<compile_context>
chip_gen: v7x
topology: tpu7x:2x2x1
jax: 0.10.0
libtpu: 0.0.40
codegen_flags: <defaults>
</compile_context>

<pallas_src>
import math

import jax
import jax.numpy as jnp
from jax.experimental import pallas as pl
from jax.experimental.pallas import tpu as pltpu

# Model config (small TPU-friendly instance of TextureNet(D=4, W=64, input_ch=3, skips=[2]))
D = 4
W = 64            # hidden width (module default is 256; code is generic in W)
INPUT_CH = 3
SKIPS = (2,)

C_PAD = 8                 # uv channels padded 3 -> 8 (sublane-aligned K for uv dots)
OUT_LANES = 128           # packed output block width (unmasked lane-dense vst)

N_UV = 2 + len(SKIPS)     # layers that read uv: linear1, each skip layer, color[0]
N_H = D + 2               # layers that read h : linear_list[0..D-1], color[0], color[2]
N_B = D + 3               # biases for layers 0..D+2 (final-layer bias packed separately)

TM_SAMPLES = 4096         # samples per grid step (sweep 2048-8192 for large N)


# ----------------------------------------------------------------------------
# Kernel (shape-agnostic in the group count G: everything comes from ref shapes)
# ----------------------------------------------------------------------------
def _texture_mlp_kernel(uv_ref, wuv_ref, wh_ref, b_ref, wf_ref, bf_ref, out_ref):
    """Full TextureNet forward for one tile of TMP packed rows (G samples/row).

    uv_ref : (TMP, G*C_PAD)        f32  packed uv, sample q*G+j in lanes [j*8, j*8+3)
    wuv_ref: (N_UV, G*C_PAD, G*W)  f32  block-diagonal uv weights (f32 precision)
    wh_ref : (N_H, G*W, G*W)       bf16 block-diagonal hidden weights
    b_ref  : (N_B, 1, G*W)         f32  biases tiled across the G lane groups
    wf_ref : (G*W, OUT_LANES)      bf16 final layer, block layout
    bf_ref : (1, OUT_LANES)        f32  final bias, block layout
    out_ref: (TMP, OUT_LANES)      bf16 sigmoid(rgb); group j in lanes [j*P, j*P+3)
    """
    uv = uv_ref[...]                                           # (TMP, G*C_PAD) f32

    def uv_dot(j):
        # f32 uv contribution (tiny K = G*C_PAD) -> keeps texture coords full precision.
        return jnp.dot(uv, wuv_ref[j], preferred_element_type=jnp.float32)

    def h_dot(h, j):
        # Dense K=N=G*W bf16 MXU pass with f32 accumulation.
        return jnp.dot(h, wh_ref[j], preferred_element_type=jnp.float32)

    # linear1: uv -> W, ReLU
    h = jax.nn.relu(uv_dot(0) + b_ref[0]).astype(jnp.bfloat16)

    # linear_list (skip layers = h-dot + uv-dot, no in-kernel concat)
    uv_idx = 1
    for i in range(D):
        y = h_dot(h, i) + b_ref[1 + i]
        if i in SKIPS:
            y = y + uv_dot(uv_idx)
            uv_idx += 1
        h = jax.nn.relu(y).astype(jnp.bfloat16)

    # color_linear[0]: cat([uv, h]) -> W, ReLU
    y = h_dot(h, D) + uv_dot(uv_idx) + b_ref[D + 1]
    h = jax.nn.relu(y).astype(jnp.bfloat16)

    # color_linear[2]: W -> W//2, ReLU (output columns zero-padded to W per group)
    h = jax.nn.relu(h_dot(h, D + 1) + b_ref[D + 2]).astype(jnp.bfloat16)

    # color_linear[4]: W//2 -> 3, Sigmoid; lane-dense bf16 store
    logits = jnp.dot(h, wf_ref[...], preferred_element_type=jnp.float32) + bf_ref[...]
    out_ref[...] = jax.nn.sigmoid(logits).astype(jnp.bfloat16)


# ----------------------------------------------------------------------------
# Parameter construction / packing
# ----------------------------------------------------------------------------
def _init_linear(key, fan_in, fan_out):
    """Deterministic nn.Linear-style init (uniform +/- 1/sqrt(fan_in))."""
    k_w, k_b = jax.random.split(key)
    bound = 1.0 / math.sqrt(fan_in)
    w = jax.random.uniform(k_w, (fan_in, fan_out), jnp.float32, -bound, bound)
    b = jax.random.uniform(k_b, (1, fan_out), jnp.float32, -bound, bound)
    return w, b


def init_texture_net_layers(key):
    """List of (w, b) in forward order, unpadded (used by packer and reference)."""
    keys = iter(jax.random.split(key, D + 4))
    layers = [_init_linear(next(keys), INPUT_CH, W)]
    for i in range(D):
        fan_in = INPUT_CH + W if i in SKIPS else W
        layers.append(_init_linear(next(keys), fan_in, W))
    layers.append(_init_linear(next(keys), INPUT_CH + W, W))      # color[0]
    layers.append(_init_linear(next(keys), W, W // 2))            # color[2]
    layers.append(_init_linear(next(keys), W // 2, 3))            # color[4]
    return layers


def _block_diag(w, g):
    """Tile (kin, kout) -> block-diagonal (g*kin, g*kout)."""
    kin, kout = w.shape
    out = jnp.zeros((g * kin, g * kout), w.dtype)
    for j in range(g):
        out = out.at[j * kin:(j + 1) * kin, j * kout:(j + 1) * kout].set(w)
    return out


def pack_params(layers, g):
    """Pack the unpadded layers into the block-diagonal slabs the kernel uses.

    Concat-skip layers in torch take cat([uv, h]), so weight rows are
    [uv-part (INPUT_CH rows), h-part (W rows)]; those two parts are split into
    the f32 uv slab and the bf16 h slab respectively.
    """
    assert OUT_LANES % g == 0
    P = OUT_LANES // g
    assert P >= 3

    w0, b0 = layers[0]
    hidden = layers[1:1 + D]
    wc0, bc0 = layers[1 + D]
    wc2, bc2 = layers[2 + D]
    wc4, bc4 = layers[3 + D]

    def pad_uv_rows(w):  # (INPUT_CH, W) -> (C_PAD, W)
        return jnp.zeros((C_PAD, W), jnp.float32).at[:INPUT_CH].set(w)

    # uv weights (f32), forward order: linear1, each skip layer, color[0]
    uv_ws = [pad_uv_rows(w0)]
    for i in range(D):
        if i in SKIPS:
            uv_ws.append(pad_uv_rows(hidden[i][0][:INPUT_CH]))
    uv_ws.append(pad_uv_rows(wc0[:INPUT_CH]))
    wuv = jnp.stack([_block_diag(w, g) for w in uv_ws])            # (N_UV, g*C_PAD, g*W) f32

    # h weights (bf16), forward order: linear_list h-parts, color[0] h-part, color[2]
    h_ws = []
    for i in range(D):
        w = hidden[i][0]
        h_ws.append(w[INPUT_CH:] if i in SKIPS else w)             # (W, W)
    h_ws.append(wc0[INPUT_CH:])                                    # (W, W)
    h_ws.append(jnp.zeros((W, W), jnp.float32).at[:, :W // 2].set(wc2))
    wh = jnp.stack([_block_diag(w, g) for w in h_ws]).astype(jnp.bfloat16)

    # biases (f32) for layers 0..D+2, tiled across the g lane groups
    bs = [b0] + [hidden[i][1] for i in range(D)] + [
        bc0, jnp.zeros((1, W), jnp.float32).at[:, :W // 2].set(bc2)]
    b = jnp.stack([jnp.tile(bi, (1, g)) for bi in bs])             # (N_B, 1, g*W)

    # final layer (W//2 -> 3): group j uses rows [j*W, j*W+W//2), lanes [j*P, j*P+3)
    wf = jnp.zeros((g * W, OUT_LANES), jnp.float32)
    bf = jnp.zeros((1, OUT_LANES), jnp.float32)
    for j in range(g):
        wf = wf.at[j * W:j * W + W // 2, j * P:j * P + 3].set(wc4)
        bf = bf.at[:, j * P:j * P + 3].set(bc4)

    return wuv, wh, b, wf.astype(jnp.bfloat16), bf


def pick_group_count():
    """G lane-packed sample groups: 2 fills a 128-wide MXU (v5e and older),
    4 fills the 256-wide array on v6e/v7x."""
    try:
        kind = jax.devices()[0].device_kind.lower()
    except Exception:
        return 2
    if any(tag in kind for tag in ("v2", "v3", "v4", "v5")):
        return 2
    return 4


# ----------------------------------------------------------------------------
# Wrapper
# ----------------------------------------------------------------------------
def texture_net_forward(uv, packed, g, tm_samples=TM_SAMPLES):
    """uv: (N, INPUT_CH) float32 (any N). Returns (N, 3) rgb float32."""
    wuv, wh, b, wf, bf = packed
    n = uv.shape[0]
    assert uv.shape[1] == INPUT_CH
    P = OUT_LANES // g

    unit = 8 * g  # smallest sample tile: 8 sublanes * g lane groups
    # Cap the tile for small N (limit padding waste) and keep >= 2 grid steps
    # whenever possible so v7x's two TensorCores both get work.
    cap = max(unit, pl.cdiv(n, 2 * unit) * unit)
    tm = max(unit, (min(tm_samples, cap) // unit) * unit)
    n_pad = pl.cdiv(n, tm) * tm
    tmp = tm // g                       # packed rows per grid step
    grid = (n_pad // tm,)

    # Raw f32 uv, padded to C_PAD lanes and packed g samples per row:
    # sample q*g + j lives at packed row q, lanes [j*C_PAD, (j+1)*C_PAD).
    uv_pad = jnp.zeros((n_pad, C_PAD), jnp.float32).at[:n, :INPUT_CH].set(
        uv.astype(jnp.float32))
    uv_packed = uv_pad.reshape(n_pad // g, g * C_PAD)

    out = pl.pallas_call(
        _texture_mlp_kernel,
        out_shape=jax.ShapeDtypeStruct((n_pad // g, OUT_LANES), jnp.bfloat16),
        grid_spec=pltpu.PrefetchScalarGridSpec(
            num_scalar_prefetch=0,
            grid=grid,
            in_specs=[
                pl.BlockSpec((tmp, g * C_PAD), lambda i: (i, 0)),
                pl.BlockSpec(wuv.shape, lambda i: (0, 0, 0)),
                pl.BlockSpec(wh.shape, lambda i: (0, 0, 0)),
                pl.BlockSpec(b.shape, lambda i: (0, 0, 0)),
                pl.BlockSpec(wf.shape, lambda i: (0, 0)),
                pl.BlockSpec(bf.shape, lambda i: (0, 0)),
            ],
            out_specs=pl.BlockSpec((tmp, OUT_LANES), lambda i: (i, 0)),
        ),
        compiler_params=pltpu.CompilerParams(
            dimension_semantics=("parallel",),
        ),
    )(uv_packed, wuv, wh, b, wf, bf)

    # De-interleave the packed output: (n_pad//g, 128) -> (n_pad//g, g, P) -> (n_pad, 3).
    # Lanes [3:P) per group and the padded rows hold garbage by design; the
    # slice below must always be applied before anything consumes the buffer.
    rgb = out.reshape(n_pad // g, g, P)[:, :, :3].reshape(n_pad, 3)[:n]
    return rgb.astype(jnp.float32)


# ----------------------------------------------------------------------------
# Plain-JAX f32 reference (matches the PyTorch forward)
# ----------------------------------------------------------------------------
def texture_net_reference(uv, layers):
    it = iter(layers)
    w, b = next(it)
    h = jax.nn.relu(uv @ w + b)
    for i in range(D):
        w, b = next(it)
        if i in SKIPS:
            h = jnp.concatenate([uv, h], axis=-1)
        h = jax.nn.relu(h @ w + b)
    w, b = next(it)
    h = jnp.concatenate([uv, h], axis=-1)
    h = jax.nn.relu(h @ w + b)
    w, b = next(it)
    h = jax.nn.relu(h @ w + b)
    w, b = next(it)
    return jax.nn.sigmoid(h @ w + b)


# TODO(synk): the uvmap / F.grid_sample path (sample_uvmap) is inactive when
# uvmap is None (as in __init__) and is not implemented here.

if __name__ == "__main__":
    key = jax.random.PRNGKey(0)
    k_uv, k_params = jax.random.split(key)

    N = 2500  # deliberately not a multiple of the tile to exercise ragged handling
    uv = jax.random.uniform(k_uv, (N, INPUT_CH), jnp.float32, -1.0, 1.0)

    layers = init_texture_net_layers(k_params)
    g = pick_group_count()
    packed = pack_params(layers, g)

    rgb = texture_net_forward(uv, packed, g=g)
    rgb = jax.block_until_ready(rgb)
    assert rgb.shape == (N, 3)

    ref = texture_net_reference(uv, layers)
    err = jnp.abs(rgb - ref)
    max_err = float(jnp.max(err))
    mean_err = float(jnp.mean(err))
    # bf16 hidden activations + bf16 output vs f32 reference (uv stays f32).
    assert max_err < 3e-2, f"max abs err {max_err}"
    assert mean_err < 5e-3, f"mean abs err {mean_err}"

    print("KERNEL_OK")
</pallas_src>

<mosaic_0001>
module attributes {stable_mosaic.version = 11 : i64} {
  func.func @_texture_mlp_kernel(%arg0: i32, %arg1: memref<320x32xf32, #tpu.memory_space<vmem>>, %arg2: memref<3x32x256xf32, #tpu.memory_space<vmem>>, %arg3: memref<6x256x256xbf16, #tpu.memory_space<vmem>>, %arg4: memref<7x1x256xf32, #tpu.memory_space<vmem>>, %arg5: memref<256x128xbf16, #tpu.memory_space<vmem>>, %arg6: memref<1x128xf32, #tpu.memory_space<vmem>>, %arg7: memref<320x128xbf16, #tpu.memory_space<vmem>>) attributes {dimension_semantics = [#tpu.dimension_semantics<parallel>], iteration_bounds = array<i64: 2>, scalar_prefetch = 0 : i64, scratch_operands = 0 : i64, tpu.core_type = #tpu.core_type<tc>, window_params = [{transform_indices = @transform_0, window_bounds = array<i64: 320, 32>}, {pipeline_mode = #tpu.pipeline_mode<synchronous>, transform_indices = @transform_1, window_bounds = array<i64: 3, 32, 256>}, {pipeline_mode = #tpu.pipeline_mode<synchronous>, transform_indices = @transform_2, window_bounds = array<i64: 6, 256, 256>}, {pipeline_mode = #tpu.pipeline_mode<synchronous>, transform_indices = @transform_3, window_bounds = array<i64: 7, 1, 256>}, {pipeline_mode = #tpu.pipeline_mode<synchronous>, transform_indices = @transform_4, window_bounds = array<i64: 256, 128>}, {pipeline_mode = #tpu.pipeline_mode<synchronous>, transform_indices = @transform_5, window_bounds = array<i64: 1, 128>}, {transform_indices = @transform_6, window_bounds = array<i64: 320, 128>}]} {
    %c0 = arith.constant 0 : index
    %c0_0 = arith.constant 0 : index
    %0 = vector.load %arg1[%c0, %c0_0] : memref<320x32xf32, #tpu.memory_space<vmem>>, vector<320x32xf32>
    %c0_1 = arith.constant 0 : index
    %c0_2 = arith.constant 0 : index
    %c0_3 = arith.constant 0 : index
    %1 = vector.load %arg2[%c0_1, %c0_2, %c0_3] : memref<3x32x256xf32, #tpu.memory_space<vmem>>, vector<1x32x256xf32>
    %2 = vector.shape_cast %1 : vector<1x32x256xf32> to vector<32x256xf32>
    %cst = arith.constant dense<0.000000e+00> : vector<320x256xf32>
    %3 = tpu.matmul %0, %2, %cst {dimension_numbers = #tpu.dot_dimension_numbers<[1], [0], [0], [1], [0, 0, 1, 1], [], []>} : vector<320x32xf32>, vector<32x256xf32>, vector<320x256xf32> -> vector<320x256xf32>
    %c0_4 = arith.constant 0 : index
    %c0_5 = arith.constant 0 : index
    %c0_6 = arith.constant 0 : index
    %4 = vector.load %arg4[%c0_4, %c0_5, %c0_6] : memref<7x1x256xf32, #tpu.memory_space<vmem>>, vector<1x1x256xf32>
    %5 = vector.shape_cast %4 : vector<1x1x256xf32> to vector<1x256xf32>
    %6 = vector.broadcast %5 : vector<1x256xf32> to vector<320x256xf32>
    %7 = arith.addf %3, %6 : vector<320x256xf32>
    %cst_7 = arith.constant 0.000000e+00 : f32
    %8 = vector.broadcast %cst_7 : f32 to vector<320x256xf32>
    %9 = arith.maximumf %7, %8 : vector<320x256xf32>
    %10 = arith.truncf %9 : vector<320x256xf32> to vector<320x256xbf16>
    %c0_8 = arith.constant 0 : index
    %c0_9 = arith.constant 0 : index
    %c0_10 = arith.constant 0 : index
    %11 = vector.load %arg3[%c0_8, %c0_9, %c0_10] : memref<6x256x256xbf16, #tpu.memory_space<vmem>>, vector<1x256x256xbf16>
    %12 = vector.shape_cast %11 : vector<1x256x256xbf16> to vector<256x256xbf16>
    %cst_11 = arith.constant dense<0.000000e+00> : vector<320x256xf32>
    %13 = tpu.matmul %10, %12, %cst_11 {dimension_numbers = #tpu.dot_dimension_numbers<[1], [0], [0], [1], [0, 0, 1, 1], [], []>} : vector<320x256xbf16>, vector<256x256xbf16>, vector<320x256xf32> -> vector<320x256xf32>
    %c1 = arith.constant 1 : index
    %c0_12 = arith.constant 0 : index
    %c0_13 = arith.constant 0 : index
    %14 = vector.load %arg4[%c1, %c0_12, %c0_13] : memref<7x1x256xf32, #tpu.memory_space<vmem>>, vector<1x1x256xf32>
    %15 = vector.shape_cast %14 : vector<1x1x256xf32> to vector<1x256xf32>
    %16 = vector.broadcast %15 : vector<1x256xf32> to vector<320x256xf32>
    %17 = arith.addf %13, %16 : vector<320x256xf32>
    %cst_14 = arith.constant 0.000000e+00 : f32
    %18 = vector.broadcast %cst_14 : f32 to vector<320x256xf32>
    %19 = arith.maximumf %17, %18 : vector<320x256xf32>
    %20 = arith.truncf %19 : vector<320x256xf32> to vector<320x256xbf16>
    %c1_15 = arith.constant 1 : index
    %c0_16 = arith.constant 0 : index
    %c0_17 = arith.constant 0 : index
    %21 = vector.load %arg3[%c1_15, %c0_16, %c0_17] : memref<6x256x256xbf16, #tpu.memory_space<vmem>>, vector<1x256x256xbf16>
    %22 = vector.shape_cast %21 : vector<1x256x256xbf16> to vector<256x256xbf16>
    %cst_18 = arith.constant dense<0.000000e+00> : vector<320x256xf32>
    %23 = tpu.matmul %20, %22, %cst_18 {dimension_numbers = #tpu.dot_dimension_numbers<[1], [0], [0], [1], [0, 0, 1, 1], [], []>} : vector<320x256xbf16>, vector<256x256xbf16>, vector<320x256xf32> -> vector<320x256xf32>
    %c2 = arith.constant 2 : index
    %c0_19 = arith.constant 0 : index
    %c0_20 = arith.constant 0 : index
    %24 = vector.load %arg4[%c2, %c0_19, %c0_20] : memref<7x1x256xf32, #tpu.memory_space<vmem>>, vector<1x1x256xf32>
    %25 = vector.shape_cast %24 : vector<1x1x256xf32> to vector<1x256xf32>
    %26 = vector.broadcast %25 : vector<1x256xf32> to vector<320x256xf32>
    %27 = arith.addf %23, %26 : vector<320x256xf32>
    %cst_21 = arith.constant 0.000000e+00 : f32
    %28 = vector.broadcast %cst_21 : f32 to vector<320x256xf32>
    %29 = arith.maximumf %27, %28 : vector<320x256xf32>
    %30 = arith.truncf %29 : vector<320x256xf32> to vector<320x256xbf16>
    %c2_22 = arith.constant 2 : index
    %c0_23 = arith.constant 0 : index
    %c0_24 = arith.constant 0 : index
    %31 = vector.load %arg3[%c2_22, %c0_23, %c0_24] : memref<6x256x256xbf16, #tpu.memory_space<vmem>>, vector<1x256x256xbf16>
    %32 = vector.shape_cast %31 : vector<1x256x256xbf16> to vector<256x256xbf16>
    %cst_25 = arith.constant dense<0.000000e+00> : vector<320x256xf32>
    %33 = tpu.matmul %30, %32, %cst_25 {dimension_numbers = #tpu.dot_dimension_numbers<[1], [0], [0], [1], [0, 0, 1, 1], [], []>} : vector<320x256xbf16>, vector<256x256xbf16>, vector<320x256xf32> -> vector<320x256xf32>
    %c3 = arith.constant 3 : index
    %c0_26 = arith.constant 0 : index
    %c0_27 = arith.constant 0 : index
    %34 = vector.load %arg4[%c3, %c0_26, %c0_27] : memref<7x1x256xf32, #tpu.memory_space<vmem>>, vector<1x1x256xf32>
    %35 = vector.shape_cast %34 : vector<1x1x256xf32> to vector<1x256xf32>
    %36 = vector.broadcast %35 : vector<1x256xf32> to vector<320x256xf32>
    %37 = arith.addf %33, %36 : vector<320x256xf32>
    %c1_28 = arith.constant 1 : index
    %c0_29 = arith.constant 0 : index
    %c0_30 = arith.constant 0 : index
    %38 = vector.load %arg2[%c1_28, %c0_29, %c0_30] : memref<3x32x256xf32, #tpu.memory_space<vmem>>, vector<1x32x256xf32>
    %39 = vector.shape_cast %38 : vector<1x32x256xf32> to vector<32x256xf32>
    %cst_31 = arith.constant dense<0.000000e+00> : vector<320x256xf32>
    %40 = tpu.matmul %0, %39, %cst_31 {dimension_numbers = #tpu.dot_dimension_numbers<[1], [0], [0], [1], [0, 0, 1, 1], [], []>} : vector<320x32xf32>, vector<32x256xf32>, vector<320x256xf32> -> vector<320x256xf32>
    %41 = arith.addf %37, %40 : vector<320x256xf32>
    %cst_32 = arith.constant 0.000000e+00 : f32
    %42 = vector.broadcast %cst_32 : f32 to vector<320x256xf32>
    %43 = arith.maximumf %41, %42 : vector<320x256xf32>
    %44 = arith.truncf %43 : vector<320x256xf32> to vector<320x256xbf16>
    %c3_33 = arith.constant 3 : index
    %c0_34 = arith.constant 0 : index
    %c0_35 = arith.constant 0 : index
    %45 = vector.load %arg3[%c3_33, %c0_34, %c0_35] : memref<6x256x256xbf16, #tpu.memory_space<vmem>>, vector<1x256x256xbf16>
    %46 = vector.shape_cast %45 : vector<1x256x256xbf16> to vector<256x256xbf16>
    %cst_36 = arith.constant dense<0.000000e+00> : vector<320x256xf32>
    %47 = tpu.matmul %44, %46, %cst_36 {dimension_numbers = #tpu.dot_dimension_numbers<[1], [0], [0], [1], [0, 0, 1, 1], [], []>} : vector<320x256xbf16>, vector<256x256xbf16>, vector<320x256xf32> -> vector<320x256xf32>
    %c4 = arith.constant 4 : index
    %c0_37 = arith.constant 0 : index
    %c0_38 = arith.constant 0 : index
    %48 = vector.load %arg4[%c4, %c0_37, %c0_38] : memref<7x1x256xf32, #tpu.memory_space<vmem>>, vector<1x1x256xf32>
    %49 = vector.shape_cast %48 : vector<1x1x256xf32> to vector<1x256xf32>
    %50 = vector.broadcast %49 : vector<1x256xf32> to vector<320x256xf32>
    %51 = arith.addf %47, %50 : vector<320x256xf32>
    %cst_39 = arith.constant 0.000000e+00 : f32
    %52 = vector.broadcast %cst_39 : f32 to vector<320x256xf32>
    %53 = arith.maximumf %51, %52 : vector<320x256xf32>
    %54 = arith.truncf %53 : vector<320x256xf32> to vector<320x256xbf16>
    %c4_40 = arith.constant 4 : index
    %c0_41 = arith.constant 0 : index
    %c0_42 = arith.constant 0 : index
    %55 = vector.load %arg3[%c4_40, %c0_41, %c0_42] : memref<6x256x256xbf16, #tpu.memory_space<vmem>>, vector<1x256x256xbf16>
    %56 = vector.shape_cast %55 : vector<1x256x256xbf16> to vector<256x256xbf16>
    %cst_43 = arith.constant dense<0.000000e+00> : vector<320x256xf32>
    %57 = tpu.matmul %54, %56, %cst_43 {dimension_numbers = #tpu.dot_dimension_numbers<[1], [0], [0], [1], [0, 0, 1, 1], [], []>} : vector<320x256xbf16>, vector<256x256xbf16>, vector<320x256xf32> -> vector<320x256xf32>
    %c2_44 = arith.constant 2 : index
    %c0_45 = arith.constant 0 : index
    %c0_46 = arith.constant 0 : index
    %58 = vector.load %arg2[%c2_44, %c0_45, %c0_46] : memref<3x32x256xf32, #tpu.memory_space<vmem>>, vector<1x32x256xf32>
    %59 = vector.shape_cast %58 : vector<1x32x256xf32> to vector<32x256xf32>
    %cst_47 = arith.constant dense<0.000000e+00> : vector<320x256xf32>
    %60 = tpu.matmul %0, %59, %cst_47 {dimension_numbers = #tpu.dot_dimension_numbers<[1], [0], [0], [1], [0, 0, 1, 1], [], []>} : vector<320x32xf32>, vector<32x256xf32>, vector<320x256xf32> -> vector<320x256xf32>
    %61 = arith.addf %57, %60 : vector<320x256xf32>
    %c5 = arith.constant 5 : index
    %c0_48 = arith.constant 0 : index
    %c0_49 = arith.constant 0 : index
    %62 = vector.load %arg4[%c5, %c0_48, %c0_49] : memref<7x1x256xf32, #tpu.memory_space<vmem>>, vector<1x1x256xf32>
    %63 = vector.shape_cast %62 : vector<1x1x256xf32> to vector<1x256xf32>
    %64 = vector.broadcast %63 : vector<1x256xf32> to vector<320x256xf32>
    %65 = arith.addf %61, %64 : vector<320x256xf32>
    %cst_50 = arith.constant 0.000000e+00 : f32
    %66 = vector.broadcast %cst_50 : f32 to vector<320x256xf32>
    %67 = arith.maximumf %65, %66 : vector<320x256xf32>
    %68 = arith.truncf %67 : vector<320x256xf32> to vector<320x256xbf16>
    %c5_51 = arith.constant 5 : index
    %c0_52 = arith.constant 0 : index
    %c0_53 = arith.constant 0 : index
    %69 = vector.load %arg3[%c5_51, %c0_52, %c0_53] : memref<6x256x256xbf16, #tpu.memory_space<vmem>>, vector<1x256x256xbf16>
    %70 = vector.shape_cast %69 : vector<1x256x256xbf16> to vector<256x256xbf16>
    %cst_54 = arith.constant dense<0.000000e+00> : vector<320x256xf32>
    %71 = tpu.matmul %68, %70, %cst_54 {dimension_numbers = #tpu.dot_dimension_numbers<[1], [0], [0], [1], [0, 0, 1, 1], [], []>} : vector<320x256xbf16>, vector<256x256xbf16>, vector<320x256xf32> -> vector<320x256xf32>
    %c6 = arith.constant 6 : index
    %c0_55 = arith.constant 0 : index
    %c0_56 = arith.constant 0 : index
    %72 = vector.load %arg4[%c6, %c0_55, %c0_56] : memref<7x1x256xf32, #tpu.memory_space<vmem>>, vector<1x1x256xf32>
    %73 = vector.shape_cast %72 : vector<1x1x256xf32> to vector<1x256xf32>
    %74 = vector.broadcast %73 : vector<1x256xf32> to vector<320x256xf32>
    %75 = arith.addf %71, %74 : vector<320x256xf32>
    %cst_57 = arith.constant 0.000000e+00 : f32
    %76 = vector.broadcast %cst_57 : f32 to vector<320x256xf32>
    %77 = arith.maximumf %75, %76 : vector<320x256xf32>
    %78 = arith.truncf %77 : vector<320x256xf32> to vector<320x256xbf16>
    %c0_58 = arith.constant 0 : index
    %c0_59 = arith.constant 0 : index
    %79 = vector.load %arg5[%c0_58, %c0_59] : memref<256x128xbf16, #tpu.memory_space<vmem>>, vector<256x128xbf16>
    %cst_60 = arith.constant dense<0.000000e+00> : vector<320x128xf32>
    %80 = tpu.matmul %78, %79, %cst_60 {dimension_numbers = #tpu.dot_dimension_numbers<[1], [0], [0], [1], [0, 0, 1, 1], [], []>} : vector<320x256xbf16>, vector<256x128xbf16>, vector<320x128xf32> -> vector<320x128xf32>
    %c0_61 = arith.constant 0 : index
    %c0_62 = arith.constant 0 : index
    %81 = vector.load %arg6[%c0_61, %c0_62] : memref<1x128xf32, #tpu.memory_space<vmem>>, vector<1x128xf32>
    %82 = vector.broadcast %81 : vector<1x128xf32> to vector<320x128xf32>
    %83 = arith.addf %80, %82 : vector<320x128xf32>
    %84 = arith.negf %83 : vector<320x128xf32>
    %85 = math.exp %84 : vector<320x128xf32>
    %cst_63 = arith.constant 1.000000e+00 : f32
    %86 = vector.broadcast %cst_63 : f32 to vector<320x128xf32>
    %87 = arith.addf %86, %85 : vector<320x128xf32>
    %88 = arith.divf %86, %87 : vector<320x128xf32>
    %89 = arith.truncf %88 : vector<320x128xf32> to vector<320x128xbf16>
    %c0_64 = arith.constant 0 : index
    %c0_65 = arith.constant 0 : index
    %90 = vector.load %arg7[%c0_64, %c0_65] : memref<320x128xbf16, #tpu.memory_space<vmem>>, vector<320x128xbf16>
    tpu.vector_store %arg7[%c0_64, %c0_65], %89 {strides = array<i32>} : memref<320x128xbf16, #tpu.memory_space<vmem>>, vector<320x128xbf16>,
    return
  }
  func.func @transform_0(%arg0: i32) -> (i32, i32) {
    %c0_i32 = arith.constant 0 : i32
    %c0_i32_0 = arith.constant 0 : i32
    return %arg0, %c0_i32 : i32, i32
  }
  func.func @transform_1(%arg0: i32) -> (i32, i32, i32) {
    %c0_i32 = arith.constant 0 : i32
    %c0_i32_0 = arith.constant 0 : i32
    %c0_i32_1 = arith.constant 0 : i32
    %c0_i32_2 = arith.constant 0 : i32
    return %c0_i32, %c0_i32_0, %c0_i32_1 : i32, i32, i32
  }
  func.func @transform_2(%arg0: i32) -> (i32, i32, i32) {
    %c0_i32 = arith.constant 0 : i32
    %c0_i32_0 = arith.constant 0 : i32
    %c0_i32_1 = arith.constant 0 : i32
    %c0_i32_2 = arith.constant 0 : i32
    return %c0_i32, %c0_i32_0, %c0_i32_1 : i32, i32, i32
  }
  func.func @transform_3(%arg0: i32) -> (i32, i32, i32) {
    %c0_i32 = arith.constant 0 : i32
    %c0_i32_0 = arith.constant 0 : i32
    %c0_i32_1 = arith.constant 0 : i32
    %c0_i32_2 = arith.constant 0 : i32
    return %c0_i32, %c0_i32_0, %c0_i32_1 : i32, i32, i32
  }
  func.func @transform_4(%arg0: i32) -> (i32, i32) {
    %c0_i32 = arith.constant 0 : i32
    %c0_i32_0 = arith.constant 0 : i32
    %c0_i32_1 = arith.constant 0 : i32
    return %c0_i32, %c0_i32_0 : i32, i32
  }
  func.func @transform_5(%arg0: i32) -> (i32, i32) {
    %c0_i32 = arith.constant 0 : i32
    %c0_i32_0 = arith.constant 0 : i32
    %c0_i32_1 = arith.constant 0 : i32
    return %c0_i32, %c0_i32_0 : i32, i32
  }
  func.func @transform_6(%arg0: i32) -> (i32, i32) {
    %c0_i32 = arith.constant 0 : i32
    %c0_i32_0 = arith.constant 0 : i32
    return %arg0, %c0_i32 : i32, i32
  }
}

</mosaic_0001>

<bundles_post_ra>
// kernel: tpu_custom_call.1
= control target key start
LH: loop header
LB: loop body
LE: loop exit
PB: predicated region body
PF: predicated region fallthrough
CT: control target
= control target key end

     0   :  { %11 = vsyncpa [#allocation3], 0  ;;  %s9109_s0 = inlined_call_operand.vmem [shape: f32[640,32], index: 0, kind: input, shape index: {}]   ;;  %s9110_s1 = inlined_call_operand.vmem [shape: f32[3,32,256], index: 1, kind: input, shape index: {}]   ;;  %s9111_s2 = inlined_call_operand.hbm [shape: bf16[6,256,256], index: 2, kind: input, shape index: {}]   ;;  %s9112_s3 = inlined_call_operand.vmem [shape: f32[7,1,256], index: 3, kind: input, shape index: {}]   ;;  %s9113_s4 = inlined_call_operand.vmem [shape: bf16[256,128], index: 4, kind: input, shape index: {}]   ;;  %s9114_s5 = inlined_call_operand.vmem [shape: f32[1,128], index: 5, kind: input, shape index: {}]   ;;  %s9115_s6 = inlined_call_operand.hbm [shape: bf16[640,128], index: 6, kind: output, shape index: {}]  }
   0x1   :  { %12 = vsyncpa [#allocation4], 0 }
   0x2   :  { %14 = vsyncpa [#allocation4 + $0x1], 0  ;;  %s7269_s21 = smov 0   ;;  %s7271_s22 = smov 0  }
   0x3   :  { %s7273_s23 = smov 0   ;;  %s7275_s24 = smov 0  }
   0x4 LB: > { %s7290_s25 = sadd.s32 4294967295, %s7224_s24   ;;  %s5872_s26 = sadd.s32 4294967294, %s7224_s24   ;;  %s7224_s24 = sphi %s7275_s24, %s9186_s24   ;;  %s7220_s23 = sphi %s7273_s23, %s9185_s23   ;;  %s7216_s22 = sphi %s7271_s22, %s9184_s22   ;;  %s7212_s21 = sphi %s7269_s21, %s9183_s21  }
   0x5   : > { %s7294_s27 = sadd.s32 1, %s7224_s24   ;;  %s158_s28 = sadd.s32 1, %s7220_s23 }
   0x6   : > { %s155_s29 = ssub.s32 %s7224_s24, %s7294_s27  ;;  %p168_p0 = scmp.ne.s32.totalorder %s7220_s23, %s7216_s22 }
   0x7   : > { %p156_p1 = scmp.eq.s32.totalorder %s155_s29, 0  ;;  %p169_p2 = scmp.eq.s32.totalorder %s7290_s25, 1 }
   0x8   : > { %p174_p3 = scmp.ne.s32.totalorder %s7216_s22, %s7212_s21  ;;  %p175_p4 = scmp.eq.s32.totalorder %s5872_s26, 1 }
   0x9   : > { %s7305_s30 = scalar_select %p156_p1, %s7220_s23, %s158_s28  }
   0xa   : > { %p7307_p5 = por %p169_p2, %p168_p0  ;;  %p7311_p6 = por %p175_p4, %p174_p3 }
   0xb   : > { %p5873_p7 = scmp.ge.s32.totalorder %s7224_s24, 1  ;;  %p182_p8 = scmp.lt.s32.totalorder %s7224_s24, 3 }
   0xc   : > { %s9123_s7 = scalar_select %p7307_p5, 1, 0 }
   0xd   : > { %s9124_s8 = scalar_select %p7311_p6, 1, 0 }
   0xe   : > { %p9116_p9 = scmp.eq.s32.totalorder %s7290_s25, 0  ;;  %p7318_p10 = pnand %p5873_p7, %p182_p8 }
   0xf   : > { %s7226_s10 = smov [#allocation2]   ;;  %s7130_s15 = scalar_lea.hbm %s9111_s2, 24576 }
  0x10   : > { %s9125_s9 = scalar_select %p7318_p10, 1, 0 }
  0x11   : > { %s197_s11 = sshll.u32 %s7226_s10, 4  ;;  %p6536_p11 = pneg %p7318_p10  ;;  %s198_s11 = int_to_ptr.vmem [resolvable:$true] %s197_s11 }
  0x12   : > { %p7131_p13 = scmp.ne.s32.totalorder %s9111_s2, %s7130_s15  ;;  %p7137_p3 = scmp.lt.u32.totalorder %s7130_s15, %s9111_s2 }
  0x13   : > { %p7326_p12 = pnand %p9116_p9, %p6536_p11 }
  0x15   : > { %p7132_p0 = pneg %p7326_p12 }
  0x17   : > { %p7133_p1 = pnand %p7132_p0, %p7131_p13 }
  0x19   : > { %p7134_p2 = pneg %p7133_p1 }
  0x1b   : > { %p7139_p4 = pnand %p7137_p3, %p7134_p2 }
  0x1d   : > { %7142 = shalt.err (!%p7139_p4)
}
  0x1e   : > { %s7143_s20 = scalar_lea.vmem %s198_s11, 24576  ;;  %p7151_p9 = scmp.lt.s32.totalorder %s198_s11, %s198_s11 }
  0x1f   : > { %p7144_p7 = scmp.ne.s32.totalorder %s198_s11, %s7143_s20  ;;  %p7152_p6 = scmp.lt.s32.totalorder %s7143_s20, %s7143_s20 }
  0x21   : > { %p7146_p8 = pnand %p7144_p7, %p7132_p0  ;;  %p7153_p5 = por %p7152_p6, %p7151_p9 }
  0x23   : > { %p7147_p11 = pneg %p7146_p8 }
  0x25   : > { %p7154_p10 = pnand %p7153_p5, %p7147_p11 }
  0x27   : > { %7157 = shalt.err (!%p7154_p10)
}
  0x28   : > { %s7227_s26 = smov 128   ;;  %s7228_s28 = smov 8  }
  0x29   : > { %6539 = dma.hbm_to_vmem [thread:$0]  (!%p7326_p12), %s9111_s2, 24576, %s198_s11, [#allocation3], %s7227_s26, %s7227_s26, %s7228_s28  }
  0x2a   : > { %p9127_p13 = scmp.ne.s32.totalorder %s9125_s9, 0 }
  0x2c   : > { %231 = sbr.rel (%p9127_p13) target bundleno = 2060 (0x80c), region = 44 }
  0x33   : > { %p9128_p1 = scmp.eq.s32.totalorder %s7290_s25, 0 }
  0x35   : > { %7203 = dma.done.wait (%p9128_p1), [#allocation3], 24576   ;;  %p9129_p0 = pmov %p9128_p1 }
  0x36   : > { %s261_s13 = smul.u32 40, %s7290_s25  ;;  %v7229_v0 = vmov 0.0   ;;  %v310_v1 = vld [vmem:[%s9110_s1 + $0x8] sm:$0xff]  ;;  %v312_v2 = vld [vmem:[%s9110_s1 + $0x18] sm:$0xff]  ;;  %v309_v3 = vld [vmem:[%s9110_s1] sm:$0xff]  ;;  %vm329_vm0 = vcmask 261120  }
  0x37   : > { %7205 = vsyncadd (%p9129_p0), [#allocation3], 4294942720  ;;  %514 = vmatprep.mubr.f32.mxu0 %v7229_v0  ;;  %v6473_v4 = vpack.c.bf16 %v312_v2, %v310_v1  ;;  %v311_v5 = vld [vmem:[%s9110_s1 + $0x10] sm:$0xff]  ;;  %v314_v6 = vld [vmem:[%s9110_s1 + $0x28] sm:$0xff]  ;;  %s258_s29 = sand.u32 1, %s7216_s22   ;;  %s6353_s14 = smul.u32 2560, %s7290_s25 }
  0x38   : > { %p262_p5 = scmp.lt.s32.totalorder %s261_s13, 79  ;;  %v316_v7 = vld [vmem:[%s9110_s1 + $0x38] sm:$0xff]  ;;  %v6475_v8 = vpack.c.bf16 %v311_v5, %v309_v3  ;;  %v313_v10 = vld [vmem:[%s9110_s1 + $0x20] sm:$0xff]  ;;  %v315_v11 = vld [vmem:[%s9110_s1 + $0x30] sm:$0xff]  ;;  %s6529_s10 = smul.u32 160, %s258_s29 }
  0x39   : > { %v6477_v9 = vpack.c.bf16 %v316_v7, %v314_v6  ;;  %6474 = vmatprep.subr.bf16.mxu0 %v6473_v4  ;;  %v6479_v12 = vpack.c.bf16 %v315_v11, %v313_v10  ;;  %v6586_v20 = vld [vmem:[#allocation2 + $0x4] ss:$8 sps:$4 sm:$0xff]   ;;  %v6588_v21 = vld [vmem:[#allocation2] ss:$8 sps:$4 sm:$0xff]   ;;  %v6589_v23 = vld [vmem:[#allocation2 + $0x14] ss:$8 sps:$4 sm:$0xff]  }
  0x3a   : > { %s9188_s13 = smov (!%p262_p5, %s261_s13), 79  ;;  %6476 = vmatpush1.bf16.msra.mxu0 %v6475_v8  ;;  %1080 = vmatprep.subr.bf16.mxu1 %v6586_v20  ;;  %v6591_v24 = vld [vmem:[#allocation2 + $0x10] ss:$8 sps:$4 sm:$0xff]   ;;  %v6592_v25 = vld [vmem:[#allocation2 + $0x24] ss:$8 sps:$4 sm:$0xff]   ;;  %s9003_s12 = scalar_lea.vmem [#allocation5], %s6529_s10 }
  0x3b   : > { %s5878_s11 = sshll.u32 %s9188_s13, 3  ;;  %6478 = vmatprep.subr.bf16.mxu0 %v6477_v9  ;;  %1081 = vmatpush1.bf16.msra.mxu1 %v6588_v21  ;;  %v6594_v27 = vld [vmem:[#allocation2 + $0x20] ss:$8 sps:$4 sm:$0xff]   ;;  %v6595_v28 = vld [vmem:[#allocation2 + $0x34] ss:$8 sps:$4 sm:$0xff]   ;;  %s9068_s13 = scalar_lea.sflag [#allocation4], %s258_s29 }
  0x3c   : > { %s7381_s16 = scalar_lea.vmem %s9109_s0, %s5878_s11  ;;  %1082 = vmatprep.subr.bf16.mxu1 %v6589_v23  ;;  %v6597_v31 = vld [vmem:[#allocation2 + $0x30] ss:$8 sps:$4 sm:$0xff]   ;;  %v6598_v32 = vld [vmem:[#allocation2 + $0x44] ss:$8 sps:$4 sm:$0xff]   ;;  %v6600_v33 = vld [vmem:[#allocation2 + $0x40] ss:$8 sps:$4 sm:$0xff]  }
  0x3d   : > { %v269_v13 = vld [vmem:[%s7381_s16] sm:$0xff]  ;;  %v270_v14 = vld [vmem:[%s7381_s16 + $0x8] sm:$0xff]  ;;  %v271_v15 = vld [vmem:[%s7381_s16 + $0x10] sm:$0xff]  ;;  %s5798_s11 = sshll.u32 %s9003_s12, 4  ;;  %p9181_p9 = scmp.ne.s32.totalorder %s9123_s7, 0  ;;  %s9063_s11 = int_to_ptr.vmem [resolvable:$true] %s5798_s11 }
  0x3e   : > { %6480 = vmatpush1.bf16.msra.mxu0 %v6479_v12  ;;  %v272_v16 = vld [vmem:[%s7381_s16 + $0x18] sm:$0xff]  ;;  %v273_v17 = vld [vmem:[%s7381_s16 + $0x20] sm:$0xff]  ;;  %v274_v18 = vld [vmem:[%s7381_s16 + $0x28] sm:$0xff]  ;;  %s7158_s17 = scalar_lea.vmem %s9063_s11, 2560  ;;  %s7231_s25 = smov [#allocation5]  }
  0x3f   : > { %v275_v19 = vld [vmem:[%s7381_s16 + $0x30] sm:$0xff]  ;;  %v276_v22 = vld [vmem:[%s7381_s16 + $0x38] sm:$0xff]  ;;  %v277_v26 = vld [vmem:[%s7381_s16 + $0x40] sm:$0xff]  ;;  %1083 = vmatpush1.bf16.msra.mxu1 %v6591_v24  ;;  %p7159_p6 = scmp.ne.s32.totalorder %s9063_s11, %s7158_s17  ;;  %s7162_s18 = sshll.u32 %s7231_s25, 4  ;;  %s7163_s18 = int_to_ptr.vmem [resolvable:$false] %s7162_s18 }
  0x40   : > { %1084 = vmatprep.subr.bf16.mxu1 %v6592_v25  ;;  %v278_v29 = vld [vmem:[%s7381_s16 + $0x48] sm:$0xff]  ;;  %v279_v30 = vld [vmem:[%s7381_s16 + $0x50] sm:$0xff]  ;;  %v280_v35 = vld [vmem:[%s7381_s16 + $0x58] sm:$0xff]  ;;  %s7164_s19 = scalar_lea.vmem %s7163_s18, 5120  ;;  %p7165_p2 = scmp.lt.s32.totalorder %s9063_s11, %s7163_s18 }
  0x41   : > { %5879 = vmatmul.mubr.msk.f32.vlgmr.msra.gmra.mrb[0].mxu0 %vm329_vm0, %v269_v13  ;;  %v6601_v34 = vld [vmem:[#allocation2 + $0x54] ss:$8 sps:$4 sm:$0xff]   ;;  %v6603_v36 = vld [vmem:[#allocation2 + $0x50] ss:$8 sps:$4 sm:$0xff]   ;;  %v6604_v37 = vld [vmem:[#allocation2 + $0x64] ss:$8 sps:$4 sm:$0xff]   ;;  %p7160_p10 = pnand %p7159_p6, %p9181_p9  ;;  %p7166_p3 = scmp.lt.s32.totalorder %s7164_s19, %s7158_s17 }
  0x42   : > { %520 = vmatprep.mubr.f32.mxu0 %v7229_v0  ;;  %v281_v38 = vld [vmem:[%s7381_s16 + $0x60] sm:$0xff]  ;;  %v6607_v40 = vld [vmem:[#allocation2 + $0x74] ss:$8 sps:$4 sm:$0xff]   ;;  %v282_v41 = vld [vmem:[%s7381_s16 + $0x68] sm:$0xff] }
  0x43   : > { %1085 = vmatpush1.bf16.msra.mxu1 %v6594_v27  ;;  %v6606_v39 = vld [vmem:[#allocation2 + $0x60] ss:$8 sps:$4 sm:$0xff]   ;;  %v6609_v42 = vld [vmem:[#allocation2 + $0x70] ss:$8 sps:$4 sm:$0xff]   ;;  %v6610_v43 = vld [vmem:[#allocation2 + $0x84] ss:$8 sps:$4 sm:$0xff]   ;;  %p7161_p12 = pneg %p7160_p10  ;;  %p7167_p4 = por %p7166_p3, %p7165_p2 }
  0x44   : > { %1086 = vmatprep.subr.bf16.mxu1 %v6595_v28  ;;  %v283_v44 = vld [vmem:[%s7381_s16 + $0x70] sm:$0xff]  ;;  %v6612_v45 = vld [vmem:[#allocation2 + $0x80] ss:$8 sps:$4 sm:$0xff]   ;;  %v284_v47 = vld [vmem:[%s7381_s16 + $0x78] sm:$0xff] }
  0x45   : > { %5880 = vmatmul.mubr.msk.f32.gmra.mrb[2].mxu0 %vm329_vm0, %v270_v14  ;;  %v6613_v46 = vld [vmem:[#allocation2 + $0x94] ss:$8 sps:$4 sm:$0xff]   ;;  %v6615_v48 = vld [vmem:[#allocation2 + $0x90] ss:$8 sps:$4 sm:$0xff]   ;;  %v6616_v49 = vld [vmem:[#allocation2 + $0xa4] ss:$8 sps:$4 sm:$0xff]   ;;  %p7168_p7 = pnand %p7167_p4, %p7161_p12 }
  0x46   : > { %526 = vmatprep.mubr.f32.mxu0 %v7229_v0  ;;  %v285_v50 = vld [vmem:[%s7381_s16 + $0x80] sm:$0xff]  ;;  %v6619_v52 = vld [vmem:[#allocation2 + $0xb4] ss:$8 sps:$4 sm:$0xff]   ;;  %v286_v53 = vld [vmem:[%s7381_s16 + $0x88] sm:$0xff] }
  0x47   : > { %1087 = vmatpush1.bf16.msra.mxu1 %v6597_v31  ;;  %v6618_v51 = vld [vmem:[#allocation2 + $0xa0] ss:$8 sps:$4 sm:$0xff]   ;;  %v6621_v54 = vld [vmem:[#allocation2 + $0xb0] ss:$8 sps:$4 sm:$0xff]   ;;  %v6622_v55 = vld [vmem:[#allocation2 + $0xc4] ss:$8 sps:$4 sm:$0xff]  }
  0x48   : > { %1088 = vmatprep.subr.bf16.mxu1 %v6598_v32  ;;  %v287_v56 = vld [vmem:[%s7381_s16 + $0x90] sm:$0xff]  ;;  %v6624_v57 = vld [vmem:[#allocation2 + $0xc0] ss:$8 sps:$4 sm:$0xff]   ;;  %v288_v58 = vld [vmem:[%s7381_s16 + $0x98] sm:$0xff]  ;;  %v319_v32 = vlaneseq }
  0x49   : > { %5881 = vmatmul.mubr.msk.f32.gmra.mrb[4].mxu0 %vm329_vm0, %v271_v15  ;;  %v289_v59 = vld [vmem:[%s7381_s16 + $0xa0] sm:$0xff]  ;;  %v290_v60 = vld [vmem:[%s7381_s16 + $0xa8] sm:$0xff]  ;;  %v6625_v61 = vld [vmem:[#allocation2 + $0xd4] ss:$8 sps:$4 sm:$0xff]  }
  0x4a   : > { %532 = vmatprep.mubr.f32.mxu0 %v7229_v0  ;;  %v291_v62 = vld [vmem:[%s7381_s16 + $0xb0] sm:$0xff]  ;;  %v6628_v1 = vld [vmem:[#allocation2 + $0xe4] ss:$8 sps:$4 sm:$0xff]   ;;  %v292_v2 = vld [vmem:[%s7381_s16 + $0xb8] sm:$0xff] }
  0x4b   : > { %1089 = vmatpush1.bf16.msra.mxu1 %v6600_v33  ;;  %v6627_v63 = vld [vmem:[#allocation2 + $0xd0] ss:$8 sps:$4 sm:$0xff]   ;;  %v6630_v3 = vld [vmem:[#allocation2 + $0xe0] ss:$8 sps:$4 sm:$0xff]   ;;  %v6631_v4 = vld [vmem:[#allocation2 + $0xf4] ss:$8 sps:$4 sm:$0xff]  }
  0x4c   : > { %1090 = vmatprep.subr.bf16.mxu1 %v6601_v34  ;;  %v6633_v5 = vld [vmem:[#allocation2 + $0xf0] ss:$8 sps:$4 sm:$0xff]   ;;  %v293_v6 = vld [vmem:[%s7381_s16 + $0xc0] sm:$0xff]  ;;  %v294_v7 = vld [vmem:[%s7381_s16 + $0xc8] sm:$0xff]  ;;  %v320_v33 = vshrl.u32 %v319_v32, 7 }
  0x4d   : > { %5882 = vmatmul.mubr.msk.f32.gmra.mrb[6].mxu0 %vm329_vm0, %v272_v16  ;;  %v295_v8 = vld [vmem:[%s7381_s16 + $0xd0] sm:$0xff]  ;;  %v296_v9 = vld [vmem:[%s7381_s16 + $0xd8] sm:$0xff]  ;;  %v297_v10 = vld [vmem:[%s7381_s16 + $0xe0] sm:$0xff] }
  0x4e   : > { %538 = vmatprep.mubr.f32.mxu0 %v7229_v0  ;;  %v298_v11 = vld [vmem:[%s7381_s16 + $0xe8] sm:$0xff]  ;;  %v299_v12 = vld [vmem:[%s7381_s16 + $0xf0] sm:$0xff]  ;;  %v300_v13 = vld [vmem:[%s7381_s16 + $0xf8] sm:$0xff] }
  0x4f   : > { %1091 = vmatpush1.bf16.msra.mxu1 %v6603_v36  ;;  %v301_v14 = vld [vmem:[%s7381_s16 + $0x100] sm:$0xff]  ;;  %v302_v15 = vld [vmem:[%s7381_s16 + $0x108] sm:$0xff]  ;;  %v303_v16 = vld [vmem:[%s7381_s16 + $0x110] sm:$0xff]  ;;  %v7502_v36 = vsub.s32 0, %v320_v33 }
  0x50   : > { %1092 = vmatprep.subr.bf16.mxu1 %v6604_v37  ;;  %v307_v20 = vld [vmem:[%s7381_s16 + $0x130] sm:$0xff]  ;;  %v6634_v21 = vld [vmem:[#allocation2 + $0x100] ss:$8 sps:$4 sm:$0xff]   ;;  %v308_v23 = vld [vmem:[%s7381_s16 + $0x138] sm:$0xff]  ;;  %v7504_v37 = vsub.s32 1, %v320_v33 }
  0x51   : > { %5883 = vmatmul.mubr.msk.f32.gmra.mrb[8].mxu0 %vm329_vm0, %v273_v17  ;;  %v304_v17 = vld [vmem:[%s7381_s16 + $0x118] sm:$0xff]  ;;  %v6642_v27 = vld [vmem:[#allocation2 + $0x124] ss:$8 sps:$4 sm:$0xff]   ;;  %9130 = vst [vmem:[#allocation8_spill] sm:$0xff] %v7502_v36 }
  0x52   : > { %544 = vmatprep.mubr.f32.mxu0 %v7229_v0  ;;  %v6637_v24 = vld [vmem:[#allocation2 + $0x110] ss:$8 sps:$4 sm:$0xff]   ;;  %v6639_v25 = vld [vmem:[#allocation2 + $0x114] ss:$8 sps:$4 sm:$0xff]   ;;  %v6648_v31 = vld [vmem:[#allocation2 + $0x144] ss:$8 sps:$4 sm:$0xff]  }
  0x53   : > { %1093 = vmatpush1.bf16.msra.mxu1 %v6606_v39  ;;  %v6643_v28 = vld [vmem:[#allocation2 + $0x130] ss:$8 sps:$4 sm:$0xff]   ;;  %9131 = vst [vmem:[#allocation9_spill] sm:$0xff] %v7504_v37 }
  0x54   : > { %1094 = vmatprep.subr.bf16.mxu1 %v6607_v40  ;;  %v6649_v34 = vld [vmem:[#allocation2 + $0x150] ss:$8 sps:$4 sm:$0xff]  }
  0x55   : > { %5884 = vmatmul.mubr.msk.f32.gmra.mrb[10].mxu0 %vm329_vm0, %v274_v18  ;;  %v305_v18 = vld [vmem:[%s7381_s16 + $0x120] sm:$0xff] }
  0x56   : > { %550 = vmatprep.mubr.f32.mxu0 %v7229_v0 }
  0x57   : > { %1095 = vmatpush1.bf16.msra.mxu1 %v6609_v42  ;;  %v6652_v42 = vld [vmem:[#allocation2 + $0x160] ss:$8 sps:$4 sm:$0xff]  }
  0x58   : > { %1096 = vmatprep.subr.bf16.mxu1 %v6610_v43  ;;  %v6654_v43 = vld [vmem:[#allocation2 + $0x164] ss:$8 sps:$4 sm:$0xff]  }
  0x59   : > { %5885 = vmatmul.mubr.msk.f32.gmra.mrb[12].mxu0 %vm329_vm0, %v275_v19  ;;  %v306_v19 = vld [vmem:[%s7381_s16 + $0x128] sm:$0xff] }
  0x5a   : > { %556 = vmatprep.mubr.f32.mxu0 %v7229_v0 }
  0x5b   : > { %1097 = vmatpush1.bf16.msra.mxu1 %v6612_v45 }
  0x5c   : > { %1098 = vmatprep.subr.bf16.mxu1 %v6613_v46 }
  0x5d   : > { %5886 = vmatmul.mubr.msk.f32.gmra.mrb[14].mxu0 %vm329_vm0, %v276_v22  ;;  %v6636_v22 = vld [vmem:[#allocation2 + $0x104] ss:$8 sps:$4 sm:$0xff]  }
  0x5e   : > { %562 = vmatprep.mubr.f32.mxu0 %v7229_v0  ;;  %1639 = vmatprep.subr.bf16.mxu0 %v6636_v22 }
  0x5f   : > { %1099 = vmatpush1.bf16.msra.mxu1 %v6615_v48  ;;  %1640 = vmatpush1.bf16.msra.mxu0 %v6634_v21 }
  0x60   : > { %1100 = vmatprep.subr.bf16.mxu1 %v6616_v49  ;;  %1641 = vmatprep.subr.bf16.mxu0 %v6639_v25 }
  0x61   : > { %5887 = vmatmul.mubr.msk.f32.gmra.mrb[16].mxu0 %vm329_vm0, %v277_v26  ;;  %v6640_v26 = vld [vmem:[#allocation2 + $0x120] ss:$8 sps:$4 sm:$0xff]  }
  0x62   : > { %568 = vmatprep.mubr.f32.mxu0 %v7229_v0 }
  0x63   : > { %1101 = vmatpush1.bf16.msra.mxu1 %v6618_v51  ;;  %1642 = vmatpush1.bf16.msra.mxu0 %v6637_v24 }
  0x64   : > { %1102 = vmatprep.subr.bf16.mxu1 %v6619_v52  ;;  %1643 = vmatprep.subr.bf16.mxu0 %v6642_v27 }
  0x65   : > { %5888 = vmatmul.mubr.msk.f32.gmra.mrb[18].mxu0 %vm329_vm0, %v278_v29  ;;  %v6645_v29 = vld [vmem:[#allocation2 + $0x134] ss:$8 sps:$4 sm:$0xff]  }
  0x66   : > { %574 = vmatprep.mubr.f32.mxu0 %v7229_v0 }
  0x67   : > { %1103 = vmatpush1.bf16.msra.mxu1 %v6621_v54  ;;  %1644 = vmatpush1.bf16.msra.mxu0 %v6640_v26 }
  0x68   : > { %1104 = vmatprep.subr.bf16.mxu1 %v6622_v55  ;;  %1645 = vmatprep.subr.bf16.mxu0 %v6645_v29 }
  0x69   : > { %5889 = vmatmul.mubr.msk.f32.gmra.mrb[20].mxu0 %vm329_vm0, %v279_v30  ;;  %v6646_v30 = vld [vmem:[#allocation2 + $0x140] ss:$8 sps:$4 sm:$0xff]  }
  0x6a   : > { %580 = vmatprep.mubr.f32.mxu0 %v7229_v0 }
  0x6b   : > { %1105 = vmatpush1.bf16.msra.mxu1 %v6624_v57  ;;  %1646 = vmatpush1.bf16.msra.mxu0 %v6643_v28  ;;  %v6657_v57 = vld [vmem:[#allocation2 + $0x174] ss:$8 sps:$4 sm:$0xff]  }
  0x6c   : > { %1106 = vmatprep.subr.bf16.mxu1 %v6625_v61  ;;  %1647 = vmatprep.subr.bf16.mxu0 %v6648_v31 }
  0x6d   : > { %5890 = vmatmul.mubr.msk.f32.gmra.mrb[22].mxu0 %vm329_vm0, %v280_v35  ;;  %v6651_v35 = vld [vmem:[#allocation2 + $0x154] ss:$8 sps:$4 sm:$0xff]  }
  0x6e   : > { %586 = vmatprep.mubr.f32.mxu0 %v7229_v0 }
  0x6f   : > { %1107 = vmatpush1.bf16.msra.mxu1 %v6627_v63  ;;  %1648 = vmatpush1.bf16.msra.mxu0 %v6646_v30 }
  0x70   : > { %1108 = vmatprep.subr.bf16.mxu1 %v6628_v1  ;;  %1649 = vmatprep.subr.bf16.mxu0 %v6651_v35 }
  0x71   : > { %5891 = vmatmul.mubr.msk.f32.gmra.mrb[24].mxu0 %vm329_vm0, %v281_v38  ;;  %v317_v38 = vld [vmem:[%s9112_s3] sm:$0x3] }
  0x72   : > { %592 = vmatprep.mubr.f32.mxu0 %v7229_v0  ;;  %v7510_v39 = vrot.slane %v317_v38, %v7502_v36  ;;  %v7513_v40 = vrot.slane %v317_v38, %v7504_v37 }
  0x73   : > { %1109 = vmatpush1.bf16.msra.mxu1 %v6630_v3  ;;  %1650 = vmatpush1.bf16.msra.mxu0 %v6649_v34 }
  0x74   : > { %1110 = vmatprep.subr.bf16.mxu1 %v6631_v4  ;;  %1651 = vmatprep.subr.bf16.mxu0 %v6654_v43  ;;  %v6661_v43 = vld [vmem:[#allocation2 + $0x190] ss:$8 sps:$4 sm:$0xff]  }
  0x75   : > { %5892 = vmatmul.mubr.msk.f32.gmra.mrb[26].mxu0 %vm329_vm0, %v282_v41 }
  0x76   : > { %598 = vmatprep.mubr.f32.mxu0 %v7229_v0 }
  0x77   : > { %1111 = vmatpush1.bf16.msra.mxu1 %v6633_v5  ;;  %1652 = vmatpush1.bf16.msra.mxu0 %v6652_v42 }
  0x78   : > { %1653 = vmatprep.subr.bf16.mxu0 %v6657_v57 }
  0x79   : > { %5893 = vmatmul.mubr.msk.f32.gmra.mrb[28].mxu0 %vm329_vm0, %v283_v44 }
  0x7a   : > { %604 = vmatprep.mubr.f32.mxu0 %v7229_v0 }
  0x7d   : > { %5894 = vmatmul.mubr.msk.f32.gmra.mrb[30].mxu0 %vm329_vm0, %v284_v47 }
  0x7e   : > { %610 = vmatprep.mubr.f32.mxu0 %v7229_v0 }
  0x81   : > { %5895 = vmatmul.mubr.msk.f32.gmra.mrb[32].mxu0 %vm329_vm0, %v285_v50 }
  0x82   : > { %616 = vmatprep.mubr.f32.mxu0 %v7229_v0 }
  0x85   : > { %5896 = vmatmul.mubr.msk.f32.gmra.mrb[34].mxu0 %vm329_vm0, %v286_v53 }
  0x86   : > { %622 = vmatprep.mubr.f32.mxu0 %v7229_v0 }
  0x89   : > { %5897 = vmatmul.mubr.msk.f32.gmra.mrb[36].mxu0 %vm329_vm0, %v287_v56  ;;  %v6655_v56 = vld [vmem:[#allocation2 + $0x170] ss:$8 sps:$4 sm:$0xff]  }
  0x8a   : > { %628 = vmatprep.mubr.f32.mxu0 %v7229_v0  ;;  %1654 = vmatpush1.bf16.msra.mxu0 %v6655_v56 }
  0x8d   : > { %5898 = vmatmul.mubr.msk.f32.gmra.mrb[38].mxu0 %vm329_vm0, %v288_v58 }
  0x8e   : > { %634 = vmatprep.mubr.f32.mxu0 %v7229_v0 }
  0x91   : > { %5899 = vmatmul.mubr.msk.f32.gmra.mrb[40].mxu0 %vm329_vm0, %v289_v59 }
  0x92   : > { %640 = vmatprep.mubr.f32.mxu0 %v7229_v0 }
  0x95   : > { %5900 = vmatmul.mubr.msk.f32.gmra.mrb[42].mxu0 %vm329_vm0, %v290_v60 }
  0x96   : > { %646 = vmatprep.mubr.f32.mxu0 %v7229_v0 }
  0x99   : > { %5901 = vmatmul.mubr.msk.f32.gmra.mrb[44].mxu0 %vm329_vm0, %v291_v62 }
  0x9a   : > { %652 = vmatprep.mubr.f32.mxu0 %v7229_v0 }
  0x9d   : > { %5902 = vmatmul.mubr.msk.f32.gmra.mrb[46].mxu0 %vm329_vm0, %v292_v2 }
  0x9e   : > { %658 = vmatprep.mubr.f32.mxu0 %v7229_v0 }
  0xa1   : > { %5903 = vmatmul.mubr.msk.f32.gmra.mrb[48].mxu0 %vm329_vm0, %v293_v6 }
  0xa2   : > { %664 = vmatprep.mubr.f32.mxu0 %v7229_v0 }
  0xa5   : > { %5904 = vmatmul.mubr.msk.f32.gmra.mrb[50].mxu0 %vm329_vm0, %v294_v7 }
  0xa6   : > { %670 = vmatprep.mubr.f32.mxu0 %v7229_v0 }
  0xa9   : > { %5905 = vmatmul.mubr.msk.f32.gmra.mrb[52].mxu0 %vm329_vm0, %v295_v8 }
  0xaa   : > { %676 = vmatprep.mubr.f32.mxu0 %v7229_v0 }
  0xad   : > { %5906 = vmatmul.mubr.msk.f32.gmra.mrb[54].mxu0 %vm329_vm0, %v296_v9 }
  0xae   : > { %682 = vmatprep.mubr.f32.mxu0 %v7229_v0 }
  0xb1   : > { %5907 = vmatmul.mubr.msk.f32.gmra.mrb[56].mxu0 %vm329_vm0, %v297_v10 }
  0xb2   : > { %688 = vmatprep.mubr.f32.mxu0 %v7229_v0 }
  0xb5   : > { %5908 = vmatmul.mubr.msk.f32.gmra.mrb[58].mxu0 %vm329_vm0, %v298_v11 }
  0xb6   : > { %694 = vmatprep.mubr.f32.mxu0 %v7229_v0 }
  0xb9   : > { %5909 = vmatmul.mubr.msk.f32.gmra.mrb[60].mxu0 %vm329_vm0, %v299_v12 }
  0xba   : > { %700 = vmatprep.mubr.f32.mxu0 %v7229_v0 }
  0xbd   : > { %5910 = vmatmul.mubr.msk.f32.gmra.mrb[62].mxu0 %vm329_vm0, %v300_v13 }
  0xbe   : > { %706 = vmatprep.mubr.f32.mxu0 %v7229_v0 }
  0xc1   : > { %5911 = vmatmul.mubr.msk.f32.gmra.mrb[64].mxu0 %vm329_vm0, %v301_v14 }
  0xc2   : > { %712 = vmatprep.mubr.f32.mxu0 %v7229_v0 }
  0xc5   : > { %5912 = vmatmul.mubr.msk.f32.gmra.mrb[66].mxu0 %vm329_vm0, %v302_v15  ;;  %v6658_v15 = vld [vmem:[#allocation2 + $0x180] ss:$8 sps:$4 sm:$0xff]  }
  0xc6   : > { %718 = vmatprep.mubr.f32.mxu0 %v7229_v0 }
  0xc9   : > { %5913 = vmatmul.mubr.msk.f32.gmra.mrb[68].mxu0 %vm329_vm0, %v303_v16  ;;  %v6660_v16 = vld [vmem:[#allocation2 + $0x184] ss:$8 sps:$4 sm:$0xff]  }
  0xca   : > { %724 = vmatprep.mubr.f32.mxu0 %v7229_v0  ;;  %1655 = vmatprep.subr.bf16.mxu0 %v6660_v16 }
  0xcb   : > { %1656 = vmatpush1.bf16.msra.mxu0 %v6658_v15 }
  0xcd   : > { %5914 = vmatmul.mubr.msk.f32.gmra.mrb[70].mxu0 %vm329_vm0, %v304_v17 }
  0xce   : > { %730 = vmatprep.mubr.f32.mxu0 %v7229_v0 }
  0xd1   : > { %5915 = vmatmul.mubr.msk.f32.gmra.mrb[72].mxu0 %vm329_vm0, %v305_v18 }
  0xd2   : > { %736 = vmatprep.mubr.f32.mxu0 %v7229_v0 }
  0xd5   : > { %5916 = vmatmul.mubr.msk.f32.gmra.mrb[74].mxu0 %vm329_vm0, %v306_v19 }
  0xd6   : > { %742 = vmatprep.mubr.f32.mxu0 %v7229_v0 }
  0xd9   : > { %5917 = vmatmul.mubr.msk.f32.gmra.mrb[76].mxu0 %vm329_vm0, %v307_v20 }
  0xda   : > { %748 = vmatprep.mubr.f32.mxu0 %v7229_v0 }
  0xdd   : > { %5918 = vmatmul.mubr.msk.f32.gmra.mrb[78].mxu0 %vm329_vm0, %v308_v23 }
 0x114   : > { %v516_v41 = vpop.f32.mrb[0].mxu0 }
 0x115   : > { %v518_v44 = vpop.f32.mrb[1].mxu0  ;;  %v517_v45 = vadd.f32 %v516_v41, %v7510_v39 }
 0x116   : > { %v519_v46 = vadd.f32 %v518_v44, %v7513_v40  ;;  %v6663_v44 = vld [vmem:[#allocation2 + $0x194] ss:$8 sps:$4 sm:$0xff]  }
 0x117   : > { %v755_v51 = vmax.f32 %v517_v45, 0.0  ;;  %1657 = vmatprep.subr.bf16.mxu0 %v6663_v44 }
 0x118   : > { %v522_v47 = vpop.f32.mrb[2].mxu0  ;;  %v756_v53 = vmax.f32 %v519_v46, 0.0  ;;  %1658 = vmatpush1.bf16.msra.mxu0 %v6661_v43 }
 0x119   : > { %v523_v48 = vadd.f32 %v522_v47, %v7510_v39  ;;  %v524_v49 = vpop.f32.mrb[3].mxu0 }
 0x11a   : > { %v525_v50 = vadd.f32 %v524_v49, %v7513_v40 }
 0x11b   : > { %v757_v52 = vmax.f32 %v523_v48, 0.0 }
 0x11c   : > { %v528_v54 = vpop.f32.mrb[4].mxu0  ;;  %v758_v55 = vmax.f32 %v525_v50, 0.0 }
 0x11d   : > { %v530_v58 = vpop.f32.mrb[5].mxu0  ;;  %v835_v59 = vpack.c.bf16 %v757_v52, %v755_v51  ;;  %v529_v61 = vadd.f32 %v528_v54, %v7510_v39  ;;  %v6664_v54 = vld [vmem:[#allocation2 + $0x1a0] ss:$8 sps:$4 sm:$0xff]  }
 0x11e   : > { %v836_v60 = vpack.c.bf16 %v758_v55, %v756_v53  ;;  %v531_v62 = vadd.f32 %v530_v58, %v7513_v40  ;;  %v6666_v55 = vld [vmem:[#allocation2 + $0x1a4] ss:$8 sps:$4 sm:$0xff]   ;;  %v6669_v58 = vld [vmem:[#allocation2 + $0x1b4] ss:$8 sps:$4 sm:$0xff]  }
 0x11f   : > { %v759_v4 = vmax.f32 %v529_v61, 0.0  ;;  %1659 = vmatprep.subr.bf16.mxu0 %v6666_v55 }
 0x120   : > { %v534_v63 = vpop.f32.mrb[6].mxu0  ;;  %1112 = vmatprep.mubr.bf16.mxu1 %v836_v60  ;;  %v760_v6 = vmax.f32 %v531_v62, 0.0  ;;  %1660 = vmatpush1.bf16.msra.mxu0 %v6664_v54  ;;  %v6667_v62 = vld [vmem:[#allocation2 + $0x1b0] ss:$8 sps:$4 sm:$0xff]  }
 0x121   : > { %v535_v1 = vadd.f32 %v534_v63, %v7510_v39  ;;  %v536_v2 = vpop.f32.mrb[7].mxu0  ;;  %1113 = vmatmul.mubr.bf16.vlgmr.msra.gmra.mrb[0].mxu1 %v835_v59  ;;  %1661 = vmatprep.subr.bf16.mxu0 %v6669_v58 }
 0x122   : > { %v537_v3 = vadd.f32 %v536_v2, %v7513_v40 }
 0x123   : > { %v761_v5 = vmax.f32 %v535_v1, 0.0 }
 0x124   : > { %v762_v7 = vmax.f32 %v537_v3, 0.0  ;;  %v540_v8 = vpop.f32.mrb[8].mxu0  ;;  %v6672_v3 = vld [vmem:[#allocation2 + $0x1c4] ss:$8 sps:$4 sm:$0xff]   ;;  %1662 = vmatpush1.bf16.msra.mxu0 %v6667_v62 }
 0x125   : > { %v542_v9 = vpop.f32.mrb[9].mxu0  ;;  %v837_v10 = vpack.c.bf16 %v761_v5, %v759_v4  ;;  %v541_v12 = vadd.f32 %v540_v8, %v7510_v39  ;;  %1663 = vmatprep.subr.bf16.mxu0 %v6672_v3 }
 0x126   : > { %v838_v11 = vpack.c.bf16 %v762_v7, %v760_v6  ;;  %v543_v13 = vadd.f32 %v542_v9, %v7513_v40  ;;  %v6670_v7 = vld [vmem:[#allocation2 + $0x1c0] ss:$8 sps:$4 sm:$0xff]  }
 0x127   : > { %v763_v20 = vmax.f32 %v541_v12, 0.0 }
 0x128   : > { %v546_v14 = vpop.f32.mrb[10].mxu0  ;;  %1122 = vmatprep.mubr.bf16.mxu1 %v838_v11  ;;  %v764_v22 = vmax.f32 %v543_v13, 0.0  ;;  %v6675_v11 = vld [vmem:[#allocation2 + $0x1d4] ss:$8 sps:$4 sm:$0xff]   ;;  %1664 = vmatpush1.bf16.msra.mxu0 %v6670_v7 }
 0x129   : > { %v547_v17 = vadd.f32 %v546_v14, %v7510_v39  ;;  %v548_v18 = vpop.f32.mrb[11].mxu0  ;;  %1123 = vmatmul.mubr.bf16.gmra.mrb[4].mxu1 %v837_v10  ;;  %1665 = vmatprep.subr.bf16.mxu0 %v6675_v11 }
 0x12a   : > { %v549_v19 = vadd.f32 %v548_v18, %v7513_v40 }
 0x12b   : > { %v765_v21 = vmax.f32 %v547_v17, 0.0  ;;  %v6673_v17 = vld [vmem:[#allocation2 + $0x1d0] ss:$8 sps:$4 sm:$0xff]  }
 0x12c   : > { %v766_v23 = vmax.f32 %v549_v19, 0.0  ;;  %v552_v24 = vpop.f32.mrb[12].mxu0  ;;  %1666 = vmatpush1.bf16.msra.mxu0 %v6673_v17 }
 0x12d   : > { %v839_v25 = vpack.c.bf16 %v765_v21, %v763_v20  ;;  %v553_v26 = vadd.f32 %v552_v24, %v7510_v39  ;;  %v554_v27 = vpop.f32.mrb[13].mxu0  ;;  %v6678_v21 = vld [vmem:[#allocation2 + $0x1e4] ss:$8 sps:$4 sm:$0xff]  }
 0x12e   : > { %v840_v28 = vpack.c.bf16 %v766_v23, %v764_v22  ;;  %v555_v29 = vadd.f32 %v554_v27, %v7513_v40  ;;  %1667 = vmatprep.subr.bf16.mxu0 %v6678_v21 }
 0x12f   : > { %v767_v31 = vmax.f32 %v553_v26, 0.0 }
 0x130   : > { %1132 = vmatprep.mubr.bf16.mxu1 %v840_v28  ;;  %v558_v30 = vpop.f32.mrb[14].mxu0  ;;  %v768_v34 = vmax.f32 %v555_v29, 0.0 }
 0x131   : > { %1133 = vmatmul.mubr.bf16.gmra.mrb[8].mxu1 %v839_v25  ;;  %v559_v32 = vadd.f32 %v558_v30, %v7510_v39  ;;  %v560_v33 = vpop.f32.mrb[15].mxu0  ;;  %v6676_v25 = vld [vmem:[#allocation2 + $0x1e0] ss:$8 sps:$4 sm:$0xff]  }
 0x132   : > { %v561_v35 = vadd.f32 %v560_v33, %v7513_v40  ;;  %1668 = vmatpush1.bf16.msra.mxu0 %v6676_v25 }
 0x133   : > { %v769_v38 = vmax.f32 %v559_v32, 0.0 }
 0x134   : > { %v770_v41 = vmax.f32 %v561_v35, 0.0  ;;  %v564_v42 = vpop.f32.mrb[16].mxu0 }
 0x135   : > { %v565_v45 = vadd.f32 %v564_v42, %v7510_v39  ;;  %v566_v46 = vpop.f32.mrb[17].mxu0  ;;  %v841_v47 = vpack.c.bf16 %v769_v38, %v767_v31 }
 0x136   : > { %v567_v48 = vadd.f32 %v566_v46, %v7513_v40  ;;  %v842_v49 = vpack.c.bf16 %v770_v41, %v768_v34 }
 0x137   : > { %v771_v51 = vmax.f32 %v565_v45, 0.0 }
 0x138   : > { %v570_v50 = vpop.f32.mrb[18].mxu0  ;;  %1142 = vmatprep.mubr.bf16.mxu1 %v842_v49  ;;  %v772_v56 = vmax.f32 %v567_v48, 0.0 }
 0x139   : > { %v571_v52 = vadd.f32 %v570_v50, %v7510_v39  ;;  %v572_v53 = vpop.f32.mrb[19].mxu0  ;;  %1143 = vmatmul.mubr.bf16.gmra.mrb[12].mxu1 %v841_v47 }
 0x13a   : > { %v573_v57 = vadd.f32 %v572_v53, %v7513_v40 }
 0x13b   : > { %v773_v59 = vmax.f32 %v571_v52, 0.0 }
 0x13c   : > { %v774_v60 = vmax.f32 %v573_v57, 0.0  ;;  %v576_v61 = vpop.f32.mrb[20].mxu0 }
 0x13d   : > { %v577_v63 = vadd.f32 %v576_v61, %v7510_v39  ;;  %v578_v1 = vpop.f32.mrb[21].mxu0  ;;  %v843_v2 = vpack.c.bf16 %v773_v59, %v771_v51 }
 0x13e   : > { %v579_v4 = vadd.f32 %v578_v1, %v7513_v40  ;;  %v844_v5 = vpack.c.bf16 %v774_v60, %v772_v56 }
 0x13f   : > { %v775_v8 = vmax.f32 %v577_v63, 0.0 }
 0x140   : > { %v582_v6 = vpop.f32.mrb[22].mxu0  ;;  %1152 = vmatprep.mubr.bf16.mxu1 %v844_v5  ;;  %v776_v12 = vmax.f32 %v579_v4, 0.0 }
 0x141   : > { %v583_v9 = vadd.f32 %v582_v6, %v7510_v39  ;;  %v584_v10 = vpop.f32.mrb[23].mxu0  ;;  %1153 = vmatmul.mubr.bf16.gmra.mrb[16].mxu1 %v843_v2 }
 0x142   : > { %v585_v13 = vadd.f32 %v584_v10, %v7513_v40 }
 0x143   : > { %v777_v14 = vmax.f32 %v583_v9, 0.0 }
 0x144   : > { %v778_v15 = vmax.f32 %v585_v13, 0.0  ;;  %v588_v16 = vpop.f32.mrb[24].mxu0 }
 0x145   : > { %v589_v18 = vadd.f32 %v588_v16, %v7510_v39  ;;  %v590_v19 = vpop.f32.mrb[25].mxu0  ;;  %v845_v20 = vpack.c.bf16 %v777_v14, %v775_v8 }
 0x146   : > { %v591_v22 = vadd.f32 %v590_v19, %v7513_v40  ;;  %v846_v23 = vpack.c.bf16 %v778_v15, %v776_v12 }
 0x147   : > { %v779_v26 = vmax.f32 %v589_v18, 0.0 }
 0x148   : > { %v594_v24 = vpop.f32.mrb[26].mxu0  ;;  %1162 = vmatprep.mubr.bf16.mxu1 %v846_v23  ;;  %v780_v29 = vmax.f32 %v591_v22, 0.0 }
 0x149   : > { %v595_v27 = vadd.f32 %v594_v24, %v7510_v39  ;;  %v596_v28 = vpop.f32.mrb[27].mxu0  ;;  %1163 = vmatmul.mubr.bf16.gmra.mrb[20].mxu1 %v845_v20 }
 0x14a   : > { %v597_v30 = vadd.f32 %v596_v28, %v7513_v40 }
 0x14b   : > { %v781_v31 = vmax.f32 %v595_v27, 0.0 }
 0x14c   : > { %v782_v32 = vmax.f32 %v597_v30, 0.0  ;;  %v600_v33 = vpop.f32.mrb[28].mxu0 }
 0x14d   : > { %v601_v34 = vadd.f32 %v600_v33, %v7510_v39  ;;  %v602_v35 = vpop.f32.mrb[29].mxu0  ;;  %v847_v38 = vpack.c.bf16 %v781_v31, %v779_v26 }
 0x14e   : > { %v603_v41 = vadd.f32 %v602_v35, %v7513_v40  ;;  %v848_v42 = vpack.c.bf16 %v782_v32, %v780_v29 }
 0x14f   : > { %v783_v44 = vmax.f32 %v601_v34, 0.0 }
 0x150   : > { %v606_v43 = vpop.f32.mrb[30].mxu0  ;;  %1172 = vmatprep.mubr.bf16.mxu1 %v848_v42  ;;  %v784_v47 = vmax.f32 %v603_v41, 0.0 }
 0x151   : > { %v607_v45 = vadd.f32 %v606_v43, %v7510_v39  ;;  %v608_v46 = vpop.f32.mrb[31].mxu0  ;;  %1173 = vmatmul.mubr.bf16.gmra.mrb[24].mxu1 %v847_v38 }
 0x152   : > { %v609_v48 = vadd.f32 %v608_v46, %v7513_v40 }
 0x153   : > { %v785_v49 = vmax.f32 %v607_v45, 0.0 }
 0x154   : > { %v786_v50 = vmax.f32 %v609_v48, 0.0  ;;  %v612_v51 = vpop.f32.mrb[32].mxu0 }
 0x155   : > { %v613_v52 = vadd.f32 %v612_v51, %v7510_v39  ;;  %v614_v53 = vpop.f32.mrb[33].mxu0  ;;  %v849_v54 = vpack.c.bf16 %v785_v49, %v783_v44 }
 0x156   : > { %v615_v55 = vadd.f32 %v614_v53, %v7513_v40  ;;  %v850_v56 = vpack.c.bf16 %v786_v50, %v784_v47 }
 0x157   : > { %v787_v58 = vmax.f32 %v613_v52, 0.0 }
 0x158   : > { %v618_v57 = vpop.f32.mrb[34].mxu0  ;;  %1182 = vmatprep.mubr.bf16.mxu1 %v850_v56  ;;  %v788_v61 = vmax.f32 %v615_v55, 0.0  ;;  %v6681_v55 = vld [vmem:[#allocation2 + $0x1f4] ss:$8 sps:$4 sm:$0xff]  }
 0x159   : > { %v619_v59 = vadd.f32 %v618_v57, %v7510_v39  ;;  %v620_v60 = vpop.f32.mrb[35].mxu0  ;;  %1183 = vmatmul.mubr.bf16.gmra.mrb[28].mxu1 %v849_v54  ;;  %v6679_v54 = vld [vmem:[#allocation2 + $0x1f0] ss:$8 sps:$4 sm:$0xff]   ;;  %1669 = vmatprep.subr.bf16.mxu0 %v6681_v55 }
 0x15a   : > { %v621_v62 = vadd.f32 %v620_v60, %v7513_v40  ;;  %1670 = vmatpush1.bf16.msra.mxu0 %v6679_v54 }
 0x15b   : > { %v789_v63 = vmax.f32 %v619_v59, 0.0 }
 0x15c   : > { %v790_v1 = vmax.f32 %v621_v62, 0.0  ;;  %v624_v2 = vpop.f32.mrb[36].mxu0 }
 0x15d   : > { %v625_v3 = vadd.f32 %v624_v2, %v7510_v39  ;;  %v626_v4 = vpop.f32.mrb[37].mxu0  ;;  %v851_v5 = vpack.c.bf16 %v789_v63, %v787_v58 }
 0x15e   : > { %v627_v6 = vadd.f32 %v626_v4, %v7513_v40  ;;  %v852_v7 = vpack.c.bf16 %v790_v1, %v788_v61 }
 0x15f   : > { %v791_v9 = vmax.f32 %v625_v3, 0.0 }
 0x160   : > { %v630_v8 = vpop.f32.mrb[38].mxu0  ;;  %1192 = vmatprep.mubr.bf16.mxu1 %v852_v7  ;;  %v792_v12 = vmax.f32 %v627_v6, 0.0 }
 0x161   : > { %v631_v10 = vadd.f32 %v630_v8, %v7510_v39  ;;  %v632_v11 = vpop.f32.mrb[39].mxu0  ;;  %1193 = vmatmul.mubr.bf16.gmra.mrb[32].mxu1 %v851_v5 }
 0x162   : > { %v633_v13 = vadd.f32 %v632_v11, %v7513_v40 }
 0x163   : > { %v793_v14 = vmax.f32 %v631_v10, 0.0 }
 0x164   : > { %v794_v15 = vmax.f32 %v633_v13, 0.0  ;;  %v636_v16 = vpop.f32.mrb[40].mxu0 }
 0x165   : > { %v637_v17 = vadd.f32 %v636_v16, %v7510_v39  ;;  %v638_v18 = vpop.f32.mrb[41].mxu0  ;;  %v853_v19 = vpack.c.bf16 %v793_v14, %v791_v9 }
 0x166   : > { %v639_v20 = vadd.f32 %v638_v18, %v7513_v40  ;;  %v854_v21 = vpack.c.bf16 %v794_v15, %v792_v12 }
 0x167   : > { %v795_v23 = vmax.f32 %v637_v17, 0.0 }
 0x168   : > { %v642_v22 = vpop.f32.mrb[42].mxu0  ;;  %1202 = vmatprep.mubr.bf16.mxu1 %v854_v21  ;;  %v796_v26 = vmax.f32 %v639_v20, 0.0 }
 0x169   : > { %v643_v24 = vadd.f32 %v642_v22, %v7510_v39  ;;  %v644_v25 = vpop.f32.mrb[43].mxu0  ;;  %1203 = vmatmul.mubr.bf16.gmra.mrb[36].mxu1 %v853_v19 }
 0x16a   : > { %v645_v27 = vadd.f32 %v644_v25, %v7513_v40 }
 0x16b   : > { %v797_v28 = vmax.f32 %v643_v24, 0.0 }
 0x16c   : > { %v798_v29 = vmax.f32 %v645_v27, 0.0  ;;  %v648_v30 = vpop.f32.mrb[44].mxu0 }
 0x16d   : > { %v649_v31 = vadd.f32 %v648_v30, %v7510_v39  ;;  %v650_v32 = vpop.f32.mrb[45].mxu0  ;;  %v855_v33 = vpack.c.bf16 %v797_v28, %v795_v23 }
 0x16e   : > { %v651_v34 = vadd.f32 %v650_v32, %v7513_v40  ;;  %v856_v35 = vpack.c.bf16 %v798_v29, %v796_v26 }
 0x16f   : > { %v799_v41 = vmax.f32 %v649_v31, 0.0 }
 0x170   : > { %v654_v38 = vpop.f32.mrb[46].mxu0  ;;  %1212 = vmatprep.mubr.bf16.mxu1 %v856_v35  ;;  %v800_v44 = vmax.f32 %v651_v34, 0.0 }
 0x171   : > { %v655_v42 = vadd.f32 %v654_v38, %v7510_v39  ;;  %v656_v43 = vpop.f32.mrb[47].mxu0  ;;  %1213 = vmatmul.mubr.bf16.gmra.mrb[40].mxu1 %v855_v33 }
 0x172   : > { %v657_v45 = vadd.f32 %v656_v43, %v7513_v40 }
 0x173   : > { %v801_v46 = vmax.f32 %v655_v42, 0.0 }
 0x174   : > { %v802_v47 = vmax.f32 %v657_v45, 0.0  ;;  %v660_v48 = vpop.f32.mrb[48].mxu0 }
 0x175   : > { %v661_v49 = vadd.f32 %v660_v48, %v7510_v39  ;;  %v662_v50 = vpop.f32.mrb[49].mxu0  ;;  %v857_v51 = vpack.c.bf16 %v801_v46, %v799_v41 }
 0x176   : > { %v663_v52 = vadd.f32 %v662_v50, %v7513_v40  ;;  %v858_v53 = vpack.c.bf16 %v802_v47, %v800_v44 }
 0x177   : > { %v803_v57 = vmax.f32 %v661_v49, 0.0 }
 0x178   : > { %v666_v56 = vpop.f32.mrb[50].mxu0  ;;  %1222 = vmatprep.mubr.bf16.mxu1 %v858_v53  ;;  %v804_v60 = vmax.f32 %v663_v52, 0.0 }
 0x179   : > { %v667_v58 = vadd.f32 %v666_v56, %v7510_v39  ;;  %v668_v59 = vpop.f32.mrb[51].mxu0  ;;  %1223 = vmatmul.mubr.bf16.gmra.mrb[44].mxu1 %v857_v51 }
 0x17a   : > { %v669_v61 = vadd.f32 %v668_v59, %v7513_v40 }
 0x17b   : > { %v805_v62 = vmax.f32 %v667_v58, 0.0 }
 0x17c   : > { %v806_v63 = vmax.f32 %v669_v61, 0.0  ;;  %v672_v1 = vpop.f32.mrb[52].mxu0 }
 0x17d   : > { %v673_v2 = vadd.f32 %v672_v1, %v7510_v39  ;;  %v674_v3 = vpop.f32.mrb[53].mxu0  ;;  %v859_v4 = vpack.c.bf16 %v805_v62, %v803_v57 }
 0x17e   : > { %v675_v5 = vadd.f32 %v674_v3, %v7513_v40  ;;  %v860_v6 = vpack.c.bf16 %v806_v63, %v804_v60 }
 0x17f   : > { %v807_v8 = vmax.f32 %v673_v2, 0.0 }
 0x180   : > { %v678_v7 = vpop.f32.mrb[54].mxu0  ;;  %1232 = vmatprep.mubr.bf16.mxu1 %v860_v6  ;;  %v808_v11 = vmax.f32 %v675_v5, 0.0 }
 0x181   : > { %v679_v9 = vadd.f32 %v678_v7, %v7510_v39  ;;  %v680_v10 = vpop.f32.mrb[55].mxu0  ;;  %1233 = vmatmul.mubr.bf16.gmra.mrb[48].mxu1 %v859_v4 }
 0x182   : > { %v681_v12 = vadd.f32 %v680_v10, %v7513_v40 }
 0x183   : > { %v809_v13 = vmax.f32 %v679_v9, 0.0 }
 0x184   : > { %v810_v14 = vmax.f32 %v681_v12, 0.0  ;;  %v684_v15 = vpop.f32.mrb[56].mxu0 }
 0x185   : > { %v685_v16 = vadd.f32 %v684_v15, %v7510_v39  ;;  %v686_v17 = vpop.f32.mrb[57].mxu0  ;;  %v861_v18 = vpack.c.bf16 %v809_v13, %v807_v8 }
 0x186   : > { %v687_v19 = vadd.f32 %v686_v17, %v7513_v40  ;;  %v862_v20 = vpack.c.bf16 %v810_v14, %v808_v11 }
 0x187   : > { %v811_v22 = vmax.f32 %v685_v16, 0.0 }
 0x188   : > { %v690_v21 = vpop.f32.mrb[58].mxu0  ;;  %1242 = vmatprep.mubr.bf16.mxu1 %v862_v20  ;;  %v812_v25 = vmax.f32 %v687_v19, 0.0 }
 0x189   : > { %v691_v23 = vadd.f32 %v690_v21, %v7510_v39  ;;  %v692_v24 = vpop.f32.mrb[59].mxu0  ;;  %1243 = vmatmul.mubr.bf16.gmra.mrb[52].mxu1 %v861_v18 }
 0x18a   : > { %v693_v26 = vadd.f32 %v692_v24, %v7513_v40 }
 0x18b   : > { %v813_v27 = vmax.f32 %v691_v23, 0.0 }
 0x18c   : > { %v814_v28 = vmax.f32 %v693_v26, 0.0  ;;  %v696_v29 = vpop.f32.mrb[60].mxu0 }
 0x18d   : > { %v697_v30 = vadd.f32 %v696_v29, %v7510_v39  ;;  %v698_v31 = vpop.f32.mrb[61].mxu0  ;;  %v863_v32 = vpack.c.bf16 %v813_v27, %v811_v22 }
 0x18e   : > { %v699_v33 = vadd.f32 %v698_v31, %v7513_v40  ;;  %v864_v34 = vpack.c.bf16 %v814_v28, %v812_v25 }
 0x18f   : > { %v815_v38 = vmax.f32 %v697_v30, 0.0 }
 0x190   : > { %v702_v35 = vpop.f32.mrb[62].mxu0  ;;  %1252 = vmatprep.mubr.bf16.mxu1 %v864_v34  ;;  %v816_v43 = vmax.f32 %v699_v33, 0.0 }
 0x191   : > { %v703_v41 = vadd.f32 %v702_v35, %v7510_v39  ;;  %v704_v42 = vpop.f32.mrb[63].mxu0  ;;  %1253 = vmatmul.mubr.bf16.gmra.mrb[56].mxu1 %v863_v32 }
 0x192   : > { %v705_v44 = vadd.f32 %v704_v42, %v7513_v40 }
 0x193   : > { %v817_v45 = vmax.f32 %v703_v41, 0.0 }
 0x194   : > { %v818_v46 = vmax.f32 %v705_v44, 0.0  ;;  %v708_v47 = vpop.f32.mrb[64].mxu0 }
 0x195   : > { %v709_v48 = vadd.f32 %v708_v47, %v7510_v39  ;;  %v710_v49 = vpop.f32.mrb[65].mxu0  ;;  %v865_v50 = vpack.c.bf16 %v817_v45, %v815_v38  ;;  %v6682_v47 = vld [vmem:[#allocation2 + $0x200] ss:$8 sps:$4 sm:$0xff]  }
 0x196   : > { %v711_v51 = vadd.f32 %v710_v49, %v7513_v40  ;;  %v866_v52 = vpack.c.bf16 %v818_v46, %v816_v43  ;;  %v6684_v46 = vld [vmem:[#allocation2 + $0x204] ss:$8 sps:$4 sm:$0xff]   ;;  %v7595_v49 = vld [vmem:[#allocation2 + $0x210] ss:$8 sps:$4 sm:$0xff]  }
 0x197   : > { %v819_v54 = vmax.f32 %v709_v48, 0.0  ;;  %2198 = vmatprep.subr.bf16.mxu0 %v6684_v46  ;;  %6497 = vmatprep.subr.bf16.mxu1 %v6684_v46  ;;  %v6687_v48 = vld [vmem:[#allocation2 + $0x214] ss:$8 sps:$4 sm:$0xff]  }
 0x198   : > { %v714_v53 = vpop.f32.mrb[66].mxu0  ;;  %1262 = vmatprep.mubr.bf16.mxu1 %v866_v52  ;;  %v820_v57 = vmax.f32 %v711_v51, 0.0  ;;  %6513 = vmatpush1.bf16.msra.mxu1 %v6682_v47  ;;  %v7603_v51 = vld [vmem:[#allocation2 + $0x230] ss:$8 sps:$4 sm:$0xff]   ;;  %v7607_v52 = vld [vmem:[#allocation2 + $0x244] ss:$8 sps:$4 sm:$0xff]  }
 0x199   : > { %v715_v55 = vadd.f32 %v714_v53, %v7510_v39  ;;  %v716_v56 = vpop.f32.mrb[67].mxu0  ;;  %1263 = vmatmul.mubr.bf16.gmra.mrb[60].mxu1 %v865_v50  ;;  %6498 = vmatprep.subr.bf16.mxu1 %v6687_v48  ;;  %v7598_v50 = vld [vmem:[#allocation2 + $0x220] ss:$8 sps:$4 sm:$0xff]  }
 0x19a   : > { %v717_v58 = vadd.f32 %v716_v56, %v7513_v40  ;;  %v7609_v53 = vld [vmem:[#allocation2 + $0x240] ss:$8 sps:$4 sm:$0xff]  }
 0x19b   : > { %v821_v59 = vmax.f32 %v715_v55, 0.0  ;;  %v7615_v55 = vld [vmem:[#allocation2 + $0x250] ss:$8 sps:$4 sm:$0xff]   ;;  %v5919_v56 = vld [vmem:[%s9112_s3 + $0x2] sm:$0x3] }
 0x19c   : > { %v822_v60 = vmax.f32 %v717_v58, 0.0  ;;  %v720_v61 = vpop.f32.mrb[68].mxu0  ;;  %6514 = vmatpush1.bf16.msra.mxu1 %v7595_v49  ;;  %v7626_v58 = vrot.slane %v5919_v56, %v7504_v37 }
 0x19d   : > { %v721_v62 = vadd.f32 %v720_v61, %v7510_v39  ;;  %v722_v63 = vpop.f32.mrb[69].mxu0  ;;  %v867_v1 = vpack.c.bf16 %v821_v59, %v819_v54  ;;  %v7613_v54 = vld [vmem:[#allocation2 + $0x254] ss:$8 sps:$4 sm:$0xff]   ;;  %v7628_v59 = vld [vmem:[#allocation2 + $0x264] ss:$8 sps:$4 sm:$0xff]  }
 0x19e   : > { %v723_v2 = vadd.f32 %v722_v63, %v7513_v40  ;;  %v868_v3 = vpack.c.bf16 %v822_v60, %v820_v57  ;;  %v7623_v57 = vrot.slane %v5919_v56, %v7502_v36  ;;  %v7630_v60 = vld [vmem:[#allocation2 + $0x260] ss:$8 sps:$4 sm:$0xff]  }
 0x19f   : > { %v823_v5 = vmax.f32 %v721_v62, 0.0 }
 0x1a0   : > { %v726_v4 = vpop.f32.mrb[70].mxu0  ;;  %1272 = vmatprep.mubr.bf16.mxu1 %v868_v3  ;;  %v824_v8 = vmax.f32 %v723_v2, 0.0 }
 0x1a1   : > { %v727_v6 = vadd.f32 %v726_v4, %v7510_v39  ;;  %v728_v7 = vpop.f32.mrb[71].mxu0  ;;  %1273 = vmatmul.mubr.bf16.gmra.mrb[64].mxu1 %v867_v1 }
 0x1a2   : > { %v729_v9 = vadd.f32 %v728_v7, %v7513_v40 }
 0x1a3   : > { %v825_v10 = vmax.f32 %v727_v6, 0.0 }
 0x1a4   : > { %v826_v11 = vmax.f32 %v729_v9, 0.0  ;;  %v732_v12 = vpop.f32.mrb[72].mxu0 }
 0x1a5   : > { %v733_v13 = vadd.f32 %v732_v12, %v7510_v39  ;;  %v734_v14 = vpop.f32.mrb[73].mxu0  ;;  %v869_v15 = vpack.c.bf16 %v825_v10, %v823_v5  ;;  %v7638_v10 = vld [vmem:[#allocation2 + $0x274] ss:$8 sps:$4 sm:$0xff]   ;;  %v7640_v12 = vld [vmem:[#allocation2 + $0x270] ss:$8 sps:$4 sm:$0xff]  }
 0x1a6   : > { %v735_v16 = vadd.f32 %v734_v14, %v7513_v40  ;;  %v870_v17 = vpack.c.bf16 %v826_v11, %v824_v8 }
 0x1a7   : > { %v827_v19 = vmax.f32 %v733_v13, 0.0 }
 0x1a8   : > { %v738_v18 = vpop.f32.mrb[74].mxu0  ;;  %1282 = vmatprep.mubr.bf16.mxu1 %v870_v17  ;;  %v828_v22 = vmax.f32 %v735_v16, 0.0 }
 0x1a9   : > { %v739_v20 = vadd.f32 %v738_v18, %v7510_v39  ;;  %v740_v21 = vpop.f32.mrb[75].mxu0  ;;  %1283 = vmatmul.mubr.bf16.gmra.mrb[68].mxu1 %v869_v15 }
 0x1aa   : > { %v741_v23 = vadd.f32 %v740_v21, %v7513_v40 }
 0x1ab   : > { %v829_v24 = vmax.f32 %v739_v20, 0.0 }
 0x1ac   : > { %v830_v25 = vmax.f32 %v741_v23, 0.0  ;;  %v744_v26 = vpop.f32.mrb[76].mxu0 }
 0x1ad   : > { %v745_v27 = vadd.f32 %v744_v26, %v7510_v39  ;;  %v746_v28 = vpop.f32.mrb[77].mxu0  ;;  %v871_v29 = vpack.c.bf16 %v829_v24, %v827_v19 }
 0x1ae   : > { %v747_v30 = vadd.f32 %v746_v28, %v7513_v40  ;;  %v872_v31 = vpack.c.bf16 %v830_v25, %v828_v22 }
 0x1af   : > { %v831_v33 = vmax.f32 %v745_v27, 0.0 }
 0x1b0   : > { %v750_v32 = vpop.f32.mrb[78].mxu0  ;;  %1292 = vmatprep.mubr.bf16.mxu1 %v872_v31  ;;  %v832_v38 = vmax.f32 %v747_v30, 0.0 }
 0x1b1   : > { %v751_v34 = vadd.f32 %v750_v32, %v7510_v39  ;;  %v752_v35 = vpop.f32.mrb[79].mxu0  ;;  %1293 = vmatmul.mubr.bf16.gmra.mrb[72].mxu1 %v871_v29  ;;  %v6690_v39 = vld [vmem:[#allocation2 + $0x224] ss:$8 sps:$4 sm:$0xff]  }
 0x1b2   : > { %v753_v41 = vadd.f32 %v752_v35, %v7513_v40  ;;  %6499 = vmatprep.subr.bf16.mxu1 %v6690_v39  ;;  %v7601_v40 = vld [vmem:[#allocation2 + $0x234] ss:$8 sps:$4 sm:$0xff]  }
 0x1b3   : > { %v833_v42 = vmax.f32 %v751_v34, 0.0  ;;  %6515 = vmatpush1.bf16.msra.mxu1 %v7598_v50 }
 0x1b4   : > { %v834_v43 = vmax.f32 %v753_v41, 0.0  ;;  %6500 = vmatprep.subr.bf16.mxu1 %v7601_v40 }
 0x1b5   : > { %v873_v44 = vpack.c.bf16 %v833_v42, %v831_v33 }
 0x1b6   : > { %v874_v45 = vpack.c.bf16 %v834_v43, %v832_v38  ;;  %v7654_v38 = vld [vmem:[#allocation2 + $0x284] ss:$8 sps:$4 sm:$0xff]   ;;  %v7657_v43 = vld [vmem:[#allocation2 + $0x280] ss:$8 sps:$4 sm:$0xff]  }
 0x1b7   : > { %6516 = vmatpush1.bf16.msra.mxu1 %v7603_v51 }
 0x1b8   : > { %1302 = vmatprep.mubr.bf16.mxu1 %v874_v45  ;;  %6501 = vmatprep.subr.bf16.mxu1 %v7607_v52 }
 0x1b9   : > { %1303 = vmatmul.mubr.bf16.gmra.mrb[76].mxu1 %v873_v44 }
 0x1bb   : > { %6517 = vmatpush1.bf16.msra.mxu1 %v7609_v53 }
 0x1bc   : > { %6502 = vmatprep.subr.bf16.mxu1 %v7613_v54 }
 0x1bf   : > { %6518 = vmatpush1.bf16.msra.mxu1 %v7615_v55 }
 0x1c0   : > { %6503 = vmatprep.subr.bf16.mxu1 %v7628_v59 }
 0x1c3   : > { %6519 = vmatpush1.bf16.msra.mxu1 %v7630_v60 }
 0x1c4   : > { %6504 = vmatprep.subr.bf16.mxu1 %v7638_v10 }
 0x1c7   : > { %6520 = vmatpush1.bf16.msra.mxu1 %v7640_v12 }
 0x1c8   : > { %6505 = vmatprep.subr.bf16.mxu1 %v7654_v38 }
 0x1cb   : > { %6521 = vmatpush1.bf16.msra.mxu1 %v7657_v43 }
 0x1f4   : > { %v1114_v61 = vpop.f32.mrb[0].mxu1 }
 0x1f5   : > { %v1115_v62 = vadd.f32 %v1114_v61, %v7623_v57  ;;  %v1116_v63 = vpop.f32.mrb[1].mxu1 }
 0x1f6   : > { %v1117_v1 = vadd.f32 %v1116_v63, %v7626_v58  ;;  %v1118_v2 = vpop.f32.mrb[2].mxu1 }
 0x1f7   : > { %v1119_v3 = vadd.f32 %v1118_v2, %v7623_v57  ;;  %v1120_v4 = vpop.f32.mrb[3].mxu1  ;;  %v1313_v6 = vmax.f32 %v1115_v62, 0.0 }
 0x1f8   : > { %v1121_v5 = vadd.f32 %v1120_v4, %v7626_v58  ;;  %v1314_v8 = vmax.f32 %v1117_v1, 0.0  ;;  %v6709_v4 = vld [vmem:[#allocation2 + $0x290] ss:$8 sps:$4 sm:$0xff]  }
 0x1f9   : > { %v1315_v7 = vmax.f32 %v1119_v3, 0.0  ;;  %v6711_v3 = vld [vmem:[#allocation2 + $0x294] ss:$8 sps:$4 sm:$0xff]  }
 0x1fa   : > { %v1316_v9 = vmax.f32 %v1121_v5, 0.0  ;;  %6506 = vmatprep.subr.bf16.mxu1 %v6711_v3 }
 0x1fb   : > { %v1393_v11 = vpack.c.bf16 %v1315_v7, %v1313_v6  ;;  %6522 = vmatpush1.bf16.msra.mxu1 %v6709_v4 }
 0x1fc   : > { %v1124_v13 = vpop.f32.mrb[4].mxu1  ;;  %v1394_v14 = vpack.c.bf16 %v1316_v9, %v1314_v8 }
 0x1fd   : > { %v1125_v15 = vadd.f32 %v1124_v13, %v7623_v57  ;;  %v1126_v16 = vpop.f32.mrb[5].mxu1 }
 0x1fe   : > { %v1127_v17 = vadd.f32 %v1126_v16, %v7626_v58  ;;  %v1128_v18 = vpop.f32.mrb[6].mxu1  ;;  %1671 = vmatprep.mubr.bf16.mxu0 %v1394_v14  ;;  %v6714_v14 = vld [vmem:[#allocation2 + $0x2a4] ss:$8 sps:$4 sm:$0xff]   ;;  %v6712_v16 = vld [vmem:[#allocation2 + $0x2a0] ss:$8 sps:$4 sm:$0xff]  }
 0x1ff   : > { %v1129_v19 = vadd.f32 %v1128_v18, %v7623_v57  ;;  %v1130_v20 = vpop.f32.mrb[7].mxu1  ;;  %1672 = vmatmul.mubr.bf16.vlgmr.msra.gmra.mrb[80].mxu0 %v1393_v11  ;;  %v1317_v22 = vmax.f32 %v1125_v15, 0.0  ;;  %6507 = vmatprep.subr.bf16.mxu1 %v6714_v14 }
 0x200   : > { %v1131_v21 = vadd.f32 %v1130_v20, %v7626_v58  ;;  %2199 = vmatpush1.bf16.msra.mxu0 %v6682_v47  ;;  %v1318_v24 = vmax.f32 %v1127_v17, 0.0  ;;  %6523 = vmatpush1.bf16.msra.mxu1 %v6712_v16 }
 0x201   : > { %v1319_v23 = vmax.f32 %v1129_v19, 0.0  ;;  %2200 = vmatprep.subr.bf16.mxu0 %v6687_v48 }
 0x202   : > { %v1320_v25 = vmax.f32 %v1131_v21, 0.0 }
 0x203   : > { %v1395_v26 = vpack.c.bf16 %v1319_v23, %v1317_v22  ;;  %v6715_v22 = vld [vmem:[#allocation2 + $0x2b0] ss:$8 sps:$4 sm:$0xff]  }
 0x204   : > { %v1134_v27 = vpop.f32.mrb[8].mxu1  ;;  %v1396_v28 = vpack.c.bf16 %v1320_v25, %v1318_v24  ;;  %2201 = vmatpush1.bf16.msra.mxu0 %v7595_v49 }
 0x205   : > { %v1135_v29 = vadd.f32 %v1134_v27, %v7623_v57  ;;  %v1136_v30 = vpop.f32.mrb[9].mxu1  ;;  %2202 = vmatprep.subr.bf16.mxu0 %v6690_v39 }
 0x206   : > { %v1137_v31 = vadd.f32 %v1136_v30, %v7626_v58  ;;  %v1138_v32 = vpop.f32.mrb[10].mxu1  ;;  %1681 = vmatprep.mubr.bf16.mxu0 %v1396_v28  ;;  %v6718_v30 = vld [vmem:[#allocation2 + $0x2c0] ss:$8 sps:$4 sm:$0xff]  }
 0x207   : > { %v1139_v33 = vadd.f32 %v1138_v32, %v7623_v57  ;;  %v1140_v34 = vpop.f32.mrb[11].mxu1  ;;  %1682 = vmatmul.mubr.bf16.gmra.mrb[84].mxu0 %v1395_v26  ;;  %v1321_v41 = vmax.f32 %v1135_v29, 0.0  ;;  %v6723_v32 = vld [vmem:[#allocation2 + $0x2d4] ss:$8 sps:$4 sm:$0xff]  }
 0x208   : > { %v1141_v35 = vadd.f32 %v1140_v34, %v7626_v58  ;;  %2203 = vmatpush1.bf16.msra.mxu0 %v7598_v50  ;;  %v1322_v44 = vmax.f32 %v1137_v31, 0.0 }
 0x209   : > { %v1323_v42 = vmax.f32 %v1139_v33, 0.0  ;;  %2204 = vmatprep.subr.bf16.mxu0 %v7601_v40 }
 0x20a   : > { %v1324_v45 = vmax.f32 %v1141_v35, 0.0 }
 0x20b   : > { %v1397_v46 = vpack.c.bf16 %v1323_v42, %v1321_v41  ;;  %v6721_v41 = vld [vmem:[#allocation2 + $0x2d0] ss:$8 sps:$4 sm:$0xff]  }
 0x20c   : > { %v1398_v47 = vpack.c.bf16 %v1324_v45, %v1322_v44  ;;  %v1144_v48 = vpop.f32.mrb[12].mxu1  ;;  %2205 = vmatpush1.bf16.msra.mxu0 %v7603_v51  ;;  %v6726_v45 = vld [vmem:[#allocation2 + $0x2e4] ss:$8 sps:$4 sm:$0xff]  }
 0x20d   : > { %v1145_v49 = vadd.f32 %v1144_v48, %v7623_v57  ;;  %v1146_v39 = vpop.f32.mrb[13].mxu1  ;;  %2206 = vmatprep.subr.bf16.mxu0 %v7607_v52 }
 0x20e   : > { %1691 = vmatprep.mubr.bf16.mxu0 %v1398_v47  ;;  %v1147_v50 = vadd.f32 %v1146_v39, %v7626_v58  ;;  %v1148_v40 = vpop.f32.mrb[14].mxu1 }
 0x20f   : > { %1692 = vmatmul.mubr.bf16.gmra.mrb[88].mxu0 %v1397_v46  ;;  %v1325_v56 = vmax.f32 %v1145_v49, 0.0  ;;  %v1149_v61 = vadd.f32 %v1148_v40, %v7623_v57  ;;  %v1150_v62 = vpop.f32.mrb[15].mxu1  ;;  %v6724_v40 = vld [vmem:[#allocation2 + $0x2e0] ss:$8 sps:$4 sm:$0xff]  }
 0x210   : > { %v1326_v63 = vmax.f32 %v1147_v50, 0.0  ;;  %v1151_v1 = vadd.f32 %v1150_v62, %v7626_v58  ;;  %2207 = vmatpush1.bf16.msra.mxu0 %v7609_v53 }
 0x211   : > { %v1327_v51 = vmax.f32 %v1149_v61, 0.0  ;;  %2208 = vmatprep.subr.bf16.mxu0 %v7613_v54 }
 0x212   : > { %v1328_v2 = vmax.f32 %v1151_v1, 0.0 }
 0x213   : > { %v1399_v52 = vpack.c.bf16 %v1327_v51, %v1325_v56 }
 0x214   : > { %v1154_v5 = vpop.f32.mrb[16].mxu1  ;;  %v1400_v6 = vpack.c.bf16 %v1328_v2, %v1326_v63  ;;  %2209 = vmatpush1.bf16.msra.mxu0 %v7615_v55 }
 0x215   : > { %v1155_v7 = vadd.f32 %v1154_v5, %v7623_v57  ;;  %v1156_v8 = vpop.f32.mrb[17].mxu1  ;;  %2210 = vmatprep.subr.bf16.mxu0 %v7628_v59  ;;  %v6717_v59 = vld [vmem:[#allocation2 + $0x2b4] ss:$8 sps:$4 sm:$0xff]  }
 0x216   : > { %v1157_v53 = vadd.f32 %v1156_v8, %v7626_v58  ;;  %v1158_v9 = vpop.f32.mrb[18].mxu1  ;;  %1701 = vmatprep.mubr.bf16.mxu0 %v1400_v6  ;;  %6508 = vmatprep.subr.bf16.mxu1 %v6717_v59 }
 0x217   : > { %v1329_v54 = vmax.f32 %v1155_v7, 0.0  ;;  %v1159_v11 = vadd.f32 %v1158_v9, %v7623_v57  ;;  %v1160_v13 = vpop.f32.mrb[19].mxu1  ;;  %1702 = vmatmul.mubr.bf16.gmra.mrb[92].mxu0 %v1399_v52  ;;  %6524 = vmatpush1.bf16.msra.mxu1 %v6715_v22 }
 0x218   : > { %v1330_v15 = vmax.f32 %v1157_v53, 0.0  ;;  %v1161_v55 = vadd.f32 %v1160_v13, %v7626_v58  ;;  %2211 = vmatpush1.bf16.msra.mxu0 %v7630_v60  ;;  %v6720_v60 = vld [vmem:[#allocation2 + $0x2c4] ss:$8 sps:$4 sm:$0xff]  }
 0x219   : > { %v1331_v17 = vmax.f32 %v1159_v11, 0.0  ;;  %2212 = vmatprep.subr.bf16.mxu0 %v7638_v10  ;;  %6509 = vmatprep.subr.bf16.mxu1 %v6720_v60 }
 0x21a   : > { %v1332_v18 = vmax.f32 %v1161_v55, 0.0 }
 0x21b   : > { %v1401_v19 = vpack.c.bf16 %v1331_v17, %v1329_v54  ;;  %6525 = vmatpush1.bf16.msra.mxu1 %v6718_v30 }
 0x21c   : > { %v1164_v20 = vpop.f32.mrb[20].mxu1  ;;  %v1402_v21 = vpack.c.bf16 %v1332_v18, %v1330_v15  ;;  %2213 = vmatpush1.bf16.msra.mxu0 %v7640_v12  ;;  %6510 = vmatprep.subr.bf16.mxu1 %v6723_v32 }
 0x21d   : > { %v1165_v23 = vadd.f32 %v1164_v20, %v7623_v57  ;;  %v1166_v24 = vpop.f32.mrb[21].mxu1  ;;  %2214 = vmatprep.subr.bf16.mxu0 %v7654_v38 }
 0x21e   : > { %v1167_v25 = vadd.f32 %v1166_v24, %v7626_v58  ;;  %v1168_v10 = vpop.f32.mrb[22].mxu1  ;;  %1711 = vmatprep.mubr.bf16.mxu0 %v1402_v21 }
 0x21f   : > { %v1333_v26 = vmax.f32 %v1165_v23, 0.0  ;;  %v1169_v27 = vadd.f32 %v1168_v10, %v7623_v57  ;;  %v1170_v28 = vpop.f32.mrb[23].mxu1  ;;  %1712 = vmatmul.mubr.bf16.gmra.mrb[96].mxu0 %v1401_v19  ;;  %6526 = vmatpush1.bf16.msra.mxu1 %v6721_v41 }
 0x220   : > { %v1334_v29 = vmax.f32 %v1167_v25, 0.0  ;;  %v1171_v12 = vadd.f32 %v1170_v28, %v7626_v58  ;;  %2215 = vmatpush1.bf16.msra.mxu0 %v7657_v43  ;;  %6511 = vmatprep.subr.bf16.mxu1 %v6726_v45 }
 0x221   : > { %v1335_v31 = vmax.f32 %v1169_v27, 0.0  ;;  %2216 = vmatprep.subr.bf16.mxu0 %v6711_v3 }
 0x222   : > { %v1336_v33 = vmax.f32 %v1171_v12, 0.0 }
 0x223   : > { %v1403_v34 = vpack.c.bf16 %v1335_v31, %v1333_v26  ;;  %6527 = vmatpush1.bf16.msra.mxu1 %v6724_v40 }
 0x224   : > { %v1174_v35 = vpop.f32.mrb[24].mxu1  ;;  %v1404_v38 = vpack.c.bf16 %v1336_v33, %v1334_v29  ;;  %2217 = vmatpush1.bf16.msra.mxu0 %v6709_v4 }
 0x225   : > { %v1175_v42 = vadd.f32 %v1174_v35, %v7623_v57  ;;  %v1176_v44 = vpop.f32.mrb[25].mxu1  ;;  %2218 = vmatprep.subr.bf16.mxu0 %v6714_v14 }
 0x226   : > { %v1177_v46 = vadd.f32 %v1176_v44, %v7626_v58  ;;  %v1178_v43 = vpop.f32.mrb[26].mxu1  ;;  %1721 = vmatprep.mubr.bf16.mxu0 %v1404_v38 }
 0x227   : > { %v1337_v47 = vmax.f32 %v1175_v42, 0.0  ;;  %v1179_v48 = vadd.f32 %v1178_v43, %v7623_v57  ;;  %v1180_v49 = vpop.f32.mrb[27].mxu1  ;;  %1722 = vmatmul.mubr.bf16.gmra.mrb[100].mxu0 %v1403_v34 }
 0x228   : > { %v1338_v39 = vmax.f32 %v1177_v46, 0.0  ;;  %v1181_v50 = vadd.f32 %v1180_v49, %v7626_v58  ;;  %2219 = vmatpush1.bf16.msra.mxu0 %v6712_v16 }
 0x229   : > { %v1339_v56 = vmax.f32 %v1179_v48, 0.0  ;;  %2220 = vmatprep.subr.bf16.mxu0 %v6717_v59 }
 0x22a   : > { %v1340_v61 = vmax.f32 %v1181_v50, 0.0 }
 0x22b   : > { %v1405_v62 = vpack.c.bf16 %v1339_v56, %v1337_v47 }
 0x22c   : > { %v1184_v63 = vpop.f32.mrb[28].mxu1  ;;  %v1406_v1 = vpack.c.bf16 %v1340_v61, %v1338_v39  ;;  %2221 = vmatpush1.bf16.msra.mxu0 %v6715_v22 }
 0x22d   : > { %v1185_v51 = vadd.f32 %v1184_v63, %v7623_v57  ;;  %v1186_v2 = vpop.f32.mrb[29].mxu1  ;;  %2222 = vmatprep.subr.bf16.mxu0 %v6720_v60 }
 0x22e   : > { %v1187_v3 = vadd.f32 %v1186_v2, %v7626_v58  ;;  %v1188_v52 = vpop.f32.mrb[30].mxu1  ;;  %1731 = vmatprep.mubr.bf16.mxu0 %v1406_v1 }
 0x22f   : > { %v1341_v4 = vmax.f32 %v1185_v51, 0.0  ;;  %v1189_v5 = vadd.f32 %v1188_v52, %v7623_v57  ;;  %v1190_v6 = vpop.f32.mrb[31].mxu1  ;;  %1732 = vmatmul.mubr.bf16.gmra.mrb[104].mxu0 %v1405_v62 }
 0x230   : > { %v1342_v7 = vmax.f32 %v1187_v3, 0.0  ;;  %v1191_v8 = vadd.f32 %v1190_v6, %v7626_v58  ;;  %2223 = vmatpush1.bf16.msra.mxu0 %v6718_v30 }
 0x231   : > { %v1343_v53 = vmax.f32 %v1189_v5, 0.0  ;;  %2224 = vmatprep.subr.bf16.mxu0 %v6723_v32 }
 0x232   : > { %v1344_v9 = vmax.f32 %v1191_v8, 0.0 }
 0x233   : > { %v1407_v54 = vpack.c.bf16 %v1343_v53, %v1341_v4 }
 0x234   : > { %v1194_v11 = vpop.f32.mrb[32].mxu1  ;;  %v1408_v13 = vpack.c.bf16 %v1344_v9, %v1342_v7  ;;  %2225 = vmatpush1.bf16.msra.mxu0 %v6721_v41 }
 0x235   : > { %v1195_v14 = vadd.f32 %v1194_v11, %v7623_v57  ;;  %v1196_v15 = vpop.f32.mrb[33].mxu1  ;;  %2226 = vmatprep.subr.bf16.mxu0 %v6726_v45 }
 0x236   : > { %v1197_v55 = vadd.f32 %v1196_v15, %v7626_v58  ;;  %v1198_v16 = vpop.f32.mrb[34].mxu1  ;;  %1741 = vmatprep.mubr.bf16.mxu0 %v1408_v13  ;;  %v6727_v13 = vld [vmem:[#allocation2 + $0x2f0] ss:$8 sps:$4 sm:$0xff]  }
 0x237   : > { %v1345_v17 = vmax.f32 %v1195_v14, 0.0  ;;  %v1199_v59 = vadd.f32 %v1198_v16, %v7623_v57  ;;  %v1200_v18 = vpop.f32.mrb[35].mxu1  ;;  %1742 = vmatmul.mubr.bf16.gmra.mrb[108].mxu0 %v1407_v54  ;;  %v6729_v14 = vld [vmem:[#allocation2 + $0x2f4] ss:$8 sps:$4 sm:$0xff]  }
 0x238   : > { %v1346_v19 = vmax.f32 %v1197_v55, 0.0  ;;  %v1201_v20 = vadd.f32 %v1200_v18, %v7626_v58  ;;  %2227 = vmatpush1.bf16.msra.mxu0 %v6724_v40  ;;  %6512 = vmatprep.subr.bf16.mxu1 %v6729_v14 }
 0x239   : > { %v1347_v21 = vmax.f32 %v1199_v59, 0.0  ;;  %2228 = vmatprep.subr.bf16.mxu0 %v6729_v14  ;;  %6528 = vmatpush1.bf16.msra.mxu1 %v6727_v13 }
 0x23a   : > { %v1348_v22 = vmax.f32 %v1201_v20, 0.0 }
 0x23b   : > { %v1409_v23 = vpack.c.bf16 %v1347_v21, %v1345_v17 }
 0x23c   : > { %v1204_v24 = vpop.f32.mrb[36].mxu1  ;;  %v1410_v60 = vpack.c.bf16 %v1348_v22, %v1346_v19  ;;  %2229 = vmatpush1.bf16.msra.mxu0 %v6727_v13 }
 0x23d   : > { %v1205_v25 = vadd.f32 %v1204_v24, %v7623_v57  ;;  %v1206_v10 = vpop.f32.mrb[37].mxu1 }
 0x23e   : > { %v1207_v26 = vadd.f32 %v1206_v10, %v7626_v58  ;;  %v1208_v27 = vpop.f32.mrb[38].mxu1  ;;  %1751 = vmatprep.mubr.bf16.mxu0 %v1410_v60 }
 0x23f   : > { %v1349_v28 = vmax.f32 %v1205_v25, 0.0  ;;  %v1209_v29 = vadd.f32 %v1208_v27, %v7623_v57  ;;  %v1210_v12 = vpop.f32.mrb[39].mxu1  ;;  %1752 = vmatmul.mubr.bf16.gmra.mrb[112].mxu0 %v1409_v23 }
 0x240   : > { %v1350_v30 = vmax.f32 %v1207_v26, 0.0  ;;  %v1211_v31 = vadd.f32 %v1210_v12, %v7626_v58  ;;  %v6019_v12 = vld [vmem:[%s9110_s1 + $0x48] sm:$0xff] }
 0x241   : > { %v1351_v32 = vmax.f32 %v1209_v29, 0.0 }
 0x242   : > { %v1352_v33 = vmax.f32 %v1211_v31, 0.0 }
 0x243   : > { %v1411_v34 = vpack.c.bf16 %v1351_v32, %v1349_v28 }
 0x244   : > { %v1214_v35 = vpop.f32.mrb[40].mxu1  ;;  %v1412_v38 = vpack.c.bf16 %v1352_v33, %v1350_v30  ;;  %v6021_v30 = vld [vmem:[%s9110_s1 + $0x58] sm:$0xff] }
 0x245   : > { %v1215_v41 = vadd.f32 %v1214_v35, %v7623_v57  ;;  %v1216_v42 = vpop.f32.mrb[41].mxu1  ;;  %v6481_v33 = vpack.c.bf16 %v6021_v30, %v6019_v12 }
 0x246   : > { %v1217_v44 = vadd.f32 %v1216_v42, %v7626_v58  ;;  %v1218_v45 = vpop.f32.mrb[42].mxu1  ;;  %1761 = vmatprep.mubr.bf16.mxu0 %v1412_v38 }
 0x247   : > { %v1353_v46 = vmax.f32 %v1215_v41, 0.0  ;;  %v1219_v43 = vadd.f32 %v1218_v45, %v7623_v57  ;;  %v1220_v47 = vpop.f32.mrb[43].mxu1  ;;  %1762 = vmatmul.mubr.bf16.gmra.mrb[116].mxu0 %v1411_v34  ;;  %6482 = vmatprep.subr.bf16.mxu0 %v6481_v33 }
 0x248   : > { %v1354_v48 = vmax.f32 %v1217_v44, 0.0  ;;  %v1221_v49 = vadd.f32 %v1220_v47, %v7626_v58 }
 0x249   : > { %v1355_v39 = vmax.f32 %v1219_v43, 0.0 }
 0x24a   : > { %v1356_v50 = vmax.f32 %v1221_v49, 0.0 }
 0x24b   : > { %v1413_v40 = vpack.c.bf16 %v1355_v39, %v1353_v46 }
 0x24c   : > { %v1224_v56 = vpop.f32.mrb[44].mxu1  ;;  %v1414_v61 = vpack.c.bf16 %v1356_v50, %v1354_v48 }
 0x24d   : > { %v1225_v62 = vadd.f32 %v1224_v56, %v7623_v57  ;;  %v1226_v63 = vpop.f32.mrb[45].mxu1 }
 0x24e   : > { %v1227_v1 = vadd.f32 %v1226_v63, %v7626_v58  ;;  %v1228_v51 = vpop.f32.mrb[46].mxu1  ;;  %1771 = vmatprep.mubr.bf16.mxu0 %v1414_v61 }
 0x24f   : > { %v1357_v2 = vmax.f32 %v1225_v62, 0.0  ;;  %v1229_v3 = vadd.f32 %v1228_v51, %v7623_v57  ;;  %v1230_v52 = vpop.f32.mrb[47].mxu1  ;;  %1772 = vmatmul.mubr.bf16.gmra.mrb[120].mxu0 %v1413_v40 }
 0x250   : > { %v1358_v4 = vmax.f32 %v1227_v1, 0.0  ;;  %v1231_v5 = vadd.f32 %v1230_v52, %v7626_v58 }
 0x251   : > { %v1359_v6 = vmax.f32 %v1229_v3, 0.0 }
 0x252   : > { %v1360_v7 = vmax.f32 %v1231_v5, 0.0 }
 0x253   : > { %v1415_v8 = vpack.c.bf16 %v1359_v6, %v1357_v2 }
 0x254   : > { %v1234_v53 = vpop.f32.mrb[48].mxu1  ;;  %v1416_v9 = vpack.c.bf16 %v1360_v7, %v1358_v4 }
 0x255   : > { %v1235_v54 = vadd.f32 %v1234_v53, %v7623_v57  ;;  %v1236_v11 = vpop.f32.mrb[49].mxu1 }
 0x256   : > { %v1237_v15 = vadd.f32 %v1236_v11, %v7626_v58  ;;  %v1238_v55 = vpop.f32.mrb[50].mxu1  ;;  %1781 = vmatprep.mubr.bf16.mxu0 %v1416_v9 }
 0x257   : > { %v1361_v16 = vmax.f32 %v1235_v54, 0.0  ;;  %v1239_v17 = vadd.f32 %v1238_v55, %v7623_v57  ;;  %v1240_v59 = vpop.f32.mrb[51].mxu1  ;;  %1782 = vmatmul.mubr.bf16.gmra.mrb[124].mxu0 %v1415_v8 }
 0x258   : > { %v1362_v18 = vmax.f32 %v1237_v15, 0.0  ;;  %v1241_v19 = vadd.f32 %v1240_v59, %v7626_v58 }
 0x259   : > { %v1363_v20 = vmax.f32 %v1239_v17, 0.0 }
 0x25a   : > { %v1364_v21 = vmax.f32 %v1241_v19, 0.0 }
 0x25b   : > { %v1417_v22 = vpack.c.bf16 %v1363_v20, %v1361_v16 }
 0x25c   : > { %v1244_v23 = vpop.f32.mrb[52].mxu1  ;;  %v1418_v24 = vpack.c.bf16 %v1364_v21, %v1362_v18 }
 0x25d   : > { %v1245_v60 = vadd.f32 %v1244_v23, %v7623_v57  ;;  %v1246_v25 = vpop.f32.mrb[53].mxu1 }
 0x25e   : > { %v1247_v10 = vadd.f32 %v1246_v25, %v7626_v58  ;;  %v1248_v26 = vpop.f32.mrb[54].mxu1  ;;  %1791 = vmatprep.mubr.bf16.mxu0 %v1418_v24 }
 0x25f   : > { %v1365_v27 = vmax.f32 %v1245_v60, 0.0  ;;  %v1249_v28 = vadd.f32 %v1248_v26, %v7623_v57  ;;  %v1250_v29 = vpop.f32.mrb[55].mxu1  ;;  %1792 = vmatmul.mubr.bf16.gmra.mrb[128].mxu0 %v1417_v22 }
 0x260   : > { %v1366_v31 = vmax.f32 %v1247_v10, 0.0  ;;  %v1251_v32 = vadd.f32 %v1250_v29, %v7626_v58 }
 0x261   : > { %v1367_v34 = vmax.f32 %v1249_v28, 0.0 }
 0x262   : > { %v1368_v35 = vmax.f32 %v1251_v32, 0.0 }
 0x263   : > { %v1419_v38 = vpack.c.bf16 %v1367_v34, %v1365_v27 }
 0x264   : > { %v1254_v41 = vpop.f32.mrb[56].mxu1  ;;  %v1420_v42 = vpack.c.bf16 %v1368_v35, %v1366_v31 }
 0x265   : > { %v1255_v44 = vadd.f32 %v1254_v41, %v7623_v57  ;;  %v1256_v45 = vpop.f32.mrb[57].mxu1 }
 0x266   : > { %v1257_v46 = vadd.f32 %v1256_v45, %v7626_v58  ;;  %v1258_v43 = vpop.f32.mrb[58].mxu1  ;;  %1801 = vmatprep.mubr.bf16.mxu0 %v1420_v42 }
 0x267   : > { %v1369_v47 = vmax.f32 %v1255_v44, 0.0  ;;  %v1259_v48 = vadd.f32 %v1258_v43, %v7623_v57  ;;  %v1260_v49 = vpop.f32.mrb[59].mxu1  ;;  %1802 = vmatmul.mubr.bf16.gmra.mrb[132].mxu0 %v1419_v38 }
 0x268   : > { %v1370_v39 = vmax.f32 %v1257_v46, 0.0  ;;  %v1261_v50 = vadd.f32 %v1260_v49, %v7626_v58 }
 0x269   : > { %v1371_v40 = vmax.f32 %v1259_v48, 0.0 }
 0x26a   : > { %v1372_v56 = vmax.f32 %v1261_v50, 0.0 }
 0x26b   : > { %v1421_v61 = vpack.c.bf16 %v1371_v40, %v1369_v47 }
 0x26c   : > { %v1264_v62 = vpop.f32.mrb[60].mxu1  ;;  %v1422_v63 = vpack.c.bf16 %v1372_v56, %v1370_v39 }
 0x26d   : > { %v1265_v1 = vadd.f32 %v1264_v62, %v7623_v57  ;;  %v1266_v51 = vpop.f32.mrb[61].mxu1 }
 0x26e   : > { %v1267_v2 = vadd.f32 %v1266_v51, %v7626_v58  ;;  %v1268_v3 = vpop.f32.mrb[62].mxu1  ;;  %1811 = vmatprep.mubr.bf16.mxu0 %v1422_v63 }
 0x26f   : > { %v1373_v52 = vmax.f32 %v1265_v1, 0.0  ;;  %v1269_v4 = vadd.f32 %v1268_v3, %v7623_v57  ;;  %v1270_v5 = vpop.f32.mrb[63].mxu1  ;;  %1812 = vmatmul.mubr.bf16.gmra.mrb[136].mxu0 %v1421_v61 }
 0x270   : > { %v1374_v6 = vmax.f32 %v1267_v2, 0.0  ;;  %v1271_v7 = vadd.f32 %v1270_v5, %v7626_v58 }
 0x271   : > { %v1375_v8 = vmax.f32 %v1269_v4, 0.0 }
 0x272   : > { %v1376_v53 = vmax.f32 %v1271_v7, 0.0 }
 0x273   : > { %v1423_v9 = vpack.c.bf16 %v1375_v8, %v1373_v52 }
 0x274   : > { %v1274_v54 = vpop.f32.mrb[64].mxu1  ;;  %v1424_v11 = vpack.c.bf16 %v1376_v53, %v1374_v6  ;;  %v6732_v53 = vld [vmem:[#allocation2 + $0x304] ss:$8 sps:$4 sm:$0xff]  }
 0x275   : > { %v1275_v13 = vadd.f32 %v1274_v54, %v7623_v57  ;;  %v1276_v14 = vpop.f32.mrb[65].mxu1  ;;  %3151 = vmatprep.subr.bf16.mxu1 %v6732_v53 }
 0x276   : > { %v1277_v15 = vadd.f32 %v1276_v14, %v7626_v58  ;;  %v1278_v55 = vpop.f32.mrb[66].mxu1  ;;  %1821 = vmatprep.mubr.bf16.mxu0 %v1424_v11 }
 0x277   : > { %v1377_v16 = vmax.f32 %v1275_v13, 0.0  ;;  %v1279_v17 = vadd.f32 %v1278_v55, %v7623_v57  ;;  %v1280_v59 = vpop.f32.mrb[67].mxu1  ;;  %1822 = vmatmul.mubr.bf16.gmra.mrb[140].mxu0 %v1423_v9  ;;  %v5952_v9 = vld [vmem:[%s9112_s3 + $0x4] sm:$0x3] }
 0x278   : > { %v1378_v18 = vmax.f32 %v1277_v15, 0.0  ;;  %v1281_v19 = vadd.f32 %v1280_v59, %v7626_v58  ;;  %v7750_v54 = vrot.slane %v5952_v9, %v7502_v36 }
 0x279   : > { %v1379_v20 = vmax.f32 %v1279_v17, 0.0 }
 0x27a   : > { %v1380_v21 = vmax.f32 %v1281_v19, 0.0  ;;  %v6018_v19 = vld [vmem:[%s9110_s1 + $0x40] sm:$0xff] }
 0x27b   : > { %v1425_v22 = vpack.c.bf16 %v1379_v20, %v1377_v16  ;;  %v6020_v20 = vld [vmem:[%s9110_s1 + $0x50] sm:$0xff] }
 0x27c   : > { %v1284_v23 = vpop.f32.mrb[68].mxu1  ;;  %v1426_v24 = vpack.c.bf16 %v1380_v21, %v1378_v18 }
 0x27d   : > { %v1285_v60 = vadd.f32 %v1284_v23, %v7623_v57  ;;  %v1286_v25 = vpop.f32.mrb[69].mxu1  ;;  %v6023_v23 = vld [vmem:[%s9110_s1 + $0x68] sm:$0xff] }
 0x27e   : > { %v1287_v10 = vadd.f32 %v1286_v25, %v7626_v58  ;;  %v1288_v26 = vpop.f32.mrb[70].mxu1  ;;  %1831 = vmatprep.mubr.bf16.mxu0 %v1426_v24  ;;  %v6025_v24 = vld [vmem:[%s9110_s1 + $0x78] sm:$0xff] }
 0x27f   : > { %v1381_v27 = vmax.f32 %v1285_v60, 0.0  ;;  %v1289_v28 = vadd.f32 %v1288_v26, %v7623_v57  ;;  %v1290_v29 = vpop.f32.mrb[71].mxu1  ;;  %1832 = vmatmul.mubr.bf16.gmra.mrb[144].mxu0 %v1425_v22  ;;  %v6483_v26 = vpack.c.bf16 %v6020_v20, %v6018_v19  ;;  %v6735_v19 = vld [vmem:[#allocation2 + $0x314] ss:$8 sps:$4 sm:$0xff]  }
 0x280   : > { %v1382_v12 = vmax.f32 %v1287_v10, 0.0  ;;  %v1291_v30 = vadd.f32 %v1290_v29, %v7626_v58  ;;  %v6485_v29 = vpack.c.bf16 %v6025_v24, %v6023_v23 }
 0x281   : > { %v1383_v31 = vmax.f32 %v1289_v28, 0.0 }
 0x282   : > { %v1384_v32 = vmax.f32 %v1291_v30, 0.0  ;;  %v6024_v30 = vld [vmem:[%s9110_s1 + $0x70] sm:$0xff] }
 0x283   : > { %v1427_v33 = vpack.c.bf16 %v1383_v31, %v1381_v27 }
 0x284   : > { %v1294_v34 = vpop.f32.mrb[72].mxu1  ;;  %v1428_v35 = vpack.c.bf16 %v1384_v32, %v1382_v12  ;;  %v6022_v12 = vld [vmem:[%s9110_s1 + $0x60] sm:$0xff] }
 0x285   : > { %v1295_v38 = vadd.f32 %v1294_v34, %v7623_v57  ;;  %v1296_v41 = vpop.f32.mrb[73].mxu1 }
 0x286   : > { %v1297_v42 = vadd.f32 %v1296_v41, %v7626_v58  ;;  %v1298_v44 = vpop.f32.mrb[74].mxu1  ;;  %1841 = vmatprep.mubr.bf16.mxu0 %v1428_v35 }
 0x287   : > { %v1385_v45 = vmax.f32 %v1295_v38, 0.0  ;;  %v1299_v46 = vadd.f32 %v1298_v44, %v7623_v57  ;;  %v1300_v43 = vpop.f32.mrb[75].mxu1  ;;  %1842 = vmatmul.mubr.bf16.gmra.mrb[148].mxu0 %v1427_v33  ;;  %v6487_v38 = vpack.c.bf16 %v6024_v30, %v6022_v12  ;;  %v7051_v12 = vld [vmem:[%s7381_s16 + $0x8] sm:$0xff] }
 0x288   : > { %v1386_v47 = vmax.f32 %v1297_v42, 0.0  ;;  %v1301_v48 = vadd.f32 %v1300_v43, %v7626_v58 }
 0x289   : > { %v1387_v49 = vmax.f32 %v1299_v46, 0.0 }
 0x28a   : > { %v1388_v39 = vmax.f32 %v1301_v48, 0.0 }
 0x28b   : > { %v1429_v50 = vpack.c.bf16 %v1387_v49, %v1385_v45 }
 0x28c   : > { %v1304_v40 = vpop.f32.mrb[76].mxu1  ;;  %v1430_v56 = vpack.c.bf16 %v1388_v39, %v1386_v47 }
 0x28d   : > { %v1305_v61 = vadd.f32 %v1304_v40, %v7623_v57  ;;  %v1306_v62 = vpop.f32.mrb[77].mxu1 }
 0x28e   : > { %v1307_v63 = vadd.f32 %v1306_v62, %v7626_v58  ;;  %v1308_v1 = vpop.f32.mrb[78].mxu1  ;;  %1851 = vmatprep.mubr.bf16.mxu0 %v1430_v56 }
 0x28f   : > { %v1389_v51 = vmax.f32 %v1305_v61, 0.0  ;;  %v1309_v2 = vadd.f32 %v1308_v1, %v7623_v57  ;;  %v1310_v3 = vpop.f32.mrb[79].mxu1  ;;  %1852 = vmatmul.mubr.bf16.gmra.mrb[152].mxu0 %v1429_v50  ;;  %v7753_v57 = vrot.slane %v5952_v9, %v7504_v37 }
 0x290   : > { %v1390_v52 = vmax.f32 %v1307_v63, 0.0  ;;  %v1311_v4 = vadd.f32 %v1310_v3, %v7626_v58 }
 0x291   : > { %v1391_v5 = vmax.f32 %v1309_v2, 0.0 }
 0x292   : > { %v1392_v6 = vmax.f32 %v1311_v4, 0.0 }
 0x293   : > { %v1431_v7 = vpack.c.bf16 %v1391_v5, %v1389_v51 }
 0x294   : > { %v1432_v8 = vpack.c.bf16 %v1392_v6, %v1390_v52 }
 0x296   : > { %1861 = vmatprep.mubr.bf16.mxu0 %v1432_v8 }
 0x297   : > { %1862 = vmatmul.mubr.bf16.gmra.mrb[156].mxu0 %v1431_v7 }
 0x2d2   : > { %v1673_v11 = vpop.f32.mrb[80].mxu0 }
 0x2d3   : > { %v1674_v58 = vadd.f32 %v1673_v11, %v7750_v54  ;;  %v1675_v13 = vpop.f32.mrb[81].mxu0 }
 0x2d4   : > { %v1676_v14 = vadd.f32 %v1675_v13, %v7753_v57  ;;  %v1677_v15 = vpop.f32.mrb[82].mxu0 }
 0x2d5   : > { %v1678_v55 = vadd.f32 %v1677_v15, %v7750_v54  ;;  %v1679_v16 = vpop.f32.mrb[83].mxu0  ;;  %v1872_v59 = vmax.f32 %v1674_v58, 0.0 }
 0x2d6   : > { %v1680_v17 = vadd.f32 %v1679_v16, %v7753_v57  ;;  %v1873_v21 = vmax.f32 %v1676_v14, 0.0 }
 0x2d7   : > { %v1874_v18 = vmax.f32 %v1678_v55, 0.0 }
 0x2d8   : > { %v1875_v22 = vmax.f32 %v1680_v17, 0.0  ;;  %v6730_v17 = vld [vmem:[#allocation2 + $0x300] ss:$8 sps:$4 sm:$0xff]  }
 0x2d9   : > { %v1952_v60 = vpack.c.bf16 %v1874_v18, %v1872_v59 }
 0x2da   : > { %v1683_v25 = vpop.f32.mrb[84].mxu0  ;;  %v1953_v10 = vpack.c.bf16 %v1875_v22, %v1873_v21  ;;  %v7050_v22 = vld [vmem:[%s7381_s16] sm:$0xff] }
 0x2db   : > { %v1684_v27 = vadd.f32 %v1683_v25, %v7750_v54  ;;  %v1685_v28 = vpop.f32.mrb[85].mxu0 }
 0x2dc   : > { %v1686_v31 = vadd.f32 %v1685_v28, %v7753_v57  ;;  %v1687_v32 = vpop.f32.mrb[86].mxu0  ;;  %2230 = vmatprep.mubr.bf16.mxu0 %v1953_v10  ;;  %v6738_v28 = vld [vmem:[#allocation2 + $0x324] ss:$8 sps:$4 sm:$0xff]  }
 0x2dd   : > { %v1688_v33 = vadd.f32 %v1687_v32, %v7750_v54  ;;  %v1689_v34 = vpop.f32.mrb[87].mxu0  ;;  %2231 = vmatmul.mubr.bf16.vlgmr.msra.gmra.mrb[160].mxu0 %v1952_v60  ;;  %v1876_v41 = vmax.f32 %v1684_v27, 0.0 }
 0x2de   : > { %v1690_v35 = vadd.f32 %v1689_v34, %v7753_v57  ;;  %6484 = vmatpush1.bf16.msra.mxu0 %v6483_v26  ;;  %v1877_v44 = vmax.f32 %v1686_v31, 0.0  ;;  %v6733_v26 = vld [vmem:[#allocation2 + $0x310] ss:$8 sps:$4 sm:$0xff]  }
 0x2df   : > { %v1878_v42 = vmax.f32 %v1688_v33, 0.0  ;;  %6486 = vmatprep.subr.bf16.mxu0 %v6485_v29  ;;  %v6736_v33 = vld [vmem:[#allocation2 + $0x320] ss:$8 sps:$4 sm:$0xff]  }
 0x2e0   : > { %v1879_v45 = vmax.f32 %v1690_v35, 0.0 }
 0x2e1   : > { %v1954_v46 = vpack.c.bf16 %v1878_v42, %v1876_v41 }
 0x2e2   : > { %v1693_v43 = vpop.f32.mrb[88].mxu0  ;;  %v1955_v47 = vpack.c.bf16 %v1879_v45, %v1877_v44  ;;  %6488 = vmatpush1.bf16.msra.mxu0 %v6487_v38  ;;  %v6741_v38 = vld [vmem:[#allocation2 + $0x334] ss:$8 sps:$4 sm:$0xff]  }
 0x2e3   : > { %v1694_v48 = vadd.f32 %v1693_v43, %v7750_v54  ;;  %v1695_v49 = vpop.f32.mrb[89].mxu0  ;;  %v7052_v44 = vld [vmem:[%s7381_s16 + $0x10] sm:$0xff] }
 0x2e4   : > { %v1696_v39 = vadd.f32 %v1695_v49, %v7753_v57  ;;  %v1697_v50 = vpop.f32.mrb[90].mxu0  ;;  %2240 = vmatprep.mubr.bf16.mxu0 %v1955_v47  ;;  %v6739_v49 = vld [vmem:[#allocation2 + $0x330] ss:$8 sps:$4 sm:$0xff]  }
 0x2e5   : > { %v1698_v40 = vadd.f32 %v1697_v50, %v7750_v54  ;;  %v1699_v56 = vpop.f32.mrb[91].mxu0  ;;  %2241 = vmatmul.mubr.bf16.gmra.mrb[164].mxu0 %v1954_v46  ;;  %v1880_v62 = vmax.f32 %v1694_v48, 0.0  ;;  %v6744_v50 = vld [vmem:[#allocation2 + $0x344] ss:$8 sps:$4 sm:$0xff]  }
 0x2e6   : > { %v1700_v61 = vadd.f32 %v1699_v56, %v7753_v57  ;;  %v1881_v1 = vmax.f32 %v1696_v39, 0.0  ;;  %v7053_v56 = vld [vmem:[%s7381_s16 + $0x18] sm:$0xff] }
 0x2e7   : > { %v1882_v63 = vmax.f32 %v1698_v40, 0.0 }
 0x2e8   : > { %v1883_v51 = vmax.f32 %v1700_v61, 0.0 }
 0x2e9   : > { %v1956_v2 = vpack.c.bf16 %v1882_v63, %v1880_v62 }
 0x2ea   : > { %v1957_v3 = vpack.c.bf16 %v1883_v51, %v1881_v1  ;;  %v1703_v52 = vpop.f32.mrb[92].mxu0  ;;  %v6742_v1 = vld [vmem:[#allocation2 + $0x340] ss:$8 sps:$4 sm:$0xff]  }
 0x2eb   : > { %v1704_v4 = vadd.f32 %v1703_v52, %v7750_v54  ;;  %v1705_v5 = vpop.f32.mrb[93].mxu0 }
 0x2ec   : > { %2250 = vmatprep.mubr.bf16.mxu0 %v1957_v3  ;;  %v1706_v6 = vadd.f32 %v1705_v5, %v7753_v57  ;;  %v1707_v7 = vpop.f32.mrb[94].mxu0  ;;  %v6747_v3 = vld [vmem:[#allocation2 + $0x354] ss:$8 sps:$4 sm:$0xff]   ;;  %v7054_v5 = vld [vmem:[%s7381_s16 + $0x20] sm:$0xff] }
 0x2ed   : > { %2251 = vmatmul.mubr.bf16.gmra.mrb[168].mxu0 %v1956_v2  ;;  %v1884_v8 = vmax.f32 %v1704_v4, 0.0  ;;  %v1708_v53 = vadd.f32 %v1707_v7, %v7750_v54  ;;  %v1709_v9 = vpop.f32.mrb[95].mxu0 }
 0x2ee   : > { %v1885_v11 = vmax.f32 %v1706_v6, 0.0  ;;  %v1710_v58 = vadd.f32 %v1709_v9, %v7753_v57  ;;  %2504 = vmatprep.mubr.f32.mxu0 %v7229_v0 }
 0x2ef   : > { %v1886_v13 = vmax.f32 %v1708_v53, 0.0 }
 0x2f0   : > { %v1887_v14 = vmax.f32 %v1710_v58, 0.0 }
 0x2f1   : > { %v1958_v15 = vpack.c.bf16 %v1886_v13, %v1884_v8  ;;  %v6750_v13 = vld [vmem:[#allocation2 + $0x364] ss:$8 sps:$4 sm:$0xff]  }
 0x2f2   : > { %v1713_v55 = vpop.f32.mrb[96].mxu0  ;;  %v1959_v16 = vpack.c.bf16 %v1887_v14, %v1885_v11  ;;  %v6745_v11 = vld [vmem:[#allocation2 + $0x350] ss:$8 sps:$4 sm:$0xff]  }
 0x2f3   : > { %v1714_v59 = vadd.f32 %v1713_v55, %v7750_v54  ;;  %v1715_v18 = vpop.f32.mrb[97].mxu0 }
 0x2f4   : > { %v1716_v20 = vadd.f32 %v1715_v18, %v7753_v57  ;;  %v1717_v21 = vpop.f32.mrb[98].mxu0  ;;  %2260 = vmatprep.mubr.bf16.mxu1 %v1959_v16 }
 0x2f5   : > { %6026 = vmatmul.mubr.msk.f32.vlgmr.msra.gmra.mrb[172].mxu0 %vm329_vm0, %v7050_v22  ;;  %v1888_v23 = vmax.f32 %v1714_v59, 0.0  ;;  %v1718_v24 = vadd.f32 %v1717_v21, %v7750_v54  ;;  %v1719_v60 = vpop.f32.mrb[99].mxu0  ;;  %2261 = vmatmul.mubr.bf16.vlgmr.msra.gmra.mrb[80].mxu1 %v1958_v15  ;;  %v7055_v15 = vld [vmem:[%s7381_s16 + $0x28] sm:$0xff] }
 0x2f6   : > { %2510 = vmatprep.mubr.f32.mxu0 %v7229_v0  ;;  %v1889_v25 = vmax.f32 %v1716_v20, 0.0  ;;  %v1720_v10 = vadd.f32 %v1719_v60, %v7753_v57  ;;  %3152 = vmatpush1.bf16.msra.mxu1 %v6730_v17  ;;  %v6748_v59 = vld [vmem:[#allocation2 + $0x360] ss:$8 sps:$4 sm:$0xff]   ;;  %v6753_v20 = vld [vmem:[#allocation2 + $0x374] ss:$8 sps:$4 sm:$0xff]  }
 0x2f7   : > { %v1890_v27 = vmax.f32 %v1718_v24, 0.0  ;;  %3153 = vmatprep.subr.bf16.mxu1 %v6735_v19 }
 0x2f8   : > { %v1891_v29 = vmax.f32 %v1720_v10, 0.0 }
 0x2f9   : > { %6027 = vmatmul.mubr.msk.f32.gmra.mrb[174].mxu0 %vm329_vm0, %v7051_v12  ;;  %v1960_v30 = vpack.c.bf16 %v1890_v27, %v1888_v23  ;;  %v7056_v23 = vld [vmem:[%s7381_s16 + $0x30] sm:$0xff] }
 0x2fa   : > { %2516 = vmatprep.mubr.f32.mxu0 %v7229_v0  ;;  %v1723_v31 = vpop.f32.mrb[100].mxu0  ;;  %v1961_v32 = vpack.c.bf16 %v1891_v29, %v1889_v25  ;;  %3154 = vmatpush1.bf16.msra.mxu1 %v6733_v26  ;;  %v6751_v27 = vld [vmem:[#allocation2 + $0x370] ss:$8 sps:$4 sm:$0xff]   ;;  %v6756_v29 = vld [vmem:[#allocation2 + $0x384] ss:$8 sps:$4 sm:$0xff]  }
 0x2fb   : > { %v1724_v34 = vadd.f32 %v1723_v31, %v7750_v54  ;;  %v1725_v35 = vpop.f32.mrb[101].mxu0  ;;  %3155 = vmatprep.subr.bf16.mxu1 %v6738_v28 }
 0x2fc   : > { %v1726_v41 = vadd.f32 %v1725_v35, %v7753_v57  ;;  %v1727_v42 = vpop.f32.mrb[102].mxu0  ;;  %2270 = vmatprep.mubr.bf16.mxu1 %v1961_v32 }
 0x2fd   : > { %6028 = vmatmul.mubr.msk.f32.gmra.mrb[176].mxu0 %vm329_vm0, %v7052_v44  ;;  %v1892_v45 = vmax.f32 %v1724_v34, 0.0  ;;  %v1728_v46 = vadd.f32 %v1727_v42, %v7750_v54  ;;  %v1729_v43 = vpop.f32.mrb[103].mxu0  ;;  %2271 = vmatmul.mubr.bf16.gmra.mrb[84].mxu1 %v1960_v30  ;;  %v7057_v30 = vld [vmem:[%s7381_s16 + $0x38] sm:$0xff]  ;;  %v6754_v34 = vld [vmem:[#allocation2 + $0x380] ss:$8 sps:$4 sm:$0xff]  }
 0x2fe   : > { %2522 = vmatprep.mubr.f32.mxu0 %v7229_v0  ;;  %v1893_v47 = vmax.f32 %v1726_v41, 0.0  ;;  %v1730_v48 = vadd.f32 %v1729_v43, %v7753_v57  ;;  %3156 = vmatpush1.bf16.msra.mxu1 %v6736_v33  ;;  %v6759_v41 = vld [vmem:[#allocation2 + $0x394] ss:$8 sps:$4 sm:$0xff]  }
 0x2ff   : > { %v1894_v39 = vmax.f32 %v1728_v46, 0.0  ;;  %3157 = vmatprep.subr.bf16.mxu1 %v6741_v38 }
 0x300   : > { %v1895_v40 = vmax.f32 %v1730_v48, 0.0 }
 0x301   : > { %6029 = vmatmul.mubr.msk.f32.gmra.mrb[178].mxu0 %vm329_vm0, %v7053_v56  ;;  %v1962_v61 = vpack.c.bf16 %v1894_v39, %v1892_v45  ;;  %v7058_v45 = vld [vmem:[%s7381_s16 + $0x40] sm:$0xff]  ;;  %v6757_v39 = vld [vmem:[#allocation2 + $0x390] ss:$8 sps:$4 sm:$0xff]  }
 0x302   : > { %2528 = vmatprep.mubr.f32.mxu0 %v7229_v0  ;;  %v1733_v62 = vpop.f32.mrb[104].mxu0  ;;  %v1963_v63 = vpack.c.bf16 %v1895_v40, %v1893_v47  ;;  %3158 = vmatpush1.bf16.msra.mxu1 %v6739_v49  ;;  %v6762_v40 = vld [vmem:[#allocation2 + $0x3a4] ss:$8 sps:$4 sm:$0xff]  }
 0x303   : > { %v1734_v51 = vadd.f32 %v1733_v62, %v7750_v54  ;;  %v1735_v2 = vpop.f32.mrb[105].mxu0  ;;  %3159 = vmatprep.subr.bf16.mxu1 %v6744_v50 }
 0x304   : > { %v1736_v52 = vadd.f32 %v1735_v2, %v7753_v57  ;;  %v1737_v4 = vpop.f32.mrb[106].mxu0  ;;  %2280 = vmatprep.mubr.bf16.mxu1 %v1963_v63 }
 0x305   : > { %6030 = vmatmul.mubr.msk.f32.gmra.mrb[180].mxu0 %vm329_vm0, %v7054_v5  ;;  %v1896_v6 = vmax.f32 %v1734_v51, 0.0  ;;  %v1738_v7 = vadd.f32 %v1737_v4, %v7750_v54  ;;  %v1739_v8 = vpop.f32.mrb[107].mxu0  ;;  %2281 = vmatmul.mubr.bf16.gmra.mrb[88].mxu1 %v1962_v61  ;;  %v7059_v61 = vld [vmem:[%s7381_s16 + $0x48] sm:$0xff] }
 0x306   : > { %2534 = vmatprep.mubr.f32.mxu0 %v7229_v0  ;;  %v1897_v53 = vmax.f32 %v1736_v52, 0.0  ;;  %v1740_v9 = vadd.f32 %v1739_v8, %v7753_v57  ;;  %3160 = vmatpush1.bf16.msra.mxu1 %v6742_v1  ;;  %v6760_v51 = vld [vmem:[#allocation2 + $0x3a0] ss:$8 sps:$4 sm:$0xff]   ;;  %v6765_v52 = vld [vmem:[#allocation2 + $0x3b4] ss:$8 sps:$4 sm:$0xff]  }
 0x307   : > { %v1898_v58 = vmax.f32 %v1738_v7, 0.0  ;;  %3161 = vmatprep.subr.bf16.mxu1 %v6747_v3 }
 0x308   : > { %v1899_v14 = vmax.f32 %v1740_v9, 0.0 }
 0x309   : > { %6031 = vmatmul.mubr.msk.f32.gmra.mrb[182].mxu0 %vm329_vm0, %v7055_v15  ;;  %v1964_v55 = vpack.c.bf16 %v1898_v58, %v1896_v6  ;;  %v7060_v6 = vld [vmem:[%s7381_s16 + $0x50] sm:$0xff]  ;;  %v7061_v15 = vld [vmem:[%s7381_s16 + $0x58] sm:$0xff] }
 0x30a   : > { %2540 = vmatprep.mubr.f32.mxu0 %v7229_v0  ;;  %v1743_v16 = vpop.f32.mrb[108].mxu0  ;;  %v1965_v17 = vpack.c.bf16 %v1899_v14, %v1897_v53  ;;  %3162 = vmatpush1.bf16.msra.mxu1 %v6745_v11  ;;  %v6763_v58 = vld [vmem:[#allocation2 + $0x3b0] ss:$8 sps:$4 sm:$0xff]  }
 0x30b   : > { %v1744_v18 = vadd.f32 %v1743_v16, %v7750_v54  ;;  %v1745_v19 = vpop.f32.mrb[109].mxu0  ;;  %3163 = vmatprep.subr.bf16.mxu1 %v6750_v13 }
 0x30c   : > { %v1746_v21 = vadd.f32 %v1745_v19, %v7753_v57  ;;  %v1747_v22 = vpop.f32.mrb[110].mxu0  ;;  %2290 = vmatprep.mubr.bf16.mxu1 %v1965_v17 }
 0x30d   : > { %6032 = vmatmul.mubr.msk.f32.gmra.mrb[184].mxu0 %vm329_vm0, %v7056_v23  ;;  %v1900_v24 = vmax.f32 %v1744_v18, 0.0  ;;  %v1748_v60 = vadd.f32 %v1747_v22, %v7750_v54  ;;  %v1749_v25 = vpop.f32.mrb[111].mxu0  ;;  %2291 = vmatmul.mubr.bf16.gmra.mrb[92].mxu1 %v1964_v55 }
 0x30e   : > { %2546 = vmatprep.mubr.f32.mxu0 %v7229_v0  ;;  %v1901_v10 = vmax.f32 %v1746_v21, 0.0  ;;  %v1750_v26 = vadd.f32 %v1749_v25, %v7753_v57  ;;  %3164 = vmatpush1.bf16.msra.mxu1 %v6748_v59  ;;  %v7062_v21 = vld [vmem:[%s7381_s16 + $0x60] sm:$0xff] }
 0x30f   : > { %v1902_v28 = vmax.f32 %v1748_v60, 0.0  ;;  %3165 = vmatprep.subr.bf16.mxu1 %v6753_v20 }
 0x310   : > { %v1903_v12 = vmax.f32 %v1750_v26, 0.0 }
 0x311   : > { %6033 = vmatmul.mubr.msk.f32.gmra.mrb[186].mxu0 %vm329_vm0, %v7057_v30  ;;  %v1966_v31 = vpack.c.bf16 %v1902_v28, %v1900_v24 }
 0x312   : > { %2552 = vmatprep.mubr.f32.mxu0 %v7229_v0  ;;  %v1753_v32 = vpop.f32.mrb[112].mxu0  ;;  %v1967_v33 = vpack.c.bf16 %v1903_v12, %v1901_v10  ;;  %3166 = vmatpush1.bf16.msra.mxu1 %v6751_v27  ;;  %v7063_v27 = vld [vmem:[%s7381_s16 + $0x68] sm:$0xff] }
 0x313   : > { %v1754_v35 = vadd.f32 %v1753_v32, %v7750_v54  ;;  %v1755_v38 = vpop.f32.mrb[113].mxu0  ;;  %3167 = vmatprep.subr.bf16.mxu1 %v6756_v29 }
 0x314   : > { %v1756_v42 = vadd.f32 %v1755_v38, %v7753_v57  ;;  %v1757_v44 = vpop.f32.mrb[114].mxu0  ;;  %2300 = vmatprep.mubr.bf16.mxu1 %v1967_v33 }
 0x315   : > { %6034 = vmatmul.mubr.msk.f32.gmra.mrb[188].mxu0 %vm329_vm0, %v7058_v45  ;;  %v1904_v46 = vmax.f32 %v1754_v35, 0.0  ;;  %v1758_v43 = vadd.f32 %v1757_v44, %v7750_v54  ;;  %v1759_v47 = vpop.f32.mrb[115].mxu0  ;;  %2301 = vmatmul.mubr.bf16.gmra.mrb[96].mxu1 %v1966_v31 }
 0x316   : > { %2558 = vmatprep.mubr.f32.mxu0 %v7229_v0  ;;  %v1905_v48 = vmax.f32 %v1756_v42, 0.0  ;;  %v1760_v49 = vadd.f32 %v1759_v47, %v7753_v57  ;;  %3168 = vmatpush1.bf16.msra.mxu1 %v6754_v34  ;;  %v7064_v34 = vld [vmem:[%s7381_s16 + $0x70] sm:$0xff] }
 0x317   : > { %v1906_v50 = vmax.f32 %v1758_v43, 0.0  ;;  %3169 = vmatprep.subr.bf16.mxu1 %v6759_v41  ;;  %v7065_v43 = vld [vmem:[%s7381_s16 + $0x78] sm:$0xff] }
 0x318   : > { %v1907_v56 = vmax.f32 %v1760_v49, 0.0 }
 0x319   : > { %6035 = vmatmul.mubr.msk.f32.gmra.mrb[190].mxu0 %vm329_vm0, %v7059_v61  ;;  %v1968_v62 = vpack.c.bf16 %v1906_v50, %v1904_v46 }
 0x31a   : > { %2564 = vmatprep.mubr.f32.mxu0 %v7229_v0  ;;  %v1763_v63 = vpop.f32.mrb[116].mxu0  ;;  %v1969_v1 = vpack.c.bf16 %v1907_v56, %v1905_v48  ;;  %3170 = vmatpush1.bf16.msra.mxu1 %v6757_v39  ;;  %v6768_v56 = vld [vmem:[#allocation2 + $0x3c4] ss:$8 sps:$4 sm:$0xff]  }
 0x31b   : > { %v1764_v2 = vadd.f32 %v1763_v63, %v7750_v54  ;;  %v1765_v3 = vpop.f32.mrb[117].mxu0  ;;  %3171 = vmatprep.subr.bf16.mxu1 %v6762_v40  ;;  %v6766_v40 = vld [vmem:[#allocation2 + $0x3c0] ss:$8 sps:$4 sm:$0xff]  }
 0x31c   : > { %v1766_v4 = vadd.f32 %v1765_v3, %v7753_v57  ;;  %v1767_v5 = vpop.f32.mrb[118].mxu0  ;;  %2310 = vmatprep.mubr.bf16.mxu1 %v1969_v1  ;;  %v7066_v63 = vld [vmem:[%s7381_s16 + $0x80] sm:$0xff] }
 0x31d   : > { %6036 = vmatmul.mubr.msk.f32.gmra.mrb[192].mxu0 %vm329_vm0, %v7060_v6  ;;  %v1908_v7 = vmax.f32 %v1764_v2, 0.0  ;;  %v1768_v8 = vadd.f32 %v1767_v5, %v7750_v54  ;;  %v1769_v53 = vpop.f32.mrb[119].mxu0  ;;  %2311 = vmatmul.mubr.bf16.gmra.mrb[100].mxu1 %v1968_v62  ;;  %v7067_v6 = vld [vmem:[%s7381_s16 + $0x88] sm:$0xff] }
 0x31e   : > { %2570 = vmatprep.mubr.f32.mxu0 %v7229_v0  ;;  %v1909_v9 = vmax.f32 %v1766_v4, 0.0  ;;  %v1770_v11 = vadd.f32 %v1769_v53, %v7753_v57  ;;  %3172 = vmatpush1.bf16.msra.mxu1 %v6760_v51 }
 0x31f   : > { %v1910_v13 = vmax.f32 %v1768_v8, 0.0  ;;  %3173 = vmatprep.subr.bf16.mxu1 %v6765_v52 }
 0x320   : > { %v1911_v14 = vmax.f32 %v1770_v11, 0.0 }
 0x321   : > { %6037 = vmatmul.mubr.msk.f32.gmra.mrb[194].mxu0 %vm329_vm0, %v7061_v15  ;;  %v1970_v55 = vpack.c.bf16 %v1910_v13, %v1908_v7  ;;  %v6771_v15 = vld [vmem:[#allocation2 + $0x3d4] ss:$8 sps:$4 sm:$0xff]  }
 0x322   : > { %2576 = vmatprep.mubr.f32.mxu0 %v7229_v0  ;;  %v1773_v16 = vpop.f32.mrb[120].mxu0  ;;  %v1971_v17 = vpack.c.bf16 %v1911_v14, %v1909_v9  ;;  %3174 = vmatpush1.bf16.msra.mxu1 %v6763_v58  ;;  %v6769_v14 = vld [vmem:[#allocation2 + $0x3d0] ss:$8 sps:$4 sm:$0xff]  }
 0x323   : > { %v1774_v59 = vadd.f32 %v1773_v16, %v7750_v54  ;;  %v1775_v18 = vpop.f32.mrb[121].mxu0  ;;  %3175 = vmatprep.subr.bf16.mxu1 %v6768_v56 }
 0x324   : > { %v1776_v19 = vadd.f32 %v1775_v18, %v7753_v57  ;;  %v1777_v20 = vpop.f32.mrb[122].mxu0  ;;  %2320 = vmatprep.mubr.bf16.mxu1 %v1971_v17 }
 0x325   : > { %6038 = vmatmul.mubr.msk.f32.gmra.mrb[196].mxu0 %vm329_vm0, %v7062_v21  ;;  %v1912_v22 = vmax.f32 %v1774_v59, 0.0  ;;  %v1778_v23 = vadd.f32 %v1777_v20, %v7750_v54  ;;  %v1779_v24 = vpop.f32.mrb[123].mxu0  ;;  %2321 = vmatmul.mubr.bf16.gmra.mrb[104].mxu1 %v1970_v55  ;;  %v7068_v55 = vld [vmem:[%s7381_s16 + $0x90] sm:$0xff] }
 0x326   : > { %2582 = vmatprep.mubr.f32.mxu0 %v7229_v0  ;;  %v1913_v60 = vmax.f32 %v1776_v19, 0.0  ;;  %v1780_v25 = vadd.f32 %v1779_v24, %v7753_v57  ;;  %3176 = vmatpush1.bf16.msra.mxu1 %v6766_v40 }
 0x327   : > { %v1914_v10 = vmax.f32 %v1778_v23, 0.0  ;;  %3177 = vmatprep.subr.bf16.mxu1 %v6771_v15 }
 0x328   : > { %v1915_v26 = vmax.f32 %v1780_v25, 0.0 }
 0x329   : > { %6039 = vmatmul.mubr.msk.f32.gmra.mrb[198].mxu0 %vm329_vm0, %v7063_v27  ;;  %v1972_v28 = vpack.c.bf16 %v1914_v10, %v1912_v22  ;;  %v7069_v22 = vld [vmem:[%s7381_s16 + $0x98] sm:$0xff] }
 0x32a   : > { %2588 = vmatprep.mubr.f32.mxu0 %v7229_v0  ;;  %v1783_v29 = vpop.f32.mrb[124].mxu0  ;;  %v1973_v12 = vpack.c.bf16 %v1915_v26, %v1913_v60  ;;  %3178 = vmatpush1.bf16.msra.mxu1 %v6769_v14 }
 0x32b   : > { %v1784_v30 = vadd.f32 %v1783_v29, %v7750_v54  ;;  %v1785_v31 = vpop.f32.mrb[125].mxu0  ;;  %v6774_v29 = vld [vmem:[#allocation2 + $0x3e4] ss:$8 sps:$4 sm:$0xff]  }
 0x32c   : > { %v1786_v32 = vadd.f32 %v1785_v31, %v7753_v57  ;;  %v1787_v33 = vpop.f32.mrb[126].mxu0  ;;  %2330 = vmatprep.mubr.bf16.mxu1 %v1973_v12  ;;  %v7070_v12 = vld [vmem:[%s7381_s16 + $0xa0] sm:$0xff]  ;;  %3179 = vmatprep.subr.bf16.mxu1 %v6774_v29  ;;  %v7077_v29 = vld [vmem:[%s7381_s16 + $0xd8] sm:$0xff] }
 0x32d   : > { %6040 = vmatmul.mubr.msk.f32.gmra.mrb[200].mxu0 %vm329_vm0, %v7064_v34  ;;  %v1916_v35 = vmax.f32 %v1784_v30, 0.0  ;;  %v1788_v38 = vadd.f32 %v1787_v33, %v7750_v54  ;;  %v1789_v41 = vpop.f32.mrb[127].mxu0  ;;  %2331 = vmatmul.mubr.bf16.gmra.mrb[108].mxu1 %v1972_v28  ;;  %v6772_v28 = vld [vmem:[#allocation2 + $0x3e0] ss:$8 sps:$4 sm:$0xff]  }
 0x32e   : > { %2594 = vmatprep.mubr.f32.mxu0 %v7229_v0  ;;  %v1917_v42 = vmax.f32 %v1786_v32, 0.0  ;;  %v1790_v44 = vadd.f32 %v1789_v41, %v7753_v57  ;;  %3180 = vmatpush1.bf16.msra.mxu1 %v6772_v28  ;;  %v7071_v41 = vld [vmem:[%s7381_s16 + $0xa8] sm:$0xff] }
 0x32f   : > { %v1918_v45 = vmax.f32 %v1788_v38, 0.0 }
 0x330   : > { %v1919_v46 = vmax.f32 %v1790_v44, 0.0 }
 0x331   : > { %6041 = vmatmul.mubr.msk.f32.gmra.mrb[202].mxu0 %vm329_vm0, %v7065_v43  ;;  %v1974_v47 = vpack.c.bf16 %v1918_v45, %v1916_v35 }
 0x332   : > { %2600 = vmatprep.mubr.f32.mxu0 %v7229_v0  ;;  %v1793_v48 = vpop.f32.mrb[128].mxu0  ;;  %v1975_v49 = vpack.c.bf16 %v1919_v46, %v1917_v42 }
 0x333   : > { %v1794_v39 = vadd.f32 %v1793_v48, %v7750_v54  ;;  %v1795_v50 = vpop.f32.mrb[129].mxu0 }
 0x334   : > { %v1796_v61 = vadd.f32 %v1795_v50, %v7753_v57  ;;  %v1797_v62 = vpop.f32.mrb[130].mxu0  ;;  %2340 = vmatprep.mubr.bf16.mxu1 %v1975_v49  ;;  %v7072_v49 = vld [vmem:[%s7381_s16 + $0xb0] sm:$0xff] }
 0x335   : > { %6042 = vmatmul.mubr.msk.f32.gmra.mrb[204].mxu0 %vm329_vm0, %v7066_v63  ;;  %v1920_v1 = vmax.f32 %v1794_v39, 0.0  ;;  %v1798_v51 = vadd.f32 %v1797_v62, %v7750_v54  ;;  %v1799_v2 = vpop.f32.mrb[131].mxu0  ;;  %2341 = vmatmul.mubr.bf16.gmra.mrb[112].mxu1 %v1974_v47  ;;  %v6777_v63 = vld [vmem:[#allocation2 + $0x3f4] ss:$8 sps:$4 sm:$0xff]  }
 0x336   : > { %2606 = vmatprep.mubr.f32.mxu0 %v7229_v0  ;;  %v1921_v3 = vmax.f32 %v1796_v61, 0.0  ;;  %v1800_v52 = vadd.f32 %v1799_v2, %v7753_v57  ;;  %v7073_v2 = vld [vmem:[%s7381_s16 + $0xb8] sm:$0xff]  ;;  %3181 = vmatprep.subr.bf16.mxu1 %v6777_v63  ;;  %v7080_v63 = vld [vmem:[%s7381_s16 + $0xf0] sm:$0xff] }
 0x337   : > { %v1922_v4 = vmax.f32 %v1798_v51, 0.0  ;;  %v6775_v51 = vld [vmem:[#allocation2 + $0x3f0] ss:$8 sps:$4 sm:$0xff]  }
 0x338   : > { %v1923_v5 = vmax.f32 %v1800_v52, 0.0  ;;  %3182 = vmatpush1.bf16.msra.mxu1 %v6775_v51 }
 0x339   : > { %6043 = vmatmul.mubr.msk.f32.gmra.mrb[206].mxu0 %vm329_vm0, %v7067_v6  ;;  %v1976_v7 = vpack.c.bf16 %v1922_v4, %v1920_v1 }
 0x33a   : > { %2612 = vmatprep.mubr.f32.mxu0 %v7229_v0  ;;  %v1803_v8 = vpop.f32.mrb[132].mxu0  ;;  %v1977_v53 = vpack.c.bf16 %v1923_v5, %v1921_v3 }
 0x33b   : > { %v1804_v9 = vadd.f32 %v1803_v8, %v7750_v54  ;;  %v1805_v11 = vpop.f32.mrb[133].mxu0 }
 0x33c   : > { %v1806_v58 = vadd.f32 %v1805_v11, %v7753_v57  ;;  %v1807_v13 = vpop.f32.mrb[134].mxu0  ;;  %2350 = vmatprep.mubr.bf16.mxu1 %v1977_v53  ;;  %v7074_v53 = vld [vmem:[%s7381_s16 + $0xc0] sm:$0xff] }
 0x33d   : > { %6044 = vmatmul.mubr.msk.f32.gmra.mrb[208].mxu0 %vm329_vm0, %v7068_v55  ;;  %v1924_v16 = vmax.f32 %v1804_v9, 0.0  ;;  %v1808_v17 = vadd.f32 %v1807_v13, %v7750_v54  ;;  %v1809_v59 = vpop.f32.mrb[135].mxu0  ;;  %2351 = vmatmul.mubr.bf16.gmra.mrb[116].mxu1 %v1976_v7 }
 0x33e   : > { %2618 = vmatprep.mubr.f32.mxu0 %v7229_v0  ;;  %v1925_v18 = vmax.f32 %v1806_v58, 0.0  ;;  %v1810_v19 = vadd.f32 %v1809_v59, %v7753_v57 }
 0x33f   : > { %v1926_v20 = vmax.f32 %v1808_v17, 0.0 }
 0x340   : > { %v1927_v21 = vmax.f32 %v1810_v19, 0.0 }
 0x341   : > { %6045 = vmatmul.mubr.msk.f32.gmra.mrb[210].mxu0 %vm329_vm0, %v7069_v22  ;;  %v1978_v23 = vpack.c.bf16 %v1926_v20, %v1924_v16  ;;  %v7075_v16 = vld [vmem:[%s7381_s16 + $0xc8] sm:$0xff] }
 0x342   : > { %2624 = vmatprep.mubr.f32.mxu0 %v7229_v0  ;;  %v1813_v24 = vpop.f32.mrb[136].mxu0  ;;  %v1979_v60 = vpack.c.bf16 %v1927_v21, %v1925_v18 }
 0x343   : > { %v1814_v25 = vadd.f32 %v1813_v24, %v7750_v54  ;;  %v1815_v10 = vpop.f32.mrb[137].mxu0 }
 0x344   : > { %v1816_v26 = vadd.f32 %v1815_v10, %v7753_v57  ;;  %v1817_v27 = vpop.f32.mrb[138].mxu0  ;;  %2360 = vmatprep.mubr.bf16.mxu1 %v1979_v60 }
 0x345   : > { %6046 = vmatmul.mubr.msk.f32.gmra.mrb[212].mxu0 %vm329_vm0, %v7070_v12  ;;  %v1928_v30 = vmax.f32 %v1814_v25, 0.0  ;;  %v1818_v31 = vadd.f32 %v1817_v27, %v7750_v54  ;;  %v1819_v32 = vpop.f32.mrb[139].mxu0  ;;  %2361 = vmatmul.mubr.bf16.gmra.mrb[120].mxu1 %v1978_v23  ;;  %v7076_v23 = vld [vmem:[%s7381_s16 + $0xd0] sm:$0xff] }
 0x346   : > { %2630 = vmatprep.mubr.f32.mxu0 %v7229_v0  ;;  %v1929_v33 = vmax.f32 %v1816_v26, 0.0  ;;  %v1820_v34 = vadd.f32 %v1819_v32, %v7753_v57 }
 0x347   : > { %v1930_v35 = vmax.f32 %v1818_v31, 0.0 }
 0x348   : > { %v1931_v38 = vmax.f32 %v1820_v34, 0.0 }
 0x349   : > { %6047 = vmatmul.mubr.msk.f32.gmra.mrb[214].mxu0 %vm329_vm0, %v7071_v41  ;;  %v1980_v42 = vpack.c.bf16 %v1930_v35, %v1928_v30 }
 0x34a   : > { %2636 = vmatprep.mubr.f32.mxu0 %v7229_v0  ;;  %v1823_v44 = vpop.f32.mrb[140].mxu0  ;;  %v1981_v45 = vpack.c.bf16 %v1931_v38, %v1929_v33  ;;  %v7078_v38 = vld [vmem:[%s7381_s16 + $0xe0] sm:$0xff] }
 0x34b   : > { %v1824_v46 = vadd.f32 %v1823_v44, %v7750_v54  ;;  %v1825_v43 = vpop.f32.mrb[141].mxu0 }
 0x34c   : > { %v1826_v47 = vadd.f32 %v1825_v43, %v7753_v57  ;;  %v1827_v48 = vpop.f32.mrb[142].mxu0  ;;  %2370 = vmatprep.mubr.bf16.mxu1 %v1981_v45 }
 0x34d   : > { %6048 = vmatmul.mubr.msk.f32.gmra.mrb[216].mxu0 %vm329_vm0, %v7072_v49  ;;  %v1932_v39 = vmax.f32 %v1824_v46, 0.0  ;;  %v1828_v50 = vadd.f32 %v1827_v48, %v7750_v54  ;;  %v1829_v40 = vpop.f32.mrb[143].mxu0  ;;  %2371 = vmatmul.mubr.bf16.gmra.mrb[124].mxu1 %v1980_v42  ;;  %v7079_v48 = vld [vmem:[%s7381_s16 + $0xe8] sm:$0xff] }
 0x34e   : > { %2642 = vmatprep.mubr.f32.mxu0 %v7229_v0  ;;  %v1933_v56 = vmax.f32 %v1826_v47, 0.0  ;;  %v1830_v61 = vadd.f32 %v1829_v40, %v7753_v57 }
 0x34f   : > { %v1934_v62 = vmax.f32 %v1828_v50, 0.0 }
 0x350   : > { %v1935_v1 = vmax.f32 %v1830_v61, 0.0 }
 0x351   : > { %6049 = vmatmul.mubr.msk.f32.gmra.mrb[218].mxu0 %vm329_vm0, %v7073_v2  ;;  %v1982_v3 = vpack.c.bf16 %v1934_v62, %v1932_v39 }
 0x352   : > { %2648 = vmatprep.mubr.f32.mxu0 %v7229_v0  ;;  %v1833_v52 = vpop.f32.mrb[144].mxu0  ;;  %v1983_v4 = vpack.c.bf16 %v1935_v1, %v1933_v56 }
 0x353   : > { %v1834_v5 = vadd.f32 %v1833_v52, %v7750_v54  ;;  %v1835_v6 = vpop.f32.mrb[145].mxu0 }
 0x354   : > { %v1836_v7 = vadd.f32 %v1835_v6, %v7753_v57  ;;  %v1837_v8 = vpop.f32.mrb[146].mxu0  ;;  %2380 = vmatprep.mubr.bf16.mxu1 %v1983_v4  ;;  %v7081_v6 = vld [vmem:[%s7381_s16 + $0xf8] sm:$0xff] }
 0x355   : > { %6050 = vmatmul.mubr.msk.f32.gmra.mrb[220].mxu0 %vm329_vm0, %v7074_v53  ;;  %v1936_v9 = vmax.f32 %v1834_v5, 0.0  ;;  %v1838_v11 = vadd.f32 %v1837_v8, %v7750_v54  ;;  %v1839_v58 = vpop.f32.mrb[147].mxu0  ;;  %2381 = vmatmul.mubr.bf16.gmra.mrb[128].mxu1 %v1982_v3  ;;  %v7084_v53 = vld [vmem:[%s7381_s16 + $0x110] sm:$0xff] }
 0x356   : > { %2654 = vmatprep.mubr.f32.mxu0 %v7229_v0  ;;  %v1937_v13 = vmax.f32 %v1836_v7, 0.0  ;;  %v1840_v14 = vadd.f32 %v1839_v58, %v7753_v57  ;;  %v7087_v58 = vld [vmem:[%s7381_s16 + $0x128] sm:$0xff] }
 0x357   : > { %v1938_v15 = vmax.f32 %v1838_v11, 0.0  ;;  %v7086_v11 = vld [vmem:[%s7381_s16 + $0x120] sm:$0xff] }
 0x358   : > { %v1939_v55 = vmax.f32 %v1840_v14, 0.0  ;;  %v7089_v14 = vld [vmem:[%s7381_s16 + $0x138] sm:$0xff] }
 0x359   : > { %6051 = vmatmul.mubr.msk.f32.gmra.mrb[222].mxu0 %vm329_vm0, %v7075_v16  ;;  %v1984_v17 = vpack.c.bf16 %v1938_v15, %v1936_v9  ;;  %v7085_v9 = vld [vmem:[%s7381_s16 + $0x118] sm:$0xff]  ;;  %v6100_v15 = vld [vmem:[%s9110_s1 + $0x88] sm:$0xff] }
 0x35a   : > { %2660 = vmatprep.mubr.f32.mxu0 %v7229_v0  ;;  %v1843_v59 = vpop.f32.mrb[148].mxu0  ;;  %v1985_v18 = vpack.c.bf16 %v1939_v55, %v1937_v13  ;;  %v7088_v13 = vld [vmem:[%s7381_s16 + $0x130] sm:$0xff]  ;;  %v6102_v55 = vld [vmem:[%s9110_s1 + $0x98] sm:$0xff] }
 0x35b   : > { %v1844_v19 = vadd.f32 %v1843_v59, %v7750_v54  ;;  %v1845_v20 = vpop.f32.mrb[149].mxu0  ;;  %v6489_v16 = vpack.c.bf16 %v6102_v55, %v6100_v15  ;;  %v6101_v59 = vld [vmem:[%s9110_s1 + $0x90] sm:$0xff] }
 0x35c   : > { %v1846_v21 = vadd.f32 %v1845_v20, %v7753_v57  ;;  %v1847_v22 = vpop.f32.mrb[150].mxu0  ;;  %2390 = vmatprep.mubr.bf16.mxu1 %v1985_v18  ;;  %v6781_v55 = vld [vmem:[#allocation2 + $0x410] ss:$8 sps:$4 sm:$0xff]  }
 0x35d   : > { %6052 = vmatmul.mubr.msk.f32.gmra.mrb[224].mxu0 %vm329_vm0, %v7076_v23  ;;  %v1940_v24 = vmax.f32 %v1844_v19, 0.0  ;;  %v1848_v60 = vadd.f32 %v1847_v22, %v7750_v54  ;;  %v1849_v25 = vpop.f32.mrb[151].mxu0  ;;  %2391 = vmatmul.mubr.bf16.gmra.mrb[132].mxu1 %v1984_v17  ;;  %v6099_v17 = vld [vmem:[%s9110_s1 + $0x80] sm:$0xff] }
 0x35e   : > { %2666 = vmatprep.mubr.f32.mxu0 %v7229_v0  ;;  %v1941_v10 = vmax.f32 %v1846_v21, 0.0  ;;  %v1850_v26 = vadd.f32 %v1849_v25, %v7753_v57  ;;  %v6491_v18 = vpack.c.bf16 %v6101_v59, %v6099_v17  ;;  %v6780_v19 = vld [vmem:[#allocation2 + $0x404] ss:$8 sps:$4 sm:$0xff]   ;;  %6490 = vmatprep.subr.bf16.mxu0 %v6489_v16 }
 0x35f   : > { %v1942_v27 = vmax.f32 %v1848_v60, 0.0  ;;  %4011 = vmatprep.subr.bf16.mxu1 %v6780_v19 }
 0x360   : > { %v1943_v28 = vmax.f32 %v1850_v26, 0.0  ;;  %6492 = vmatpush1.bf16.msra.mxu0 %v6491_v18  ;;  %v5985_v26 = vld [vmem:[%s9112_s3 + $0x6] sm:$0x3] }
 0x361   : > { %6053 = vmatmul.mubr.msk.f32.gmra.mrb[226].mxu0 %vm329_vm0, %v7077_v29  ;;  %v1986_v12 = vpack.c.bf16 %v1942_v27, %v1940_v24  ;;  %v6786_v18 = vld [vmem:[#allocation2 + $0x424] ss:$8 sps:$4 sm:$0xff]  }
 0x362   : > { %2672 = vmatprep.mubr.f32.mxu0 %v7229_v0  ;;  %v1853_v30 = vpop.f32.mrb[152].mxu0  ;;  %v1987_v31 = vpack.c.bf16 %v1943_v28, %v1941_v10 }
 0x363   : > { %v1854_v32 = vadd.f32 %v1853_v30, %v7750_v54  ;;  %v1855_v33 = vpop.f32.mrb[153].mxu0 }
 0x364   : > { %v1856_v34 = vadd.f32 %v1855_v33, %v7753_v57  ;;  %v1857_v35 = vpop.f32.mrb[154].mxu0  ;;  %2400 = vmatprep.mubr.bf16.mxu1 %v1987_v31  ;;  %v7997_v31 = vrot.slane %v5985_v26, %v7504_v37 }
 0x365   : > { %6054 = vmatmul.mubr.msk.f32.gmra.mrb[228].mxu0 %vm329_vm0, %v7078_v38  ;;  %v1944_v41 = vmax.f32 %v1854_v32, 0.0  ;;  %v1858_v42 = vadd.f32 %v1857_v35, %v7750_v54  ;;  %v1859_v44 = vpop.f32.mrb[155].mxu0  ;;  %2401 = vmatmul.mubr.bf16.gmra.mrb[136].mxu1 %v1986_v12  ;;  %v7992_v12 = vrot.slane %v5985_v26, %v7502_v36 }
 0x366   : > { %2678 = vmatprep.mubr.f32.mxu0 %v7229_v0  ;;  %v1945_v45 = vmax.f32 %v1856_v34, 0.0  ;;  %v1860_v46 = vadd.f32 %v1859_v44, %v7753_v57 }
 0x367   : > { %v1946_v43 = vmax.f32 %v1858_v42, 0.0 }
 0x368   : > { %v1947_v47 = vmax.f32 %v1860_v46, 0.0 }
 0x369   : > { %6055 = vmatmul.mubr.msk.f32.gmra.mrb[230].mxu0 %vm329_vm0, %v7079_v48  ;;  %v1988_v49 = vpack.c.bf16 %v1946_v43, %v1944_v41 }
 0x36a   : > { %2684 = vmatprep.mubr.f32.mxu0 %v7229_v0  ;;  %v1863_v39 = vpop.f32.mrb[156].mxu0  ;;  %v1989_v50 = vpack.c.bf16 %v1947_v47, %v1945_v45 }
 0x36b   : > { %v1864_v40 = vadd.f32 %v1863_v39, %v7750_v54  ;;  %v1865_v56 = vpop.f32.mrb[157].mxu0 }
 0x36c   : > { %v1866_v61 = vadd.f32 %v1865_v56, %v7753_v57  ;;  %v1867_v62 = vpop.f32.mrb[158].mxu0  ;;  %2410 = vmatprep.mubr.bf16.mxu1 %v1989_v50 }
 0x36d   : > { %6056 = vmatmul.mubr.msk.f32.gmra.mrb[232].mxu0 %vm329_vm0, %v7080_v63  ;;  %v1948_v1 = vmax.f32 %v1864_v40, 0.0  ;;  %v1868_v51 = vadd.f32 %v1867_v62, %v7750_v54  ;;  %v1869_v2 = vpop.f32.mrb[159].mxu0  ;;  %2411 = vmatmul.mubr.bf16.gmra.mrb[140].mxu1 %v1988_v49  ;;  %v7082_v54 = vld [vmem:[%s7381_s16 + $0x100] sm:$0xff] }
 0x36e   : > { %2690 = vmatprep.mubr.f32.mxu0 %v7229_v0  ;;  %v1949_v3 = vmax.f32 %v1866_v61, 0.0  ;;  %v1870_v52 = vadd.f32 %v1869_v2, %v7753_v57  ;;  %v7083_v57 = vld [vmem:[%s7381_s16 + $0x108] sm:$0xff] }
 0x36f   : > { %v1950_v4 = vmax.f32 %v1868_v51, 0.0 }
 0x370   : > { %v1951_v5 = vmax.f32 %v1870_v52, 0.0 }
 0x371   : > { %6057 = vmatmul.mubr.msk.f32.gmra.mrb[234].mxu0 %vm329_vm0, %v7081_v6  ;;  %v1990_v7 = vpack.c.bf16 %v1950_v4, %v1948_v1 }
 0x372   : > { %v1991_v8 = vpack.c.bf16 %v1951_v5, %v1949_v3  ;;  %2696 = vmatprep.mubr.f32.mxu0 %v7229_v0 }
 0x374   : > { %2420 = vmatprep.mubr.bf16.mxu1 %v1991_v8 }
 0x375   : > { %6058 = vmatmul.mubr.msk.f32.gmra.mrb[236].mxu0 %vm329_vm0, %v7082_v54  ;;  %2421 = vmatmul.mubr.bf16.gmra.mrb[144].mxu1 %v1990_v7  ;;  %v6778_v54 = vld [vmem:[#allocation2 + $0x400] ss:$8 sps:$4 sm:$0xff]  }
 0x376   : > { %2702 = vmatprep.mubr.f32.mxu0 %v7229_v0 }
 0x379   : > { %6059 = vmatmul.mubr.msk.f32.gmra.mrb[238].mxu0 %vm329_vm0, %v7083_v57 }
 0x37a   : > { %2708 = vmatprep.mubr.f32.mxu0 %v7229_v0 }
 0x37d   : > { %6060 = vmatmul.mubr.msk.f32.gmra.mrb[240].mxu0 %vm329_vm0, %v7084_v53 }
 0x37e   : > { %2714 = vmatprep.mubr.f32.mxu0 %v7229_v0 }
 0x381   : > { %6061 = vmatmul.mubr.msk.f32.gmra.mrb[242].mxu0 %vm329_vm0, %v7085_v9  ;;  %v6783_v9 = vld [vmem:[#allocation2 + $0x414] ss:$8 sps:$4 sm:$0xff]  }
 0x382   : > { %2720 = vmatprep.mubr.f32.mxu0 %v7229_v0 }
 0x385   : > { %6062 = vmatmul.mubr.msk.f32.gmra.mrb[244].mxu0 %vm329_vm0, %v7086_v11 }
 0x386   : > { %2726 = vmatprep.mubr.f32.mxu0 %v7229_v0 }
 0x389   : > { %6063 = vmatmul.mubr.msk.f32.gmra.mrb[246].mxu0 %vm329_vm0, %v7087_v58 }
 0x38a   : > { %2732 = vmatprep.mubr.f32.mxu0 %v7229_v0 }
 0x38d   : > { %6064 = vmatmul.mubr.msk.f32.gmra.mrb[248].mxu0 %vm329_vm0, %v7088_v13 }
 0x38e   : > { %2738 = vmatprep.mubr.f32.mxu0 %v7229_v0 }
 0x391   : > { %6065 = vmatmul.mubr.msk.f32.gmra.mrb[250].mxu0 %vm329_vm0, %v7089_v14 }
 0x392   : > { %3610 = vmatprep.mubr.f32.mxu0 %v7229_v0 }
 0x3b0   : > { %v2232_v20 = vpop.f32.mrb[160].mxu0 }
 0x3b1   : > { %v2234_v21 = vpop.f32.mrb[161].mxu0  ;;  %v2233_v32 = vadd.f32 %v2232_v20, %v7992_v12 }
 0x3b2   : > { %v2236_v22 = vpop.f32.mrb[162].mxu0  ;;  %v2235_v33 = vadd.f32 %v2234_v21, %v7997_v31 }
 0x3b3   : > { %v2238_v23 = vpop.f32.mrb[163].mxu0  ;;  %v2237_v46 = vadd.f32 %v2236_v22, %v7992_v12 }
 0x3b4   : > { %v2239_v47 = vadd.f32 %v2238_v23, %v7997_v31 }
 0x3b8   : > { %v2242_v24 = vpop.f32.mrb[164].mxu0 }
 0x3b9   : > { %v2244_v60 = vpop.f32.mrb[165].mxu0  ;;  %v2243_v40 = vadd.f32 %v2242_v24, %v7992_v12 }
 0x3ba   : > { %v2246_v25 = vpop.f32.mrb[166].mxu0  ;;  %v2245_v62 = vadd.f32 %v2244_v60, %v7997_v31 }
 0x3bb   : > { %v2248_v10 = vpop.f32.mrb[167].mxu0  ;;  %v2247_v57 = vadd.f32 %v2246_v25, %v7992_v12 }
 0x3bc   : > { %v2249_v11 = vadd.f32 %v2248_v10, %v7997_v31 }
 0x3c0   : > { %v2252_v27 = vpop.f32.mrb[168].mxu0 }
 0x3c1   : > { %v2254_v28 = vpop.f32.mrb[169].mxu0  ;;  %v2253_v16 = vadd.f32 %v2252_v27, %v7992_v12  ;;  %v6784_v27 = vld [vmem:[#allocation2 + $0x420] ss:$8 sps:$4 sm:$0xff]  }
 0x3c2   : > { %v7989_v29 = vpop.f32.mrb[170].mxu0  ;;  %v2255_v19 = vadd.f32 %v2254_v28, %v7997_v31 }
 0x3c3   : > { %v7994_v30 = vpop.f32.mrb[171].mxu0 }
 0x3c8   : > { %v2506_v34 = vpop.f32.mrb[172].mxu0  ;;  %v8001_v35 = vpop.f32.mrb[80].mxu1 }
 0x3c9   : > { %v2745_v38 = vadd.f32 %v2506_v34, %v2233_v32  ;;  %v2508_v41 = vpop.f32.mrb[173].mxu0  ;;  %v8003_v42 = vpop.f32.mrb[81].mxu1  ;;  %v2257_v34 = vadd.f32 %v7989_v29, %v7992_v12  ;;  %v2263_v29 = vadd.f32 %v8001_v35, %v7992_v12  ;;  %v6790_v35 = vld [vmem:[#allocation2 + $0x440] ss:$8 sps:$4 sm:$0xff]  }
 0x3ca   : > { %v2746_v44 = vadd.f32 %v2508_v41, %v2235_v33  ;;  %v8005_v45 = vpop.f32.mrb[82].mxu1  ;;  %v2259_v41 = vadd.f32 %v7994_v30, %v7997_v31  ;;  %v2265_v30 = vadd.f32 %v8003_v42, %v7997_v31  ;;  %v6795_v42 = vld [vmem:[#allocation2 + $0x454] ss:$8 sps:$4 sm:$0xff]  }
 0x3cb   : > { %v8008_v43 = vpop.f32.mrb[83].mxu1  ;;  %v2825_v56 = vmax.f32 %v2745_v38, 0.0  ;;  %v6789_v38 = vld [vmem:[#allocation2 + $0x434] ss:$8 sps:$4 sm:$0xff]  }
 0x3cc   : > { %v2512_v48 = vpop.f32.mrb[174].mxu0  ;;  %v2826_v63 = vmax.f32 %v2746_v44, 0.0 }
 0x3cd   : > { %v2747_v49 = vadd.f32 %v2512_v48, %v2237_v46  ;;  %v2514_v39 = vpop.f32.mrb[175].mxu0 }
 0x3ce   : > { %v2748_v50 = vadd.f32 %v2514_v39, %v2239_v47 }
 0x3cf   : > { %v2827_v61 = vmax.f32 %v2747_v49, 0.0  ;;  %v6787_v49 = vld [vmem:[#allocation2 + $0x430] ss:$8 sps:$4 sm:$0xff]  }
 0x3d0   : > { %v2828_v1 = vmax.f32 %v2748_v50, 0.0  ;;  %v2518_v51 = vpop.f32.mrb[176].mxu0  ;;  %v8013_v2 = vpop.f32.mrb[84].mxu1 }
 0x3d1   : > { %v2905_v3 = vpack.c.bf16 %v2827_v61, %v2825_v56  ;;  %v2749_v52 = vadd.f32 %v2518_v51, %v2243_v40  ;;  %v2520_v4 = vpop.f32.mrb[177].mxu0  ;;  %v8015_v5 = vpop.f32.mrb[85].mxu1  ;;  %v6792_v40 = vld [vmem:[#allocation2 + $0x444] ss:$8 sps:$4 sm:$0xff]  }
 0x3d2   : > { %v2906_v6 = vpack.c.bf16 %v2828_v1, %v2826_v63  ;;  %v2750_v7 = vadd.f32 %v2520_v4, %v2245_v62  ;;  %v8017_v8 = vpop.f32.mrb[86].mxu1 }
 0x3d3   : > { %v8020_v53 = vpop.f32.mrb[87].mxu1  ;;  %v2829_v17 = vmax.f32 %v2749_v52, 0.0 }
 0x3d4   : > { %v2524_v58 = vpop.f32.mrb[178].mxu0  ;;  %3183 = vmatprep.mubr.bf16.mxu1 %v2906_v6  ;;  %v2830_v20 = vmax.f32 %v2750_v7, 0.0 }
 0x3d5   : > { %v2751_v13 = vadd.f32 %v2524_v58, %v2247_v57  ;;  %v2526_v14 = vpop.f32.mrb[179].mxu0  ;;  %3184 = vmatmul.mubr.bf16.vlgmr.msra.gmra.mrb[148].mxu1 %v2905_v3 }
 0x3d6   : > { %v2752_v15 = vadd.f32 %v2526_v14, %v2249_v11  ;;  %4012 = vmatpush1.bf16.msra.mxu1 %v6778_v54  ;;  %v2267_v54 = vadd.f32 %v8005_v45, %v7992_v12  ;;  %v6106_v11 = vld [vmem:[%s9110_s1 + $0xb8] sm:$0xff]  ;;  %v6103_v45 = vld [vmem:[%s9110_s1 + $0xa0] sm:$0xff] }
 0x3d7   : > { %v2831_v59 = vmax.f32 %v2751_v13, 0.0  ;;  %4013 = vmatprep.subr.bf16.mxu1 %v6783_v9  ;;  %v6104_v9 = vld [vmem:[%s9110_s1 + $0xa8] sm:$0xff]  ;;  %v2269_v13 = vadd.f32 %v8008_v43, %v7997_v31  ;;  %v2273_v43 = vadd.f32 %v8013_v2, %v7992_v12 }
 0x3d8   : > { %v2832_v21 = vmax.f32 %v2752_v15, 0.0  ;;  %v2530_v22 = vpop.f32.mrb[180].mxu0  ;;  %v8025_v23 = vpop.f32.mrb[88].mxu1  ;;  %v6493_v14 = vpack.c.bf16 %v6106_v11, %v6104_v9  ;;  %v6105_v15 = vld [vmem:[%s9110_s1 + $0xb0] sm:$0xff] }
 0x3d9   : > { %v2907_v24 = vpack.c.bf16 %v2831_v59, %v2829_v17  ;;  %v2753_v60 = vadd.f32 %v2530_v22, %v2253_v16  ;;  %v2532_v25 = vpop.f32.mrb[181].mxu0  ;;  %v8027_v10 = vpop.f32.mrb[89].mxu1  ;;  %v6495_v17 = vpack.c.bf16 %v6105_v15, %v6103_v45  ;;  %v7092_v45 = vld [vmem:[%s7381_s16 + $0x10] sm:$0xff] }
 0x3da   : > { %v2908_v26 = vpack.c.bf16 %v2832_v21, %v2830_v20  ;;  %v2754_v32 = vadd.f32 %v2532_v25, %v2255_v19  ;;  %v8029_v33 = vpop.f32.mrb[90].mxu1  ;;  %4014 = vmatpush1.bf16.msra.mxu1 %v6781_v55  ;;  %6494 = vmatprep.subr.bf16.mxu0 %v6493_v14  ;;  %v6798_v21 = vld [vmem:[#allocation2 + $0x464] ss:$8 sps:$4 sm:$0xff]   ;;  %v2275_v25 = vadd.f32 %v8015_v5, %v7997_v31  ;;  %v6802_v14 = vld [vmem:[#allocation2 + $0x480] ss:$8 sps:$4 sm:$0xff]  }
 0x3db   : > { %v8033_v28 = vpop.f32.mrb[91].mxu1  ;;  %4015 = vmatprep.subr.bf16.mxu1 %v6786_v18  ;;  %v2833_v39 = vmax.f32 %v2753_v60, 0.0  ;;  %v6793_v18 = vld [vmem:[#allocation2 + $0x450] ss:$8 sps:$4 sm:$0xff]   ;;  %6496 = vmatpush1.bf16.msra.mxu0 %v6495_v17  ;;  %v2277_v5 = vadd.f32 %v8017_v8, %v7992_v12 }
 0x3dc   : > { %v2536_v44 = vpop.f32.mrb[182].mxu0  ;;  %3193 = vmatprep.mubr.bf16.mxu1 %v2908_v26  ;;  %v2834_v56 = vmax.f32 %v2754_v32, 0.0  ;;  %v2289_v17 = vadd.f32 %v8033_v28, %v7997_v31 }
 0x3dd   : > { %v2755_v46 = vadd.f32 %v2536_v44, %v2257_v34  ;;  %v2538_v47 = vpop.f32.mrb[183].mxu0  ;;  %3194 = vmatmul.mubr.bf16.gmra.mrb[152].mxu1 %v2907_v24 }
 0x3de   : > { %v2756_v48 = vadd.f32 %v2538_v47, %v2259_v41  ;;  %4016 = vmatpush1.bf16.msra.mxu1 %v6784_v27  ;;  %v7090_v47 = vld [vmem:[%s7381_s16] sm:$0xff] }
 0x3df   : > { %v2835_v50 = vmax.f32 %v2755_v46, 0.0  ;;  %4017 = vmatprep.subr.bf16.mxu1 %v6789_v38  ;;  %v6796_v46 = vld [vmem:[#allocation2 + $0x460] ss:$8 sps:$4 sm:$0xff]   ;;  %6107 = vmatmul.mubr.msk.f32.vlgmr.msra.gmra.mrb[252].mxu0 %vm329_vm0, %v7090_v47 }
 0x3e0   : > { %v2836_v61 = vmax.f32 %v2756_v48, 0.0  ;;  %v2542_v62 = vpop.f32.mrb[184].mxu0  ;;  %v8041_v63 = vpop.f32.mrb[92].mxu1  ;;  %3616 = vmatprep.mubr.f32.mxu0 %v7229_v0 }
 0x3e1   : > { %v2909_v1 = vpack.c.bf16 %v2835_v50, %v2833_v39  ;;  %v2757_v51 = vadd.f32 %v2542_v62, %v2263_v29  ;;  %v2544_v3 = vpop.f32.mrb[185].mxu0  ;;  %v8043_v52 = vpop.f32.mrb[93].mxu1  ;;  %v2279_v50 = vadd.f32 %v8020_v53, %v7997_v31  ;;  %v7091_v62 = vld [vmem:[%s7381_s16 + $0x8] sm:$0xff] }
 0x3e2   : > { %v2910_v4 = vpack.c.bf16 %v2836_v61, %v2834_v56  ;;  %v2758_v6 = vadd.f32 %v2544_v3, %v2265_v30  ;;  %v8045_v7 = vpop.f32.mrb[94].mxu1  ;;  %4018 = vmatpush1.bf16.msra.mxu1 %v6787_v49  ;;  %v6801_v49 = vld [vmem:[#allocation2 + $0x474] ss:$8 sps:$4 sm:$0xff]   ;;  %v6799_v61 = vld [vmem:[#allocation2 + $0x470] ss:$8 sps:$4 sm:$0xff]  }
 0x3e3   : > { %v8049_v57 = vpop.f32.mrb[95].mxu1  ;;  %4019 = vmatprep.subr.bf16.mxu1 %v6792_v40  ;;  %v2837_v19 = vmax.f32 %v2757_v51, 0.0  ;;  %6108 = vmatmul.mubr.msk.f32.gmra.mrb[254].mxu0 %vm329_vm0, %v7091_v62  ;;  %v6804_v51 = vld [vmem:[#allocation2 + $0x484] ss:$8 sps:$4 sm:$0xff]  }
 0x3e4   : > { %v2548_v58 = vpop.f32.mrb[186].mxu0  ;;  %3203 = vmatprep.mubr.bf16.mxu1 %v2910_v4  ;;  %v2838_v22 = vmax.f32 %v2758_v6, 0.0  ;;  %3622 = vmatprep.mubr.f32.mxu0 %v7229_v0  ;;  %v2285_v6 = vadd.f32 %v8027_v10, %v7997_v31  ;;  %v2287_v10 = vadd.f32 %v8029_v33, %v7992_v12 }
 0x3e5   : > { %v2759_v55 = vadd.f32 %v2548_v58, %v2267_v54  ;;  %v2550_v16 = vpop.f32.mrb[187].mxu0  ;;  %3204 = vmatmul.mubr.bf16.gmra.mrb[156].mxu1 %v2909_v1  ;;  %v2283_v1 = vadd.f32 %v8025_v23, %v7992_v12 }
 0x3e6   : > { %v2760_v59 = vadd.f32 %v2550_v16, %v2269_v13  ;;  %4020 = vmatpush1.bf16.msra.mxu1 %v6790_v35 }
 0x3e7   : > { %v2839_v20 = vmax.f32 %v2759_v55, 0.0  ;;  %4021 = vmatprep.subr.bf16.mxu1 %v6795_v42  ;;  %6109 = vmatmul.mubr.msk.f32.gmra.mrb[0].mxu0 %vm329_vm0, %v7092_v45  ;;  %v6807_v55 = vld [vmem:[#allocation2 + $0x494] ss:$8 sps:$4 sm:$0xff]  }
 0x3e8   : > { %v2840_v24 = vmax.f32 %v2760_v59, 0.0  ;;  %v2554_v60 = vpop.f32.mrb[188].mxu0  ;;  %v8069_v26 = vpop.f32.mrb[96].mxu1  ;;  %3628 = vmatprep.mubr.f32.mxu0 %v7229_v0 }
 0x3e9   : > { %v2911_v32 = vpack.c.bf16 %v2839_v20, %v2837_v19  ;;  %v2761_v27 = vadd.f32 %v2554_v60, %v2273_v43  ;;  %v2556_v34 = vpop.f32.mrb[189].mxu0  ;;  %v8071_v38 = vpop.f32.mrb[97].mxu1  ;;  %v6805_v20 = vld [vmem:[#allocation2 + $0x490] ss:$8 sps:$4 sm:$0xff]  }
 0x3ea   : > { %v2912_v41 = vpack.c.bf16 %v2840_v24, %v2838_v22  ;;  %v2762_v44 = vadd.f32 %v2556_v34, %v2275_v25  ;;  %v8073_v2 = vpop.f32.mrb[98].mxu1  ;;  %4022 = vmatpush1.bf16.msra.mxu1 %v6793_v18  ;;  %v7093_v43 = vld [vmem:[%s7381_s16 + $0x18] sm:$0xff]  ;;  %v2293_v22 = vadd.f32 %v8041_v63, %v7992_v12  ;;  %v6810_v24 = vld [vmem:[#allocation2 + $0x4a4] ss:$8 sps:$4 sm:$0xff]  }
 0x3eb   : > { %v8079_v48 = vpop.f32.mrb[99].mxu1  ;;  %4023 = vmatprep.subr.bf16.mxu1 %v6798_v21  ;;  %v2841_v8 = vmax.f32 %v2761_v27, 0.0  ;;  %6110 = vmatmul.mubr.msk.f32.gmra.mrb[2].mxu0 %vm329_vm0, %v7093_v43 }
 0x3ec   : > { %v2560_v39 = vpop.f32.mrb[190].mxu0  ;;  %3213 = vmatprep.mubr.bf16.mxu1 %v2912_v41  ;;  %v2842_v53 = vmax.f32 %v2762_v44, 0.0  ;;  %3634 = vmatprep.mubr.f32.mxu0 %v7229_v0 }
 0x3ed   : > { %v2763_v29 = vadd.f32 %v2560_v39, %v2277_v5  ;;  %v2562_v40 = vpop.f32.mrb[191].mxu0  ;;  %3214 = vmatmul.mubr.bf16.gmra.mrb[160].mxu1 %v2911_v32  ;;  %v2295_v32 = vadd.f32 %v8043_v52, %v7997_v31  ;;  %v7094_v39 = vld [vmem:[%s7381_s16 + $0x20] sm:$0xff]  ;;  %v2297_v52 = vadd.f32 %v8045_v7, %v7992_v12 }
 0x3ee   : > { %v2764_v56 = vadd.f32 %v2562_v40, %v2279_v50  ;;  %4024 = vmatpush1.bf16.msra.mxu1 %v6796_v46 }
 0x3ef   : > { %v2843_v30 = vmax.f32 %v2763_v29, 0.0  ;;  %4025 = vmatprep.subr.bf16.mxu1 %v6801_v49  ;;  %v6808_v49 = vld [vmem:[#allocation2 + $0x4a0] ss:$8 sps:$4 sm:$0xff]   ;;  %6111 = vmatmul.mubr.msk.f32.gmra.mrb[4].mxu0 %vm329_vm0, %v7094_v39  ;;  %v6813_v29 = vld [vmem:[#allocation2 + $0x4b4] ss:$8 sps:$4 sm:$0xff]  }
 0x3f0   : > { %v2844_v3 = vmax.f32 %v2764_v56, 0.0  ;;  %v2566_v4 = vpop.f32.mrb[192].mxu0  ;;  %v8091_v35 = vpop.f32.mrb[100].mxu1  ;;  %3640 = vmatprep.mubr.f32.mxu0 %v7229_v0  ;;  %v2299_v56 = vadd.f32 %v8049_v57, %v7997_v31 }
 0x3f1   : > { %v2913_v54 = vpack.c.bf16 %v2843_v30, %v2841_v8  ;;  %v2765_v42 = vadd.f32 %v2566_v4, %v2283_v1  ;;  %v2568_v9 = vpop.f32.mrb[193].mxu0  ;;  %v8093_v11 = vpop.f32.mrb[101].mxu1  ;;  %v6811_v30 = vld [vmem:[#allocation2 + $0x4b0] ss:$8 sps:$4 sm:$0xff]   ;;  %v7095_v1 = vld [vmem:[%s7381_s16 + $0x28] sm:$0xff] }
 0x3f2   : > { %v2914_v58 = vpack.c.bf16 %v2844_v3, %v2842_v53  ;;  %v2766_v23 = vadd.f32 %v2568_v9, %v2285_v6  ;;  %v8095_v13 = vpop.f32.mrb[102].mxu1  ;;  %4026 = vmatpush1.bf16.msra.mxu1 %v6799_v61  ;;  %v2303_v53 = vadd.f32 %v8069_v26, %v7992_v12  ;;  %v6816_v3 = vld [vmem:[#allocation2 + $0x4c4] ss:$8 sps:$4 sm:$0xff]  }
 0x3f3   : > { %v8101_v15 = vpop.f32.mrb[103].mxu1  ;;  %4027 = vmatprep.subr.bf16.mxu1 %v6804_v51  ;;  %v2845_v33 = vmax.f32 %v2765_v42, 0.0  ;;  %6112 = vmatmul.mubr.msk.f32.gmra.mrb[6].mxu0 %vm329_vm0, %v7095_v1 }
 0x3f4   : > { %v2572_v16 = vpop.f32.mrb[194].mxu0  ;;  %3223 = vmatprep.mubr.bf16.mxu1 %v2914_v58  ;;  %v2846_v28 = vmax.f32 %v2766_v23, 0.0  ;;  %3646 = vmatprep.mubr.f32.mxu0 %v7229_v0 }
 0x3f5   : > { %v2767_v59 = vadd.f32 %v2572_v16, %v2287_v10  ;;  %v2574_v18 = vpop.f32.mrb[195].mxu0  ;;  %3224 = vmatmul.mubr.bf16.gmra.mrb[164].mxu1 %v2913_v54  ;;  %v2305_v54 = vadd.f32 %v8071_v38, %v7997_v31  ;;  %v7096_v16 = vld [vmem:[%s7381_s16 + $0x30] sm:$0xff]  ;;  %v2307_v38 = vadd.f32 %v8073_v2, %v7992_v12 }
 0x3f6   : > { %v2768_v19 = vadd.f32 %v2574_v18, %v2289_v17  ;;  %4028 = vmatpush1.bf16.msra.mxu1 %v6802_v14 }
 0x3f7   : > { %v2847_v21 = vmax.f32 %v2767_v59, 0.0  ;;  %4029 = vmatprep.subr.bf16.mxu1 %v6807_v55  ;;  %v6814_v55 = vld [vmem:[#allocation2 + $0x4c0] ss:$8 sps:$4 sm:$0xff]   ;;  %6113 = vmatmul.mubr.msk.f32.gmra.mrb[8].mxu0 %vm329_vm0, %v7096_v16  ;;  %v6819_v59 = vld [vmem:[#allocation2 + $0x4d4] ss:$8 sps:$4 sm:$0xff]  }
 0x3f8   : > { %v2848_v60 = vmax.f32 %v2768_v19, 0.0  ;;  %v2578_v25 = vpop.f32.mrb[196].mxu0  ;;  %v8113_v27 = vpop.f32.mrb[104].mxu1  ;;  %3652 = vmatprep.mubr.f32.mxu0 %v7229_v0  ;;  %v2309_v19 = vadd.f32 %v8079_v48, %v7997_v31 }
 0x3f9   : > { %v2915_v34 = vpack.c.bf16 %v2847_v21, %v2845_v33  ;;  %v2769_v41 = vadd.f32 %v2578_v25, %v2293_v22  ;;  %v2580_v44 = vpop.f32.mrb[197].mxu0  ;;  %v8115_v46 = vpop.f32.mrb[105].mxu1  ;;  %v6817_v21 = vld [vmem:[#allocation2 + $0x4d0] ss:$8 sps:$4 sm:$0xff]  }
 0x3fa   : > { %v2916_v47 = vpack.c.bf16 %v2848_v60, %v2846_v28  ;;  %v2770_v63 = vadd.f32 %v2580_v44, %v2295_v32  ;;  %v8117_v5 = vpop.f32.mrb[106].mxu1  ;;  %4030 = vmatpush1.bf16.msra.mxu1 %v6805_v20  ;;  %v7097_v22 = vld [vmem:[%s7381_s16 + $0x38] sm:$0xff]  ;;  %v2313_v28 = vadd.f32 %v8091_v35, %v7992_v12  ;;  %v6822_v60 = vld [vmem:[#allocation2 + $0x4e4] ss:$8 sps:$4 sm:$0xff]  }
 0x3fb   : > { %v8123_v50 = vpop.f32.mrb[107].mxu1  ;;  %4031 = vmatprep.subr.bf16.mxu1 %v6810_v24  ;;  %v2849_v7 = vmax.f32 %v2769_v41, 0.0  ;;  %6114 = vmatmul.mubr.msk.f32.gmra.mrb[10].mxu0 %vm329_vm0, %v7097_v22  ;;  %v2327_v16 = vadd.f32 %v8117_v5, %v7992_v12 }
 0x3fc   : > { %v2584_v40 = vpop.f32.mrb[198].mxu0  ;;  %3233 = vmatprep.mubr.bf16.mxu1 %v2916_v47  ;;  %v2850_v57 = vmax.f32 %v2770_v63, 0.0  ;;  %3658 = vmatprep.mubr.f32.mxu0 %v7229_v0 }
 0x3fd   : > { %v2771_v61 = vadd.f32 %v2584_v40, %v2297_v52  ;;  %v2586_v62 = vpop.f32.mrb[199].mxu0  ;;  %3234 = vmatmul.mubr.bf16.gmra.mrb[168].mxu1 %v2915_v34  ;;  %v2315_v34 = vadd.f32 %v8093_v11, %v7997_v31  ;;  %v7098_v40 = vld [vmem:[%s7381_s16 + $0x40] sm:$0xff]  ;;  %v2317_v11 = vadd.f32 %v8095_v13, %v7992_v12 }
 0x3fe   : > { %v2772_v8 = vadd.f32 %v2586_v62, %v2299_v56  ;;  %4032 = vmatpush1.bf16.msra.mxu1 %v6808_v49  ;;  %v2319_v62 = vadd.f32 %v8101_v15, %v7997_v31  ;;  %v2325_v15 = vadd.f32 %v8115_v46, %v7997_v31 }
 0x3ff   : > { %v2851_v51 = vmax.f32 %v2771_v61, 0.0  ;;  %4033 = vmatprep.subr.bf16.mxu1 %v6813_v29  ;;  %v6820_v29 = vld [vmem:[#allocation2 + $0x4e0] ss:$8 sps:$4 sm:$0xff]   ;;  %6115 = vmatmul.mubr.msk.f32.gmra.mrb[12].mxu0 %vm329_vm0, %v7098_v40 }
 0x400   : > { %v2852_v4 = vmax.f32 %v2772_v8, 0.0  ;;  %v2590_v6 = vpop.f32.mrb[200].mxu0  ;;  %v8135_v42 = vpop.f32.mrb[108].mxu1  ;;  %3664 = vmatprep.mubr.f32.mxu0 %v7229_v0 }
 0x401   : > { %v2917_v9 = vpack.c.bf16 %v2851_v51, %v2849_v7  ;;  %v2773_v58 = vadd.f32 %v2590_v6, %v2303_v53  ;;  %v2592_v23 = vpop.f32.mrb[201].mxu0  ;;  %v8137_v14 = vpop.f32.mrb[109].mxu1  ;;  %v7099_v7 = vld [vmem:[%s7381_s16 + $0x48] sm:$0xff]  ;;  %v2323_v53 = vadd.f32 %v8113_v27, %v7992_v12  ;;  %v7100_v27 = vld [vmem:[%s7381_s16 + $0x50] sm:$0xff]  ;;  %v2333_v5 = vadd.f32 %v8135_v42, %v7992_v12  ;;  %v7102_v42 = vld [vmem:[%s7381_s16 + $0x60] sm:$0xff] }
 0x402   : > { %v2918_v45 = vpack.c.bf16 %v2852_v4, %v2850_v57  ;;  %v2774_v26 = vadd.f32 %v2592_v23, %v2305_v54  ;;  %v8139_v10 = vpop.f32.mrb[110].mxu1  ;;  %4034 = vmatpush1.bf16.msra.mxu1 %v6811_v30 }
 0x403   : > { %v8145_v17 = vpop.f32.mrb[111].mxu1  ;;  %4035 = vmatprep.subr.bf16.mxu1 %v6816_v3  ;;  %v2853_v2 = vmax.f32 %v2773_v58, 0.0  ;;  %6116 = vmatmul.mubr.msk.f32.gmra.mrb[14].mxu0 %vm329_vm0, %v7099_v7 }
 0x404   : > { %v2596_v18 = vpop.f32.mrb[202].mxu0  ;;  %3243 = vmatprep.mubr.bf16.mxu1 %v2918_v45  ;;  %v2854_v48 = vmax.f32 %v2774_v26, 0.0  ;;  %3670 = vmatprep.mubr.f32.mxu0 %v7229_v0 }
 0x405   : > { %v2775_v20 = vadd.f32 %v2596_v18, %v2307_v38  ;;  %v2598_v43 = vpop.f32.mrb[203].mxu0  ;;  %3244 = vmatmul.mubr.bf16.gmra.mrb[172].mxu1 %v2917_v9 }
 0x406   : > { %v2776_v33 = vadd.f32 %v2598_v43, %v2309_v19  ;;  %4036 = vmatpush1.bf16.msra.mxu1 %v6814_v55  ;;  %v7101_v43 = vld [vmem:[%s7381_s16 + $0x58] sm:$0xff] }
 0x407   : > { %v2855_v24 = vmax.f32 %v2775_v20, 0.0  ;;  %4037 = vmatprep.subr.bf16.mxu1 %v6819_v59  ;;  %6117 = vmatmul.mubr.msk.f32.gmra.mrb[16].mxu0 %vm329_vm0, %v7100_v27  ;;  %v2329_v59 = vadd.f32 %v8123_v50, %v7997_v31  ;;  %v2335_v50 = vadd.f32 %v8137_v14, %v7997_v31 }
 0x408   : > { %v2856_v25 = vmax.f32 %v2776_v33, 0.0  ;;  %v2602_v32 = vpop.f32.mrb[204].mxu0  ;;  %v8157_v41 = vpop.f32.mrb[112].mxu1  ;;  %3676 = vmatprep.mubr.f32.mxu0 %v7229_v0 }
 0x409   : > { %v2919_v44 = vpack.c.bf16 %v2855_v24, %v2853_v2  ;;  %v2777_v47 = vadd.f32 %v2602_v32, %v2313_v28  ;;  %v2604_v63 = vpop.f32.mrb[205].mxu0  ;;  %v8159_v49 = vpop.f32.mrb[113].mxu1 }
 0x40a   : > { %v2920_v39 = vpack.c.bf16 %v2856_v25, %v2854_v48  ;;  %v2778_v35 = vadd.f32 %v2604_v63, %v2315_v34  ;;  %v8161_v52 = vpop.f32.mrb[114].mxu1  ;;  %4038 = vmatpush1.bf16.msra.mxu1 %v6817_v21  ;;  %v2337_v63 = vadd.f32 %v8139_v10, %v7992_v12  ;;  %v2343_v10 = vadd.f32 %v8157_v41, %v7992_v12  ;;  %v7104_v41 = vld [vmem:[%s7381_s16 + $0x70] sm:$0xff] }
 0x40b   : > { %v8167_v56 = vpop.f32.mrb[115].mxu1  ;;  %4039 = vmatprep.subr.bf16.mxu1 %v6822_v60  ;;  %v2857_v51 = vmax.f32 %v2777_v47, 0.0  ;;  %6118 = vmatmul.mubr.msk.f32.gmra.mrb[18].mxu0 %vm329_vm0, %v7101_v43 }
 0x40c   : > { %v2608_v61 = vpop.f32.mrb[206].mxu0  ;;  %3253 = vmatprep.mubr.bf16.mxu1 %v2920_v39  ;;  %v2858_v3 = vmax.f32 %v2778_v35, 0.0  ;;  %3682 = vmatprep.mubr.f32.mxu0 %v7229_v0  ;;  %v2339_v35 = vadd.f32 %v8145_v17, %v7997_v31  ;;  %v2345_v17 = vadd.f32 %v8159_v49, %v7997_v31 }
 0x40d   : > { %v2779_v8 = vadd.f32 %v2608_v61, %v2317_v11  ;;  %v2610_v30 = vpop.f32.mrb[207].mxu0  ;;  %3254 = vmatmul.mubr.bf16.gmra.mrb[176].mxu1 %v2919_v44  ;;  %v7103_v61 = vld [vmem:[%s7381_s16 + $0x68] sm:$0xff] }
 0x40e   : > { %v2780_v1 = vadd.f32 %v2610_v30, %v2319_v62  ;;  %4040 = vmatpush1.bf16.msra.mxu1 %v6820_v29 }
 0x40f   : > { %v2859_v13 = vmax.f32 %v2779_v8, 0.0  ;;  %6119 = vmatmul.mubr.msk.f32.gmra.mrb[20].mxu0 %vm329_vm0, %v7102_v42 }
 0x410   : > { %v2860_v57 = vmax.f32 %v2780_v1, 0.0  ;;  %v2614_v4 = vpop.f32.mrb[208].mxu0  ;;  %v8179_v6 = vpop.f32.mrb[116].mxu1  ;;  %3688 = vmatprep.mubr.f32.mxu0 %v7229_v0 }
 0x411   : > { %v2921_v54 = vpack.c.bf16 %v2859_v13, %v2857_v51  ;;  %v2781_v9 = vadd.f32 %v2614_v4, %v2323_v53  ;;  %v2616_v58 = vpop.f32.mrb[209].mxu0  ;;  %v8181_v23 = vpop.f32.mrb[117].mxu1 }
 0x412   : > { %v2922_v45 = vpack.c.bf16 %v2860_v57, %v2858_v3  ;;  %v2782_v26 = vadd.f32 %v2616_v58, %v2325_v15  ;;  %v8183_v55 = vpop.f32.mrb[118].mxu1 }
 0x413   : > { %v8189_v38 = vpop.f32.mrb[119].mxu1  ;;  %v2861_v33 = vmax.f32 %v2781_v9, 0.0  ;;  %6120 = vmatmul.mubr.msk.f32.gmra.mrb[22].mxu0 %vm329_vm0, %v7103_v61  ;;  %v2347_v9 = vadd.f32 %v8161_v52, %v7992_v12  ;;  %v2353_v52 = vadd.f32 %v8179_v6, %v7992_v12  ;;  %v7106_v6 = vld [vmem:[%s7381_s16 + $0x80] sm:$0xff] }
 0x414   : > { %v2620_v46 = vpop.f32.mrb[210].mxu0  ;;  %3263 = vmatprep.mubr.bf16.mxu1 %v2922_v45  ;;  %v2862_v22 = vmax.f32 %v2782_v26, 0.0  ;;  %3694 = vmatprep.mubr.f32.mxu0 %v7229_v0  ;;  %v2349_v45 = vadd.f32 %v8167_v56, %v7997_v31  ;;  %v2355_v56 = vadd.f32 %v8181_v23, %v7997_v31  ;;  %v6823_v23 = vld [vmem:[#allocation2 + $0x4f0] ss:$8 sps:$4 sm:$0xff]   ;;  %v2359_v42 = vadd.f32 %v8189_v38, %v7997_v31 }
 0x415   : > { %v2783_v18 = vadd.f32 %v2620_v46, %v2327_v16  ;;  %v2622_v19 = vpop.f32.mrb[211].mxu0  ;;  %3264 = vmatmul.mubr.bf16.gmra.mrb[180].mxu1 %v2921_v54  ;;  %v7105_v46 = vld [vmem:[%s7381_s16 + $0x78] sm:$0xff] }
 0x416   : > { %v2784_v20 = vadd.f32 %v2622_v19, %v2329_v59 }
 0x417   : > { %v2863_v21 = vmax.f32 %v2783_v18, 0.0  ;;  %6121 = vmatmul.mubr.msk.f32.gmra.mrb[24].mxu0 %vm329_vm0, %v7104_v41 }
 0x418   : > { %v2864_v2 = vmax.f32 %v2784_v20, 0.0  ;;  %v2626_v24 = vpop.f32.mrb[212].mxu0  ;;  %v8201_v28 = vpop.f32.mrb[120].mxu1  ;;  %3700 = vmatprep.mubr.f32.mxu0 %v7229_v0 }
 0x419   : > { %v2923_v60 = vpack.c.bf16 %v2863_v21, %v2861_v33  ;;  %v2785_v48 = vadd.f32 %v2626_v24, %v2333_v5  ;;  %v2628_v25 = vpop.f32.mrb[213].mxu0  ;;  %v8203_v32 = vpop.f32.mrb[121].mxu1 }
 0x41a   : > { %v2924_v34 = vpack.c.bf16 %v2864_v2, %v2862_v22  ;;  %v2786_v44 = vadd.f32 %v2628_v25, %v2335_v50  ;;  %v8205_v47 = vpop.f32.mrb[122].mxu1 }
 0x41b   : > { %v8211_v39 = vpop.f32.mrb[123].mxu1  ;;  %v2865_v62 = vmax.f32 %v2785_v48, 0.0  ;;  %6122 = vmatmul.mubr.msk.f32.gmra.mrb[26].mxu0 %vm329_vm0, %v7105_v46  ;;  %v2357_v48 = vadd.f32 %v8183_v55, %v7992_v12 }
 0x41c   : > { %v2632_v14 = vpop.f32.mrb[214].mxu0  ;;  %3273 = vmatprep.mubr.bf16.mxu1 %v2924_v34  ;;  %v2866_v30 = vmax.f32 %v2786_v44, 0.0  ;;  %3706 = vmatprep.mubr.f32.mxu0 %v7229_v0  ;;  %v6825_v34 = vld [vmem:[#allocation2 + $0x4f4] ss:$8 sps:$4 sm:$0xff]   ;;  %v2369_v41 = vadd.f32 %v8211_v39, %v7997_v31 }
 0x41d   : > { %v2787_v29 = vadd.f32 %v2632_v14, %v2337_v63  ;;  %v2634_v40 = vpop.f32.mrb[215].mxu0  ;;  %3274 = vmatmul.mubr.bf16.gmra.mrb[184].mxu1 %v2923_v60  ;;  %4041 = vmatprep.subr.bf16.mxu1 %v6825_v34 }
 0x41e   : > { %v2788_v11 = vadd.f32 %v2634_v40, %v2339_v35  ;;  %4042 = vmatpush1.bf16.msra.mxu1 %v6823_v23 }
 0x41f   : > { %v2867_v8 = vmax.f32 %v2787_v29, 0.0  ;;  %6123 = vmatmul.mubr.msk.f32.gmra.mrb[28].mxu0 %vm329_vm0, %v7106_v6  ;;  %v7107_v29 = vld [vmem:[%s7381_s16 + $0x88] sm:$0xff] }
 0x420   : > { %v2868_v1 = vmax.f32 %v2788_v11, 0.0  ;;  %v2638_v7 = vpop.f32.mrb[216].mxu0  ;;  %v8223_v51 = vpop.f32.mrb[124].mxu1  ;;  %3712 = vmatprep.mubr.f32.mxu0 %v7229_v0  ;;  %v2363_v11 = vadd.f32 %v8201_v28, %v7992_v12  ;;  %v7108_v28 = vld [vmem:[%s7381_s16 + $0x90] sm:$0xff] }
 0x421   : > { %v2925_v13 = vpack.c.bf16 %v2867_v8, %v2865_v62  ;;  %v2789_v53 = vadd.f32 %v2638_v7, %v2343_v10  ;;  %v2640_v3 = vpop.f32.mrb[217].mxu0  ;;  %v8225_v57 = vpop.f32.mrb[125].mxu1  ;;  %v2365_v8 = vadd.f32 %v8203_v32, %v7997_v31 }
 0x422   : > { %v2926_v4 = vpack.c.bf16 %v2868_v1, %v2866_v30  ;;  %v2790_v15 = vadd.f32 %v2640_v3, %v2345_v17  ;;  %v8227_v54 = vpop.f32.mrb[126].mxu1  ;;  %v2375_v39 = vadd.f32 %v8225_v57, %v7997_v31 }
 0x423   : > { %v8233_v58 = vpop.f32.mrb[127].mxu1  ;;  %v2869_v59 = vmax.f32 %v2789_v53, 0.0  ;;  %6124 = vmatmul.mubr.msk.f32.gmra.mrb[30].mxu0 %vm329_vm0, %v7107_v29 }
 0x424   : > { %v2644_v49 = vpop.f32.mrb[218].mxu0  ;;  %3283 = vmatprep.mubr.bf16.mxu1 %v2926_v4  ;;  %v2870_v19 = vmax.f32 %v2790_v15, 0.0  ;;  %3718 = vmatprep.mubr.f32.mxu0 %v7229_v0  ;;  %v2367_v4 = vadd.f32 %v8205_v47, %v7992_v12  ;;  %v2373_v47 = vadd.f32 %v8223_v51, %v7992_v12  ;;  %v7110_v51 = vld [vmem:[%s7381_s16 + $0xa0] sm:$0xff]  ;;  %v2379_v6 = vadd.f32 %v8233_v58, %v7997_v31 }
 0x425   : > { %v2791_v26 = vadd.f32 %v2644_v49, %v2347_v9  ;;  %v2646_v27 = vpop.f32.mrb[219].mxu0  ;;  %3284 = vmatmul.mubr.bf16.gmra.mrb[188].mxu1 %v2925_v13 }
 0x426   : > { %v2792_v16 = vadd.f32 %v2646_v27, %v2349_v45 }
 0x427   : > { %v2871_v18 = vmax.f32 %v2791_v26, 0.0  ;;  %6125 = vmatmul.mubr.msk.f32.gmra.mrb[32].mxu0 %vm329_vm0, %v7108_v28  ;;  %v7109_v26 = vld [vmem:[%s7381_s16 + $0x98] sm:$0xff] }
 0x428   : > { %v2872_v20 = vmax.f32 %v2792_v16, 0.0  ;;  %v2650_v43 = vpop.f32.mrb[220].mxu0  ;;  %v8245_v33 = vpop.f32.mrb[128].mxu1  ;;  %3724 = vmatprep.mubr.f32.mxu0 %v7229_v0 }
 0x429   : > { %v2927_v21 = vpack.c.bf16 %v2871_v18, %v2869_v59  ;;  %v2793_v5 = vadd.f32 %v2650_v43, %v2353_v52  ;;  %v2652_v22 = vpop.f32.mrb[221].mxu0  ;;  %v8247_v2 = vpop.f32.mrb[129].mxu1 }
 0x42a   : > { %v2928_v24 = vpack.c.bf16 %v2872_v20, %v2870_v19  ;;  %v2794_v50 = vadd.f32 %v2652_v22, %v2355_v56  ;;  %v8249_v60 = vpop.f32.mrb[130].mxu1  ;;  %v2385_v58 = vadd.f32 %v8247_v2, %v7997_v31 }
 0x42b   : > { %v8255_v25 = vpop.f32.mrb[131].mxu1  ;;  %v2873_v55 = vmax.f32 %v2793_v5, 0.0  ;;  %6126 = vmatmul.mubr.msk.f32.gmra.mrb[34].mxu0 %vm329_vm0, %v7109_v26 }
 0x42c   : > { %v2656_v44 = vpop.f32.mrb[222].mxu0  ;;  %3293 = vmatprep.mubr.bf16.mxu1 %v2928_v24  ;;  %v2874_v61 = vmax.f32 %v2794_v50, 0.0  ;;  %3730 = vmatprep.mubr.f32.mxu0 %v7229_v0  ;;  %v2377_v24 = vadd.f32 %v8227_v54, %v7992_v12  ;;  %v2383_v54 = vadd.f32 %v8245_v33, %v7992_v12  ;;  %v7112_v33 = vld [vmem:[%s7381_s16 + $0xb0] sm:$0xff] }
 0x42d   : > { %v2795_v63 = vadd.f32 %v2656_v44, %v2357_v48  ;;  %v2658_v14 = vpop.f32.mrb[223].mxu0  ;;  %3294 = vmatmul.mubr.bf16.gmra.mrb[192].mxu1 %v2927_v21  ;;  %v7111_v44 = vld [vmem:[%s7381_s16 + $0xa8] sm:$0xff] }
 0x42e   : > { %v2796_v35 = vadd.f32 %v2658_v14, %v2359_v42 }
 0x42f   : > { %v2875_v40 = vmax.f32 %v2795_v63, 0.0  ;;  %6127 = vmatmul.mubr.msk.f32.gmra.mrb[36].mxu0 %vm329_vm0, %v7110_v51 }
 0x430   : > { %v2876_v62 = vmax.f32 %v2796_v35, 0.0  ;;  %v2662_v38 = vpop.f32.mrb[224].mxu0  ;;  %v8267_v10 = vpop.f32.mrb[132].mxu1  ;;  %3736 = vmatprep.mubr.f32.mxu0 %v7229_v0 }
 0x431   : > { %v2929_v30 = vpack.c.bf16 %v2875_v40, %v2873_v55  ;;  %v2797_v1 = vadd.f32 %v2662_v38, %v2363_v11  ;;  %v2664_v7 = vpop.f32.mrb[225].mxu0  ;;  %v8269_v17 = vpop.f32.mrb[133].mxu1 }
 0x432   : > { %v2930_v13 = vpack.c.bf16 %v2876_v62, %v2874_v61  ;;  %v2798_v53 = vadd.f32 %v2664_v7, %v2365_v8  ;;  %v8271_v3 = vpop.f32.mrb[134].mxu1 }
 0x433   : > { %v8277_v15 = vpop.f32.mrb[135].mxu1  ;;  %v2877_v27 = vmax.f32 %v2797_v1, 0.0  ;;  %6128 = vmatmul.mubr.msk.f32.gmra.mrb[38].mxu0 %vm329_vm0, %v7111_v44  ;;  %v2387_v1 = vadd.f32 %v8249_v60, %v7992_v12 }
 0x434   : > { %v2668_v32 = vpop.f32.mrb[226].mxu0  ;;  %3303 = vmatprep.mubr.bf16.mxu1 %v2930_v13  ;;  %v2878_v46 = vmax.f32 %v2798_v53, 0.0  ;;  %3742 = vmatprep.mubr.f32.mxu0 %v7229_v0  ;;  %v2389_v13 = vadd.f32 %v8255_v25, %v7997_v31 }
 0x435   : > { %v2799_v9 = vadd.f32 %v2668_v32, %v2367_v4  ;;  %v2670_v49 = vpop.f32.mrb[227].mxu0  ;;  %3304 = vmatmul.mubr.bf16.gmra.mrb[196].mxu1 %v2929_v30  ;;  %v7113_v32 = vld [vmem:[%s7381_s16 + $0xb8] sm:$0xff] }
 0x436   : > { %v2800_v45 = vadd.f32 %v2670_v49, %v2369_v41  ;;  %v2393_v41 = vadd.f32 %v8267_v10, %v7992_v12  ;;  %v2395_v49 = vadd.f32 %v8269_v17, %v7997_v31  ;;  %v2397_v17 = vadd.f32 %v8271_v3, %v7992_v12 }
 0x437   : > { %v2879_v16 = vmax.f32 %v2799_v9, 0.0  ;;  %6129 = vmatmul.mubr.msk.f32.gmra.mrb[40].mxu0 %vm329_vm0, %v7112_v33 }
 0x438   : > { %v2880_v59 = vmax.f32 %v2800_v45, 0.0  ;;  %v2674_v18 = vpop.f32.mrb[228].mxu0  ;;  %v8289_v52 = vpop.f32.mrb[136].mxu1  ;;  %3748 = vmatprep.mubr.f32.mxu0 %v7229_v0 }
 0x439   : > { %v2931_v19 = vpack.c.bf16 %v2879_v16, %v2877_v27  ;;  %v2801_v20 = vadd.f32 %v2674_v18, %v2373_v47  ;;  %v2676_v43 = vpop.f32.mrb[229].mxu0  ;;  %v8291_v56 = vpop.f32.mrb[137].mxu1  ;;  %v2403_v3 = vadd.f32 %v8289_v52, %v7992_v12 }
 0x43a   : > { %v2932_v21 = vpack.c.bf16 %v2880_v59, %v2878_v46  ;;  %v2802_v5 = vadd.f32 %v2676_v43, %v2375_v39  ;;  %v8293_v22 = vpop.f32.mrb[138].mxu1  ;;  %v2399_v43 = vadd.f32 %v8277_v15, %v7997_v31  ;;  %v2405_v15 = vadd.f32 %v8291_v56, %v7997_v31 }
 0x43b   : > { %v8299_v50 = vpop.f32.mrb[139].mxu1  ;;  %v2881_v42 = vmax.f32 %v2801_v20, 0.0  ;;  %6130 = vmatmul.mubr.msk.f32.gmra.mrb[42].mxu0 %vm329_vm0, %v7113_v32  ;;  %v2407_v52 = vadd.f32 %v8293_v22, %v7992_v12 }
 0x43c   : > { %v2680_v57 = vpop.f32.mrb[230].mxu0  ;;  %3313 = vmatprep.mubr.bf16.mxu1 %v2932_v21  ;;  %v2882_v14 = vmax.f32 %v2802_v5, 0.0  ;;  %3754 = vmatprep.mubr.f32.mxu0 %v7229_v0  ;;  %v2409_v56 = vadd.f32 %v8299_v50, %v7997_v31 }
 0x43d   : > { %v2803_v48 = vadd.f32 %v2680_v57, %v2377_v24  ;;  %v2682_v23 = vpop.f32.mrb[231].mxu0  ;;  %3314 = vmatmul.mubr.bf16.gmra.mrb[200].mxu1 %v2931_v19  ;;  %v7114_v19 = vld [vmem:[%s7381_s16 + $0xc0] sm:$0xff]  ;;  %v7115_v57 = vld [vmem:[%s7381_s16 + $0xc8] sm:$0xff] }
 0x43e   : > { %v2804_v34 = vadd.f32 %v2682_v23, %v2379_v6 }
 0x43f   : > { %v2883_v63 = vmax.f32 %v2803_v48, 0.0  ;;  %6131 = vmatmul.mubr.msk.f32.gmra.mrb[44].mxu0 %vm329_vm0, %v7114_v19 }
 0x440   : > { %v2884_v35 = vmax.f32 %v2804_v34, 0.0  ;;  %v2686_v29 = vpop.f32.mrb[232].mxu0  ;;  %v8311_v55 = vpop.f32.mrb[140].mxu1  ;;  %3760 = vmatprep.mubr.f32.mxu0 %v7229_v0 }
 0x441   : > { %v2933_v40 = vpack.c.bf16 %v2883_v63, %v2881_v42  ;;  %v2805_v11 = vadd.f32 %v2686_v29, %v2383_v54  ;;  %v2688_v61 = vpop.f32.mrb[233].mxu0  ;;  %v8313_v62 = vpop.f32.mrb[141].mxu1  ;;  %v7116_v29 = vld [vmem:[%s7381_s16 + $0xd0] sm:$0xff] }
 0x442   : > { %v2934_v38 = vpack.c.bf16 %v2884_v35, %v2882_v14  ;;  %v2806_v8 = vadd.f32 %v2688_v61, %v2385_v58  ;;  %v8315_v30 = vpop.f32.mrb[142].mxu1  ;;  %v2415_v50 = vadd.f32 %v8313_v62, %v7997_v31 }
 0x443   : > { %v8321_v7 = vpop.f32.mrb[143].mxu1  ;;  %v2885_v60 = vmax.f32 %v2805_v11, 0.0  ;;  %6132 = vmatmul.mubr.msk.f32.gmra.mrb[46].mxu0 %vm329_vm0, %v7115_v57 }
 0x444   : > { %v2692_v2 = vpop.f32.mrb[234].mxu0  ;;  %3323 = vmatprep.mubr.bf16.mxu1 %v2934_v38  ;;  %v2886_v45 = vmax.f32 %v2806_v8, 0.0  ;;  %3766 = vmatprep.mubr.f32.mxu0 %v7229_v0  ;;  %v7117_v38 = vld [vmem:[%s7381_s16 + $0xd8] sm:$0xff]  ;;  %v2413_v8 = vadd.f32 %v8311_v55, %v7992_v12  ;;  %v2417_v55 = vadd.f32 %v8315_v30, %v7992_v12  ;;  %v2419_v62 = vadd.f32 %v8321_v7, %v7997_v31 }
 0x445   : > { %v2807_v53 = vadd.f32 %v2692_v2, %v2387_v1  ;;  %v2694_v28 = vpop.f32.mrb[235].mxu0  ;;  %3324 = vmatmul.mubr.bf16.gmra.mrb[204].mxu1 %v2933_v40 }
 0x446   : > { %v2808_v4 = vadd.f32 %v2694_v28, %v2389_v13 }
 0x447   : > { %v2887_v9 = vmax.f32 %v2807_v53, 0.0  ;;  %6133 = vmatmul.mubr.msk.f32.gmra.mrb[48].mxu0 %vm329_vm0, %v7116_v29  ;;  %v7127_v29 = vld [vmem:[%s7381_s16 + $0x128] sm:$0xff] }
 0x448   : > { %v2888_v25 = vmax.f32 %v2808_v4, 0.0  ;;  %v2698_v26 = vpop.f32.mrb[236].mxu0  ;;  %v8333_v27 = vpop.f32.mrb[144].mxu1  ;;  %3772 = vmatprep.mubr.f32.mxu0 %v7229_v0 }
 0x449   : > { %v2935_v16 = vpack.c.bf16 %v2887_v9, %v2885_v60  ;;  %v2809_v47 = vadd.f32 %v2698_v26, %v2393_v41  ;;  %v2700_v46 = vpop.f32.mrb[237].mxu0  ;;  %v8335_v59 = vpop.f32.mrb[145].mxu1  ;;  %v7118_v60 = vld [vmem:[%s7381_s16 + $0xe0] sm:$0xff]  ;;  %v7119_v26 = vld [vmem:[%s7381_s16 + $0xe8] sm:$0xff] }
 0x44a   : > { %v2936_v10 = vpack.c.bf16 %v2888_v25, %v2886_v45  ;;  %v2810_v18 = vadd.f32 %v2700_v46, %v2395_v49  ;;  %v8337_v39 = vpop.f32.mrb[146].mxu1  ;;  %v2425_v7 = vadd.f32 %v8335_v59, %v7997_v31 }
 0x44b   : > { %v8343_v20 = vpop.f32.mrb[147].mxu1  ;;  %v2889_v6 = vmax.f32 %v2809_v47, 0.0  ;;  %6134 = vmatmul.mubr.msk.f32.gmra.mrb[50].mxu0 %vm329_vm0, %v7117_v38  ;;  %v6835_v38 = vld [vmem:[#allocation2 + $0x530] ss:$8 sps:$4 sm:$0xff]  }
 0x44c   : > { %v2704_v21 = vpop.f32.mrb[238].mxu0  ;;  %3333 = vmatprep.mubr.bf16.mxu1 %v2936_v10  ;;  %v2890_v23 = vmax.f32 %v2810_v18, 0.0  ;;  %3778 = vmatprep.mubr.f32.mxu0 %v7229_v0  ;;  %v2429_v59 = vadd.f32 %v8343_v20, %v7997_v31 }
 0x44d   : > { %v2811_v5 = vadd.f32 %v2704_v21, %v2397_v17  ;;  %v2706_v51 = vpop.f32.mrb[239].mxu0  ;;  %3334 = vmatmul.mubr.bf16.gmra.mrb[208].mxu1 %v2935_v16  ;;  %v2423_v16 = vadd.f32 %v8333_v27, %v7992_v12  ;;  %v2427_v27 = vadd.f32 %v8337_v39, %v7992_v12 }
 0x44e   : > { %v2812_v24 = vadd.f32 %v2706_v51, %v2399_v43  ;;  %v7120_v51 = vld [vmem:[%s7381_s16 + $0xf0] sm:$0xff] }
 0x44f   : > { %v2891_v48 = vmax.f32 %v2811_v5, 0.0  ;;  %6135 = vmatmul.mubr.msk.f32.gmra.mrb[52].mxu0 %vm329_vm0, %v7118_v60 }
 0x450   : > { %v2892_v34 = vmax.f32 %v2812_v24, 0.0  ;;  %v2710_v44 = vpop.f32.mrb[240].mxu0  ;;  %3784 = vmatprep.mubr.f32.mxu0 %v7229_v0 }
 0x451   : > { %v2937_v42 = vpack.c.bf16 %v2891_v48, %v2889_v6  ;;  %v2813_v63 = vadd.f32 %v2710_v44, %v2403_v3  ;;  %v2712_v54 = vpop.f32.mrb[241].mxu0  ;;  %v7121_v48 = vld [vmem:[%s7381_s16 + $0xf8] sm:$0xff]  ;;  %v7123_v44 = vld [vmem:[%s7381_s16 + $0x108] sm:$0xff] }
 0x452   : > { %v2938_v14 = vpack.c.bf16 %v2892_v34, %v2890_v23  ;;  %v2814_v35 = vadd.f32 %v2712_v54, %v2405_v15  ;;  %v7122_v34 = vld [vmem:[%s7381_s16 + $0x100] sm:$0xff] }
 0x453   : > { %v2893_v33 = vmax.f32 %v2813_v63, 0.0  ;;  %6136 = vmatmul.mubr.msk.f32.gmra.mrb[54].mxu0 %vm329_vm0, %v7119_v26  ;;  %v7125_v63 = vld [vmem:[%s7381_s16 + $0x118] sm:$0xff]  ;;  %v6826_v54 = vld [vmem:[#allocation2 + $0x500] ss:$8 sps:$4 sm:$0xff]  }
 0x454   : > { %v2716_v58 = vpop.f32.mrb[242].mxu0  ;;  %3343 = vmatprep.mubr.bf16.mxu1 %v2938_v14  ;;  %v2894_v1 = vmax.f32 %v2814_v35, 0.0  ;;  %3790 = vmatprep.mubr.f32.mxu0 %v7229_v0  ;;  %v6828_v14 = vld [vmem:[#allocation2 + $0x504] ss:$8 sps:$4 sm:$0xff]  }
 0x455   : > { %v2815_v40 = vadd.f32 %v2716_v58, %v2407_v52  ;;  %v2718_v11 = vpop.f32.mrb[243].mxu0  ;;  %3344 = vmatmul.mubr.bf16.gmra.mrb[212].mxu1 %v2937_v42  ;;  %v7124_v42 = vld [vmem:[%s7381_s16 + $0x110] sm:$0xff]  ;;  %4663 = vmatprep.subr.bf16.mxu0 %v6828_v14  ;;  %v7126_v35 = vld [vmem:[%s7381_s16 + $0x120] sm:$0xff] }
 0x456   : > { %v2816_v61 = vadd.f32 %v2718_v11, %v2409_v56  ;;  %4664 = vmatpush1.bf16.msra.mxu0 %v6826_v54  ;;  %v6829_v52 = vld [vmem:[#allocation2 + $0x510] ss:$8 sps:$4 sm:$0xff]   ;;  %v6831_v56 = vld [vmem:[#allocation2 + $0x514] ss:$8 sps:$4 sm:$0xff]   ;;  %v6834_v11 = vld [vmem:[#allocation2 + $0x524] ss:$8 sps:$4 sm:$0xff]  }
 0x457   : > { %v2895_v22 = vmax.f32 %v2815_v40, 0.0  ;;  %6137 = vmatmul.mubr.msk.f32.gmra.mrb[56].mxu0 %vm329_vm0, %v7120_v51  ;;  %4665 = vmatprep.subr.bf16.mxu0 %v6831_v56  ;;  %v7128_v58 = vld [vmem:[%s7381_s16 + $0x130] sm:$0xff]  ;;  %v6832_v40 = vld [vmem:[#allocation2 + $0x520] ss:$8 sps:$4 sm:$0xff]  }
 0x458   : > { %v2896_v2 = vmax.f32 %v2816_v61, 0.0  ;;  %v2722_v13 = vpop.f32.mrb[244].mxu0  ;;  %3796 = vmatprep.mubr.f32.mxu0 %v7229_v0  ;;  %v7129_v61 = vld [vmem:[%s7381_s16 + $0x138] sm:$0xff]  ;;  %s9061_s16 = scalar_lea.hbm %s9115_s6, %s6353_s14 }
 0x459   : > { %v2939_v53 = vpack.c.bf16 %v2895_v22, %v2893_v33  ;;  %v2817_v28 = vadd.f32 %v2722_v13, %v2413_v8  ;;  %v2724_v4 = vpop.f32.mrb[245].mxu0  ;;  %v6837_v8 = vld [vmem:[#allocation2 + $0x534] ss:$8 sps:$4 sm:$0xff]   ;;  %v6838_v33 = vld [vmem:[#allocation2 + $0x540] ss:$8 sps:$4 sm:$0xff]  }
 0x45a   : > { %v2940_v32 = vpack.c.bf16 %v2896_v2, %v2894_v1  ;;  %v2818_v41 = vadd.f32 %v2724_v4, %v2415_v50  ;;  %4666 = vmatpush1.bf16.msra.mxu0 %v6829_v52  ;;  %v6840_v22 = vld [vmem:[#allocation2 + $0x544] ss:$8 sps:$4 sm:$0xff]   ;;  %v6066_v50 = vld [vmem:[%s9112_s3 + $0x8] sm:$0x3]  ;;  %v6841_v13 = vld [vmem:[#allocation2 + $0x550] ss:$8 sps:$4 sm:$0xff]  }
 0x45b   : > { %v2897_v47 = vmax.f32 %v2817_v28, 0.0  ;;  %6138 = vmatmul.mubr.msk.f32.gmra.mrb[58].mxu0 %vm329_vm0, %v7121_v48  ;;  %4667 = vmatprep.subr.bf16.mxu0 %v6834_v11  ;;  %v8423_v1 = vrot.slane %v6066_v50, %v7504_v37 }
 0x45c   : > { %v2728_v9 = vpop.f32.mrb[246].mxu0  ;;  %3353 = vmatprep.mubr.bf16.mxu1 %v2940_v32  ;;  %v2898_v46 = vmax.f32 %v2818_v41, 0.0  ;;  %3802 = vmatprep.mubr.f32.mxu0 %v7229_v0 }
 0x45d   : > { %v2819_v49 = vadd.f32 %v2728_v9, %v2417_v55  ;;  %v2730_v45 = vpop.f32.mrb[247].mxu0  ;;  %3354 = vmatmul.mubr.bf16.gmra.mrb[216].mxu1 %v2939_v53  ;;  %v6843_v53 = vld [vmem:[#allocation2 + $0x554] ss:$8 sps:$4 sm:$0xff]  }
 0x45e   : > { %v2820_v25 = vadd.f32 %v2730_v45, %v2419_v62  ;;  %4668 = vmatpush1.bf16.msra.mxu0 %v6832_v40 }
 0x45f   : > { %v2899_v30 = vmax.f32 %v2819_v49, 0.0  ;;  %6139 = vmatmul.mubr.msk.f32.gmra.mrb[60].mxu0 %vm329_vm0, %v7122_v34  ;;  %4669 = vmatprep.subr.bf16.mxu0 %v6837_v8 }
 0x460   : > { %v2900_v10 = vmax.f32 %v2820_v25, 0.0  ;;  %v2734_v18 = vpop.f32.mrb[248].mxu0  ;;  %3808 = vmatprep.mubr.f32.mxu0 %v7229_v0 }
 0x461   : > { %v2941_v19 = vpack.c.bf16 %v2899_v30, %v2897_v47  ;;  %v2821_v17 = vadd.f32 %v2734_v18, %v2423_v16  ;;  %v2736_v43 = vpop.f32.mrb[249].mxu0  ;;  %v6844_v30 = vld [vmem:[#allocation2 + $0x560] ss:$8 sps:$4 sm:$0xff]  }
 0x462   : > { %v2942_v21 = vpack.c.bf16 %v2900_v10, %v2898_v46  ;;  %v2822_v5 = vadd.f32 %v2736_v43, %v2425_v7  ;;  %4670 = vmatpush1.bf16.msra.mxu0 %v6835_v38  ;;  %v6846_v7 = vld [vmem:[#allocation2 + $0x564] ss:$8 sps:$4 sm:$0xff]  }
 0x463   : > { %v2901_v15 = vmax.f32 %v2821_v17, 0.0  ;;  %6140 = vmatmul.mubr.msk.f32.gmra.mrb[62].mxu0 %vm329_vm0, %v7123_v44  ;;  %4671 = vmatprep.subr.bf16.mxu0 %v6840_v22 }
 0x464   : > { %v2740_v24 = vpop.f32.mrb[250].mxu0  ;;  %3363 = vmatprep.mubr.bf16.mxu1 %v2942_v21  ;;  %v2902_v12 = vmax.f32 %v2822_v5, 0.0  ;;  %3814 = vmatprep.mubr.f32.mxu0 %v7229_v0 }
 0x465   : > { %v2823_v57 = vadd.f32 %v2740_v24, %v2427_v27  ;;  %v2742_v3 = vpop.f32.mrb[251].mxu0  ;;  %3364 = vmatmul.mubr.bf16.gmra.mrb[220].mxu1 %v2941_v19 }
 0x466   : > { %v2824_v6 = vadd.f32 %v2742_v3, %v2429_v59  ;;  %4672 = vmatpush1.bf16.msra.mxu0 %v6838_v33 }
 0x467   : > { %v2903_v23 = vmax.f32 %v2823_v57, 0.0  ;;  %6141 = vmatmul.mubr.msk.f32.gmra.mrb[64].mxu0 %vm329_vm0, %v7124_v42  ;;  %4673 = vmatprep.subr.bf16.mxu0 %v6843_v53  ;;  %v6852_v53 = vld [vmem:[#allocation2 + $0x584] ss:$8 sps:$4 sm:$0xff]  }
 0x468   : > { %v2904_v39 = vmax.f32 %v2824_v6, 0.0  ;;  %3820 = vmatprep.mubr.f32.mxu0 %v7229_v0 }
 0x469   : > { %v2943_v31 = vpack.c.bf16 %v2903_v23, %v2901_v15 }
 0x46a   : > { %v2944_v20 = vpack.c.bf16 %v2904_v39, %v2902_v12  ;;  %4674 = vmatpush1.bf16.msra.mxu0 %v6841_v13  ;;  %v6850_v13 = vld [vmem:[#allocation2 + $0x580] ss:$8 sps:$4 sm:$0xff]  }
 0x46b   : > { %6142 = vmatmul.mubr.msk.f32.gmra.mrb[66].mxu0 %vm329_vm0, %v7125_v63  ;;  %4675 = vmatprep.subr.bf16.mxu0 %v6846_v7 }
 0x46c   : > { %3373 = vmatprep.mubr.bf16.mxu1 %v2944_v20  ;;  %3826 = vmatprep.mubr.f32.mxu0 %v7229_v0  ;;  %v6849_v20 = vld [vmem:[#allocation2 + $0x574] ss:$8 sps:$4 sm:$0xff]  }
 0x46d   : > { %3374 = vmatmul.mubr.bf16.gmra.mrb[224].mxu1 %v2943_v31  ;;  %v6847_v31 = vld [vmem:[#allocation2 + $0x570] ss:$8 sps:$4 sm:$0xff]  }
 0x46e   : > { %4676 = vmatpush1.bf16.msra.mxu0 %v6844_v30 }
 0x46f   : > { %6143 = vmatmul.mubr.msk.f32.gmra.mrb[68].mxu0 %vm329_vm0, %v7126_v35  ;;  %4677 = vmatprep.subr.bf16.mxu0 %v6849_v20 }
 0x470   : > { %3832 = vmatprep.mubr.f32.mxu0 %v7229_v0 }
 0x472   : > { %4678 = vmatpush1.bf16.msra.mxu0 %v6847_v31  ;;  %v6862_v31 = vld [vmem:[#allocation2 + $0x5c0] ss:$8 sps:$4 sm:$0xff]  }
 0x473   : > { %6144 = vmatmul.mubr.msk.f32.gmra.mrb[70].mxu0 %vm329_vm0, %v7127_v29  ;;  %4679 = vmatprep.subr.bf16.mxu0 %v6852_v53 }
 0x474   : > { %3838 = vmatprep.mubr.f32.mxu0 %v7229_v0 }
 0x476   : > { %4680 = vmatpush1.bf16.msra.mxu0 %v6850_v13 }
 0x477   : > { %6145 = vmatmul.mubr.msk.f32.gmra.mrb[72].mxu0 %vm329_vm0, %v7128_v58 }
 0x478   : > { %3844 = vmatprep.mubr.f32.mxu0 %v7229_v0  ;;  %v8420_v0 = vrot.slane %v6066_v50, %v7502_v36 }
 0x47b   : > { %6146 = vmatmul.mubr.msk.f32.gmra.mrb[74].mxu0 %vm329_vm0, %v7129_v61 }
 0x4a8   : > { %v3185_v2 = vpop.f32.mrb[148].mxu1 }
 0x4a9   : > { %v3186_v28 = vadd.f32 %v3185_v2, %v8420_v0  ;;  %v3187_v4 = vpop.f32.mrb[149].mxu1 }
 0x4aa   : > { %v3188_v32 = vadd.f32 %v3187_v4, %v8423_v1  ;;  %v3189_v41 = vpop.f32.mrb[150].mxu1 }
 0x4ab   : > { %v3190_v60 = vadd.f32 %v3189_v41, %v8420_v0  ;;  %v3191_v55 = vpop.f32.mrb[151].mxu1  ;;  %v3384_v9 = vmax.f32 %v3186_v28, 0.0 }
 0x4ac   : > { %v3192_v62 = vadd.f32 %v3191_v55, %v8423_v1  ;;  %v3385_v45 = vmax.f32 %v3188_v32, 0.0 }
 0x4ad   : > { %v3386_v49 = vmax.f32 %v3190_v60, 0.0 }
 0x4ae   : > { %v3387_v25 = vmax.f32 %v3192_v62, 0.0 }
 0x4af   : > { %v3464_v26 = vpack.c.bf16 %v3386_v49, %v3384_v9  ;;  %v6853_v49 = vld [vmem:[#allocation2 + $0x590] ss:$8 sps:$4 sm:$0xff]  }
 0x4b0   : > { %v3465_v16 = vpack.c.bf16 %v3387_v25, %v3385_v45  ;;  %v3195_v47 = vpop.f32.mrb[152].mxu1  ;;  %v6855_v45 = vld [vmem:[#allocation2 + $0x594] ss:$8 sps:$4 sm:$0xff]  }
 0x4b1   : > { %v3196_v46 = vadd.f32 %v3195_v47, %v8420_v0  ;;  %v3197_v10 = vpop.f32.mrb[153].mxu1  ;;  %4681 = vmatprep.subr.bf16.mxu0 %v6855_v45 }
 0x4b2   : > { %v3198_v18 = vadd.f32 %v3197_v10, %v8423_v1  ;;  %v3199_v19 = vpop.f32.mrb[154].mxu1  ;;  %4043 = vmatprep.mubr.bf16.mxu1 %v3465_v16  ;;  %v8445_v16 = vpop.f32.mrb[252].mxu0  ;;  %4682 = vmatpush1.bf16.msra.mxu0 %v6853_v49 }
 0x4b3   : > { %v3200_v17 = vadd.f32 %v3199_v19, %v8420_v0  ;;  %v3201_v43 = vpop.f32.mrb[155].mxu1  ;;  %4044 = vmatmul.mubr.bf16.vlgmr.msra.gmra.mrb[228].mxu1 %v3464_v26  ;;  %v3388_v5 = vmax.f32 %v3196_v46, 0.0  ;;  %v6858_v26 = vld [vmem:[#allocation2 + $0x5a4] ss:$8 sps:$4 sm:$0xff]   ;;  %v8447_v7 = vpop.f32.mrb[253].mxu0 }
 0x4b4   : > { %v3202_v21 = vadd.f32 %v3201_v43, %v8423_v1  ;;  %v3389_v27 = vmax.f32 %v3198_v18, 0.0  ;;  %v6856_v18 = vld [vmem:[#allocation2 + $0x5a0] ss:$8 sps:$4 sm:$0xff]   ;;  %4683 = vmatprep.subr.bf16.mxu0 %v6858_v26 }
 0x4b5   : > { %v3390_v51 = vmax.f32 %v3200_v17, 0.0  ;;  %v6861_v17 = vld [vmem:[#allocation2 + $0x5b4] ss:$8 sps:$4 sm:$0xff]  }
 0x4b6   : > { %v3391_v59 = vmax.f32 %v3202_v21, 0.0  ;;  %4684 = vmatpush1.bf16.msra.mxu0 %v6856_v18 }
 0x4b7   : > { %v3466_v24 = vpack.c.bf16 %v3390_v51, %v3388_v5  ;;  %4685 = vmatprep.subr.bf16.mxu0 %v6861_v17 }
 0x4b8   : > { %v3467_v57 = vpack.c.bf16 %v3391_v59, %v3389_v27  ;;  %v3205_v3 = vpop.f32.mrb[156].mxu1 }
 0x4b9   : > { %v3206_v6 = vadd.f32 %v3205_v3, %v8420_v0  ;;  %v3207_v48 = vpop.f32.mrb[157].mxu1 }
 0x4ba   : > { %v3208_v15 = vadd.f32 %v3207_v48, %v8423_v1  ;;  %v3209_v23 = vpop.f32.mrb[158].mxu1  ;;  %4053 = vmatprep.mubr.bf16.mxu1 %v3467_v57 }
 0x4bb   : > { %v3210_v12 = vadd.f32 %v3209_v23, %v8420_v0  ;;  %v3211_v39 = vpop.f32.mrb[159].mxu1  ;;  %4054 = vmatmul.mubr.bf16.gmra.mrb[232].mxu1 %v3466_v24  ;;  %v3392_v44 = vmax.f32 %v3206_v6, 0.0  ;;  %v6859_v24 = vld [vmem:[#allocation2 + $0x5b0] ss:$8 sps:$4 sm:$0xff]   ;;  %v6864_v6 = vld [vmem:[#allocation2 + $0x5c4] ss:$8 sps:$4 sm:$0xff]  }
 0x4bc   : > { %v3212_v34 = vadd.f32 %v3211_v39, %v8423_v1  ;;  %v3393_v63 = vmax.f32 %v3208_v15, 0.0  ;;  %4686 = vmatpush1.bf16.msra.mxu0 %v6859_v24 }
 0x4bd   : > { %v3394_v42 = vmax.f32 %v3210_v12, 0.0  ;;  %4687 = vmatprep.subr.bf16.mxu0 %v6864_v6 }
 0x4be   : > { %v3395_v54 = vmax.f32 %v3212_v34, 0.0  ;;  %v6867_v34 = vld [vmem:[#allocation2 + $0x5d4] ss:$8 sps:$4 sm:$0xff]  }
 0x4bf   : > { %v3468_v14 = vpack.c.bf16 %v3394_v42, %v3392_v44 }
 0x4c0   : > { %v3469_v35 = vpack.c.bf16 %v3395_v54, %v3393_v63  ;;  %v3215_v29 = vpop.f32.mrb[160].mxu1  ;;  %4688 = vmatpush1.bf16.msra.mxu0 %v6862_v31 }
 0x4c1   : > { %v3216_v52 = vadd.f32 %v3215_v29, %v8420_v0  ;;  %v3217_v56 = vpop.f32.mrb[161].mxu1  ;;  %v6865_v29 = vld [vmem:[#allocation2 + $0x5d0] ss:$8 sps:$4 sm:$0xff]   ;;  %4689 = vmatprep.subr.bf16.mxu0 %v6867_v34 }
 0x4c2   : > { %v3218_v58 = vadd.f32 %v3217_v56, %v8423_v1  ;;  %v3219_v40 = vpop.f32.mrb[162].mxu1  ;;  %4063 = vmatprep.mubr.bf16.mxu1 %v3469_v35 }
 0x4c3   : > { %v3220_v11 = vadd.f32 %v3219_v40, %v8420_v0  ;;  %v3221_v61 = vpop.f32.mrb[163].mxu1  ;;  %4064 = vmatmul.mubr.bf16.gmra.mrb[236].mxu1 %v3468_v14  ;;  %v3396_v8 = vmax.f32 %v3216_v52, 0.0 }
 0x4c4   : > { %v3222_v38 = vadd.f32 %v3221_v61, %v8423_v1  ;;  %v3397_v22 = vmax.f32 %v3218_v58, 0.0  ;;  %v6870_v58 = vld [vmem:[#allocation2 + $0x5e4] ss:$8 sps:$4 sm:$0xff]   ;;  %4690 = vmatpush1.bf16.msra.mxu0 %v6865_v29 }
 0x4c5   : > { %v3398_v33 = vmax.f32 %v3220_v11, 0.0  ;;  %4691 = vmatprep.subr.bf16.mxu0 %v6870_v58 }
 0x4c6   : > { %v3399_v50 = vmax.f32 %v3222_v38, 0.0 }
 0x4c7   : > { %v3470_v2 = vpack.c.bf16 %v3398_v33, %v3396_v8  ;;  %v6868_v33 = vld [vmem:[#allocation2 + $0x5e0] ss:$8 sps:$4 sm:$0xff]  }
 0x4c8   : > { %v3471_v28 = vpack.c.bf16 %v3399_v50, %v3397_v22  ;;  %v3225_v4 = vpop.f32.mrb[164].mxu1  ;;  %4692 = vmatpush1.bf16.msra.mxu0 %v6868_v33 }
 0x4c9   : > { %v3226_v32 = vadd.f32 %v3225_v4, %v8420_v0  ;;  %v3227_v41 = vpop.f32.mrb[165].mxu1 }
 0x4ca   : > { %v3228_v60 = vadd.f32 %v3227_v41, %v8423_v1  ;;  %v3229_v55 = vpop.f32.mrb[166].mxu1  ;;  %4073 = vmatprep.mubr.bf16.mxu1 %v3471_v28 }
 0x4cb   : > { %v3230_v62 = vadd.f32 %v3229_v55, %v8420_v0  ;;  %v3231_v9 = vpop.f32.mrb[167].mxu1  ;;  %4074 = vmatmul.mubr.bf16.gmra.mrb[240].mxu1 %v3470_v2  ;;  %v3400_v47 = vmax.f32 %v3226_v32, 0.0 }
 0x4cc   : > { %v3232_v25 = vadd.f32 %v3231_v9, %v8423_v1  ;;  %v3401_v46 = vmax.f32 %v3228_v60, 0.0 }
 0x4cd   : > { %v3402_v30 = vmax.f32 %v3230_v62, 0.0 }
 0x4ce   : > { %v3403_v10 = vmax.f32 %v3232_v25, 0.0 }
 0x4cf   : > { %v3472_v19 = vpack.c.bf16 %v3402_v30, %v3400_v47 }
 0x4d0   : > { %v3473_v43 = vpack.c.bf16 %v3403_v10, %v3401_v46  ;;  %v3235_v21 = vpop.f32.mrb[168].mxu1 }
 0x4d1   : > { %v3236_v5 = vadd.f32 %v3235_v21, %v8420_v0  ;;  %v3237_v51 = vpop.f32.mrb[169].mxu1 }
 0x4d2   : > { %v3238_v27 = vadd.f32 %v3237_v51, %v8423_v1  ;;  %v3239_v59 = vpop.f32.mrb[170].mxu1  ;;  %4083 = vmatprep.mubr.bf16.mxu1 %v3473_v43 }
 0x4d3   : > { %v3240_v57 = vadd.f32 %v3239_v59, %v8420_v0  ;;  %v3241_v3 = vpop.f32.mrb[171].mxu1  ;;  %4084 = vmatmul.mubr.bf16.gmra.mrb[244].mxu1 %v3472_v19  ;;  %v3404_v15 = vmax.f32 %v3236_v5, 0.0 }
 0x4d4   : > { %v3242_v48 = vadd.f32 %v3241_v3, %v8423_v1  ;;  %v3405_v12 = vmax.f32 %v3238_v27, 0.0 }
 0x4d5   : > { %v3406_v23 = vmax.f32 %v3240_v57, 0.0 }
 0x4d6   : > { %v3407_v39 = vmax.f32 %v3242_v48, 0.0 }
 0x4d7   : > { %v3474_v20 = vpack.c.bf16 %v3406_v23, %v3404_v15 }
 0x4d8   : > { %v3475_v44 = vpack.c.bf16 %v3407_v39, %v3405_v12  ;;  %v3245_v42 = vpop.f32.mrb[172].mxu1 }
 0x4d9   : > { %v3246_v63 = vadd.f32 %v3245_v42, %v8420_v0  ;;  %v3247_v54 = vpop.f32.mrb[173].mxu1 }
 0x4da   : > { %v3248_v14 = vadd.f32 %v3247_v54, %v8423_v1  ;;  %v3249_v35 = vpop.f32.mrb[174].mxu1  ;;  %4093 = vmatprep.mubr.bf16.mxu1 %v3475_v44 }
 0x4db   : > { %v3250_v52 = vadd.f32 %v3249_v35, %v8420_v0  ;;  %v3251_v56 = vpop.f32.mrb[175].mxu1  ;;  %4094 = vmatmul.mubr.bf16.gmra.mrb[248].mxu1 %v3474_v20  ;;  %v3408_v11 = vmax.f32 %v3246_v63, 0.0 }
 0x4dc   : > { %v3252_v40 = vadd.f32 %v3251_v56, %v8423_v1  ;;  %v3409_v38 = vmax.f32 %v3248_v14, 0.0 }
 0x4dd   : > { %v3410_v61 = vmax.f32 %v3250_v52, 0.0 }
 0x4de   : > { %v3411_v8 = vmax.f32 %v3252_v40, 0.0 }
 0x4df   : > { %v3476_v22 = vpack.c.bf16 %v3410_v61, %v3408_v11 }
 0x4e0   : > { %v3477_v50 = vpack.c.bf16 %v3411_v8, %v3409_v38  ;;  %v3255_v2 = vpop.f32.mrb[176].mxu1 }
 0x4e1   : > { %v3256_v13 = vadd.f32 %v3255_v2, %v8420_v0  ;;  %v3257_v53 = vpop.f32.mrb[177].mxu1 }
 0x4e2   : > { %v3258_v28 = vadd.f32 %v3257_v53, %v8423_v1  ;;  %v3259_v4 = vpop.f32.mrb[178].mxu1  ;;  %4103 = vmatprep.mubr.bf16.mxu1 %v3477_v50 }
 0x4e3   : > { %v3260_v32 = vadd.f32 %v3259_v4, %v8420_v0  ;;  %v3261_v41 = vpop.f32.mrb[179].mxu1  ;;  %4104 = vmatmul.mubr.bf16.gmra.mrb[252].mxu1 %v3476_v22  ;;  %v3412_v55 = vmax.f32 %v3256_v13, 0.0 }
 0x4e4   : > { %v3262_v60 = vadd.f32 %v3261_v41, %v8423_v1  ;;  %v3413_v9 = vmax.f32 %v3258_v28, 0.0 }
 0x4e5   : > { %v3414_v62 = vmax.f32 %v3260_v32, 0.0 }
 0x4e6   : > { %v3415_v49 = vmax.f32 %v3262_v60, 0.0 }
 0x4e7   : > { %v3478_v45 = vpack.c.bf16 %v3414_v62, %v3412_v55 }
 0x4e8   : > { %v3479_v25 = vpack.c.bf16 %v3415_v49, %v3413_v9  ;;  %v3265_v26 = vpop.f32.mrb[180].mxu1  ;;  %v8477_v49 = vpop.f32.mrb[254].mxu0 }
 0x4e9   : > { %v3266_v47 = vadd.f32 %v3265_v26, %v8420_v0  ;;  %v3267_v30 = vpop.f32.mrb[181].mxu1  ;;  %v8479_v26 = vpop.f32.mrb[255].mxu0 }
 0x4ea   : > { %v3268_v46 = vadd.f32 %v3267_v30, %v8423_v1  ;;  %v3269_v10 = vpop.f32.mrb[182].mxu1  ;;  %4113 = vmatprep.mubr.bf16.mxu1 %v3479_v25 }
 0x4eb   : > { %v3270_v18 = vadd.f32 %v3269_v10, %v8420_v0  ;;  %v3271_v19 = vpop.f32.mrb[183].mxu1  ;;  %4114 = vmatmul.mubr.bf16.gmra.mrb[0].mxu1 %v3478_v45  ;;  %v3416_v43 = vmax.f32 %v3266_v47, 0.0 }
 0x4ec   : > { %v3272_v17 = vadd.f32 %v3271_v19, %v8423_v1  ;;  %v3417_v5 = vmax.f32 %v3268_v46, 0.0 }
 0x4ed   : > { %v3418_v21 = vmax.f32 %v3270_v18, 0.0 }
 0x4ee   : > { %v3419_v51 = vmax.f32 %v3272_v17, 0.0  ;;  %v8484_v17 = vpop.f32.mrb[0].mxu0 }
 0x4ef   : > { %v3480_v27 = vpack.c.bf16 %v3418_v21, %v3416_v43  ;;  %v8487_v21 = vpop.f32.mrb[1].mxu0 }
 0x4f0   : > { %v3481_v59 = vpack.c.bf16 %v3419_v51, %v3417_v5  ;;  %v3275_v24 = vpop.f32.mrb[184].mxu1 }
 0x4f1   : > { %v3276_v57 = vadd.f32 %v3275_v24, %v8420_v0  ;;  %v3277_v3 = vpop.f32.mrb[185].mxu1 }
 0x4f2   : > { %v3278_v6 = vadd.f32 %v3277_v3, %v8423_v1  ;;  %v3279_v48 = vpop.f32.mrb[186].mxu1  ;;  %4123 = vmatprep.mubr.bf16.mxu1 %v3481_v59 }
 0x4f3   : > { %v3280_v15 = vadd.f32 %v3279_v48, %v8420_v0  ;;  %v3281_v23 = vpop.f32.mrb[187].mxu1  ;;  %4124 = vmatmul.mubr.bf16.gmra.mrb[4].mxu1 %v3480_v27  ;;  %v3420_v39 = vmax.f32 %v3276_v57, 0.0  ;;  %v6873_v27 = vld [vmem:[#allocation2 + $0x5f4] ss:$8 sps:$4 sm:$0xff]   ;;  %v6871_v57 = vld [vmem:[#allocation2 + $0x5f0] ss:$8 sps:$4 sm:$0xff]  }
 0x4f4   : > { %v3282_v12 = vadd.f32 %v3281_v23, %v8423_v1  ;;  %v3421_v20 = vmax.f32 %v3278_v6, 0.0  ;;  %4693 = vmatprep.subr.bf16.mxu0 %v6873_v27  ;;  %v8489_v6 = vpop.f32.mrb[2].mxu0 }
 0x4f5   : > { %v3422_v31 = vmax.f32 %v3280_v15, 0.0  ;;  %4694 = vmatpush1.bf16.msra.mxu0 %v6871_v57  ;;  %v8491_v23 = vpop.f32.mrb[3].mxu0 }
 0x4f6   : > { %v3423_v34 = vmax.f32 %v3282_v12, 0.0 }
 0x4f7   : > { %v3482_v44 = vpack.c.bf16 %v3422_v31, %v3420_v39 }
 0x4f8   : > { %v3483_v42 = vpack.c.bf16 %v3423_v34, %v3421_v20  ;;  %v3285_v63 = vpop.f32.mrb[188].mxu1 }
 0x4f9   : > { %v3286_v54 = vadd.f32 %v3285_v63, %v8420_v0  ;;  %v3287_v14 = vpop.f32.mrb[189].mxu1 }
 0x4fa   : > { %v3288_v35 = vadd.f32 %v3287_v14, %v8423_v1  ;;  %v3289_v29 = vpop.f32.mrb[190].mxu1  ;;  %4133 = vmatprep.mubr.bf16.mxu1 %v3483_v42  ;;  %v8496_v42 = vpop.f32.mrb[4].mxu0 }
 0x4fb   : > { %v3290_v52 = vadd.f32 %v3289_v29, %v8420_v0  ;;  %v3291_v56 = vpop.f32.mrb[191].mxu1  ;;  %4134 = vmatmul.mubr.bf16.gmra.mrb[8].mxu1 %v3482_v44  ;;  %v3424_v40 = vmax.f32 %v3286_v54, 0.0  ;;  %v8499_v54 = vpop.f32.mrb[5].mxu0 }
 0x4fc   : > { %v3292_v58 = vadd.f32 %v3291_v56, %v8423_v1  ;;  %v3425_v61 = vmax.f32 %v3288_v35, 0.0 }
 0x4fd   : > { %v3426_v11 = vmax.f32 %v3290_v52, 0.0 }
 0x4fe   : > { %v3427_v38 = vmax.f32 %v3292_v58, 0.0  ;;  %v8501_v58 = vpop.f32.mrb[6].mxu0 }
 0x4ff   : > { %v3484_v8 = vpack.c.bf16 %v3426_v11, %v3424_v40 }
 0x500   : > { %v3485_v33 = vpack.c.bf16 %v3427_v38, %v3425_v61  ;;  %v3295_v22 = vpop.f32.mrb[192].mxu1  ;;  %v8503_v61 = vpop.f32.mrb[7].mxu0 }
 0x501   : > { %v3296_v50 = vadd.f32 %v3295_v22, %v8420_v0  ;;  %v3297_v2 = vpop.f32.mrb[193].mxu1 }
 0x502   : > { %v3298_v13 = vadd.f32 %v3297_v2, %v8423_v1  ;;  %v3299_v53 = vpop.f32.mrb[194].mxu1  ;;  %4143 = vmatprep.mubr.bf16.mxu1 %v3485_v33 }
 0x503   : > { %v3300_v28 = vadd.f32 %v3299_v53, %v8420_v0  ;;  %v3301_v4 = vpop.f32.mrb[195].mxu1  ;;  %4144 = vmatmul.mubr.bf16.gmra.mrb[12].mxu1 %v3484_v8  ;;  %v3428_v41 = vmax.f32 %v3296_v50, 0.0 }
 0x504   : > { %v3302_v32 = vadd.f32 %v3301_v4, %v8423_v1  ;;  %v3429_v55 = vmax.f32 %v3298_v13, 0.0  ;;  %v8508_v13 = vpop.f32.mrb[8].mxu0 }
 0x505   : > { %v3430_v60 = vmax.f32 %v3300_v28, 0.0  ;;  %v8511_v28 = vpop.f32.mrb[9].mxu0 }
 0x506   : > { %v3431_v62 = vmax.f32 %v3302_v32, 0.0 }
 0x507   : > { %v3486_v9 = vpack.c.bf16 %v3430_v60, %v3428_v41 }
 0x508   : > { %v3487_v45 = vpack.c.bf16 %v3431_v62, %v3429_v55  ;;  %v3305_v25 = vpop.f32.mrb[196].mxu1  ;;  %v8513_v62 = vpop.f32.mrb[10].mxu0 }
 0x509   : > { %v3306_v47 = vadd.f32 %v3305_v25, %v8420_v0  ;;  %v3307_v30 = vpop.f32.mrb[197].mxu1  ;;  %v8515_v25 = vpop.f32.mrb[11].mxu0 }
 0x50a   : > { %v3308_v46 = vadd.f32 %v3307_v30, %v8423_v1  ;;  %v3309_v10 = vpop.f32.mrb[198].mxu1  ;;  %4153 = vmatprep.mubr.bf16.mxu1 %v3487_v45 }
 0x50b   : > { %v3310_v18 = vadd.f32 %v3309_v10, %v8420_v0  ;;  %v3311_v19 = vpop.f32.mrb[199].mxu1  ;;  %4154 = vmatmul.mubr.bf16.gmra.mrb[16].mxu1 %v3486_v9  ;;  %v3432_v5 = vmax.f32 %v3306_v47, 0.0 }
 0x50c   : > { %v3312_v43 = vadd.f32 %v3311_v19, %v8423_v1  ;;  %v3433_v59 = vmax.f32 %v3308_v46, 0.0 }
 0x50d   : > { %v3434_v51 = vmax.f32 %v3310_v18, 0.0 }
 0x50e   : > { %v3435_v24 = vmax.f32 %v3312_v43, 0.0  ;;  %v8520_v43 = vpop.f32.mrb[12].mxu0 }
 0x50f   : > { %v3488_v3 = vpack.c.bf16 %v3434_v51, %v3432_v5  ;;  %v8523_v51 = vpop.f32.mrb[13].mxu0 }
 0x510   : > { %v3489_v48 = vpack.c.bf16 %v3435_v24, %v3433_v59  ;;  %v3315_v15 = vpop.f32.mrb[200].mxu1 }
 0x511   : > { %v3316_v12 = vadd.f32 %v3315_v15, %v8420_v0  ;;  %v3317_v39 = vpop.f32.mrb[201].mxu1 }
 0x512   : > { %v3318_v31 = vadd.f32 %v3317_v39, %v8423_v1  ;;  %v3319_v20 = vpop.f32.mrb[202].mxu1  ;;  %4163 = vmatprep.mubr.bf16.mxu1 %v3489_v48  ;;  %v8525_v48 = vpop.f32.mrb[14].mxu0 }
 0x513   : > { %v3320_v34 = vadd.f32 %v3319_v20, %v8420_v0  ;;  %v3321_v44 = vpop.f32.mrb[203].mxu1  ;;  %4164 = vmatmul.mubr.bf16.gmra.mrb[20].mxu1 %v3488_v3  ;;  %v3436_v14 = vmax.f32 %v3316_v12, 0.0  ;;  %v8527_v39 = vpop.f32.mrb[15].mxu0 }
 0x514   : > { %v3322_v63 = vadd.f32 %v3321_v44, %v8423_v1  ;;  %v3437_v29 = vmax.f32 %v3318_v31, 0.0 }
 0x515   : > { %v3438_v35 = vmax.f32 %v3320_v34, 0.0 }
 0x516   : > { %v3439_v52 = vmax.f32 %v3322_v63, 0.0 }
 0x517   : > { %v3490_v56 = vpack.c.bf16 %v3438_v35, %v3436_v14  ;;  %v8532_v35 = vpop.f32.mrb[16].mxu0 }
 0x518   : > { %v3491_v40 = vpack.c.bf16 %v3439_v52, %v3437_v29  ;;  %v3325_v11 = vpop.f32.mrb[204].mxu1  ;;  %v8535_v52 = vpop.f32.mrb[17].mxu0 }
 0x519   : > { %v3326_v38 = vadd.f32 %v3325_v11, %v8420_v0  ;;  %v3327_v8 = vpop.f32.mrb[205].mxu1 }
 0x51a   : > { %v3328_v33 = vadd.f32 %v3327_v8, %v8423_v1  ;;  %v3329_v22 = vpop.f32.mrb[206].mxu1  ;;  %4173 = vmatprep.mubr.bf16.mxu1 %v3491_v40 }
 0x51b   : > { %v3330_v50 = vadd.f32 %v3329_v22, %v8420_v0  ;;  %v3331_v2 = vpop.f32.mrb[207].mxu1  ;;  %4174 = vmatmul.mubr.bf16.gmra.mrb[24].mxu1 %v3490_v56  ;;  %v3440_v4 = vmax.f32 %v3326_v38, 0.0 }
 0x51c   : > { %v3332_v53 = vadd.f32 %v3331_v2, %v8423_v1  ;;  %v3441_v41 = vmax.f32 %v3328_v33, 0.0  ;;  %v8537_v33 = vpop.f32.mrb[18].mxu0 }
 0x51d   : > { %v3442_v32 = vmax.f32 %v3330_v50, 0.0  ;;  %v8539_v2 = vpop.f32.mrb[19].mxu0 }
 0x51e   : > { %v3443_v60 = vmax.f32 %v3332_v53, 0.0 }
 0x51f   : > { %v3492_v55 = vpack.c.bf16 %v3442_v32, %v3440_v4 }
 0x520   : > { %v3493_v9 = vpack.c.bf16 %v3443_v60, %v3441_v41  ;;  %v3335_v45 = vpop.f32.mrb[208].mxu1 }
 0x521   : > { %v3336_v47 = vadd.f32 %v3335_v45, %v8420_v0  ;;  %v3337_v30 = vpop.f32.mrb[209].mxu1 }
 0x522   : > { %v3338_v46 = vadd.f32 %v3337_v30, %v8423_v1  ;;  %v3339_v10 = vpop.f32.mrb[210].mxu1  ;;  %4183 = vmatprep.mubr.bf16.mxu1 %v3493_v9  ;;  %v8544_v9 = vpop.f32.mrb[20].mxu0 }
 0x523   : > { %v3340_v18 = vadd.f32 %v3339_v10, %v8420_v0  ;;  %v3341_v19 = vpop.f32.mrb[211].mxu1  ;;  %4184 = vmatmul.mubr.bf16.gmra.mrb[28].mxu1 %v3492_v55  ;;  %v3444_v27 = vmax.f32 %v3336_v47, 0.0  ;;  %v8547_v47 = vpop.f32.mrb[21].mxu0 }
 0x524   : > { %v3342_v5 = vadd.f32 %v3341_v19, %v8423_v1  ;;  %v3445_v24 = vmax.f32 %v3338_v46, 0.0 }
 0x525   : > { %v3446_v59 = vmax.f32 %v3340_v18, 0.0 }
 0x526   : > { %v3447_v57 = vmax.f32 %v3342_v5, 0.0  ;;  %v8549_v5 = vpop.f32.mrb[22].mxu0 }
 0x527   : > { %v3494_v3 = vpack.c.bf16 %v3446_v59, %v3444_v27 }
 0x528   : > { %v3495_v15 = vpack.c.bf16 %v3447_v57, %v3445_v24  ;;  %v3345_v12 = vpop.f32.mrb[212].mxu1  ;;  %v8551_v24 = vpop.f32.mrb[23].mxu0 }
 0x529   : > { %v3346_v31 = vadd.f32 %v3345_v12, %v8420_v0  ;;  %v3347_v20 = vpop.f32.mrb[213].mxu1 }
 0x52a   : > { %v3348_v34 = vadd.f32 %v3347_v20, %v8423_v1  ;;  %v3349_v44 = vpop.f32.mrb[214].mxu1  ;;  %4193 = vmatprep.mubr.bf16.mxu1 %v3495_v15 }
 0x52b   : > { %v3350_v63 = vadd.f32 %v3349_v44, %v8420_v0  ;;  %v3351_v14 = vpop.f32.mrb[215].mxu1  ;;  %4194 = vmatmul.mubr.bf16.gmra.mrb[32].mxu1 %v3494_v3  ;;  %v3448_v56 = vmax.f32 %v3346_v31, 0.0 }
 0x52c   : > { %v3352_v29 = vadd.f32 %v3351_v14, %v8423_v1  ;;  %v3449_v11 = vmax.f32 %v3348_v34, 0.0  ;;  %v8556_v34 = vpop.f32.mrb[24].mxu0 }
 0x52d   : > { %v3450_v40 = vmax.f32 %v3350_v63, 0.0  ;;  %v8559_v63 = vpop.f32.mrb[25].mxu0 }
 0x52e   : > { %v3451_v38 = vmax.f32 %v3352_v29, 0.0 }
 0x52f   : > { %v3496_v8 = vpack.c.bf16 %v3450_v40, %v3448_v56 }
 0x530   : > { %v3497_v22 = vpack.c.bf16 %v3451_v38, %v3449_v11  ;;  %v3355_v50 = vpop.f32.mrb[216].mxu1  ;;  %v8561_v38 = vpop.f32.mrb[26].mxu0 }
 0x531   : > { %v3356_v53 = vadd.f32 %v3355_v50, %v8420_v0  ;;  %v3357_v4 = vpop.f32.mrb[217].mxu1  ;;  %v8563_v50 = vpop.f32.mrb[27].mxu0 }
 0x532   : > { %v3358_v32 = vadd.f32 %v3357_v4, %v8423_v1  ;;  %v3359_v41 = vpop.f32.mrb[218].mxu1  ;;  %4203 = vmatprep.mubr.bf16.mxu1 %v3497_v22 }
 0x533   : > { %v3360_v60 = vadd.f32 %v3359_v41, %v8420_v0  ;;  %v3361_v55 = vpop.f32.mrb[219].mxu1  ;;  %4204 = vmatmul.mubr.bf16.gmra.mrb[36].mxu1 %v3496_v8  ;;  %v3452_v30 = vmax.f32 %v3356_v53, 0.0 }
 0x534   : > { %v3362_v45 = vadd.f32 %v3361_v55, %v8423_v1  ;;  %v3453_v10 = vmax.f32 %v3358_v32, 0.0 }
 0x535   : > { %v3454_v46 = vmax.f32 %v3360_v60, 0.0 }
 0x536   : > { %v3455_v18 = vmax.f32 %v3362_v45, 0.0  ;;  %v8568_v45 = vpop.f32.mrb[28].mxu0 }
 0x537   : > { %v3498_v19 = vpack.c.bf16 %v3454_v46, %v3452_v30  ;;  %v8571_v46 = vpop.f32.mrb[29].mxu0 }
 0x538   : > { %v3499_v27 = vpack.c.bf16 %v3455_v18, %v3453_v10  ;;  %v3365_v59 = vpop.f32.mrb[220].mxu1 }
 0x539   : > { %v3366_v57 = vadd.f32 %v3365_v59, %v8420_v0  ;;  %v3367_v3 = vpop.f32.mrb[221].mxu1 }
 0x53a   : > { %v3368_v15 = vadd.f32 %v3367_v3, %v8423_v1  ;;  %v3369_v12 = vpop.f32.mrb[222].mxu1  ;;  %4213 = vmatprep.mubr.bf16.mxu1 %v3499_v27 }
 0x53b   : > { %v3370_v31 = vadd.f32 %v3369_v12, %v8420_v0  ;;  %v3371_v20 = vpop.f32.mrb[223].mxu1  ;;  %4214 = vmatmul.mubr.bf16.gmra.mrb[40].mxu1 %v3498_v19  ;;  %v3456_v14 = vmax.f32 %v3366_v57, 0.0  ;;  %v8573_v57 = vpop.f32.mrb[30].mxu0 }
 0x53c   : > { %v3372_v44 = vadd.f32 %v3371_v20, %v8423_v1  ;;  %v3457_v56 = vmax.f32 %v3368_v15, 0.0  ;;  %v8575_v15 = vpop.f32.mrb[31].mxu0 }
 0x53d   : > { %v3458_v29 = vmax.f32 %v3370_v31, 0.0 }
 0x53e   : > { %v3459_v40 = vmax.f32 %v3372_v44, 0.0 }
 0x53f   : > { %v3500_v11 = vpack.c.bf16 %v3458_v29, %v3456_v14  ;;  %v6874_v14 = vld [vmem:[%s9113_s4] sm:$0xff]  }
 0x540   : > { %v3501_v8 = vpack.c.bf16 %v3459_v40, %v3457_v56  ;;  %v3375_v22 = vpop.f32.mrb[224].mxu1  ;;  %v9119_v56 = vmov 0  }
 0x541   : > { %v3376_v53 = vadd.f32 %v3375_v22, %v8420_v0  ;;  %v3377_v4 = vpop.f32.mrb[225].mxu1  ;;  %5151 = vmatprep.subr.bf16.mxu1 %v9119_v56  ;;  %v6875_v22 = vld [vmem:[%s9113_s4 + $0x8] sm:$0xff]  }
 0x542   : > { %v3378_v32 = vadd.f32 %v3377_v4, %v8423_v1  ;;  %v3379_v41 = vpop.f32.mrb[226].mxu1  ;;  %4223 = vmatprep.mubr.bf16.mxu1 %v3501_v8  ;;  %5152 = vmatpush1.bf16.msra.mxu1 %v6874_v14 }
 0x543   : > { %v3380_v60 = vadd.f32 %v3379_v41, %v8420_v0  ;;  %v3381_v55 = vpop.f32.mrb[227].mxu1  ;;  %4224 = vmatmul.mubr.bf16.gmra.mrb[44].mxu1 %v3500_v11  ;;  %v3460_v10 = vmax.f32 %v3376_v53, 0.0  ;;  %v8577_v0 = vpop.f32.mrb[32].mxu0  ;;  %5153 = vmatprep.subr.bf16.mxu1 %v9119_v56 }
 0x544   : > { %v3382_v30 = vadd.f32 %v3381_v55, %v8423_v1  ;;  %v3461_v19 = vmax.f32 %v3378_v32, 0.0  ;;  %v8579_v12 = vpop.f32.mrb[33].mxu0 }
 0x545   : > { %v3462_v18 = vmax.f32 %v3380_v60, 0.0  ;;  %v8581_v31 = vpop.f32.mrb[34].mxu0  ;;  %v6876_v60 = vld [vmem:[%s9113_s4 + $0x10] sm:$0xff]  }
 0x546   : > { %v3463_v27 = vmax.f32 %v3382_v30, 0.0  ;;  %v8583_v1 = vpop.f32.mrb[35].mxu0  ;;  %5154 = vmatpush1.bf16.msra.mxu1 %v6875_v22 }
 0x547   : > { %v3502_v59 = vpack.c.bf16 %v3462_v18, %v3460_v10  ;;  %v8585_v20 = vpop.f32.mrb[36].mxu0  ;;  %5155 = vmatprep.subr.bf16.mxu1 %v9119_v56 }
 0x548   : > { %v3503_v3 = vpack.c.bf16 %v3463_v27, %v3461_v19  ;;  %v8587_v44 = vpop.f32.mrb[37].mxu0 }
 0x549   : > { %v8592_v29 = vpop.f32.mrb[38].mxu0 }
 0x54a   : > { %4233 = vmatprep.mubr.bf16.mxu1 %v3503_v3  ;;  %v8595_v40 = vpop.f32.mrb[39].mxu0  ;;  %5156 = vmatpush1.bf16.msra.mxu1 %v6876_v60  ;;  %v6877_v3 = vld [vmem:[%s9113_s4 + $0x18] sm:$0xff]  }
 0x54b   : > { %4234 = vmatmul.mubr.bf16.gmra.mrb[48].mxu1 %v3502_v59  ;;  %v8598_v11 = vpop.f32.mrb[40].mxu0  ;;  %5157 = vmatprep.subr.bf16.mxu1 %v9119_v56 }
 0x54c   : > { %v8600_v8 = vpop.f32.mrb[41].mxu0 }
 0x54d   : > { %v8605_v53 = vpop.f32.mrb[42].mxu0 }
 0x54e   : > { %v8607_v4 = vpop.f32.mrb[43].mxu0  ;;  %5158 = vmatpush1.bf16.msra.mxu1 %v6877_v3  ;;  %v6179_v3 = vld [vmem:[%s9112_s3 + $0xa] sm:$0x3] }
 0x54f   : > { %9132 = vst [vmem:[#allocation10_spill] sm:$0xff] %v8607_v4  ;;  %v8610_v32 = vpop.f32.mrb[44].mxu0  ;;  %5159 = vmatprep.subr.bf16.mxu1 %v9119_v56 }
 0x550   : > { %9133 = vst [vmem:[#allocation11_spill] sm:$0xff] %v8610_v32  ;;  %v8612_v41 = vpop.f32.mrb[45].mxu0 }
 0x551   : > { %9134 = vst [vmem:[#allocation12_spill] sm:$0xff] %v8612_v41  ;;  %v8617_v55 = vpop.f32.mrb[46].mxu0 }
 0x552   : > { %9135 = vst [vmem:[#allocation13_spill] sm:$0xff] %v8617_v55  ;;  %v8619_v30 = vpop.f32.mrb[47].mxu0 }
 0x553   : > { %9136 = vst [vmem:[#allocation14_spill] sm:$0xff] %v8619_v30  ;;  %v8622_v10 = vpop.f32.mrb[48].mxu0 }
 0x554   : > { %9137 = vst [vmem:[#allocation15_spill] sm:$0xff] %v8622_v10  ;;  %v8624_v18 = vpop.f32.mrb[49].mxu0 }
 0x555   : > { %9138 = vst [vmem:[#allocation16_spill] sm:$0xff] %v8624_v18  ;;  %v8626_v19 = vpop.f32.mrb[50].mxu0 }
 0x556   : > { %9139 = vst [vmem:[#allocation17_spill] sm:$0xff] %v8626_v19  ;;  %v8628_v27 = vpop.f32.mrb[51].mxu0 }
 0x557   : > { %9140 = vst [vmem:[#allocation18_spill] sm:$0xff] %v8628_v27  ;;  %v8630_v59 = vpop.f32.mrb[52].mxu0 }
 0x558   : > { %9141 = vst [vmem:[#allocation19_spill] sm:$0xff] %v8630_v59  ;;  %v8635_v14 = vpop.f32.mrb[53].mxu0  ;;  %v6878_v59 = vld [vmem:[%s9113_s4 + $0x20] sm:$0xff]  }
 0x559   : > { %9142 = vst [vmem:[#allocation20_spill] sm:$0xff] %v8635_v14  ;;  %v8637_v22 = vpop.f32.mrb[54].mxu0  ;;  %5160 = vmatpush1.bf16.msra.mxu1 %v6878_v59  ;;  %v8665_v14 = vrot.slane %v6179_v3, %v7504_v37  ;;  %v9153_v37 = vmov 0  }
 0x55a   : > { %9143 = vst [vmem:[#allocation21_spill] sm:$0xff] %v8637_v22  ;;  %v8640_v60 = vpop.f32.mrb[55].mxu0  ;;  %5161 = vmatprep.subr.bf16.mxu1 %v9119_v56 }
 0x55b   : > { %9144 = vst [vmem:[#allocation22_spill] sm:$0xff] %v8640_v60  ;;  %v8642_v18 = vpop.f32.mrb[56].mxu0 }
 0x55c   : > { %9145 = vst [vmem:[#allocation23_spill] sm:$0xff] %v8642_v18  ;;  %v8644_v19 = vpop.f32.mrb[57].mxu0 }
 0x55d   : > { %9146 = vst [vmem:[#allocation24_spill] sm:$0xff] %v8644_v19  ;;  %v8649_v27 = vpop.f32.mrb[58].mxu0  ;;  %v8662_v19 = vrot.slane %v6179_v3, %v7502_v36 }
 0x55e   : > { %9147 = vst [vmem:[#allocation25_spill] sm:$0xff] %v8649_v27  ;;  %v8651_v10 = vpop.f32.mrb[59].mxu0  ;;  %v6879_v27 = vld [vmem:[%s9113_s4 + $0x28] sm:$0xff]  }
 0x55f   : > { %9148 = vst [vmem:[#allocation26_spill] sm:$0xff] %v8651_v10  ;;  %v8657_v60 = vpop.f32.mrb[60].mxu0  ;;  %5162 = vmatpush1.bf16.msra.mxu1 %v6879_v27 }
 0x560   : > { %9149 = vst [vmem:[#allocation27_spill] sm:$0xff] %v8657_v60  ;;  %v8659_v18 = vpop.f32.mrb[61].mxu0  ;;  %5163 = vmatprep.subr.bf16.mxu1 %v9153_v37 }
 0x561   : > { %9150 = vst [vmem:[#allocation28_spill] sm:$0xff] %v8659_v18  ;;  %v8671_v30 = vpop.f32.mrb[62].mxu0 }
 0x562   : > { %9151 = vst [vmem:[#allocation29_spill] sm:$0xff] %v8671_v30  ;;  %v8674_v18 = vpop.f32.mrb[63].mxu0 }
 0x563   : > { %9152 = vst [vmem:[#allocation30_spill] sm:$0xff] %v8674_v18  ;;  %v8682_v30 = vpop.f32.mrb[64].mxu0 }
 0x564   : > { %9154 = vst [vmem:[#allocation31_spill] sm:$0xff] %v8682_v30 }
 0x586   : > { %v4045_v22 = vpop.f32.mrb[228].mxu1 }
 0x587   : > { %v4046_v10 = vadd.f32 %v4045_v22, %v8445_v16  ;;  %v4047_v59 = vpop.f32.mrb[229].mxu1 }
 0x588   : > { %v4048_v56 = vadd.f32 %v4047_v59, %v8447_v7  ;;  %v4049_v60 = vpop.f32.mrb[230].mxu1  ;;  %v8685_v59 = vpop.f32.mrb[65].mxu0 }
 0x589   : > { %v4257_v36 = vadd.f32 %v8662_v19, %v4046_v10  ;;  %v4050_v55 = vadd.f32 %v4049_v60, %v8477_v49  ;;  %v4051_v3 = vpop.f32.mrb[231].mxu1  ;;  %9155 = vst [vmem:[#allocation32_spill] sm:$0xff] %v8685_v59 }
 0x58a   : > { %v4258_v16 = vadd.f32 %v8665_v14, %v4048_v56  ;;  %v4052_v22 = vadd.f32 %v4051_v3, %v8479_v26  ;;  %v6880_v26 = vld [vmem:[%s9113_s4 + $0x30] sm:$0xff]  }
 0x58b   : > { %v4259_v41 = vadd.f32 %v8662_v19, %v4050_v55  ;;  %v4337_v18 = vmax.f32 %v4257_v36, 0.0  ;;  %v8691_v55 = vpop.f32.mrb[66].mxu0  ;;  %5164 = vmatpush1.bf16.msra.mxu1 %v6880_v26 }
 0x58c   : > { %v4260_v7 = vadd.f32 %v8665_v14, %v4052_v22  ;;  %v4338_v32 = vmax.f32 %v4258_v16, 0.0  ;;  %v8694_v59 = vpop.f32.mrb[67].mxu0  ;;  %5165 = vmatprep.subr.bf16.mxu1 %v9153_v37 }
 0x58d   : > { %v4339_v10 = vmax.f32 %v4259_v41, 0.0 }
 0x58e   : > { %v4340_v49 = vmax.f32 %v4260_v7, 0.0  ;;  %v4055_v60 = vpop.f32.mrb[232].mxu1 }
 0x58f   : > { %v4417_v27 = vpack.c.bf16 %v4339_v10, %v4337_v18  ;;  %v4056_v56 = vadd.f32 %v4055_v60, %v8484_v17  ;;  %v4057_v4 = vpop.f32.mrb[233].mxu1 }
 0x590   : > { %v4058_v3 = vadd.f32 %v4057_v4, %v8487_v21  ;;  %v4059_v22 = vpop.f32.mrb[234].mxu1  ;;  %v4418_v30 = vpack.c.bf16 %v4340_v49, %v4338_v32  ;;  %v8702_v21 = vpop.f32.mrb[68].mxu0 }
 0x591   : > { %v4261_v36 = vadd.f32 %v8662_v19, %v4056_v56  ;;  %v4060_v41 = vadd.f32 %v4059_v22, %v8489_v6  ;;  %v4061_v18 = vpop.f32.mrb[235].mxu1  ;;  %v8705_v32 = vpop.f32.mrb[69].mxu0 }
 0x592   : > { %v4262_v17 = vadd.f32 %v8665_v14, %v4058_v3  ;;  %v4062_v16 = vadd.f32 %v4061_v18, %v8491_v23  ;;  %4695 = vmatprep.mubr.bf16.mxu0 %v4418_v30  ;;  %v8708_v3 = vpop.f32.mrb[70].mxu0 }
 0x593   : > { %v4263_v7 = vadd.f32 %v8662_v19, %v4060_v41  ;;  %4696 = vmatmul.mubr.bf16.vlgmr.msra.gmra.mrb[76].mxu0 %v4417_v27  ;;  %v4341_v10 = vmax.f32 %v4261_v36, 0.0  ;;  %v8711_v18 = vpop.f32.mrb[71].mxu0 }
 0x594   : > { %v4264_v4 = vadd.f32 %v8665_v14, %v4062_v16  ;;  %v4342_v49 = vmax.f32 %v4262_v17, 0.0 }
 0x595   : > { %v4343_v6 = vmax.f32 %v4263_v7, 0.0 }
 0x596   : > { %v4344_v60 = vmax.f32 %v4264_v4, 0.0  ;;  %v4065_v56 = vpop.f32.mrb[236].mxu1 }
 0x597   : > { %v4419_v26 = vpack.c.bf16 %v4343_v6, %v4341_v10  ;;  %v4066_v23 = vadd.f32 %v4065_v56, %v8496_v42  ;;  %v4067_v30 = vpop.f32.mrb[237].mxu1  ;;  %v8718_v10 = vpop.f32.mrb[72].mxu0  ;;  %v6881_v6 = vld [vmem:[%s9113_s4 + $0x38] sm:$0xff]  }
 0x598   : > { %v4068_v22 = vadd.f32 %v4067_v30, %v8499_v54  ;;  %v4069_v27 = vpop.f32.mrb[238].mxu1  ;;  %v4420_v41 = vpack.c.bf16 %v4344_v60, %v4342_v49  ;;  %v8724_v49 = vpop.f32.mrb[73].mxu0  ;;  %5166 = vmatpush1.bf16.msra.mxu1 %v6881_v6 }
 0x599   : > { %v4265_v16 = vadd.f32 %v8662_v19, %v4066_v23  ;;  %v4070_v36 = vadd.f32 %v4069_v27, %v8501_v58  ;;  %v4071_v7 = vpop.f32.mrb[239].mxu1  ;;  %v8727_v27 = vpop.f32.mrb[74].mxu0  ;;  %5167 = vmatprep.subr.bf16.mxu1 %v9153_v37 }
 0x59a   : > { %v4266_v17 = vadd.f32 %v8665_v14, %v4068_v22  ;;  %v4072_v4 = vadd.f32 %v4071_v7, %v8503_v61  ;;  %4705 = vmatprep.mubr.bf16.mxu0 %v4420_v41 }
 0x59b   : > { %v4267_v42 = vadd.f32 %v8662_v19, %v4070_v36  ;;  %4706 = vmatmul.mubr.bf16.gmra.mrb[80].mxu0 %v4419_v26  ;;  %v4345_v58 = vmax.f32 %v4265_v16, 0.0 }
 0x59c   : > { %v4268_v54 = vadd.f32 %v8665_v14, %v4072_v4  ;;  %v4346_v56 = vmax.f32 %v4266_v17, 0.0  ;;  %v8731_v4 = vpop.f32.mrb[75].mxu0 }
 0x59d   : > { %v4347_v60 = vmax.f32 %v4267_v42, 0.0 }
 0x59e   : > { %v4348_v23 = vmax.f32 %v4268_v54, 0.0  ;;  %v4075_v30 = vpop.f32.mrb[240].mxu1 }
 0x59f   : > { %v4421_v61 = vpack.c.bf16 %v4347_v60, %v4345_v58  ;;  %v4076_v22 = vadd.f32 %v4075_v30, %v8508_v13  ;;  %v4077_v26 = vpop.f32.mrb[241].mxu1 }
 0x5a0   : > { %v4078_v41 = vadd.f32 %v4077_v26, %v8511_v28  ;;  %v4079_v36 = vpop.f32.mrb[242].mxu1  ;;  %v4422_v7 = vpack.c.bf16 %v4348_v23, %v4346_v56 }
 0x5a1   : > { %v4269_v16 = vadd.f32 %v8662_v19, %v4076_v22  ;;  %v4080_v17 = vadd.f32 %v4079_v36, %v8513_v62  ;;  %v4081_v42 = vpop.f32.mrb[243].mxu1 }
 0x5a2   : > { %v4270_v54 = vadd.f32 %v8665_v14, %v4078_v41  ;;  %v4082_v13 = vadd.f32 %v4081_v42, %v8515_v25  ;;  %4715 = vmatprep.mubr.bf16.mxu0 %v4422_v7  ;;  %v6882_v41 = vld [vmem:[%s9113_s4 + $0x40] sm:$0xff]  }
 0x5a3   : > { %v4271_v6 = vadd.f32 %v8662_v19, %v4080_v17  ;;  %4716 = vmatmul.mubr.bf16.gmra.mrb[84].mxu0 %v4421_v61  ;;  %v4349_v28 = vmax.f32 %v4269_v16, 0.0  ;;  %5168 = vmatpush1.bf16.msra.mxu1 %v6882_v41 }
 0x5a4   : > { %v4272_v58 = vadd.f32 %v8665_v14, %v4082_v13  ;;  %v4350_v56 = vmax.f32 %v4270_v54, 0.0  ;;  %5169 = vmatprep.subr.bf16.mxu1 %v9153_v37 }
 0x5a5   : > { %v4351_v60 = vmax.f32 %v4271_v6, 0.0 }
 0x5a6   : > { %v4352_v23 = vmax.f32 %v4272_v58, 0.0  ;;  %v4085_v30 = vpop.f32.mrb[244].mxu1  ;;  %v6884_v58 = vld [vmem:[%s9113_s4 + $0x50] sm:$0xff]  }
 0x5a7   : > { %v4423_v26 = vpack.c.bf16 %v4351_v60, %v4349_v28  ;;  %v4086_v22 = vadd.f32 %v4085_v30, %v8520_v43  ;;  %v4087_v62 = vpop.f32.mrb[245].mxu1 }
 0x5a8   : > { %v4088_v25 = vadd.f32 %v4087_v62, %v8523_v51  ;;  %v4089_v36 = vpop.f32.mrb[246].mxu1  ;;  %v4424_v7 = vpack.c.bf16 %v4352_v23, %v4350_v56  ;;  %v6883_v51 = vld [vmem:[%s9113_s4 + $0x48] sm:$0xff]  }
 0x5a9   : > { %v4273_v61 = vadd.f32 %v8662_v19, %v4086_v22  ;;  %v4090_v16 = vadd.f32 %v4089_v36, %v8525_v48  ;;  %v4091_v17 = vpop.f32.mrb[247].mxu1  ;;  %5170 = vmatpush1.bf16.msra.mxu1 %v6883_v51 }
 0x5aa   : > { %v4274_v42 = vadd.f32 %v8665_v14, %v4088_v25  ;;  %v4092_v54 = vadd.f32 %v4091_v17, %v8527_v39  ;;  %4725 = vmatprep.mubr.bf16.mxu0 %v4424_v7  ;;  %5171 = vmatprep.subr.bf16.mxu1 %v9153_v37  ;;  %v6885_v7 = vld [vmem:[%s9113_s4 + $0x58] sm:$0xff]  }
 0x5ab   : > { %v4275_v43 = vadd.f32 %v8662_v19, %v4090_v16  ;;  %4726 = vmatmul.mubr.bf16.gmra.mrb[88].mxu0 %v4423_v26  ;;  %v4353_v6 = vmax.f32 %v4273_v61, 0.0 }
 0x5ac   : > { %v4276_v13 = vadd.f32 %v8665_v14, %v4092_v54  ;;  %v4354_v39 = vmax.f32 %v4274_v42, 0.0  ;;  %v6886_v42 = vld [vmem:[%s9113_s4 + $0x60] sm:$0xff]  }
 0x5ad   : > { %v4355_v48 = vmax.f32 %v4275_v43, 0.0  ;;  %5172 = vmatpush1.bf16.msra.mxu1 %v6884_v58 }
 0x5ae   : > { %v4356_v28 = vmax.f32 %v4276_v13, 0.0  ;;  %v4095_v60 = vpop.f32.mrb[248].mxu1  ;;  %5173 = vmatprep.subr.bf16.mxu1 %v9153_v37 }
 0x5af   : > { %v4425_v56 = vpack.c.bf16 %v4355_v48, %v4353_v6  ;;  %v4096_v23 = vadd.f32 %v4095_v60, %v8532_v35  ;;  %v4097_v30 = vpop.f32.mrb[249].mxu1 }
 0x5b0   : > { %v4098_v26 = vadd.f32 %v4097_v30, %v8535_v52  ;;  %v4099_v22 = vpop.f32.mrb[250].mxu1  ;;  %v4426_v62 = vpack.c.bf16 %v4356_v28, %v4354_v39 }
 0x5b1   : > { %v4277_v41 = vadd.f32 %v8662_v19, %v4096_v23  ;;  %v4100_v25 = vadd.f32 %v4099_v22, %v8537_v33  ;;  %v4101_v36 = vpop.f32.mrb[251].mxu1  ;;  %5174 = vmatpush1.bf16.msra.mxu1 %v6885_v7  ;;  %v6887_v23 = vld [vmem:[%s9113_s4 + $0x68] sm:$0xff]  }
 0x5b2   : > { %v4278_v61 = vadd.f32 %v8665_v14, %v4098_v26  ;;  %v4102_v16 = vadd.f32 %v4101_v36, %v8539_v2  ;;  %4735 = vmatprep.mubr.bf16.mxu0 %v4426_v62  ;;  %5175 = vmatprep.subr.bf16.mxu1 %v9153_v37  ;;  %v6888_v62 = vld [vmem:[%s9113_s4 + $0x70] sm:$0xff]  }
 0x5b3   : > { %v4279_v35 = vadd.f32 %v8662_v19, %v4100_v25  ;;  %4736 = vmatmul.mubr.bf16.gmra.mrb[92].mxu0 %v4425_v56  ;;  %v4357_v17 = vmax.f32 %v4277_v41, 0.0 }
 0x5b4   : > { %v4280_v52 = vadd.f32 %v8665_v14, %v4102_v16  ;;  %v4358_v54 = vmax.f32 %v4278_v61, 0.0 }
 0x5b5   : > { %v4359_v33 = vmax.f32 %v4279_v35, 0.0  ;;  %5176 = vmatpush1.bf16.msra.mxu1 %v6886_v42 }
 0x5b6   : > { %v4360_v43 = vmax.f32 %v4280_v52, 0.0  ;;  %v4105_v51 = vpop.f32.mrb[252].mxu1  ;;  %5177 = vmatprep.subr.bf16.mxu1 %v9153_v37 }
 0x5b7   : > { %v4427_v2 = vpack.c.bf16 %v4359_v33, %v4357_v17  ;;  %v4106_v13 = vadd.f32 %v4105_v51, %v8544_v9  ;;  %v4107_v6 = vpop.f32.mrb[253].mxu1 }
 0x5b8   : > { %v4108_v48 = vadd.f32 %v4107_v6, %v8547_v47  ;;  %v4109_v58 = vpop.f32.mrb[254].mxu1  ;;  %v4428_v39 = vpack.c.bf16 %v4360_v43, %v4358_v54 }
 0x5b9   : > { %v4281_v28 = vadd.f32 %v8662_v19, %v4106_v13  ;;  %v4110_v60 = vadd.f32 %v4109_v58, %v8549_v5  ;;  %v4111_v56 = vpop.f32.mrb[255].mxu1  ;;  %5178 = vmatpush1.bf16.msra.mxu1 %v6887_v23 }
 0x5ba   : > { %v4282_v30 = vadd.f32 %v8665_v14, %v4108_v48  ;;  %v4112_v26 = vadd.f32 %v4111_v56, %v8551_v24  ;;  %4745 = vmatprep.mubr.bf16.mxu0 %v4428_v39  ;;  %5179 = vmatprep.subr.bf16.mxu1 %v9153_v37 }
 0x5bb   : > { %v4283_v9 = vadd.f32 %v8662_v19, %v4110_v60  ;;  %4746 = vmatmul.mubr.bf16.gmra.mrb[96].mxu0 %v4427_v2  ;;  %v4361_v22 = vmax.f32 %v4281_v28, 0.0 }
 0x5bc   : > { %v4284_v47 = vadd.f32 %v8665_v14, %v4112_v26  ;;  %v4362_v41 = vmax.f32 %v4282_v30, 0.0 }
 0x5bd   : > { %v4363_v5 = vmax.f32 %v4283_v9, 0.0  ;;  %5180 = vmatpush1.bf16.msra.mxu1 %v6888_v62 }
 0x5be   : > { %v4364_v25 = vmax.f32 %v4284_v47, 0.0  ;;  %v4115_v36 = vpop.f32.mrb[0].mxu1  ;;  %5181 = vmatprep.subr.bf16.mxu1 %v9153_v37 }
 0x5bf   : > { %v4429_v24 = vpack.c.bf16 %v4363_v5, %v4361_v22  ;;  %v4116_v7 = vadd.f32 %v4115_v36, %v8556_v34  ;;  %v4117_v61 = vpop.f32.mrb[1].mxu1 }
 0x5c0   : > { %v4118_v16 = vadd.f32 %v4117_v61, %v8559_v63  ;;  %v4119_v35 = vpop.f32.mrb[2].mxu1  ;;  %v4430_v52 = vpack.c.bf16 %v4364_v25, %v4362_v41 }
 0x5c1   : > { %v4285_v17 = vadd.f32 %v8662_v19, %v4116_v7  ;;  %v4120_v33 = vadd.f32 %v4119_v35, %v8561_v38  ;;  %v4121_v42 = vpop.f32.mrb[3].mxu1 }
 0x5c2   : > { %v4286_v54 = vadd.f32 %v8665_v14, %v4118_v16  ;;  %v4122_v43 = vadd.f32 %v4121_v42, %v8563_v50  ;;  %4755 = vmatprep.mubr.bf16.mxu0 %v4430_v52 }
 0x5c3   : > { %v4287_v34 = vadd.f32 %v8662_v19, %v4120_v33  ;;  %4756 = vmatmul.mubr.bf16.gmra.mrb[100].mxu0 %v4429_v24  ;;  %v4365_v51 = vmax.f32 %v4285_v17, 0.0 }
 0x5c4   : > { %v4288_v63 = vadd.f32 %v8665_v14, %v4122_v43  ;;  %v4366_v13 = vmax.f32 %v4286_v54, 0.0 }
 0x5c5   : > { %v4367_v2 = vmax.f32 %v4287_v34, 0.0 }
 0x5c6   : > { %v4368_v6 = vmax.f32 %v4288_v63, 0.0  ;;  %v4125_v48 = vpop.f32.mrb[4].mxu1 }
 0x5c7   : > { %v4431_v38 = vpack.c.bf16 %v4367_v2, %v4365_v51  ;;  %v4126_v58 = vadd.f32 %v4125_v48, %v8568_v45  ;;  %v4127_v39 = vpop.f32.mrb[5].mxu1 }
 0x5c8   : > { %v4128_v28 = vadd.f32 %v4127_v39, %v8571_v46  ;;  %v4129_v50 = vpop.f32.mrb[6].mxu1  ;;  %v4432_v60 = vpack.c.bf16 %v4368_v6, %v4366_v13 }
 0x5c9   : > { %v4289_v37 = vadd.f32 %v8662_v19, %v4126_v58  ;;  %v4130_v56 = vadd.f32 %v4129_v50, %v8573_v57  ;;  %v4131_v23 = vpop.f32.mrb[7].mxu1 }
 0x5ca   : > { %v4290_v30 = vadd.f32 %v8665_v14, %v4128_v28  ;;  %v4132_v26 = vadd.f32 %v4131_v23, %v8575_v15  ;;  %4765 = vmatprep.mubr.bf16.mxu0 %v4432_v60 }
 0x5cb   : > { %v4291_v9 = vadd.f32 %v8662_v19, %v4130_v56  ;;  %4766 = vmatmul.mubr.bf16.gmra.mrb[104].mxu0 %v4431_v38  ;;  %v4369_v47 = vmax.f32 %v4289_v37, 0.0 }
 0x5cc   : > { %v4292_v45 = vadd.f32 %v8665_v14, %v4132_v26  ;;  %v4370_v46 = vmax.f32 %v4290_v30, 0.0 }
 0x5cd   : > { %v4371_v22 = vmax.f32 %v4291_v9, 0.0 }
 0x5ce   : > { %v4372_v5 = vmax.f32 %v4292_v45, 0.0  ;;  %v4135_v62 = vpop.f32.mrb[8].mxu1 }
 0x5cf   : > { %v4433_v41 = vpack.c.bf16 %v4371_v22, %v4369_v47  ;;  %v4136_v25 = vadd.f32 %v4135_v62, %v8577_v0  ;;  %v4137_v57 = vpop.f32.mrb[9].mxu1 }
 0x5d0   : > { %v4138_v36 = vadd.f32 %v4137_v57, %v8579_v12  ;;  %v4139_v24 = vpop.f32.mrb[10].mxu1  ;;  %v4434_v7 = vpack.c.bf16 %v4372_v5, %v4370_v46  ;;  %v9156_v46 = vld [vmem:[#allocation10_spill] sm:$0xff] }
 0x5d1   : > { %v4293_v15 = vadd.f32 %v8662_v19, %v4136_v25  ;;  %v4140_v61 = vadd.f32 %v4139_v24, %v8581_v31  ;;  %v4141_v16 = vpop.f32.mrb[11].mxu1 }
 0x5d2   : > { %v4294_v35 = vadd.f32 %v8665_v14, %v4138_v36  ;;  %v4142_v52 = vadd.f32 %v4141_v16, %v8583_v1  ;;  %4775 = vmatprep.mubr.bf16.mxu0 %v4434_v7  ;;  %v9157_v7 = vld [vmem:[#allocation11_spill] sm:$0xff] }
 0x5d3   : > { %v4295_v17 = vadd.f32 %v8662_v19, %v4140_v61  ;;  %4776 = vmatmul.mubr.bf16.gmra.mrb[108].mxu0 %v4433_v41  ;;  %v4373_v33 = vmax.f32 %v4293_v15, 0.0  ;;  %v9158_v61 = vld [vmem:[#allocation12_spill] sm:$0xff] }
 0x5d4   : > { %v4296_v0 = vadd.f32 %v8665_v14, %v4142_v52  ;;  %v4374_v12 = vmax.f32 %v4294_v35, 0.0 }
 0x5d5   : > { %v4375_v42 = vmax.f32 %v4295_v17, 0.0 }
 0x5d6   : > { %v4376_v54 = vmax.f32 %v4296_v0, 0.0  ;;  %v4145_v43 = vpop.f32.mrb[12].mxu1  ;;  %v9159_v0 = vld [vmem:[#allocation13_spill] sm:$0xff] }
 0x5d7   : > { %v4435_v34 = vpack.c.bf16 %v4375_v42, %v4373_v33  ;;  %v4146_v63 = vadd.f32 %v4145_v43, %v8585_v20  ;;  %v4147_v31 = vpop.f32.mrb[13].mxu1 }
 0x5d8   : > { %v4148_v51 = vadd.f32 %v4147_v31, %v8587_v44  ;;  %v4149_v2 = vpop.f32.mrb[14].mxu1  ;;  %v4436_v13 = vpack.c.bf16 %v4376_v54, %v4374_v12  ;;  %v9160_v54 = vld [vmem:[#allocation14_spill] sm:$0xff] }
 0x5d9   : > { %v4297_v1 = vadd.f32 %v8662_v19, %v4146_v63  ;;  %v4150_v6 = vadd.f32 %v4149_v2, %v8592_v29  ;;  %v4151_v48 = vpop.f32.mrb[15].mxu1 }
 0x5da   : > { %v4298_v38 = vadd.f32 %v8665_v14, %v4148_v51  ;;  %v4152_v58 = vadd.f32 %v4151_v48, %v8595_v40  ;;  %4785 = vmatprep.mubr.bf16.mxu0 %v4436_v13 }
 0x5db   : > { %v4299_v39 = vadd.f32 %v8662_v19, %v4150_v6  ;;  %4786 = vmatmul.mubr.bf16.gmra.mrb[112].mxu0 %v4435_v34  ;;  %v4377_v28 = vmax.f32 %v4297_v1, 0.0  ;;  %v6889_v34 = vld [vmem:[%s9113_s4 + $0x78] sm:$0xff]  }
 0x5dc   : > { %v4300_v20 = vadd.f32 %v8665_v14, %v4152_v58  ;;  %v4378_v44 = vmax.f32 %v4298_v38, 0.0  ;;  %5182 = vmatpush1.bf16.msra.mxu1 %v6889_v34  ;;  %v9161_v38 = vld [vmem:[#allocation15_spill] sm:$0xff] }
 0x5dd   : > { %v4379_v50 = vmax.f32 %v4299_v39, 0.0 }
 0x5de   : > { %v4380_v60 = vmax.f32 %v4300_v20, 0.0  ;;  %v4155_v37 = vpop.f32.mrb[16].mxu1  ;;  %v9162_v20 = vld [vmem:[#allocation16_spill] sm:$0xff] }
 0x5df   : > { %v4437_v56 = vpack.c.bf16 %v4379_v50, %v4377_v28  ;;  %v4156_v23 = vadd.f32 %v4155_v37, %v8598_v11  ;;  %v4157_v29 = vpop.f32.mrb[17].mxu1  ;;  %v9163_v37 = vld [vmem:[#allocation17_spill] sm:$0xff] }
 0x5e0   : > { %v4158_v30 = vadd.f32 %v4157_v29, %v8600_v8  ;;  %v4159_v26 = vpop.f32.mrb[18].mxu1  ;;  %v4438_v9 = vpack.c.bf16 %v4380_v60, %v4378_v44 }
 0x5e1   : > { %v4301_v40 = vadd.f32 %v8662_v19, %v4156_v23  ;;  %v4160_v45 = vadd.f32 %v4159_v26, %v8605_v53  ;;  %v4161_v47 = vpop.f32.mrb[19].mxu1 }
 0x5e2   : > { %v4302_v22 = vadd.f32 %v8665_v14, %v4158_v30  ;;  %v4162_v5 = vadd.f32 %v4161_v47, %v9156_v46  ;;  %4795 = vmatprep.mubr.bf16.mxu0 %v4438_v9  ;;  %v9164_v30 = vld [vmem:[#allocation18_spill] sm:$0xff] }
 0x5e3   : > { %v4303_v62 = vadd.f32 %v8662_v19, %v4160_v45  ;;  %4796 = vmatmul.mubr.bf16.gmra.mrb[116].mxu0 %v4437_v56  ;;  %v4381_v41 = vmax.f32 %v4301_v40, 0.0 }
 0x5e4   : > { %v4304_v11 = vadd.f32 %v8665_v14, %v4162_v5  ;;  %v4382_v8 = vmax.f32 %v4302_v22, 0.0 }
 0x5e5   : > { %v4383_v25 = vmax.f32 %v4303_v62, 0.0 }
 0x5e6   : > { %v4384_v57 = vmax.f32 %v4304_v11, 0.0  ;;  %v4165_v36 = vpop.f32.mrb[20].mxu1  ;;  %v9165_v11 = vld [vmem:[#allocation19_spill] sm:$0xff] }
 0x5e7   : > { %v4439_v24 = vpack.c.bf16 %v4383_v25, %v4381_v41  ;;  %v4166_v15 = vadd.f32 %v4165_v36, %v9157_v7  ;;  %v4167_v53 = vpop.f32.mrb[21].mxu1 }
 0x5e8   : > { %v4168_v16 = vadd.f32 %v4167_v53, %v9158_v61  ;;  %v4169_v35 = vpop.f32.mrb[22].mxu1  ;;  %v4440_v52 = vpack.c.bf16 %v4384_v57, %v4382_v8  ;;  %v9166_v8 = vld [vmem:[#allocation20_spill] sm:$0xff] }
 0x5e9   : > { %v4305_v17 = vadd.f32 %v8662_v19, %v4166_v15  ;;  %v4170_v33 = vadd.f32 %v4169_v35, %v9159_v0  ;;  %v4171_v42 = vpop.f32.mrb[23].mxu1  ;;  %v9167_v15 = vld [vmem:[#allocation21_spill] sm:$0xff]  ;;  %v9168_v35 = vld [vmem:[#allocation22_spill] sm:$0xff] }
 0x5ea   : > { %v4306_v12 = vadd.f32 %v8665_v14, %v4168_v16  ;;  %v4172_v43 = vadd.f32 %v4171_v42, %v9160_v54  ;;  %4805 = vmatprep.mubr.bf16.mxu0 %v4440_v52 }
 0x5eb   : > { %v4307_v63 = vadd.f32 %v8662_v19, %v4170_v33  ;;  %4806 = vmatmul.mubr.bf16.gmra.mrb[120].mxu0 %v4439_v24  ;;  %v4385_v51 = vmax.f32 %v4305_v17, 0.0 }
 0x5ec   : > { %v4308_v31 = vadd.f32 %v8665_v14, %v4172_v43  ;;  %v4386_v13 = vmax.f32 %v4306_v12, 0.0 }
 0x5ed   : > { %v4387_v2 = vmax.f32 %v4307_v63, 0.0  ;;  %v9169_v63 = vld [vmem:[#allocation23_spill] sm:$0xff] }
 0x5ee   : > { %v4388_v1 = vmax.f32 %v4308_v31, 0.0  ;;  %v4175_v6 = vpop.f32.mrb[24].mxu1 }
 0x5ef   : > { %v4441_v48 = vpack.c.bf16 %v4387_v2, %v4385_v51  ;;  %v4176_v58 = vadd.f32 %v4175_v6, %v9161_v38  ;;  %v4177_v39 = vpop.f32.mrb[25].mxu1  ;;  %v9170_v2 = vld [vmem:[#allocation24_spill] sm:$0xff]  ;;  %v9171_v38 = vld [vmem:[#allocation25_spill] sm:$0xff] }
 0x5f0   : > { %v4178_v28 = vadd.f32 %v4177_v39, %v9162_v20  ;;  %v4179_v50 = vpop.f32.mrb[26].mxu1  ;;  %v4442_v44 = vpack.c.bf16 %v4388_v1, %v4386_v13 }
 0x5f1   : > { %v4309_v60 = vadd.f32 %v8662_v19, %v4176_v58  ;;  %v4180_v56 = vadd.f32 %v4179_v50, %v9163_v37  ;;  %v4181_v23 = vpop.f32.mrb[27].mxu1 }
 0x5f2   : > { %v4310_v29 = vadd.f32 %v8665_v14, %v4178_v28  ;;  %v4182_v26 = vadd.f32 %v4181_v23, %v9164_v30  ;;  %4815 = vmatprep.mubr.bf16.mxu0 %v4442_v44  ;;  %v9172_v28 = vld [vmem:[#allocation26_spill] sm:$0xff] }
 0x5f3   : > { %v4311_v9 = vadd.f32 %v8662_v19, %v4180_v56  ;;  %4816 = vmatmul.mubr.bf16.gmra.mrb[124].mxu0 %v4441_v48  ;;  %v4389_v45 = vmax.f32 %v4309_v60, 0.0 }
 0x5f4   : > { %v4312_v40 = vadd.f32 %v8665_v14, %v4182_v26  ;;  %v4390_v22 = vmax.f32 %v4310_v29, 0.0 }
 0x5f5   : > { %v4391_v47 = vmax.f32 %v4311_v9, 0.0  ;;  %v9173_v9 = vld [vmem:[#allocation27_spill] sm:$0xff] }
 0x5f6   : > { %v4392_v46 = vmax.f32 %v4312_v40, 0.0  ;;  %v4185_v5 = vpop.f32.mrb[28].mxu1 }
 0x5f7   : > { %v4443_v62 = vpack.c.bf16 %v4391_v47, %v4389_v45  ;;  %v4186_v41 = vadd.f32 %v4185_v5, %v9165_v11  ;;  %v4187_v25 = vpop.f32.mrb[29].mxu1  ;;  %v9174_v47 = vld [vmem:[#allocation28_spill] sm:$0xff]  ;;  %v9175_v11 = vld [vmem:[#allocation29_spill] sm:$0xff] }
 0x5f8   : > { %v4188_v57 = vadd.f32 %v4187_v25, %v9166_v8  ;;  %v4189_v36 = vpop.f32.mrb[30].mxu1  ;;  %v4444_v24 = vpack.c.bf16 %v4392_v46, %v4390_v22 }
 0x5f9   : > { %v4313_v7 = vadd.f32 %v8662_v19, %v4186_v41  ;;  %v4190_v53 = vadd.f32 %v4189_v36, %v9167_v15  ;;  %v4191_v61 = vpop.f32.mrb[31].mxu1 }
 0x5fa   : > { %v4314_v16 = vadd.f32 %v8665_v14, %v4188_v57  ;;  %v4192_v52 = vadd.f32 %v4191_v61, %v9168_v35  ;;  %4825 = vmatprep.mubr.bf16.mxu0 %v4444_v24  ;;  %v9176_v57 = vld [vmem:[#allocation30_spill] sm:$0xff] }
 0x5fb   : > { %v4315_v17 = vadd.f32 %v8662_v19, %v4190_v53  ;;  %4826 = vmatmul.mubr.bf16.gmra.mrb[128].mxu0 %v4443_v62  ;;  %v4393_v33 = vmax.f32 %v4313_v7, 0.0 }
 0x5fc   : > { %v4316_v0 = vadd.f32 %v8665_v14, %v4192_v52  ;;  %v4394_v12 = vmax.f32 %v4314_v16, 0.0 }
 0x5fd   : > { %v4395_v42 = vmax.f32 %v4315_v17, 0.0  ;;  %v9177_v17 = vld [vmem:[#allocation31_spill] sm:$0xff] }
 0x5fe   : > { %v4396_v54 = vmax.f32 %v4316_v0, 0.0  ;;  %v4195_v43 = vpop.f32.mrb[32].mxu1 }
 0x5ff   : > { %v4445_v34 = vpack.c.bf16 %v4395_v42, %v4393_v33  ;;  %v4196_v31 = vadd.f32 %v4195_v43, %v9169_v63  ;;  %v4197_v51 = vpop.f32.mrb[33].mxu1  ;;  %v9178_v42 = vld [vmem:[#allocation32_spill] sm:$0xff] }
 0x600   : > { %v4198_v13 = vadd.f32 %v4197_v51, %v9170_v2  ;;  %v4199_v1 = vpop.f32.mrb[34].mxu1  ;;  %v4446_v6 = vpack.c.bf16 %v4396_v54, %v4394_v12 }
 0x601   : > { %v4317_v48 = vadd.f32 %v8662_v19, %v4196_v31  ;;  %v4200_v58 = vadd.f32 %v4199_v1, %v9171_v38  ;;  %v4201_v39 = vpop.f32.mrb[35].mxu1 }
 0x602   : > { %v4318_v20 = vadd.f32 %v8665_v14, %v4198_v13  ;;  %v4202_v50 = vadd.f32 %v4201_v39, %v9172_v28  ;;  %4835 = vmatprep.mubr.bf16.mxu0 %v4446_v6 }
 0x603   : > { %v4319_v44 = vadd.f32 %v8662_v19, %v4200_v58  ;;  %4836 = vmatmul.mubr.bf16.gmra.mrb[132].mxu0 %v4445_v34  ;;  %v4397_v37 = vmax.f32 %v4317_v48, 0.0 }
 0x604   : > { %v4320_v60 = vadd.f32 %v8665_v14, %v4202_v50  ;;  %v4398_v23 = vmax.f32 %v4318_v20, 0.0 }
 0x605   : > { %v4399_v56 = vmax.f32 %v4319_v44, 0.0 }
 0x606   : > { %v4400_v29 = vmax.f32 %v4320_v60, 0.0  ;;  %v4205_v30 = vpop.f32.mrb[36].mxu1 }
 0x607   : > { %v4447_v26 = vpack.c.bf16 %v4399_v56, %v4397_v37  ;;  %v4206_v40 = vadd.f32 %v4205_v30, %v9173_v9  ;;  %v4207_v45 = vpop.f32.mrb[37].mxu1 }
 0x608   : > { %v4208_v22 = vadd.f32 %v4207_v45, %v9174_v47  ;;  %v4209_v46 = vpop.f32.mrb[38].mxu1  ;;  %v4448_v5 = vpack.c.bf16 %v4400_v29, %v4398_v23 }
 0x609   : > { %v4321_v62 = vadd.f32 %v8662_v19, %v4206_v40  ;;  %v4210_v41 = vadd.f32 %v4209_v46, %v9175_v11  ;;  %v4211_v25 = vpop.f32.mrb[39].mxu1 }
 0x60a   : > { %v4322_v8 = vadd.f32 %v8665_v14, %v4208_v22  ;;  %v4212_v36 = vadd.f32 %v4211_v25, %v9176_v57  ;;  %4845 = vmatprep.mubr.bf16.mxu0 %v4448_v5 }
 0x60b   : > { %v4323_v24 = vadd.f32 %v8662_v19, %v4210_v41  ;;  %4846 = vmatmul.mubr.bf16.gmra.mrb[136].mxu0 %v4447_v26  ;;  %v4401_v15 = vmax.f32 %v4321_v62, 0.0 }
 0x60c   : > { %v4324_v7 = vadd.f32 %v8665_v14, %v4212_v36  ;;  %v4402_v61 = vmax.f32 %v4322_v8, 0.0 }
 0x60d   : > { %v4403_v53 = vmax.f32 %v4323_v24, 0.0 }
 0x60e   : > { %v4404_v16 = vmax.f32 %v4324_v7, 0.0  ;;  %v4215_v35 = vpop.f32.mrb[40].mxu1 }
 0x60f   : > { %v4449_v52 = vpack.c.bf16 %v4403_v53, %v4401_v15  ;;  %v4216_v0 = vadd.f32 %v4215_v35, %v9177_v17  ;;  %v4217_v33 = vpop.f32.mrb[41].mxu1 }
 0x610   : > { %v4218_v12 = vadd.f32 %v4217_v33, %v9178_v42  ;;  %v4219_v54 = vpop.f32.mrb[42].mxu1  ;;  %v4450_v43 = vpack.c.bf16 %v4404_v16, %v4402_v61  ;;  %v9179_v61 = vld [vmem:[#allocation8_spill] sm:$0xff]  ;;  %v9180_v16 = vld [vmem:[#allocation9_spill] sm:$0xff] }
 0x611   : > { %v4325_v34 = vadd.f32 %v8662_v19, %v4216_v0  ;;  %v4220_v63 = vadd.f32 %v4219_v54, %v8691_v55  ;;  %v4221_v31 = vpop.f32.mrb[43].mxu1 }
 0x612   : > { %v4326_v51 = vadd.f32 %v8665_v14, %v4218_v12  ;;  %v4222_v2 = vadd.f32 %v4221_v31, %v8694_v59  ;;  %4855 = vmatprep.mubr.bf16.mxu0 %v4450_v43 }
 0x613   : > { %v4327_v13 = vadd.f32 %v8662_v19, %v4220_v63  ;;  %4856 = vmatmul.mubr.bf16.gmra.mrb[140].mxu0 %v4449_v52  ;;  %v4405_v6 = vmax.f32 %v4325_v34, 0.0 }
 0x614   : > { %v4328_v1 = vadd.f32 %v8665_v14, %v4222_v2  ;;  %v4406_v38 = vmax.f32 %v4326_v51, 0.0 }
 0x615   : > { %v4407_v48 = vmax.f32 %v4327_v13, 0.0 }
 0x616   : > { %v4408_v58 = vmax.f32 %v4328_v1, 0.0  ;;  %v4225_v39 = vpop.f32.mrb[44].mxu1 }
 0x617   : > { %v4451_v20 = vpack.c.bf16 %v4407_v48, %v4405_v6  ;;  %v4226_v28 = vadd.f32 %v4225_v39, %v8702_v21  ;;  %v4227_v55 = vpop.f32.mrb[45].mxu1 }
 0x618   : > { %v4228_v50 = vadd.f32 %v4227_v55, %v8705_v32  ;;  %v4229_v44 = vpop.f32.mrb[46].mxu1  ;;  %v4452_v60 = vpack.c.bf16 %v4408_v58, %v4406_v38 }
 0x619   : > { %v4329_v59 = vadd.f32 %v8662_v19, %v4226_v28  ;;  %v4230_v37 = vadd.f32 %v4229_v44, %v8708_v3  ;;  %v4231_v56 = vpop.f32.mrb[47].mxu1 }
 0x61a   : > { %v4330_v23 = vadd.f32 %v8665_v14, %v4228_v50  ;;  %v4232_v29 = vadd.f32 %v4231_v56, %v8711_v18  ;;  %4865 = vmatprep.mubr.bf16.mxu0 %v4452_v60 }
 0x61b   : > { %v4331_v30 = vadd.f32 %v8662_v19, %v4230_v37  ;;  %4866 = vmatmul.mubr.bf16.gmra.mrb[144].mxu0 %v4451_v20  ;;  %v4409_v26 = vmax.f32 %v4329_v59, 0.0 }
 0x61c   : > { %v4332_v21 = vadd.f32 %v8665_v14, %v4232_v29  ;;  %v4410_v32 = vmax.f32 %v4330_v23, 0.0 }
 0x61d   : > { %v4411_v9 = vmax.f32 %v4331_v30, 0.0 }
 0x61e   : > { %v4412_v40 = vmax.f32 %v4332_v21, 0.0  ;;  %v4235_v45 = vpop.f32.mrb[48].mxu1 }
 0x61f   : > { %v4453_v47 = vpack.c.bf16 %v4411_v9, %v4409_v26  ;;  %v4236_v22 = vadd.f32 %v4235_v45, %v8718_v10  ;;  %v4237_v3 = vpop.f32.mrb[49].mxu1 }
 0x620   : > { %v4238_v46 = vadd.f32 %v4237_v3, %v8724_v49  ;;  %v4239_v5 = vpop.f32.mrb[50].mxu1  ;;  %v4454_v62 = vpack.c.bf16 %v4412_v40, %v4410_v32 }
 0x621   : > { %v4333_v18 = vadd.f32 %v8662_v19, %v4236_v22  ;;  %v4240_v11 = vadd.f32 %v4239_v5, %v8727_v27  ;;  %v4241_v41 = vpop.f32.mrb[51].mxu1  ;;  %v6180_v27 = vld [vmem:[%s9112_s3 + $0xc] sm:$0x3] }
 0x622   : > { %v4334_v25 = vadd.f32 %v8665_v14, %v4238_v46  ;;  %v4242_v8 = vadd.f32 %v4241_v41, %v8731_v4  ;;  %4875 = vmatprep.mubr.bf16.mxu0 %v4454_v62  ;;  %v8902_v4 = vrot.slane %v6180_v27, %v9179_v61 }
 0x623   : > { %v4335_v57 = vadd.f32 %v8662_v19, %v4240_v11  ;;  %4876 = vmatmul.mubr.bf16.gmra.mrb[148].mxu0 %v4453_v47  ;;  %v4413_v36 = vmax.f32 %v4333_v18, 0.0  ;;  %v8905_v19 = vrot.slane %v6180_v27, %v9180_v16 }
 0x624   : > { %v4336_v10 = vadd.f32 %v8665_v14, %v4242_v8  ;;  %v4414_v49 = vmax.f32 %v4334_v25, 0.0 }
 0x625   : > { %v4415_v24 = vmax.f32 %v4335_v57, 0.0 }
 0x626   : > { %v4416_v7 = vmax.f32 %v4336_v10, 0.0 }
 0x627   : > { %v4455_v15 = vpack.c.bf16 %v4415_v24, %v4413_v36 }
 0x628   : > { %v4456_v53 = vpack.c.bf16 %v4416_v7, %v4414_v49 }
 0x62a   : > { %4885 = vmatprep.mubr.bf16.mxu0 %v4456_v53 }
 0x62b   : > { %4886 = vmatmul.mubr.bf16.gmra.mrb[152].mxu0 %v4455_v15 }
 0x666   : > { %v4697_v35 = vpop.f32.mrb[76].mxu0 }
 0x667   : > { %v4698_v14 = vadd.f32 %v4697_v35, %v8902_v4  ;;  %v4699_v52 = vpop.f32.mrb[77].mxu0 }
 0x668   : > { %v4700_v17 = vadd.f32 %v4699_v52, %v8905_v19  ;;  %v4701_v0 = vpop.f32.mrb[78].mxu0 }
 0x669   : > { %v4702_v33 = vadd.f32 %v4701_v0, %v8902_v4  ;;  %v4703_v42 = vpop.f32.mrb[79].mxu0  ;;  %v4896_v54 = vmax.f32 %v4698_v14, 0.0 }
 0x66a   : > { %v4704_v12 = vadd.f32 %v4703_v42, %v8905_v19  ;;  %v4897_v34 = vmax.f32 %v4700_v17, 0.0 }
 0x66b   : > { %v4898_v43 = vmax.f32 %v4702_v33, 0.0 }
 0x66c   : > { %v4899_v63 = vmax.f32 %v4704_v12, 0.0 }
 0x66d   : > { %v4976_v31 = vpack.c.bf16 %v4898_v43, %v4896_v54 }
 0x66e   : > { %v4977_v51 = vpack.c.bf16 %v4899_v63, %v4897_v34  ;;  %v4707_v2 = vpop.f32.mrb[80].mxu0 }
 0x66f   : > { %v4708_v13 = vadd.f32 %v4707_v2, %v8902_v4  ;;  %v4709_v1 = vpop.f32.mrb[81].mxu0 }
 0x670   : > { %v4710_v6 = vadd.f32 %v4709_v1, %v8905_v19  ;;  %v4711_v48 = vpop.f32.mrb[82].mxu0  ;;  %5183 = vmatprep.mubr.bf16.mxu1 %v4977_v51 }
 0x671   : > { %v4712_v38 = vadd.f32 %v4711_v48, %v8902_v4  ;;  %v4713_v58 = vpop.f32.mrb[83].mxu0  ;;  %5184 = vmatmul.mubr.bf16.vlgmr.msra.gmra.mrb[52].mxu1 %v4976_v31  ;;  %v4900_v20 = vmax.f32 %v4708_v13, 0.0 }
 0x672   : > { %v4714_v39 = vadd.f32 %v4713_v58, %v8905_v19  ;;  %v4901_v55 = vmax.f32 %v4710_v6, 0.0 }
 0x673   : > { %v4902_v28 = vmax.f32 %v4712_v38, 0.0 }
 0x674   : > { %v4903_v50 = vmax.f32 %v4714_v39, 0.0 }
 0x675   : > { %v4978_v44 = vpack.c.bf16 %v4902_v28, %v4900_v20 }
 0x676   : > { %v4979_v60 = vpack.c.bf16 %v4903_v50, %v4901_v55  ;;  %v4717_v59 = vpop.f32.mrb[84].mxu0 }
 0x677   : > { %v4718_v37 = vadd.f32 %v4717_v59, %v8902_v4  ;;  %v4719_v56 = vpop.f32.mrb[85].mxu0 }
 0x678   : > { %v4720_v23 = vadd.f32 %v4719_v56, %v8905_v19  ;;  %v4721_v29 = vpop.f32.mrb[86].mxu0  ;;  %5191 = vmatprep.mubr.bf16.mxu1 %v4979_v60 }
 0x679   : > { %v4722_v30 = vadd.f32 %v4721_v29, %v8902_v4  ;;  %v4723_v21 = vpop.f32.mrb[87].mxu0  ;;  %5192 = vmatmul.mubr.bf16.gmra.mrb[56].mxu1 %v4978_v44  ;;  %v4904_v9 = vmax.f32 %v4718_v37, 0.0 }
 0x67a   : > { %v4724_v26 = vadd.f32 %v4723_v21, %v8905_v19  ;;  %v4905_v40 = vmax.f32 %v4720_v23, 0.0 }
 0x67b   : > { %v4906_v32 = vmax.f32 %v4722_v30, 0.0 }
 0x67c   : > { %v4907_v45 = vmax.f32 %v4724_v26, 0.0 }
 0x67d   : > { %v4980_v47 = vpack.c.bf16 %v4906_v32, %v4904_v9 }
 0x67e   : > { %v4981_v22 = vpack.c.bf16 %v4907_v45, %v4905_v40  ;;  %v4727_v3 = vpop.f32.mrb[88].mxu0 }
 0x67f   : > { %v4728_v46 = vadd.f32 %v4727_v3, %v8902_v4  ;;  %v4729_v5 = vpop.f32.mrb[89].mxu0 }
 0x680   : > { %v4730_v62 = vadd.f32 %v4729_v5, %v8905_v19  ;;  %v4731_v18 = vpop.f32.mrb[90].mxu0  ;;  %5199 = vmatprep.mubr.bf16.mxu1 %v4981_v22 }
 0x681   : > { %v4732_v11 = vadd.f32 %v4731_v18, %v8902_v4  ;;  %v4733_v41 = vpop.f32.mrb[91].mxu0  ;;  %5200 = vmatmul.mubr.bf16.gmra.mrb[60].mxu1 %v4980_v47  ;;  %v4908_v8 = vmax.f32 %v4728_v46, 0.0 }
 0x682   : > { %v4734_v25 = vadd.f32 %v4733_v41, %v8905_v19  ;;  %v4909_v10 = vmax.f32 %v4730_v62, 0.0 }
 0x683   : > { %v4910_v57 = vmax.f32 %v4732_v11, 0.0 }
 0x684   : > { %v4911_v36 = vmax.f32 %v4734_v25, 0.0 }
 0x685   : > { %v4982_v24 = vpack.c.bf16 %v4910_v57, %v4908_v8 }
 0x686   : > { %v4983_v49 = vpack.c.bf16 %v4911_v36, %v4909_v10  ;;  %v4737_v7 = vpop.f32.mrb[92].mxu0 }
 0x687   : > { %v4738_v15 = vadd.f32 %v4737_v7, %v8902_v4  ;;  %v4739_v53 = vpop.f32.mrb[93].mxu0 }
 0x688   : > { %v4740_v27 = vadd.f32 %v4739_v53, %v8905_v19  ;;  %v4741_v61 = vpop.f32.mrb[94].mxu0  ;;  %5207 = vmatprep.mubr.bf16.mxu1 %v4983_v49 }
 0x689   : > { %v4742_v16 = vadd.f32 %v4741_v61, %v8902_v4  ;;  %v4743_v35 = vpop.f32.mrb[95].mxu0  ;;  %5208 = vmatmul.mubr.bf16.gmra.mrb[64].mxu1 %v4982_v24  ;;  %v4912_v52 = vmax.f32 %v4738_v15, 0.0 }
 0x68a   : > { %v4744_v14 = vadd.f32 %v4743_v35, %v8905_v19  ;;  %v4913_v0 = vmax.f32 %v4740_v27, 0.0 }
 0x68b   : > { %v4914_v17 = vmax.f32 %v4742_v16, 0.0 }
 0x68c   : > { %v4915_v33 = vmax.f32 %v4744_v14, 0.0 }
 0x68d   : > { %v4984_v42 = vpack.c.bf16 %v4914_v17, %v4912_v52 }
 0x68e   : > { %v4985_v12 = vpack.c.bf16 %v4915_v33, %v4913_v0  ;;  %v4747_v54 = vpop.f32.mrb[96].mxu0 }
 0x68f   : > { %v4748_v43 = vadd.f32 %v4747_v54, %v8902_v4  ;;  %v4749_v34 = vpop.f32.mrb[97].mxu0 }
 0x690   : > { %v4750_v63 = vadd.f32 %v4749_v34, %v8905_v19  ;;  %v4751_v31 = vpop.f32.mrb[98].mxu0  ;;  %5215 = vmatprep.mubr.bf16.mxu1 %v4985_v12 }
 0x691   : > { %v4752_v51 = vadd.f32 %v4751_v31, %v8902_v4  ;;  %v4753_v2 = vpop.f32.mrb[99].mxu0  ;;  %5216 = vmatmul.mubr.bf16.gmra.mrb[68].mxu1 %v4984_v42  ;;  %v4916_v1 = vmax.f32 %v4748_v43, 0.0 }
 0x692   : > { %v4754_v13 = vadd.f32 %v4753_v2, %v8905_v19  ;;  %v4917_v48 = vmax.f32 %v4750_v63, 0.0 }
 0x693   : > { %v4918_v6 = vmax.f32 %v4752_v51, 0.0 }
 0x694   : > { %v4919_v38 = vmax.f32 %v4754_v13, 0.0 }
 0x695   : > { %v4986_v58 = vpack.c.bf16 %v4918_v6, %v4916_v1 }
 0x696   : > { %v4987_v39 = vpack.c.bf16 %v4919_v38, %v4917_v48  ;;  %v4757_v20 = vpop.f32.mrb[100].mxu0 }
 0x697   : > { %v4758_v28 = vadd.f32 %v4757_v20, %v8902_v4  ;;  %v4759_v55 = vpop.f32.mrb[101].mxu0 }
 0x698   : > { %v4760_v50 = vadd.f32 %v4759_v55, %v8905_v19  ;;  %v4761_v44 = vpop.f32.mrb[102].mxu0  ;;  %5223 = vmatprep.mubr.bf16.mxu1 %v4987_v39 }
 0x699   : > { %v4762_v60 = vadd.f32 %v4761_v44, %v8902_v4  ;;  %v4763_v59 = vpop.f32.mrb[103].mxu0  ;;  %5224 = vmatmul.mubr.bf16.gmra.mrb[72].mxu1 %v4986_v58  ;;  %v4920_v56 = vmax.f32 %v4758_v28, 0.0 }
 0x69a   : > { %v4764_v37 = vadd.f32 %v4763_v59, %v8905_v19  ;;  %v4921_v29 = vmax.f32 %v4760_v50, 0.0 }
 0x69b   : > { %v4922_v23 = vmax.f32 %v4762_v60, 0.0 }
 0x69c   : > { %v4923_v30 = vmax.f32 %v4764_v37, 0.0 }
 0x69d   : > { %v4988_v21 = vpack.c.bf16 %v4922_v23, %v4920_v56 }
 0x69e   : > { %v4989_v26 = vpack.c.bf16 %v4923_v30, %v4921_v29  ;;  %v4767_v9 = vpop.f32.mrb[104].mxu0 }
 0x69f   : > { %v4768_v32 = vadd.f32 %v4767_v9, %v8902_v4  ;;  %v4769_v40 = vpop.f32.mrb[105].mxu0 }
 0x6a0   : > { %v4770_v45 = vadd.f32 %v4769_v40, %v8905_v19  ;;  %v4771_v47 = vpop.f32.mrb[106].mxu0  ;;  %5231 = vmatprep.mubr.bf16.mxu1 %v4989_v26 }
 0x6a1   : > { %v4772_v22 = vadd.f32 %v4771_v47, %v8902_v4  ;;  %v4773_v3 = vpop.f32.mrb[107].mxu0  ;;  %5232 = vmatmul.mubr.bf16.gmra.mrb[76].mxu1 %v4988_v21  ;;  %v4924_v5 = vmax.f32 %v4768_v32, 0.0 }
 0x6a2   : > { %v4774_v46 = vadd.f32 %v4773_v3, %v8905_v19  ;;  %v4925_v18 = vmax.f32 %v4770_v45, 0.0 }
 0x6a3   : > { %v4926_v62 = vmax.f32 %v4772_v22, 0.0 }
 0x6a4   : > { %v4927_v11 = vmax.f32 %v4774_v46, 0.0 }
 0x6a5   : > { %v4990_v41 = vpack.c.bf16 %v4926_v62, %v4924_v5 }
 0x6a6   : > { %v4991_v25 = vpack.c.bf16 %v4927_v11, %v4925_v18  ;;  %v4777_v8 = vpop.f32.mrb[108].mxu0 }
 0x6a7   : > { %v4778_v57 = vadd.f32 %v4777_v8, %v8902_v4  ;;  %v4779_v10 = vpop.f32.mrb[109].mxu0 }
 0x6a8   : > { %v4780_v36 = vadd.f32 %v4779_v10, %v8905_v19  ;;  %v4781_v24 = vpop.f32.mrb[110].mxu0  ;;  %5239 = vmatprep.mubr.bf16.mxu1 %v4991_v25 }
 0x6a9   : > { %v4782_v49 = vadd.f32 %v4781_v24, %v8902_v4  ;;  %v4783_v7 = vpop.f32.mrb[111].mxu0  ;;  %5240 = vmatmul.mubr.bf16.gmra.mrb[80].mxu1 %v4990_v41  ;;  %v4928_v53 = vmax.f32 %v4778_v57, 0.0 }
 0x6aa   : > { %v4784_v15 = vadd.f32 %v4783_v7, %v8905_v19  ;;  %v4929_v61 = vmax.f32 %v4780_v36, 0.0 }
 0x6ab   : > { %v4930_v27 = vmax.f32 %v4782_v49, 0.0 }
 0x6ac   : > { %v4931_v16 = vmax.f32 %v4784_v15, 0.0 }
 0x6ad   : > { %v4992_v35 = vpack.c.bf16 %v4930_v27, %v4928_v53 }
 0x6ae   : > { %v4993_v14 = vpack.c.bf16 %v4931_v16, %v4929_v61  ;;  %v4787_v52 = vpop.f32.mrb[112].mxu0 }
 0x6af   : > { %v4788_v17 = vadd.f32 %v4787_v52, %v8902_v4  ;;  %v4789_v0 = vpop.f32.mrb[113].mxu0 }
 0x6b0   : > { %v4790_v33 = vadd.f32 %v4789_v0, %v8905_v19  ;;  %v4791_v42 = vpop.f32.mrb[114].mxu0  ;;  %5247 = vmatprep.mubr.bf16.mxu1 %v4993_v14 }
 0x6b1   : > { %v4792_v12 = vadd.f32 %v4791_v42, %v8902_v4  ;;  %v4793_v54 = vpop.f32.mrb[115].mxu0  ;;  %5248 = vmatmul.mubr.bf16.gmra.mrb[84].mxu1 %v4992_v35  ;;  %v4932_v34 = vmax.f32 %v4788_v17, 0.0 }
 0x6b2   : > { %v4794_v43 = vadd.f32 %v4793_v54, %v8905_v19  ;;  %v4933_v31 = vmax.f32 %v4790_v33, 0.0 }
 0x6b3   : > { %v4934_v63 = vmax.f32 %v4792_v12, 0.0 }
 0x6b4   : > { %v4935_v51 = vmax.f32 %v4794_v43, 0.0 }
 0x6b5   : > { %v4994_v2 = vpack.c.bf16 %v4934_v63, %v4932_v34 }
 0x6b6   : > { %v4995_v13 = vpack.c.bf16 %v4935_v51, %v4933_v31  ;;  %v4797_v1 = vpop.f32.mrb[116].mxu0 }
 0x6b7   : > { %v4798_v6 = vadd.f32 %v4797_v1, %v8902_v4  ;;  %v4799_v48 = vpop.f32.mrb[117].mxu0 }
 0x6b8   : > { %v4800_v38 = vadd.f32 %v4799_v48, %v8905_v19  ;;  %v4801_v58 = vpop.f32.mrb[118].mxu0  ;;  %5255 = vmatprep.mubr.bf16.mxu1 %v4995_v13 }
 0x6b9   : > { %v4802_v39 = vadd.f32 %v4801_v58, %v8902_v4  ;;  %v4803_v20 = vpop.f32.mrb[119].mxu0  ;;  %5256 = vmatmul.mubr.bf16.gmra.mrb[88].mxu1 %v4994_v2  ;;  %v4936_v55 = vmax.f32 %v4798_v6, 0.0 }
 0x6ba   : > { %v4804_v28 = vadd.f32 %v4803_v20, %v8905_v19  ;;  %v4937_v44 = vmax.f32 %v4800_v38, 0.0 }
 0x6bb   : > { %v4938_v50 = vmax.f32 %v4802_v39, 0.0 }
 0x6bc   : > { %v4939_v60 = vmax.f32 %v4804_v28, 0.0 }
 0x6bd   : > { %v4996_v59 = vpack.c.bf16 %v4938_v50, %v4936_v55 }
 0x6be   : > { %v4997_v37 = vpack.c.bf16 %v4939_v60, %v4937_v44  ;;  %v4807_v56 = vpop.f32.mrb[120].mxu0 }
 0x6bf   : > { %v4808_v23 = vadd.f32 %v4807_v56, %v8902_v4  ;;  %v4809_v29 = vpop.f32.mrb[121].mxu0 }
 0x6c0   : > { %v4810_v30 = vadd.f32 %v4809_v29, %v8905_v19  ;;  %v4811_v21 = vpop.f32.mrb[122].mxu0  ;;  %5263 = vmatprep.mubr.bf16.mxu1 %v4997_v37 }
 0x6c1   : > { %v4812_v26 = vadd.f32 %v4811_v21, %v8902_v4  ;;  %v4813_v9 = vpop.f32.mrb[123].mxu0  ;;  %5264 = vmatmul.mubr.bf16.gmra.mrb[92].mxu1 %v4996_v59  ;;  %v4940_v40 = vmax.f32 %v4808_v23, 0.0 }
 0x6c2   : > { %v4814_v32 = vadd.f32 %v4813_v9, %v8905_v19  ;;  %v4941_v47 = vmax.f32 %v4810_v30, 0.0 }
 0x6c3   : > { %v4942_v45 = vmax.f32 %v4812_v26, 0.0 }
 0x6c4   : > { %v4943_v22 = vmax.f32 %v4814_v32, 0.0 }
 0x6c5   : > { %v4998_v3 = vpack.c.bf16 %v4942_v45, %v4940_v40 }
 0x6c6   : > { %v4999_v46 = vpack.c.bf16 %v4943_v22, %v4941_v47  ;;  %v4817_v5 = vpop.f32.mrb[124].mxu0 }
 0x6c7   : > { %v4818_v62 = vadd.f32 %v4817_v5, %v8902_v4  ;;  %v4819_v18 = vpop.f32.mrb[125].mxu0 }
 0x6c8   : > { %v4820_v11 = vadd.f32 %v4819_v18, %v8905_v19  ;;  %v4821_v41 = vpop.f32.mrb[126].mxu0  ;;  %5271 = vmatprep.mubr.bf16.mxu1 %v4999_v46 }
 0x6c9   : > { %v4822_v25 = vadd.f32 %v4821_v41, %v8902_v4  ;;  %v4823_v8 = vpop.f32.mrb[127].mxu0  ;;  %5272 = vmatmul.mubr.bf16.gmra.mrb[96].mxu1 %v4998_v3  ;;  %v4944_v10 = vmax.f32 %v4818_v62, 0.0 }
 0x6ca   : > { %v4824_v57 = vadd.f32 %v4823_v8, %v8905_v19  ;;  %v4945_v24 = vmax.f32 %v4820_v11, 0.0 }
 0x6cb   : > { %v4946_v36 = vmax.f32 %v4822_v25, 0.0 }
 0x6cc   : > { %v4947_v49 = vmax.f32 %v4824_v57, 0.0 }
 0x6cd   : > { %v5000_v7 = vpack.c.bf16 %v4946_v36, %v4944_v10 }
 0x6ce   : > { %v5001_v15 = vpack.c.bf16 %v4947_v49, %v4945_v24  ;;  %v4827_v53 = vpop.f32.mrb[128].mxu0 }
 0x6cf   : > { %v4828_v27 = vadd.f32 %v4827_v53, %v8902_v4  ;;  %v4829_v61 = vpop.f32.mrb[129].mxu0 }
 0x6d0   : > { %v4830_v16 = vadd.f32 %v4829_v61, %v8905_v19  ;;  %v4831_v35 = vpop.f32.mrb[130].mxu0  ;;  %5279 = vmatprep.mubr.bf16.mxu1 %v5001_v15 }
 0x6d1   : > { %v4832_v14 = vadd.f32 %v4831_v35, %v8902_v4  ;;  %v4833_v52 = vpop.f32.mrb[131].mxu0  ;;  %5280 = vmatmul.mubr.bf16.gmra.mrb[100].mxu1 %v5000_v7  ;;  %v4948_v0 = vmax.f32 %v4828_v27, 0.0 }
 0x6d2   : > { %v4834_v17 = vadd.f32 %v4833_v52, %v8905_v19  ;;  %v4949_v42 = vmax.f32 %v4830_v16, 0.0 }
 0x6d3   : > { %v4950_v33 = vmax.f32 %v4832_v14, 0.0 }
 0x6d4   : > { %v4951_v12 = vmax.f32 %v4834_v17, 0.0 }
 0x6d5   : > { %v5002_v54 = vpack.c.bf16 %v4950_v33, %v4948_v0 }
 0x6d6   : > { %v5003_v43 = vpack.c.bf16 %v4951_v12, %v4949_v42  ;;  %v4837_v34 = vpop.f32.mrb[132].mxu0 }
 0x6d7   : > { %v4838_v63 = vadd.f32 %v4837_v34, %v8902_v4  ;;  %v4839_v31 = vpop.f32.mrb[133].mxu0 }
 0x6d8   : > { %v4840_v51 = vadd.f32 %v4839_v31, %v8905_v19  ;;  %v4841_v2 = vpop.f32.mrb[134].mxu0  ;;  %5287 = vmatprep.mubr.bf16.mxu1 %v5003_v43 }
 0x6d9   : > { %v4842_v13 = vadd.f32 %v4841_v2, %v8902_v4  ;;  %v4843_v1 = vpop.f32.mrb[135].mxu0  ;;  %5288 = vmatmul.mubr.bf16.gmra.mrb[104].mxu1 %v5002_v54  ;;  %v4952_v48 = vmax.f32 %v4838_v63, 0.0 }
 0x6da   : > { %v4844_v6 = vadd.f32 %v4843_v1, %v8905_v19  ;;  %v4953_v58 = vmax.f32 %v4840_v51, 0.0 }
 0x6db   : > { %v4954_v38 = vmax.f32 %v4842_v13, 0.0 }
 0x6dc   : > { %v4955_v39 = vmax.f32 %v4844_v6, 0.0 }
 0x6dd   : > { %v5004_v20 = vpack.c.bf16 %v4954_v38, %v4952_v48 }
 0x6de   : > { %v5005_v28 = vpack.c.bf16 %v4955_v39, %v4953_v58  ;;  %v4847_v55 = vpop.f32.mrb[136].mxu0 }
 0x6df   : > { %v4848_v50 = vadd.f32 %v4847_v55, %v8902_v4  ;;  %v4849_v44 = vpop.f32.mrb[137].mxu0 }
 0x6e0   : > { %v4850_v60 = vadd.f32 %v4849_v44, %v8905_v19  ;;  %v4851_v59 = vpop.f32.mrb[138].mxu0  ;;  %5295 = vmatprep.mubr.bf16.mxu1 %v5005_v28 }
 0x6e1   : > { %v4852_v37 = vadd.f32 %v4851_v59, %v8902_v4  ;;  %v4853_v56 = vpop.f32.mrb[139].mxu0  ;;  %5296 = vmatmul.mubr.bf16.gmra.mrb[108].mxu1 %v5004_v20  ;;  %v4956_v29 = vmax.f32 %v4848_v50, 0.0 }
 0x6e2   : > { %v4854_v23 = vadd.f32 %v4853_v56, %v8905_v19  ;;  %v4957_v21 = vmax.f32 %v4850_v60, 0.0 }
 0x6e3   : > { %v4958_v30 = vmax.f32 %v4852_v37, 0.0 }
 0x6e4   : > { %v4959_v26 = vmax.f32 %v4854_v23, 0.0 }
 0x6e5   : > { %v5006_v9 = vpack.c.bf16 %v4958_v30, %v4956_v29  ;;  %v8990_v29 = vld [vmem:[%s9114_s5] ss:$0 sm:$0xff] }
 0x6e6   : > { %v5007_v32 = vpack.c.bf16 %v4959_v26, %v4957_v21  ;;  %v4857_v40 = vpop.f32.mrb[140].mxu0 }
 0x6e7   : > { %v4858_v45 = vadd.f32 %v4857_v40, %v8902_v4  ;;  %v4859_v47 = vpop.f32.mrb[141].mxu0 }
 0x6e8   : > { %v4860_v22 = vadd.f32 %v4859_v47, %v8905_v19  ;;  %v4861_v3 = vpop.f32.mrb[142].mxu0  ;;  %5303 = vmatprep.mubr.bf16.mxu1 %v5007_v32 }
 0x6e9   : > { %v4862_v46 = vadd.f32 %v4861_v3, %v8902_v4  ;;  %v4863_v5 = vpop.f32.mrb[143].mxu0  ;;  %5304 = vmatmul.mubr.bf16.gmra.mrb[112].mxu1 %v5006_v9  ;;  %v4960_v18 = vmax.f32 %v4858_v45, 0.0 }
 0x6ea   : > { %v4864_v62 = vadd.f32 %v4863_v5, %v8905_v19  ;;  %v4961_v41 = vmax.f32 %v4860_v22, 0.0 }
 0x6eb   : > { %v4962_v11 = vmax.f32 %v4862_v46, 0.0 }
 0x6ec   : > { %v4963_v25 = vmax.f32 %v4864_v62, 0.0 }
 0x6ed   : > { %v5008_v8 = vpack.c.bf16 %v4962_v11, %v4960_v18 }
 0x6ee   : > { %v5009_v57 = vpack.c.bf16 %v4963_v25, %v4961_v41  ;;  %v4867_v10 = vpop.f32.mrb[144].mxu0 }
 0x6ef   : > { %v4868_v36 = vadd.f32 %v4867_v10, %v8902_v4  ;;  %v4869_v24 = vpop.f32.mrb[145].mxu0 }
 0x6f0   : > { %v4870_v49 = vadd.f32 %v4869_v24, %v8905_v19  ;;  %v4871_v7 = vpop.f32.mrb[146].mxu0  ;;  %5311 = vmatprep.mubr.bf16.mxu1 %v5009_v57 }
 0x6f1   : > { %v4872_v15 = vadd.f32 %v4871_v7, %v8902_v4  ;;  %v4873_v53 = vpop.f32.mrb[147].mxu0  ;;  %5312 = vmatmul.mubr.bf16.gmra.mrb[116].mxu1 %v5008_v8  ;;  %v4964_v61 = vmax.f32 %v4868_v36, 0.0 }
 0x6f2   : > { %v4874_v27 = vadd.f32 %v4873_v53, %v8905_v19  ;;  %v4965_v35 = vmax.f32 %v4870_v49, 0.0 }
 0x6f3   : > { %v4966_v16 = vmax.f32 %v4872_v15, 0.0 }
 0x6f4   : > { %v4967_v14 = vmax.f32 %v4874_v27, 0.0 }
 0x6f5   : > { %v5010_v52 = vpack.c.bf16 %v4966_v16, %v4964_v61 }
 0x6f6   : > { %v5011_v17 = vpack.c.bf16 %v4967_v14, %v4965_v35  ;;  %v4877_v0 = vpop.f32.mrb[148].mxu0 }
 0x6f7   : > { %v4878_v33 = vadd.f32 %v4877_v0, %v8902_v4  ;;  %v4879_v42 = vpop.f32.mrb[149].mxu0 }
 0x6f8   : > { %v4880_v12 = vadd.f32 %v4879_v42, %v8905_v19  ;;  %v4881_v54 = vpop.f32.mrb[150].mxu0  ;;  %5319 = vmatprep.mubr.bf16.mxu1 %v5011_v17 }
 0x6f9   : > { %v4882_v43 = vadd.f32 %v4881_v54, %v8902_v4  ;;  %v4883_v34 = vpop.f32.mrb[151].mxu0  ;;  %5320 = vmatmul.mubr.bf16.gmra.mrb[120].mxu1 %v5010_v52  ;;  %v4968_v31 = vmax.f32 %v4878_v33, 0.0 }
 0x6fa   : > { %v4884_v63 = vadd.f32 %v4883_v34, %v8905_v19  ;;  %v4969_v2 = vmax.f32 %v4880_v12, 0.0 }
 0x6fb   : > { %v4970_v51 = vmax.f32 %v4882_v43, 0.0 }
 0x6fc   : > { %v4971_v13 = vmax.f32 %v4884_v63, 0.0 }
 0x6fd   : > { %v5012_v1 = vpack.c.bf16 %v4970_v51, %v4968_v31 }
 0x6fe   : > { %v5013_v6 = vpack.c.bf16 %v4971_v13, %v4969_v2  ;;  %v4887_v48 = vpop.f32.mrb[152].mxu0 }
 0x6ff   : > { %v4888_v38 = vadd.f32 %v4887_v48, %v8902_v4  ;;  %v4889_v58 = vpop.f32.mrb[153].mxu0 }
 0x700   : > { %v4890_v39 = vadd.f32 %v4889_v58, %v8905_v19  ;;  %v4891_v20 = vpop.f32.mrb[154].mxu0  ;;  %5327 = vmatprep.mubr.bf16.mxu1 %v5013_v6 }
 0x701   : > { %v4892_v28 = vadd.f32 %v4891_v20, %v8902_v4  ;;  %v4893_v55 = vpop.f32.mrb[155].mxu0  ;;  %5328 = vmatmul.mubr.bf16.gmra.mrb[124].mxu1 %v5012_v1  ;;  %v4972_v44 = vmax.f32 %v4888_v38, 0.0 }
 0x702   : > { %v4894_v50 = vadd.f32 %v4893_v55, %v8905_v19  ;;  %v4973_v59 = vmax.f32 %v4890_v39, 0.0 }
 0x703   : > { %v4974_v60 = vmax.f32 %v4892_v28, 0.0 }
 0x704   : > { %v4975_v37 = vmax.f32 %v4894_v50, 0.0 }
 0x705   : > { %v5014_v56 = vpack.c.bf16 %v4974_v60, %v4972_v44 }
 0x706   : > { %v5015_v23 = vpack.c.bf16 %v4975_v37, %v4973_v59 }
 0x708   : > { %5335 = vmatprep.mubr.bf16.mxu1 %v5015_v23 }
 0x709   : > { %5336 = vmatmul.mubr.bf16.gmra.mrb[128].mxu1 %v5014_v56 }
 0x744   : > { %v5185_v30 = vpop.f32.mrb[52].mxu1 }
 0x745   : > { %v5186_v4 = vadd.f32 %v8990_v29, %v5185_v30  ;;  %v5187_v21 = vpop.f32.mrb[53].mxu1 }
 0x746   : > { %v5188_v26 = vpop.f32.mrb[54].mxu1 }
 0x747   : > { %v6230_v9 = vmul.f32 -1.442695, %v5186_v4  ;;  %v5189_v19 = vadd.f32 %v8990_v29, %v5188_v26  ;;  %v5190_v32 = vpop.f32.mrb[55].mxu1 }
 0x749   : > { %6890 = vpow2.f32 %v6230_v9  ;;  %v6231_v40 = vmul.f32 -1.442695, %v5189_v19 }
 0x74b   : > { %6892 = vpow2.f32 %v6231_v40 }
 0x74c   : > { %v5193_v45 = vpop.f32.mrb[56].mxu1 }
 0x74d   : > { %v5194_v47 = vadd.f32 %v8990_v29, %v5193_v45  ;;  %v5195_v22 = vpop.f32.mrb[57].mxu1 }
 0x74e   : > { %v5196_v3 = vpop.f32.mrb[58].mxu1 }
 0x74f   : > { %v6232_v46 = vmul.f32 -1.442695, %v5194_v47  ;;  %v5197_v5 = vadd.f32 %v8990_v29, %v5196_v3  ;;  %v5198_v62 = vpop.f32.mrb[59].mxu1 }
 0x751   : > { %6894 = vpow2.f32 %v6232_v46  ;;  %v6233_v18 = vmul.f32 -1.442695, %v5197_v5 }
 0x753   : > { %v6891_v11 = vpop.eup %6890  ;;  %6896 = vpow2.f32 %v6233_v18 }
 0x754   : > { %v5464_v41 = vadd.f32 1.0, %v6891_v11  ;;  %v5201_v25 = vpop.f32.mrb[60].mxu1 }
 0x755   : > { %v6893_v8 = vpop.eup %6892  ;;  %v5202_v57 = vadd.f32 %v8990_v29, %v5201_v25  ;;  %v5203_v10 = vpop.f32.mrb[61].mxu1 }
 0x756   : > { %v5465_v36 = vadd.f32 1.0, %v6893_v8  ;;  %v5204_v24 = vpop.f32.mrb[62].mxu1  ;;  %6898 = vrcp.f32 %v5464_v41 }
 0x757   : > { %v6234_v49 = vmul.f32 -1.442695, %v5202_v57  ;;  %v5205_v7 = vadd.f32 %v8990_v29, %v5204_v24  ;;  %v5206_v15 = vpop.f32.mrb[63].mxu1 }
 0x758   : > { %6900 = vrcp.f32 %v5465_v36 }
 0x759   : > { %6902 = vpow2.f32 %v6234_v49  ;;  %v6235_v53 = vmul.f32 -1.442695, %v5205_v7 }
 0x75b   : > { %v6895_v27 = vpop.eup %6894  ;;  %6904 = vpow2.f32 %v6235_v53 }
 0x75c   : > { %v5466_v61 = vadd.f32 1.0, %v6895_v27  ;;  %v5209_v16 = vpop.f32.mrb[64].mxu1 }
 0x75d   : > { %v6897_v35 = vpop.eup %6896  ;;  %v5210_v14 = vadd.f32 %v8990_v29, %v5209_v16  ;;  %v5211_v52 = vpop.f32.mrb[65].mxu1 }
 0x75e   : > { %v5467_v17 = vadd.f32 1.0, %v6897_v35  ;;  %v5212_v0 = vpop.f32.mrb[66].mxu1  ;;  %6906 = vrcp.f32 %v5466_v61 }
 0x75f   : > { %v6236_v33 = vmul.f32 -1.442695, %v5210_v14  ;;  %v5213_v42 = vadd.f32 %v8990_v29, %v5212_v0  ;;  %v5214_v12 = vpop.f32.mrb[67].mxu1 }
 0x760   : > { %6908 = vrcp.f32 %v5467_v17  ;;  %v6899_v54 = vpop.eup %6898 }
 0x761   : > { %6910 = vpow2.f32 %v6236_v33  ;;  %v6237_v43 = vmul.f32 -1.442695, %v5213_v42 }
 0x762   : > { %v6901_v34 = vpop.eup %6900 }
 0x763   : > { %v6903_v63 = vpop.eup %6902  ;;  %v6357_v31 = vpack.c.bf16 %v6901_v34, %v6899_v54  ;;  %6912 = vpow2.f32 %v6237_v43 }
 0x764   : > { %v5468_v51 = vadd.f32 1.0, %v6903_v63  ;;  %v5217_v2 = vpop.f32.mrb[68].mxu1 }
 0x765   : > { %v6905_v13 = vpop.eup %6904  ;;  %6358 = vst [vmem:[%s9003_s12] sm:$0xff] %v6357_v31   ;;  %v5218_v1 = vadd.f32 %v8990_v29, %v5217_v2  ;;  %v5219_v6 = vpop.f32.mrb[69].mxu1 }
 0x766   : > { %v5469_v48 = vadd.f32 1.0, %v6905_v13  ;;  %v5220_v38 = vpop.f32.mrb[70].mxu1  ;;  %6914 = vrcp.f32 %v5468_v51 }
 0x767   : > { %v6238_v58 = vmul.f32 -1.442695, %v5218_v1  ;;  %v5221_v39 = vadd.f32 %v8990_v29, %v5220_v38  ;;  %v5222_v20 = vpop.f32.mrb[71].mxu1 }
 0x768   : > { %6916 = vrcp.f32 %v5469_v48  ;;  %v6907_v28 = vpop.eup %6906 }
 0x769   : > { %6918 = vpow2.f32 %v6238_v58  ;;  %v6239_v55 = vmul.f32 -1.442695, %v5221_v39 }
 0x76a   : > { %v6909_v50 = vpop.eup %6908 }
 0x76b   : > { %v6911_v44 = vpop.eup %6910  ;;  %v6362_v60 = vpack.c.bf16 %v6909_v50, %v6907_v28  ;;  %6920 = vpow2.f32 %v6239_v55 }
 0x76c   : > { %v5470_v59 = vadd.f32 1.0, %v6911_v44  ;;  %v5225_v37 = vpop.f32.mrb[72].mxu1 }
 0x76d   : > { %v6913_v56 = vpop.eup %6912  ;;  %6454 = vst [vmem:[%s9003_s12 + $0x8] sm:$0xff] %v6362_v60   ;;  %v5226_v23 = vadd.f32 %v8990_v29, %v5225_v37  ;;  %v5227_v30 = vpop.f32.mrb[73].mxu1 }
 0x76e   : > { %v5471_v4 = vadd.f32 1.0, %v6913_v56  ;;  %v5228_v21 = vpop.f32.mrb[74].mxu1  ;;  %6922 = vrcp.f32 %v5470_v59 }
 0x76f   : > { %v6240_v26 = vmul.f32 -1.442695, %v5226_v23  ;;  %v5229_v9 = vadd.f32 %v8990_v29, %v5228_v21  ;;  %v5230_v19 = vpop.f32.mrb[75].mxu1 }
 0x770   : > { %6924 = vrcp.f32 %v5471_v4  ;;  %v6915_v32 = vpop.eup %6914 }
 0x771   : > { %6926 = vpow2.f32 %v6240_v26  ;;  %v6241_v40 = vmul.f32 -1.442695, %v5229_v9 }
 0x772   : > { %v6917_v45 = vpop.eup %6916 }
 0x773   : > { %v6919_v47 = vpop.eup %6918  ;;  %v6367_v22 = vpack.c.bf16 %v6917_v45, %v6915_v32  ;;  %6928 = vpow2.f32 %v6241_v40 }
 0x774   : > { %v5472_v3 = vadd.f32 1.0, %v6919_v47  ;;  %v5233_v46 = vpop.f32.mrb[76].mxu1 }
 0x775   : > { %v6921_v5 = vpop.eup %6920  ;;  %6455 = vst [vmem:[%s9003_s12 + $0x10] sm:$0xff] %v6367_v22   ;;  %v5234_v62 = vadd.f32 %v8990_v29, %v5233_v46  ;;  %v5235_v18 = vpop.f32.mrb[77].mxu1 }
 0x776   : > { %v5473_v11 = vadd.f32 1.0, %v6921_v5  ;;  %v5236_v41 = vpop.f32.mrb[78].mxu1  ;;  %6930 = vrcp.f32 %v5472_v3 }
 0x777   : > { %v6242_v25 = vmul.f32 -1.442695, %v5234_v62  ;;  %v5237_v8 = vadd.f32 %v8990_v29, %v5236_v41  ;;  %v5238_v57 = vpop.f32.mrb[79].mxu1 }
 0x778   : > { %6932 = vrcp.f32 %v5473_v11  ;;  %v6923_v10 = vpop.eup %6922 }
 0x779   : > { %6934 = vpow2.f32 %v6242_v25  ;;  %v6243_v36 = vmul.f32 -1.442695, %v5237_v8 }
 0x77a   : > { %v6925_v24 = vpop.eup %6924 }
 0x77b   : > { %v6927_v49 = vpop.eup %6926  ;;  %v6372_v7 = vpack.c.bf16 %v6925_v24, %v6923_v10  ;;  %6936 = vpow2.f32 %v6243_v36 }
 0x77c   : > { %v5474_v15 = vadd.f32 1.0, %v6927_v49  ;;  %v5241_v53 = vpop.f32.mrb[80].mxu1 }
 0x77d   : > { %v6929_v27 = vpop.eup %6928  ;;  %6456 = vst [vmem:[%s9003_s12 + $0x18] sm:$0xff] %v6372_v7   ;;  %v5242_v61 = vadd.f32 %v8990_v29, %v5241_v53  ;;  %v5243_v16 = vpop.f32.mrb[81].mxu1 }
 0x77e   : > { %v5475_v35 = vadd.f32 1.0, %v6929_v27  ;;  %v5244_v14 = vpop.f32.mrb[82].mxu1  ;;  %6938 = vrcp.f32 %v5474_v15 }
 0x77f   : > { %v6244_v52 = vmul.f32 -1.442695, %v5242_v61  ;;  %v5245_v17 = vadd.f32 %v8990_v29, %v5244_v14  ;;  %v5246_v0 = vpop.f32.mrb[83].mxu1 }
 0x780   : > { %6940 = vrcp.f32 %v5475_v35  ;;  %v6931_v33 = vpop.eup %6930 }
 0x781   : > { %6942 = vpow2.f32 %v6244_v52  ;;  %v6245_v42 = vmul.f32 -1.442695, %v5245_v17 }
 0x782   : > { %v6933_v12 = vpop.eup %6932 }
 0x783   : > { %v6935_v54 = vpop.eup %6934  ;;  %v6377_v43 = vpack.c.bf16 %v6933_v12, %v6931_v33  ;;  %6944 = vpow2.f32 %v6245_v42 }
 0x784   : > { %v5476_v34 = vadd.f32 1.0, %v6935_v54  ;;  %v5249_v63 = vpop.f32.mrb[84].mxu1 }
 0x785   : > { %v6937_v31 = vpop.eup %6936  ;;  %6457 = vst [vmem:[%s9003_s12 + $0x20] sm:$0xff] %v6377_v43   ;;  %v5250_v51 = vadd.f32 %v8990_v29, %v5249_v63  ;;  %v5251_v2 = vpop.f32.mrb[85].mxu1 }
 0x786   : > { %v5477_v13 = vadd.f32 1.0, %v6937_v31  ;;  %v5252_v1 = vpop.f32.mrb[86].mxu1  ;;  %6946 = vrcp.f32 %v5476_v34 }
 0x787   : > { %v6246_v6 = vmul.f32 -1.442695, %v5250_v51  ;;  %v5253_v48 = vadd.f32 %v8990_v29, %v5252_v1  ;;  %v5254_v38 = vpop.f32.mrb[87].mxu1 }
 0x788   : > { %6948 = vrcp.f32 %v5477_v13  ;;  %v6939_v58 = vpop.eup %6938 }
 0x789   : > { %6950 = vpow2.f32 %v6246_v6  ;;  %v6247_v39 = vmul.f32 -1.442695, %v5253_v48 }
 0x78a   : > { %v6941_v20 = vpop.eup %6940 }
 0x78b   : > { %v6943_v28 = vpop.eup %6942  ;;  %v6382_v55 = vpack.c.bf16 %v6941_v20, %v6939_v58  ;;  %6952 = vpow2.f32 %v6247_v39 }
 0x78c   : > { %v5478_v50 = vadd.f32 1.0, %v6943_v28  ;;  %v5257_v44 = vpop.f32.mrb[88].mxu1 }
 0x78d   : > { %v6945_v60 = vpop.eup %6944  ;;  %6458 = vst [vmem:[%s9003_s12 + $0x28] sm:$0xff] %v6382_v55   ;;  %v5258_v59 = vadd.f32 %v8990_v29, %v5257_v44  ;;  %v5259_v37 = vpop.f32.mrb[89].mxu1 }
 0x78e   : > { %v5479_v56 = vadd.f32 1.0, %v6945_v60  ;;  %v5260_v23 = vpop.f32.mrb[90].mxu1  ;;  %6954 = vrcp.f32 %v5478_v50 }
 0x78f   : > { %v6248_v30 = vmul.f32 -1.442695, %v5258_v59  ;;  %v5261_v4 = vadd.f32 %v8990_v29, %v5260_v23  ;;  %v5262_v21 = vpop.f32.mrb[91].mxu1 }
 0x790   : > { %6956 = vrcp.f32 %v5479_v56  ;;  %v6947_v26 = vpop.eup %6946 }
 0x791   : > { %6958 = vpow2.f32 %v6248_v30  ;;  %v6249_v9 = vmul.f32 -1.442695, %v5261_v4 }
 0x792   : > { %v6949_v19 = vpop.eup %6948 }
 0x793   : > { %v6951_v32 = vpop.eup %6950  ;;  %v6387_v40 = vpack.c.bf16 %v6949_v19, %v6947_v26  ;;  %6960 = vpow2.f32 %v6249_v9 }
 0x794   : > { %v5480_v45 = vadd.f32 1.0, %v6951_v32  ;;  %v5265_v47 = vpop.f32.mrb[92].mxu1 }
 0x795   : > { %v6953_v22 = vpop.eup %6952  ;;  %6459 = vst [vmem:[%s9003_s12 + $0x30] sm:$0xff] %v6387_v40   ;;  %v5266_v3 = vadd.f32 %v8990_v29, %v5265_v47  ;;  %v5267_v46 = vpop.f32.mrb[93].mxu1 }
 0x796   : > { %v5481_v5 = vadd.f32 1.0, %v6953_v22  ;;  %v5268_v62 = vpop.f32.mrb[94].mxu1  ;;  %6962 = vrcp.f32 %v5480_v45 }
 0x797   : > { %v6250_v18 = vmul.f32 -1.442695, %v5266_v3  ;;  %v5269_v11 = vadd.f32 %v8990_v29, %v5268_v62  ;;  %v5270_v41 = vpop.f32.mrb[95].mxu1 }
 0x798   : > { %6964 = vrcp.f32 %v5481_v5  ;;  %v6955_v25 = vpop.eup %6954 }
 0x799   : > { %6966 = vpow2.f32 %v6250_v18  ;;  %v6251_v8 = vmul.f32 -1.442695, %v5269_v11 }
 0x79a   : > { %v6957_v57 = vpop.eup %6956 }
 0x79b   : > { %v6959_v10 = vpop.eup %6958  ;;  %v6392_v36 = vpack.c.bf16 %v6957_v57, %v6955_v25  ;;  %6968 = vpow2.f32 %v6251_v8 }
 0x79c   : > { %v5482_v24 = vadd.f32 1.0, %v6959_v10  ;;  %v5273_v49 = vpop.f32.mrb[96].mxu1 }
 0x79d   : > { %v6961_v7 = vpop.eup %6960  ;;  %6460 = vst [vmem:[%s9003_s12 + $0x38] sm:$0xff] %v6392_v36   ;;  %v5274_v15 = vadd.f32 %v8990_v29, %v5273_v49  ;;  %v5275_v53 = vpop.f32.mrb[97].mxu1 }
 0x79e   : > { %v5483_v27 = vadd.f32 1.0, %v6961_v7  ;;  %v5276_v61 = vpop.f32.mrb[98].mxu1  ;;  %6970 = vrcp.f32 %v5482_v24 }
 0x79f   : > { %v6252_v16 = vmul.f32 -1.442695, %v5274_v15  ;;  %v5277_v35 = vadd.f32 %v8990_v29, %v5276_v61  ;;  %v5278_v14 = vpop.f32.mrb[99].mxu1 }
 0x7a0   : > { %6972 = vrcp.f32 %v5483_v27  ;;  %v6963_v52 = vpop.eup %6962 }
 0x7a1   : > { %6974 = vpow2.f32 %v6252_v16  ;;  %v6253_v17 = vmul.f32 -1.442695, %v5277_v35 }
 0x7a2   : > { %v6965_v0 = vpop.eup %6964 }
 0x7a3   : > { %v6967_v33 = vpop.eup %6966  ;;  %v6397_v42 = vpack.c.bf16 %v6965_v0, %v6963_v52  ;;  %6976 = vpow2.f32 %v6253_v17 }
 0x7a4   : > { %v5484_v12 = vadd.f32 1.0, %v6967_v33  ;;  %v5281_v54 = vpop.f32.mrb[100].mxu1 }
 0x7a5   : > { %v6969_v43 = vpop.eup %6968  ;;  %6461 = vst [vmem:[%s9003_s12 + $0x40] sm:$0xff] %v6397_v42   ;;  %v5282_v34 = vadd.f32 %v8990_v29, %v5281_v54  ;;  %v5283_v63 = vpop.f32.mrb[101].mxu1 }
 0x7a6   : > { %v5485_v31 = vadd.f32 1.0, %v6969_v43  ;;  %v5284_v51 = vpop.f32.mrb[102].mxu1  ;;  %6978 = vrcp.f32 %v5484_v12 }
 0x7a7   : > { %v6254_v2 = vmul.f32 -1.442695, %v5282_v34  ;;  %v5285_v13 = vadd.f32 %v8990_v29, %v5284_v51  ;;  %v5286_v1 = vpop.f32.mrb[103].mxu1 }
 0x7a8   : > { %6980 = vrcp.f32 %v5485_v31  ;;  %v6971_v6 = vpop.eup %6970 }
 0x7a9   : > { %6982 = vpow2.f32 %v6254_v2  ;;  %v6255_v48 = vmul.f32 -1.442695, %v5285_v13 }
 0x7aa   : > { %v6973_v38 = vpop.eup %6972 }
 0x7ab   : > { %v6975_v58 = vpop.eup %6974  ;;  %v6402_v39 = vpack.c.bf16 %v6973_v38, %v6971_v6  ;;  %6984 = vpow2.f32 %v6255_v48 }
 0x7ac   : > { %v5486_v20 = vadd.f32 1.0, %v6975_v58  ;;  %v5289_v28 = vpop.f32.mrb[104].mxu1 }
 0x7ad   : > { %v6977_v55 = vpop.eup %6976  ;;  %6462 = vst [vmem:[%s9003_s12 + $0x48] sm:$0xff] %v6402_v39   ;;  %v5290_v50 = vadd.f32 %v8990_v29, %v5289_v28  ;;  %v5291_v44 = vpop.f32.mrb[105].mxu1 }
 0x7ae   : > { %v5487_v60 = vadd.f32 1.0, %v6977_v55  ;;  %v5292_v59 = vpop.f32.mrb[106].mxu1  ;;  %6986 = vrcp.f32 %v5486_v20 }
 0x7af   : > { %v6256_v37 = vmul.f32 -1.442695, %v5290_v50  ;;  %v5293_v56 = vadd.f32 %v8990_v29, %v5292_v59  ;;  %v5294_v23 = vpop.f32.mrb[107].mxu1 }
 0x7b0   : > { %6988 = vrcp.f32 %v5487_v60  ;;  %v6979_v30 = vpop.eup %6978 }
 0x7b1   : > { %6990 = vpow2.f32 %v6256_v37  ;;  %v6257_v4 = vmul.f32 -1.442695, %v5293_v56 }
 0x7b2   : > { %v6981_v21 = vpop.eup %6980 }
 0x7b3   : > { %v6983_v26 = vpop.eup %6982  ;;  %v6407_v9 = vpack.c.bf16 %v6981_v21, %v6979_v30  ;;  %6992 = vpow2.f32 %v6257_v4 }
 0x7b4   : > { %v5488_v19 = vadd.f32 1.0, %v6983_v26  ;;  %v5297_v32 = vpop.f32.mrb[108].mxu1 }
 0x7b5   : > { %v6985_v40 = vpop.eup %6984  ;;  %6463 = vst [vmem:[%s9003_s12 + $0x50] sm:$0xff] %v6407_v9   ;;  %v5298_v45 = vadd.f32 %v8990_v29, %v5297_v32  ;;  %v5299_v47 = vpop.f32.mrb[109].mxu1 }
 0x7b6   : > { %v5489_v22 = vadd.f32 1.0, %v6985_v40  ;;  %v5300_v3 = vpop.f32.mrb[110].mxu1  ;;  %6994 = vrcp.f32 %v5488_v19 }
 0x7b7   : > { %v6258_v46 = vmul.f32 -1.442695, %v5298_v45  ;;  %v5301_v5 = vadd.f32 %v8990_v29, %v5300_v3  ;;  %v5302_v62 = vpop.f32.mrb[111].mxu1 }
 0x7b8   : > { %6996 = vrcp.f32 %v5489_v22  ;;  %v6987_v18 = vpop.eup %6986 }
 0x7b9   : > { %6998 = vpow2.f32 %v6258_v46  ;;  %v6259_v11 = vmul.f32 -1.442695, %v5301_v5 }
 0x7ba   : > { %v6989_v41 = vpop.eup %6988 }
 0x7bb   : > { %v6991_v25 = vpop.eup %6990  ;;  %v6412_v8 = vpack.c.bf16 %v6989_v41, %v6987_v18  ;;  %7000 = vpow2.f32 %v6259_v11 }
 0x7bc   : > { %v5490_v57 = vadd.f32 1.0, %v6991_v25  ;;  %v5305_v10 = vpop.f32.mrb[112].mxu1 }
 0x7bd   : > { %v6993_v36 = vpop.eup %6992  ;;  %6464 = vst [vmem:[%s9003_s12 + $0x58] sm:$0xff] %v6412_v8   ;;  %v5306_v24 = vadd.f32 %v8990_v29, %v5305_v10  ;;  %v5307_v49 = vpop.f32.mrb[113].mxu1 }
 0x7be   : > { %v5491_v7 = vadd.f32 1.0, %v6993_v36  ;;  %v5308_v15 = vpop.f32.mrb[114].mxu1  ;;  %7002 = vrcp.f32 %v5490_v57 }
 0x7bf   : > { %v6260_v53 = vmul.f32 -1.442695, %v5306_v24  ;;  %v5309_v27 = vadd.f32 %v8990_v29, %v5308_v15  ;;  %v5310_v61 = vpop.f32.mrb[115].mxu1 }
 0x7c0   : > { %7004 = vrcp.f32 %v5491_v7  ;;  %v6995_v16 = vpop.eup %6994 }
 0x7c1   : > { %7006 = vpow2.f32 %v6260_v53  ;;  %v6261_v35 = vmul.f32 -1.442695, %v5309_v27 }
 0x7c2   : > { %v6997_v14 = vpop.eup %6996 }
 0x7c3   : > { %v6999_v52 = vpop.eup %6998  ;;  %v6417_v17 = vpack.c.bf16 %v6997_v14, %v6995_v16  ;;  %7008 = vpow2.f32 %v6261_v35 }
 0x7c4   : > { %v5492_v0 = vadd.f32 1.0, %v6999_v52  ;;  %v5313_v33 = vpop.f32.mrb[116].mxu1 }
 0x7c5   : > { %v7001_v42 = vpop.eup %7000  ;;  %6465 = vst [vmem:[%s9003_s12 + $0x60] sm:$0xff] %v6417_v17   ;;  %v5314_v12 = vadd.f32 %v8990_v29, %v5313_v33  ;;  %v5315_v54 = vpop.f32.mrb[117].mxu1 }
 0x7c6   : > { %v5493_v43 = vadd.f32 1.0, %v7001_v42  ;;  %v5316_v34 = vpop.f32.mrb[118].mxu1  ;;  %7010 = vrcp.f32 %v5492_v0 }
 0x7c7   : > { %v6262_v63 = vmul.f32 -1.442695, %v5314_v12  ;;  %v5317_v31 = vadd.f32 %v8990_v29, %v5316_v34  ;;  %v5318_v51 = vpop.f32.mrb[119].mxu1 }
 0x7c8   : > { %7012 = vrcp.f32 %v5493_v43  ;;  %v7003_v2 = vpop.eup %7002 }
 0x7c9   : > { %7014 = vpow2.f32 %v6262_v63  ;;  %v6263_v13 = vmul.f32 -1.442695, %v5317_v31 }
 0x7ca   : > { %v7005_v1 = vpop.eup %7004 }
 0x7cb   : > { %v7007_v6 = vpop.eup %7006  ;;  %v6422_v48 = vpack.c.bf16 %v7005_v1, %v7003_v2  ;;  %7016 = vpow2.f32 %v6263_v13 }
 0x7cc   : > { %v5494_v38 = vadd.f32 1.0, %v7007_v6  ;;  %v5321_v58 = vpop.f32.mrb[120].mxu1 }
 0x7cd   : > { %v7009_v39 = vpop.eup %7008  ;;  %6466 = vst [vmem:[%s9003_s12 + $0x68] sm:$0xff] %v6422_v48   ;;  %v5322_v20 = vadd.f32 %v8990_v29, %v5321_v58  ;;  %v5323_v28 = vpop.f32.mrb[121].mxu1 }
 0x7ce   : > { %v5495_v55 = vadd.f32 1.0, %v7009_v39  ;;  %v5324_v50 = vpop.f32.mrb[122].mxu1  ;;  %7018 = vrcp.f32 %v5494_v38 }
 0x7cf   : > { %v6264_v44 = vmul.f32 -1.442695, %v5322_v20  ;;  %v5325_v60 = vadd.f32 %v8990_v29, %v5324_v50  ;;  %v5326_v59 = vpop.f32.mrb[123].mxu1 }
 0x7d0   : > { %7020 = vrcp.f32 %v5495_v55  ;;  %v7011_v37 = vpop.eup %7010 }
 0x7d1   : > { %7022 = vpow2.f32 %v6264_v44  ;;  %v6265_v56 = vmul.f32 -1.442695, %v5325_v60 }
 0x7d2   : > { %v7013_v23 = vpop.eup %7012 }
 0x7d3   : > { %v7015_v30 = vpop.eup %7014  ;;  %v6427_v4 = vpack.c.bf16 %v7013_v23, %v7011_v37  ;;  %7024 = vpow2.f32 %v6265_v56 }
 0x7d4   : > { %v5496_v21 = vadd.f32 1.0, %v7015_v30  ;;  %v5329_v26 = vpop.f32.mrb[124].mxu1 }
 0x7d5   : > { %v7017_v9 = vpop.eup %7016  ;;  %6467 = vst [vmem:[%s9003_s12 + $0x70] sm:$0xff] %v6427_v4   ;;  %v5330_v19 = vadd.f32 %v8990_v29, %v5329_v26  ;;  %v5331_v32 = vpop.f32.mrb[125].mxu1 }
 0x7d6   : > { %v5497_v40 = vadd.f32 1.0, %v7017_v9  ;;  %v5332_v45 = vpop.f32.mrb[126].mxu1  ;;  %7026 = vrcp.f32 %v5496_v21 }
 0x7d7   : > { %v6266_v47 = vmul.f32 -1.442695, %v5330_v19  ;;  %v5333_v22 = vadd.f32 %v8990_v29, %v5332_v45  ;;  %v5334_v3 = vpop.f32.mrb[127].mxu1 }
 0x7d8   : > { %7028 = vrcp.f32 %v5497_v40  ;;  %v7019_v46 = vpop.eup %7018 }
 0x7d9   : > { %7030 = vpow2.f32 %v6266_v47  ;;  %v6267_v5 = vmul.f32 -1.442695, %v5333_v22 }
 0x7da   : > { %v7021_v62 = vpop.eup %7020 }
 0x7db   : > { %v7023_v18 = vpop.eup %7022  ;;  %v6432_v11 = vpack.c.bf16 %v7021_v62, %v7019_v46  ;;  %7032 = vpow2.f32 %v6267_v5 }
 0x7dc   : > { %v5498_v41 = vadd.f32 1.0, %v7023_v18  ;;  %v5337_v25 = vpop.f32.mrb[128].mxu1 }
 0x7dd   : > { %v7025_v8 = vpop.eup %7024  ;;  %6468 = vst [vmem:[%s9003_s12 + $0x78] sm:$0xff] %v6432_v11   ;;  %v5338_v57 = vadd.f32 %v8990_v29, %v5337_v25  ;;  %v5339_v10 = vpop.f32.mrb[129].mxu1 }
 0x7de   : > { %v5499_v36 = vadd.f32 1.0, %v7025_v8  ;;  %v5340_v24 = vpop.f32.mrb[130].mxu1  ;;  %7034 = vrcp.f32 %v5498_v41 }
 0x7df   : > { %v6268_v49 = vmul.f32 -1.442695, %v5338_v57  ;;  %v5341_v7 = vadd.f32 %v8990_v29, %v5340_v24  ;;  %v5342_v15 = vpop.f32.mrb[131].mxu1 }
 0x7e0   : > { %7036 = vrcp.f32 %v5499_v36  ;;  %v7027_v53 = vpop.eup %7026 }
 0x7e1   : > { %7038 = vpow2.f32 %v6268_v49  ;;  %v6269_v27 = vmul.f32 -1.442695, %v5341_v7 }
 0x7e2   : > { %v7029_v61 = vpop.eup %7028 }
 0x7e3   : > { %v7031_v16 = vpop.eup %7030  ;;  %v6437_v35 = vpack.c.bf16 %v7029_v61, %v7027_v53  ;;  %7040 = vpow2.f32 %v6269_v27 }
 0x7e4   : > { %v5500_v14 = vadd.f32 1.0, %v7031_v16 }
 0x7e5   : > { %v7033_v52 = vpop.eup %7032  ;;  %6469 = vst [vmem:[%s9003_s12 + $0x80] sm:$0xff] %v6437_v35  }
 0x7e6   : > { %v5501_v17 = vadd.f32 1.0, %v7033_v52  ;;  %7042 = vrcp.f32 %v5500_v14 }
 0x7e8   : > { %7044 = vrcp.f32 %v5501_v17  ;;  %v7035_v29 = vpop.eup %7034 }
 0x7ea   : > { %v7037_v0 = vpop.eup %7036 }
 0x7eb   : > { %v7039_v33 = vpop.eup %7038  ;;  %v6442_v42 = vpack.c.bf16 %v7037_v0, %v7035_v29 }
 0x7ec   : > { %v5502_v12 = vadd.f32 1.0, %v7039_v33 }
 0x7ed   : > { %v7041_v54 = vpop.eup %7040  ;;  %6470 = vst [vmem:[%s9003_s12 + $0x88] sm:$0xff] %v6442_v42  }
 0x7ee   : > { %v5503_v43 = vadd.f32 1.0, %v7041_v54  ;;  %7046 = vrcp.f32 %v5502_v12 }
 0x7f0   : > { %7048 = vrcp.f32 %v5503_v43  ;;  %v7043_v34 = vpop.eup %7042 }
 0x7f2   : > { %v7045_v63 = vpop.eup %7044 }
 0x7f3   : > { %v6447_v31 = vpack.c.bf16 %v7045_v63, %v7043_v34 }
 0x7f5   : > { %6471 = vst [vmem:[%s9003_s12 + $0x90] sm:$0xff] %v6447_v31  }
 0x7f8   : > { %v7047_v51 = vpop.eup %7046 }
 0x7fa   : > { %v7049_v2 = vpop.eup %7048 }
 0x7fb   : > { %v6452_v13 = vpack.c.bf16 %v7049_v2, %v7047_v51 }
 0x7fd   : > { %6472 = vst [vmem:[%s9003_s12 + $0x98] sm:$0xff] %v6452_v13  }
 0x7fe   : > { %7171 = shalt.err (!%p7168_p7)
}
 0x7ff   : > { %s7172_s20 = scalar_lea.hbm %s9061_s16, 2560  ;;  %s7176_s29 = scalar_lea.hbm %s9115_s6, 5120 }
 0x800   : > { %p7173_p8 = scmp.ne.s32.totalorder %s9061_s16, %s7172_s20  ;;  %p7177_p1 = scmp.lt.u32.totalorder %s9061_s16, %s9115_s6 }
 0x801   : > { %p7178_p0 = scmp.lt.u32.totalorder %s7176_s29, %s7172_s20  ;;  %p7180_p6 = scmp.lt.u32.totalorder %s7172_s20, %s9061_s16 }
 0x802   : > { %p7174_p11 = pnand %p7173_p8, %p9181_p9 }
 0x803   : > { %p7179_p5 = por %p7178_p0, %p7177_p1 }
 0x804   : > { %p7175_p13 = pneg %p7174_p11 }
 0x805   : > { %p7181_p10 = por %p7180_p6, %p7179_p5 }
 0x807   : > { %p7182_p12 = pnand %p7181_p10, %p7175_p13 }
 0x809   : > { %7185 = shalt.err (!%p7182_p12)
}
 0x80a   : > { %s7232_s14 = smov 64   ;;  %s7233_s9 = smov 4  }
 0x80b   : > { %6534 = dma.vmem_to_hbm [thread:$0]  (%p9181_p9), %s9063_s11, 2560, %s9061_s16, %s9068_s13, %s7232_s14, %s7232_s14, %s7233_s9  }
 0x80c PF: > { %p6546_p2 = scmp.ge.s32.totalorder %s7224_s24, 2  ;;  %s5813_s15 = sand.u32 1, %s7212_s21  }
 0x80d   : > { %p9182_p3 = scmp.ne.s32.totalorder %s9124_s8, 0  ;;  %s5814_s17 = scalar_lea.sflag [#allocation4], %s5813_s15 }
 0x80f   : > { %p6541_p4 = pnand %p6546_p2, %p9182_p3 }
 0x811   : > { %7207 = dma.done.wait (!%p6541_p4), %s5814_s17, 2560  }
 0x812   : > { %7209 = vsyncadd (!%p6541_p4), %s5814_s17, 4294964736  ;;  %p17_p7 = scmp.ge.s32.totalorder %s7294_s27, 4   ;;  %s9183_s21 = smov %s7216_s22 }
 0x813   : > { %s9184_s22 = smov %s7220_s23  ;;  %s9185_s23 = smov %s7305_s30 }
 0x814   : > { %s9186_s24 = smov %s7294_s27  ;;  %19 = sbr.rel (!%p17_p7) target bundleno = 4 (0x4), region = 97 }
 0x81b   :  { %5819 = vsyncpa [#allocation3], 1 }
 0x81c   :  { %5821 = vsyncpa [#allocation3 + $0x1], 1 }
 0x81d   :  { %5822 = vsyncpa [#allocation4], 1 }
 0x81e   :  { %5824 = vsyncpa [#allocation4 + $0x1], 1 }

</bundles_post_ra>
